<compile_context>
chip_gen: v6e
topology: v6e:2x2x1
jax: 0.10.0
libtpu: 0.0.40
codegen_flags: <defaults>
</compile_context>

<pallas_src>
import functools
import math

import jax
import jax.numpy as jnp
from jax.experimental import pallas as pl
from jax.experimental.pallas import tpu as pltpu


_GELU_C = math.sqrt(2.0 / math.pi)


def _round_up(x, m):
    return ((x + m - 1) // m) * m


# ----------------------------- fused Pallas kernel -----------------------------

def _fused_decoder_kernel(enc_ref, img_w_ref, img_b_ref, tok_pos_ref, bias_ref,
                          ln1_g_ref, ln1_b_ref, attn_w_ref, attn_b_ref,
                          proj_w_ref, proj_b_ref, ln2_g_ref, ln2_b_ref,
                          fc_w_ref, fc_b_ref, mproj_w_ref, mproj_b_ref,
                          lnf_g_ref, lnf_b_ref, wte_ref,
                          logits_ref,
                          *, B, B_pad, S_pad, D, D_pad, H, HP, n_layer, scale, eps):
    f32 = jnp.float32
    M = B * S_pad
    inv_d = 1.0 / D
    nt = (((1,), (1,)), ((), ()))        # contract last dims:  A @ B^T on the MXU

    def layer_norm(x, g, b):
        # Stats over the D real features only (padded lanes of x are zero, so the
        # full-lane sums equal the real-feature sums).  gamma/beta are zero on the
        # padded lanes -> output stays zero there.
        mean = jnp.sum(x, axis=-1, keepdims=True) * inv_d
        ex2 = jnp.sum(x * x, axis=-1, keepdims=True) * inv_d
        var = ex2 - mean * mean
        xn = (x - mean) * jax.lax.rsqrt(var + eps)
        return xn * g + b

    # ---- embeddings: (token + position) precomputed in glue; add the image
    #      embedding (Linear(encoder_dim -> n_embd)) at row 0 of each sequence.
    img = jnp.dot(enc_ref[...], img_w_ref[...],
                  preferred_element_type=f32) + img_b_ref[...]        # (B_pad, D_pad)
    rid = jax.lax.broadcasted_iota(jnp.int32, (M, B_pad), 0)
    cid = jax.lax.broadcasted_iota(jnp.int32, (M, B_pad), 1)
    sel = (rid == cid * S_pad).astype(f32)       # one-hot: img[b] -> row b*S_pad
    h = tok_pos_ref[...] + jnp.dot(sel, img, preferred_element_type=f32)  # (M, D_pad)

    for l in range(n_layer):
        # ------------------------- attention block -------------------------
        x = layer_norm(h, ln1_g_ref[l], ln1_b_ref[l])                 # (M, D_pad)
        attn_acc = [None] * B
        for hh in range(H):
            # per-head q/k/v weights live in their own 128-lane-aligned blocks
            w_q = attn_w_ref[l, :, pl.ds(hh * HP, HP)]                # (D_pad, HP)
            w_k = attn_w_ref[l, :, pl.ds((H + hh) * HP, HP)]
            w_v = attn_w_ref[l, :, pl.ds((2 * H + hh) * HP, HP)]
            b_q = attn_b_ref[l, :, pl.ds(hh * HP, HP)]                # (1, HP)
            b_k = attn_b_ref[l, :, pl.ds((H + hh) * HP, HP)]
            b_v = attn_b_ref[l, :, pl.ds((2 * H + hh) * HP, HP)]
            w_o = proj_w_ref[l, pl.ds(hh * HP, HP), :]                # (HP, D_pad)

            q_all = jnp.dot(x, w_q, preferred_element_type=f32) + b_q   # (M, HP)
            k_all = jnp.dot(x, w_k, preferred_element_type=f32) + b_k
            v_all = jnp.dot(x, w_v, preferred_element_type=f32) + b_v

            for b in range(B):
                r = b * S_pad
                q = q_all[r:r + S_pad, :]
                k = k_all[r:r + S_pad, :]
                v = v_all[r:r + S_pad, :]
                s = jax.lax.dot_general(q, k, nt,
                                        preferred_element_type=f32) * scale
                s = s + bias_ref[b]                 # causal + padding bias (precomputed)
                m = jnp.max(s, axis=-1, keepdims=True)
                p = jnp.exp(s - m)
                p = p * pl.reciprocal(jnp.sum(p, axis=-1, keepdims=True),
                                      approx=True)
                o = jnp.dot(p, v, preferred_element_type=f32)         # (S_pad, HP)
                contrib = jnp.dot(o, w_o, preferred_element_type=f32)  # (S_pad, D_pad)
                attn_acc[b] = contrib if attn_acc[b] is None else attn_acc[b] + contrib

        attn = attn_acc[0] if B == 1 else jnp.concatenate(attn_acc, axis=0)
        h = h + attn + proj_b_ref[l]

        # ---------------------------- MLP block ----------------------------
        x = layer_norm(h, ln2_g_ref[l], ln2_b_ref[l])
        f = jnp.dot(x, fc_w_ref[l], preferred_element_type=f32) + fc_b_ref[l]
        f = 0.5 * f * (1.0 + jnp.tanh(_GELU_C * (f + 0.044715 * (f * f * f))))
        h = h + jnp.dot(f, mproj_w_ref[l],
                        preferred_element_type=f32) + mproj_b_ref[l]

    # -------------- final LN + tied LM head (no transposed weight) --------------
    xf = layer_norm(h, lnf_g_ref[...], lnf_b_ref[...])
    logits_ref[...] = jax.lax.dot_general(xf, wte_ref[...], nt,
                                          preferred_element_type=f32)


# ----------------------------- params & packing -----------------------------

def init_params(key, *, vocab, n_embd, n_head, n_layer, n_inner, encoder_dim, max_pos):
    std = 0.02
    keys = jax.random.split(key, 6 + 12 * n_layer)
    ki = iter(keys)

    def nrm(shape, s=std):
        return jax.random.normal(next(ki), shape, jnp.float32) * s

    p = {
        "wte": nrm((vocab, n_embd)),
        "wpe": nrm((max_pos, n_embd)),
        "img_w": nrm((encoder_dim, n_embd)),
        "img_b": nrm((n_embd,)),
        "lnf_g": 1.0 + nrm((n_embd,)),
        "lnf_b": nrm((n_embd,)),
        "layers": [],
    }
    for _ in range(n_layer):
        p["layers"].append({
            "ln1_g": 1.0 + nrm((n_embd,)),
            "ln1_b": nrm((n_embd,)),
            "attn_w": nrm((n_embd, 3 * n_embd)),
            "attn_b": nrm((3 * n_embd,)),
            "proj_w": nrm((n_embd, n_embd)),
            "proj_b": nrm((n_embd,)),
            "ln2_g": 1.0 + nrm((n_embd,)),
            "ln2_b": nrm((n_embd,)),
            "fc_w": nrm((n_embd, n_inner)),
            "fc_b": nrm((n_inner,)),
            "mproj_w": nrm((n_inner, n_embd)),
            "mproj_b": nrm((n_embd,)),
        })
    return p


def pack_params(params, *, n_head):
    """Pad / repack all weights once (outside jit) into a lane-dense VMEM layout."""
    D = params["wte"].shape[1]
    V = params["wte"].shape[0]
    E = params["img_w"].shape[0]
    F = params["layers"][0]["fc_w"].shape[1]
    L = len(params["layers"])
    H = n_head
    Dh = D // H
    HP = 128                                 # per-head lane block
    D_pad = _round_up(D, 128)
    E_pad = _round_up(E, 128)
    V_pad = _round_up(V, 128)
    F_pad = _round_up(F, 128)

    def pad2(a, r, c):
        return jnp.zeros((r, c), jnp.float32).at[:a.shape[0], :a.shape[1]].set(a)

    def padrow(a, c):
        return jnp.zeros((1, c), jnp.float32).at[0, :a.shape[0]].set(a)

    def pack_qkv_w(w):                       # (D, 3D) -> (D_pad, 3*H*HP)
        out = jnp.zeros((D_pad, 3 * H * HP), jnp.float32)
        for kind in range(3):                # q, k, v
            for h in range(H):
                src = w[:, kind * D + h * Dh: kind * D + (h + 1) * Dh]
                dst = (kind * H + h) * HP
                out = out.at[:D, dst:dst + Dh].set(src)
        return out

    def pack_qkv_b(b):                       # (3D,) -> (1, 3*H*HP)
        out = jnp.zeros((1, 3 * H * HP), jnp.float32)
        for kind in range(3):
            for h in range(H):
                src = b[kind * D + h * Dh: kind * D + (h + 1) * Dh]
                dst = (kind * H + h) * HP
                out = out.at[0, dst:dst + Dh].set(src)
        return out

    def pack_proj_w(w):                      # (D, D) -> (H*HP, D_pad)
        out = jnp.zeros((H * HP, D_pad), jnp.float32)
        for h in range(H):
            out = out.at[h * HP:h * HP + Dh, :D].set(w[h * Dh:(h + 1) * Dh, :])
        return out

    layers = params["layers"]
    packed = dict(
        wte=pad2(params["wte"], V_pad, D_pad),
        wpe=pad2(params["wpe"], params["wpe"].shape[0], D_pad),
        img_w=pad2(params["img_w"], E_pad, D_pad),
        img_b=padrow(params["img_b"], D_pad),
        ln1_g=jnp.stack([padrow(lp["ln1_g"], D_pad) for lp in layers]),
        ln1_b=jnp.stack([padrow(lp["ln1_b"], D_pad) for lp in layers]),
        attn_w=jnp.stack([pack_qkv_w(lp["attn_w"]) for lp in layers]),
        attn_b=jnp.stack([pack_qkv_b(lp["attn_b"]) for lp in layers]),
        proj_w=jnp.stack([pack_proj_w(lp["proj_w"]) for lp in layers]),
        proj_b=jnp.stack([padrow(lp["proj_b"], D_pad) for lp in layers]),
        ln2_g=jnp.stack([padrow(lp["ln2_g"], D_pad) for lp in layers]),
        ln2_b=jnp.stack([padrow(lp["ln2_b"], D_pad) for lp in layers]),
        fc_w=jnp.stack([pad2(lp["fc_w"], D_pad, F_pad) for lp in layers]),
        fc_b=jnp.stack([padrow(lp["fc_b"], F_pad) for lp in layers]),
        mproj_w=jnp.stack([pad2(lp["mproj_w"], F_pad, D_pad) for lp in layers]),
        mproj_b=jnp.stack([padrow(lp["mproj_b"], D_pad) for lp in layers]),
        lnf_g=padrow(params["lnf_g"], D_pad),
        lnf_b=padrow(params["lnf_b"], D_pad),
    )
    cfg = dict(n_embd=D, vocab=V, n_head=H, n_layer=L,
               D_pad=D_pad, E_pad=E_pad, V_pad=V_pad, F_pad=F_pad, HP=HP)
    return packed, cfg


# ----------------------------- forward (thin XLA glue + 1 pallas_call) -------

def _full_block(shape):
    return pl.BlockSpec(shape, lambda i, _n=len(shape): (0,) * _n)


def fused_decoder_forward(packed, encoder_hidden_states, input_ids, attention_mask,
                          *, cfg):
    B, E = encoder_hidden_states.shape
    T = input_ids.shape[1]
    S = T + 1
    D = cfg["n_embd"]
    V = cfg["vocab"]
    H = cfg["n_head"]
    L = cfg["n_layer"]
    D_pad, E_pad, V_pad, HP = cfg["D_pad"], cfg["E_pad"], cfg["V_pad"], cfg["HP"]
    S_pad = _round_up(S, 8)
    B_pad = _round_up(B, 8)
    M = B * S_pad
    scale = 1.0 / math.sqrt(D // H)

    # ---- tiny XLA glue: padding, mask bias, token-embedding gather ----
    enc_pad = jnp.zeros((B_pad, E_pad), jnp.float32).at[:B, :E].set(
        encoder_hidden_states.astype(jnp.float32))

    if attention_mask is None:
        ext = jnp.ones((B, S), jnp.float32)
    else:
        ext = jnp.concatenate(
            [jnp.ones((B, 1), attention_mask.dtype), attention_mask],
            axis=1).astype(jnp.float32)
    ext_pad = jnp.zeros((B, S_pad), jnp.float32).at[:, :S].set(ext)

    row = jax.lax.broadcasted_iota(jnp.int32, (S_pad, S_pad), 0)
    col = jax.lax.broadcasted_iota(jnp.int32, (S_pad, S_pad), 1)
    causal_bias = jnp.where(col <= row, 0.0, -1e9)                     # (S_pad, S_pad)
    bias = causal_bias[None, :, :] + (1.0 - ext_pad)[:, None, :] * (-1e9)  # (B,S_pad,S_pad)

    # token-embedding gather kept in XLA glue (data-dependent gather)
    tok = jnp.take(packed["wte"], input_ids, axis=0)                   # (B, T, D_pad)
    pos = packed["wpe"][:S]                                            # (S, D_pad)
    tok_pos = jnp.zeros((B, S_pad, D_pad), jnp.float32)
    tok_pos = tok_pos.at[:, 0, :].set(jnp.broadcast_to(pos[0], (B, D_pad)))
    tok_pos = tok_pos.at[:, 1:S, :].set(tok + pos[1:S][None, :, :])
    tok_pos = tok_pos.reshape(M, D_pad)

    inputs = (enc_pad, packed["img_w"], packed["img_b"], tok_pos, bias,
              packed["ln1_g"], packed["ln1_b"], packed["attn_w"], packed["attn_b"],
              packed["proj_w"], packed["proj_b"], packed["ln2_g"], packed["ln2_b"],
              packed["fc_w"], packed["fc_b"], packed["mproj_w"], packed["mproj_b"],
              packed["lnf_g"], packed["lnf_b"], packed["wte"])

    kernel = functools.partial(
        _fused_decoder_kernel,
        B=B, B_pad=B_pad, S_pad=S_pad, D=D, D_pad=D_pad,
        H=H, HP=HP, n_layer=L, scale=scale, eps=1e-5)

    logits_pad = pl.pallas_call(
        kernel,
        out_shape=jax.ShapeDtypeStruct((M, V_pad), jnp.float32),
        grid=(1,),
        in_specs=[_full_block(a.shape) for a in inputs],
        out_specs=pl.BlockSpec((M, V_pad), lambda i: (0, 0)),
        compiler_params=pltpu.CompilerParams(
            dimension_semantics=("arbitrary",)),
    )(*inputs)

    logits = logits_pad.reshape(B, S_pad, V_pad)[:, :S, :V]
    return logits


# ----------------------------- plain-JAX reference -----------------------------

def reference_forward(params, enc, ids, mask, *, n_head):
    B, _ = enc.shape
    T = ids.shape[1]
    S = T + 1
    D = params["wte"].shape[1]
    H = n_head
    Dh = D // H

    img = enc @ params["img_w"] + params["img_b"]                      # (B, D)
    ext = jnp.concatenate([jnp.ones((B, 1), mask.dtype), mask], 1).astype(jnp.float32)
    pad_bias = (1.0 - ext) * (-1e9)                                    # (B, S)
    tok = params["wte"][ids]
    h = jnp.concatenate([img[:, None, :], tok], axis=1) + params["wpe"][:S][None]

    def ln(x, g, b):
        mu = x.mean(-1, keepdims=True)
        var = ((x - mu) ** 2).mean(-1, keepdims=True)
        return (x - mu) * jax.lax.rsqrt(var + 1e-5) * g + b

    causal = jnp.tril(jnp.ones((S, S)))
    for lp in params["layers"]:
        x = ln(h, lp["ln1_g"], lp["ln1_b"])
        qkv = x @ lp["attn_w"] + lp["attn_b"]
        q, k, v = jnp.split(qkv, 3, axis=-1)
        q = q.reshape(B, S, H, Dh).transpose(0, 2, 1, 3)
        k = k.reshape(B, S, H, Dh).transpose(0, 2, 1, 3)
        v = v.reshape(B, S, H, Dh).transpose(0, 2, 1, 3)
        s = jnp.einsum('bhqd,bhkd->bhqk', q, k) / math.sqrt(Dh)
        s = jnp.where(causal[None, None] > 0, s, -1e9) + pad_bias[:, None, None, :]
        p = jax.nn.softmax(s, axis=-1)
        o = jnp.einsum('bhqk,bhkd->bhqd', p, v).transpose(0, 2, 1, 3).reshape(B, S, D)
        h = h + o @ lp["proj_w"] + lp["proj_b"]
        x = ln(h, lp["ln2_g"], lp["ln2_b"])
        f = x @ lp["fc_w"] + lp["fc_b"]
        f = 0.5 * f * (1.0 + jnp.tanh(_GELU_C * (f + 0.044715 * f ** 3)))
        h = h + f @ lp["mproj_w"] + lp["mproj_b"]
    x = ln(h, params["lnf_g"], params["lnf_b"])
    return x @ params["wte"].T


# ----------------------------- main -----------------------------

if __name__ == "__main__":
    # TODO(synk): pretrained ViT encoder / GPT-2 checkpoint + tokenizer have no
    # in-script equivalent; synthetic deterministic weights are used and the ViT
    # features are supplied directly as encoder_hidden_states.
    VOCAB = 64
    N_EMBD = 32
    N_HEAD = 4
    N_LAYER = 2
    N_INNER = 4 * N_EMBD
    ENCODER_DIM = 16
    MAX_POS = 16
    B, T = 2, 8

    key = jax.random.PRNGKey(0)
    kp, ke, ki = jax.random.split(key, 3)

    params = init_params(kp, vocab=VOCAB, n_embd=N_EMBD, n_head=N_HEAD,
                         n_layer=N_LAYER, n_inner=N_INNER,
                         encoder_dim=ENCODER_DIM, max_pos=MAX_POS)
    packed, cfg = pack_params(params, n_head=N_HEAD)

    encoder_hidden_states = jax.random.normal(ke, (B, ENCODER_DIM), jnp.float32)
    input_ids = jax.random.randint(ki, (B, T), 0, VOCAB)
    attention_mask = jnp.ones((B, T), jnp.float32).at[1, T - 1].set(0.0)

    fwd = jax.jit(functools.partial(fused_decoder_forward, cfg=cfg))
    logits = fwd(packed, encoder_hidden_states, input_ids, attention_mask)
    jax.block_until_ready(logits)

    assert logits.shape == (B, T + 1, VOCAB), logits.shape
    assert bool(jnp.all(jnp.isfinite(logits)))

    ref = reference_forward(params, encoder_hidden_states, input_ids,
                            attention_mask, n_head=N_HEAD)
    max_err = float(jnp.max(jnp.abs(logits - ref)))
    assert max_err < 1e-2, max_err

    print("KERNEL_OK")
</pallas_src>

<mosaic_0001>
module attributes {stable_mosaic.version = 11 : i64} {
  func.func @_fused_decoder_kernel(%arg0: i32, %arg1: memref<8x128xf32, #tpu.memory_space<vmem>>, %arg2: memref<128x128xf32, #tpu.memory_space<vmem>>, %arg3: memref<1x128xf32, #tpu.memory_space<vmem>>, %arg4: memref<32x128xf32, #tpu.memory_space<vmem>>, %arg5: memref<2x16x16xf32, #tpu.memory_space<vmem>>, %arg6: memref<2x1x128xf32, #tpu.memory_space<vmem>>, %arg7: memref<2x1x128xf32, #tpu.memory_space<vmem>>, %arg8: memref<2x128x1536xf32, #tpu.memory_space<vmem>>, %arg9: memref<2x1x1536xf32, #tpu.memory_space<vmem>>, %arg10: memref<2x512x128xf32, #tpu.memory_space<vmem>>, %arg11: memref<2x1x128xf32, #tpu.memory_space<vmem>>, %arg12: memref<2x1x128xf32, #tpu.memory_space<vmem>>, %arg13: memref<2x1x128xf32, #tpu.memory_space<vmem>>, %arg14: memref<2x128x128xf32, #tpu.memory_space<vmem>>, %arg15: memref<2x1x128xf32, #tpu.memory_space<vmem>>, %arg16: memref<2x128x128xf32, #tpu.memory_space<vmem>>, %arg17: memref<2x1x128xf32, #tpu.memory_space<vmem>>, %arg18: memref<1x128xf32, #tpu.memory_space<vmem>>, %arg19: memref<1x128xf32, #tpu.memory_space<vmem>>, %arg20: memref<128x128xf32, #tpu.memory_space<vmem>>, %arg21: memref<32x128xf32, #tpu.memory_space<vmem>>) attributes {dimension_semantics = [#tpu.dimension_semantics<arbitrary>], iteration_bounds = array<i64: 1>, scalar_prefetch = 0 : i64, scratch_operands = 0 : i64, tpu.core_type = #tpu.core_type<tc>, window_params = [{pipeline_mode = #tpu.pipeline_mode<synchronous>, transform_indices = @transform_0, window_bounds = array<i64: 8, 128>}, {pipeline_mode = #tpu.pipeline_mode<synchronous>, transform_indices = @transform_1, window_bounds = array<i64: 128, 128>}, {pipeline_mode = #tpu.pipeline_mode<synchronous>, transform_indices = @transform_2, window_bounds = array<i64: 1, 128>}, {pipeline_mode = #tpu.pipeline_mode<synchronous>, transform_indices = @transform_3, window_bounds = array<i64: 32, 128>}, {pipeline_mode = #tpu.pipeline_mode<synchronous>, transform_indices = @transform_4, window_bounds = array<i64: 2, 16, 16>}, {pipeline_mode = #tpu.pipeline_mode<synchronous>, transform_indices = @transform_5, window_bounds = array<i64: 2, 1, 128>}, {pipeline_mode = #tpu.pipeline_mode<synchronous>, transform_indices = @transform_6, window_bounds = array<i64: 2, 1, 128>}, {pipeline_mode = #tpu.pipeline_mode<synchronous>, transform_indices = @transform_7, window_bounds = array<i64: 2, 128, 1536>}, {pipeline_mode = #tpu.pipeline_mode<synchronous>, transform_indices = @transform_8, window_bounds = array<i64: 2, 1, 1536>}, {pipeline_mode = #tpu.pipeline_mode<synchronous>, transform_indices = @transform_9, window_bounds = array<i64: 2, 512, 128>}, {pipeline_mode = #tpu.pipeline_mode<synchronous>, transform_indices = @transform_10, window_bounds = array<i64: 2, 1, 128>}, {pipeline_mode = #tpu.pipeline_mode<synchronous>, transform_indices = @transform_11, window_bounds = array<i64: 2, 1, 128>}, {pipeline_mode = #tpu.pipeline_mode<synchronous>, transform_indices = @transform_12, window_bounds = array<i64: 2, 1, 128>}, {pipeline_mode = #tpu.pipeline_mode<synchronous>, transform_indices = @transform_13, window_bounds = array<i64: 2, 128, 128>}, {pipeline_mode = #tpu.pipeline_mode<synchronous>, transform_indices = @transform_14, window_bounds = array<i64: 2, 1, 128>}, {pipeline_mode = #tpu.pipeline_mode<synchronous>, transform_indices = @transform_15, window_bounds = array<i64: 2, 128, 128>}, {pipeline_mode = #tpu.pipeline_mode<synchronous>, transform_indices = @transform_16, window_bounds = array<i64: 2, 1, 128>}, {pipeline_mode = #tpu.pipeline_mode<synchronous>, transform_indices = @transform_17, window_bounds = array<i64: 1, 128>}, {pipeline_mode = #tpu.pipeline_mode<synchronous>, transform_indices = @transform_18, window_bounds = array<i64: 1, 128>}, {pipeline_mode = #tpu.pipeline_mode<synchronous>, transform_indices = @transform_19, window_bounds = array<i64: 128, 128>}, {pipeline_mode = #tpu.pipeline_mode<synchronous>, transform_indices = @transform_20, window_bounds = array<i64: 32, 128>}]} {
    %c0 = arith.constant 0 : index
    %c0_0 = arith.constant 0 : index
    %0 = vector.load %arg1[%c0, %c0_0] : memref<8x128xf32, #tpu.memory_space<vmem>>, vector<8x128xf32>
    %c0_1 = arith.constant 0 : index
    %c0_2 = arith.constant 0 : index
    %1 = vector.load %arg2[%c0_1, %c0_2] : memref<128x128xf32, #tpu.memory_space<vmem>>, vector<128x128xf32>
    %cst = arith.constant dense<0.000000e+00> : vector<8x128xf32>
    %2 = tpu.matmul %0, %1, %cst {dimension_numbers = #tpu.dot_dimension_numbers<[1], [0], [0], [1], [0, 0, 1, 1], [], []>} : vector<8x128xf32>, vector<128x128xf32>, vector<8x128xf32> -> vector<8x128xf32>
    %c0_3 = arith.constant 0 : index
    %c0_4 = arith.constant 0 : index
    %3 = vector.load %arg3[%c0_3, %c0_4] : memref<1x128xf32, #tpu.memory_space<vmem>>, vector<1x128xf32>
    %4 = vector.broadcast %3 : vector<1x128xf32> to vector<8x128xf32>
    %5 = arith.addf %2, %4 : vector<8x128xf32>
    %6 = tpu.iota {dimensions = array<i32: 0>} : vector<32x8xi32>
    %7 = tpu.iota {dimensions = array<i32: 1>} : vector<32x8xi32>
    %c16_i32 = arith.constant 16 : i32
    %8 = vector.broadcast %c16_i32 : i32 to vector<32x8xi32>
    %9 = arith.muli %7, %8 : vector<32x8xi32>
    %10 = arith.cmpi eq, %6, %9 : vector<32x8xi32>
    %11 = arith.extui %10 : vector<32x8xi1> to vector<32x8xi32>
    %12 = arith.sitofp %11 : vector<32x8xi32> to vector<32x8xf32>
    %c0_5 = arith.constant 0 : index
    %c0_6 = arith.constant 0 : index
    %13 = vector.load %arg4[%c0_5, %c0_6] : memref<32x128xf32, #tpu.memory_space<vmem>>, vector<32x128xf32>
    %cst_7 = arith.constant dense<0.000000e+00> : vector<32x128xf32>
    %14 = tpu.matmul %12, %5, %cst_7 {dimension_numbers = #tpu.dot_dimension_numbers<[1], [0], [0], [1], [0, 0, 1, 1], [], []>} : vector<32x8xf32>, vector<8x128xf32>, vector<32x128xf32> -> vector<32x128xf32>
    %15 = arith.addf %13, %14 : vector<32x128xf32>
    %c0_8 = arith.constant 0 : index
    %c0_9 = arith.constant 0 : index
    %c0_10 = arith.constant 0 : index
    %16 = vector.load %arg6[%c0_8, %c0_9, %c0_10] : memref<2x1x128xf32, #tpu.memory_space<vmem>>, vector<1x1x128xf32>
    %17 = vector.shape_cast %16 : vector<1x1x128xf32> to vector<1x128xf32>
    %c0_11 = arith.constant 0 : index
    %c0_12 = arith.constant 0 : index
    %c0_13 = arith.constant 0 : index
    %18 = vector.load %arg7[%c0_11, %c0_12, %c0_13] : memref<2x1x128xf32, #tpu.memory_space<vmem>>, vector<1x1x128xf32>
    %19 = vector.shape_cast %18 : vector<1x1x128xf32> to vector<1x128xf32>
    %cst_14 = arith.constant dense<0.000000e+00> : vector<32xf32>
    %20 = vector.multi_reduction <add>, %15, %cst_14 [1] : vector<32x128xf32> to vector<32xf32>
    %21 = vector.shape_cast %20 : vector<32xf32> to vector<32x1xf32>
    %cst_15 = arith.constant 3.125000e-02 : f32
    %22 = vector.broadcast %cst_15 : f32 to vector<32x1xf32>
    %23 = arith.mulf %21, %22 : vector<32x1xf32>
    %24 = arith.mulf %15, %15 : vector<32x128xf32>
    %cst_16 = arith.constant dense<0.000000e+00> : vector<32xf32>
    %25 = vector.multi_reduction <add>, %24, %cst_16 [1] : vector<32x128xf32> to vector<32xf32>
    %26 = vector.shape_cast %25 : vector<32xf32> to vector<32x1xf32>
    %cst_17 = arith.constant 3.125000e-02 : f32
    %27 = vector.broadcast %cst_17 : f32 to vector<32x1xf32>
    %28 = arith.mulf %26, %27 : vector<32x1xf32>
    %29 = arith.mulf %23, %23 : vector<32x1xf32>
    %30 = arith.subf %28, %29 : vector<32x1xf32>
    %31 = vector.broadcast %23 : vector<32x1xf32> to vector<32x128xf32>
    %32 = arith.subf %15, %31 : vector<32x128xf32>
    %cst_18 = arith.constant 9.99999974E-6 : f32
    %33 = vector.broadcast %cst_18 : f32 to vector<32x1xf32>
    %34 = arith.addf %30, %33 : vector<32x1xf32>
    %35 = math.rsqrt %34 : vector<32x1xf32>
    %36 = vector.broadcast %35 : vector<32x1xf32> to vector<32x128xf32>
    %37 = arith.mulf %32, %36 : vector<32x128xf32>
    %38 = vector.broadcast %17 : vector<1x128xf32> to vector<32x128xf32>
    %39 = arith.mulf %37, %38 : vector<32x128xf32>
    %40 = vector.broadcast %19 : vector<1x128xf32> to vector<32x128xf32>
    %41 = arith.addf %39, %40 : vector<32x128xf32>
    %c0_19 = arith.constant 0 : index
    %c0_20 = arith.constant 0 : index
    %c0_21 = arith.constant 0 : index
    %42 = vector.load %arg8[%c0_19, %c0_20, %c0_21] : memref<2x128x1536xf32, #tpu.memory_space<vmem>>, vector<1x128x128xf32>
    %43 = vector.shape_cast %42 : vector<1x128x128xf32> to vector<128x128xf32>
    %c0_22 = arith.constant 0 : index
    %c0_23 = arith.constant 0 : index
    %c512 = arith.constant 512 : index
    %44 = vector.load %arg8[%c0_22, %c0_23, %c512] : memref<2x128x1536xf32, #tpu.memory_space<vmem>>, vector<1x128x128xf32>
    %45 = vector.shape_cast %44 : vector<1x128x128xf32> to vector<128x128xf32>
    %c0_24 = arith.constant 0 : index
    %c0_25 = arith.constant 0 : index
    %c1024 = arith.constant 1024 : index
    %46 = vector.load %arg8[%c0_24, %c0_25, %c1024] : memref<2x128x1536xf32, #tpu.memory_space<vmem>>, vector<1x128x128xf32>
    %47 = vector.shape_cast %46 : vector<1x128x128xf32> to vector<128x128xf32>
    %c0_26 = arith.constant 0 : index
    %c0_27 = arith.constant 0 : index
    %c0_28 = arith.constant 0 : index
    %48 = vector.load %arg9[%c0_26, %c0_27, %c0_28] : memref<2x1x1536xf32, #tpu.memory_space<vmem>>, vector<1x1x128xf32>
    %49 = vector.shape_cast %48 : vector<1x1x128xf32> to vector<1x128xf32>
    %c0_29 = arith.constant 0 : index
    %c0_30 = arith.constant 0 : index
    %c512_31 = arith.constant 512 : index
    %50 = vector.load %arg9[%c0_29, %c0_30, %c512_31] : memref<2x1x1536xf32, #tpu.memory_space<vmem>>, vector<1x1x128xf32>
    %51 = vector.shape_cast %50 : vector<1x1x128xf32> to vector<1x128xf32>
    %c0_32 = arith.constant 0 : index
    %c0_33 = arith.constant 0 : index
    %c1024_34 = arith.constant 1024 : index
    %52 = vector.load %arg9[%c0_32, %c0_33, %c1024_34] : memref<2x1x1536xf32, #tpu.memory_space<vmem>>, vector<1x1x128xf32>
    %53 = vector.shape_cast %52 : vector<1x1x128xf32> to vector<1x128xf32>
    %c0_35 = arith.constant 0 : index
    %c0_36 = arith.constant 0 : index
    %c0_37 = arith.constant 0 : index
    %54 = vector.load %arg10[%c0_35, %c0_36, %c0_37] : memref<2x512x128xf32, #tpu.memory_space<vmem>>, vector<1x128x128xf32>
    %55 = vector.shape_cast %54 : vector<1x128x128xf32> to vector<128x128xf32>
    %cst_38 = arith.constant dense<0.000000e+00> : vector<32x128xf32>
    %56 = tpu.matmul %41, %43, %cst_38 {dimension_numbers = #tpu.dot_dimension_numbers<[1], [0], [0], [1], [0, 0, 1, 1], [], []>} : vector<32x128xf32>, vector<128x128xf32>, vector<32x128xf32> -> vector<32x128xf32>
    %57 = vector.broadcast %49 : vector<1x128xf32> to vector<32x128xf32>
    %58 = arith.addf %56, %57 : vector<32x128xf32>
    %cst_39 = arith.constant dense<0.000000e+00> : vector<32x128xf32>
    %59 = tpu.matmul %41, %45, %cst_39 {dimension_numbers = #tpu.dot_dimension_numbers<[1], [0], [0], [1], [0, 0, 1, 1], [], []>} : vector<32x128xf32>, vector<128x128xf32>, vector<32x128xf32> -> vector<32x128xf32>
    %60 = vector.broadcast %51 : vector<1x128xf32> to vector<32x128xf32>
    %61 = arith.addf %59, %60 : vector<32x128xf32>
    %cst_40 = arith.constant dense<0.000000e+00> : vector<32x128xf32>
    %62 = tpu.matmul %41, %47, %cst_40 {dimension_numbers = #tpu.dot_dimension_numbers<[1], [0], [0], [1], [0, 0, 1, 1], [], []>} : vector<32x128xf32>, vector<128x128xf32>, vector<32x128xf32> -> vector<32x128xf32>
    %63 = vector.broadcast %53 : vector<1x128xf32> to vector<32x128xf32>
    %64 = arith.addf %62, %63 : vector<32x128xf32>
    %65 = vector.extract_strided_slice %58 {offsets = [0, 0], sizes = [16, 128], strides = [1, 1]} : vector<32x128xf32> to vector<16x128xf32>
    %66 = vector.extract_strided_slice %61 {offsets = [0, 0], sizes = [16, 128], strides = [1, 1]} : vector<32x128xf32> to vector<16x128xf32>
    %67 = vector.extract_strided_slice %64 {offsets = [0, 0], sizes = [16, 128], strides = [1, 1]} : vector<32x128xf32> to vector<16x128xf32>
    %cst_41 = arith.constant dense<0.000000e+00> : vector<16x16xf32>
    %68 = tpu.matmul %65, %66, %cst_41 {dimension_numbers = #tpu.dot_dimension_numbers<[1], [1], [0], [0], [0, 0, 1, 0], [], []>} : vector<16x128xf32>, vector<16x128xf32>, vector<16x16xf32> -> vector<16x16xf32>
    %cst_42 = arith.constant 0.353553385 : f32
    %69 = vector.broadcast %cst_42 : f32 to vector<16x16xf32>
    %70 = arith.mulf %68, %69 : vector<16x16xf32>
    %c0_43 = arith.constant 0 : index
    %c0_44 = arith.constant 0 : index
    %c0_45 = arith.constant 0 : index
    %71 = vector.load %arg5[%c0_43, %c0_44, %c0_45] : memref<2x16x16xf32, #tpu.memory_space<vmem>>, vector<1x16x16xf32>
    %72 = vector.shape_cast %71 : vector<1x16x16xf32> to vector<16x16xf32>
    %73 = arith.addf %70, %72 : vector<16x16xf32>
    %cst_46 = arith.constant dense<0xFF800000> : vector<16xf32>
    %74 = vector.multi_reduction <maximumf>, %73, %cst_46 [1] : vector<16x16xf32> to vector<16xf32>
    %75 = vector.shape_cast %74 : vector<16xf32> to vector<16x1xf32>
    %76 = vector.broadcast %75 : vector<16x1xf32> to vector<16x16xf32>
    %77 = arith.subf %73, %76 : vector<16x16xf32>
    %78 = math.exp %77 : vector<16x16xf32>
    %cst_47 = arith.constant dense<0.000000e+00> : vector<16xf32>
    %79 = vector.multi_reduction <add>, %78, %cst_47 [1] : vector<16x16xf32> to vector<16xf32>
    %80 = vector.shape_cast %79 : vector<16xf32> to vector<16x1xf32>
    %81 = tpu.reciprocal %80 {approx = true} : vector<16x1xf32> -> vector<16x1xf32>
    %82 = vector.broadcast %81 : vector<16x1xf32> to vector<16x16xf32>
    %83 = arith.mulf %78, %82 : vector<16x16xf32>
    %cst_48 = arith.constant dense<0.000000e+00> : vector<16x128xf32>
    %84 = tpu.matmul %83, %67, %cst_48 {dimension_numbers = #tpu.dot_dimension_numbers<[1], [0], [0], [1], [0, 0, 1, 1], [], []>} : vector<16x16xf32>, vector<16x128xf32>, vector<16x128xf32> -> vector<16x128xf32>
    %cst_49 = arith.constant dense<0.000000e+00> : vector<16x128xf32>
    %85 = tpu.matmul %84, %55, %cst_49 {dimension_numbers = #tpu.dot_dimension_numbers<[1], [0], [0], [1], [0, 0, 1, 1], [], []>} : vector<16x128xf32>, vector<128x128xf32>, vector<16x128xf32> -> vector<16x128xf32>
    %86 = vector.extract_strided_slice %58 {offsets = [16, 0], sizes = [16, 128], strides = [1, 1]} : vector<32x128xf32> to vector<16x128xf32>
    %87 = vector.extract_strided_slice %61 {offsets = [16, 0], sizes = [16, 128], strides = [1, 1]} : vector<32x128xf32> to vector<16x128xf32>
    %88 = vector.extract_strided_slice %64 {offsets = [16, 0], sizes = [16, 128], strides = [1, 1]} : vector<32x128xf32> to vector<16x128xf32>
    %cst_50 = arith.constant dense<0.000000e+00> : vector<16x16xf32>
    %89 = tpu.matmul %86, %87, %cst_50 {dimension_numbers = #tpu.dot_dimension_numbers<[1], [1], [0], [0], [0, 0, 1, 0], [], []>} : vector<16x128xf32>, vector<16x128xf32>, vector<16x16xf32> -> vector<16x16xf32>
    %cst_51 = arith.constant 0.353553385 : f32
    %90 = vector.broadcast %cst_51 : f32 to vector<16x16xf32>
    %91 = arith.mulf %89, %90 : vector<16x16xf32>
    %c1 = arith.constant 1 : index
    %c0_52 = arith.constant 0 : index
    %c0_53 = arith.constant 0 : index
    %92 = vector.load %arg5[%c1, %c0_52, %c0_53] : memref<2x16x16xf32, #tpu.memory_space<vmem>>, vector<1x16x16xf32>
    %93 = vector.shape_cast %92 : vector<1x16x16xf32> to vector<16x16xf32>
    %94 = arith.addf %91, %93 : vector<16x16xf32>
    %cst_54 = arith.constant dense<0xFF800000> : vector<16xf32>
    %95 = vector.multi_reduction <maximumf>, %94, %cst_54 [1] : vector<16x16xf32> to vector<16xf32>
    %96 = vector.shape_cast %95 : vector<16xf32> to vector<16x1xf32>
    %97 = vector.broadcast %96 : vector<16x1xf32> to vector<16x16xf32>
    %98 = arith.subf %94, %97 : vector<16x16xf32>
    %99 = math.exp %98 : vector<16x16xf32>
    %cst_55 = arith.constant dense<0.000000e+00> : vector<16xf32>
    %100 = vector.multi_reduction <add>, %99, %cst_55 [1] : vector<16x16xf32> to vector<16xf32>
    %101 = vector.shape_cast %100 : vector<16xf32> to vector<16x1xf32>
    %102 = tpu.reciprocal %101 {approx = true} : vector<16x1xf32> -> vector<16x1xf32>
    %103 = vector.broadcast %102 : vector<16x1xf32> to vector<16x16xf32>
    %104 = arith.mulf %99, %103 : vector<16x16xf32>
    %cst_56 = arith.constant dense<0.000000e+00> : vector<16x128xf32>
    %105 = tpu.matmul %104, %88, %cst_56 {dimension_numbers = #tpu.dot_dimension_numbers<[1], [0], [0], [1], [0, 0, 1, 1], [], []>} : vector<16x16xf32>, vector<16x128xf32>, vector<16x128xf32> -> vector<16x128xf32>
    %cst_57 = arith.constant dense<0.000000e+00> : vector<16x128xf32>
    %106 = tpu.matmul %105, %55, %cst_57 {dimension_numbers = #tpu.dot_dimension_numbers<[1], [0], [0], [1], [0, 0, 1, 1], [], []>} : vector<16x128xf32>, vector<128x128xf32>, vector<16x128xf32> -> vector<16x128xf32>
    %c0_58 = arith.constant 0 : index
    %c0_59 = arith.constant 0 : index
    %c128 = arith.constant 128 : index
    %107 = vector.load %arg8[%c0_58, %c0_59, %c128] : memref<2x128x1536xf32, #tpu.memory_space<vmem>>, vector<1x128x128xf32>
    %108 = vector.shape_cast %107 : vector<1x128x128xf32> to vector<128x128xf32>
    %c0_60 = arith.constant 0 : index
    %c0_61 = arith.constant 0 : index
    %c640 = arith.constant 640 : index
    %109 = vector.load %arg8[%c0_60, %c0_61, %c640] : memref<2x128x1536xf32, #tpu.memory_space<vmem>>, vector<1x128x128xf32>
    %110 = vector.shape_cast %109 : vector<1x128x128xf32> to vector<128x128xf32>
    %c0_62 = arith.constant 0 : index
    %c0_63 = arith.constant 0 : index
    %c1152 = arith.constant 1152 : index
    %111 = vector.load %arg8[%c0_62, %c0_63, %c1152] : memref<2x128x1536xf32, #tpu.memory_space<vmem>>, vector<1x128x128xf32>
    %112 = vector.shape_cast %111 : vector<1x128x128xf32> to vector<128x128xf32>
    %c0_64 = arith.constant 0 : index
    %c0_65 = arith.constant 0 : index
    %c128_66 = arith.constant 128 : index
    %113 = vector.load %arg9[%c0_64, %c0_65, %c128_66] : memref<2x1x1536xf32, #tpu.memory_space<vmem>>, vector<1x1x128xf32>
    %114 = vector.shape_cast %113 : vector<1x1x128xf32> to vector<1x128xf32>
    %c0_67 = arith.constant 0 : index
    %c0_68 = arith.constant 0 : index
    %c640_69 = arith.constant 640 : index
    %115 = vector.load %arg9[%c0_67, %c0_68, %c640_69] : memref<2x1x1536xf32, #tpu.memory_space<vmem>>, vector<1x1x128xf32>
    %116 = vector.shape_cast %115 : vector<1x1x128xf32> to vector<1x128xf32>
    %c0_70 = arith.constant 0 : index
    %c0_71 = arith.constant 0 : index
    %c1152_72 = arith.constant 1152 : index
    %117 = vector.load %arg9[%c0_70, %c0_71, %c1152_72] : memref<2x1x1536xf32, #tpu.memory_space<vmem>>, vector<1x1x128xf32>
    %118 = vector.shape_cast %117 : vector<1x1x128xf32> to vector<1x128xf32>
    %c0_73 = arith.constant 0 : index
    %c128_74 = arith.constant 128 : index
    %c0_75 = arith.constant 0 : index
    %119 = vector.load %arg10[%c0_73, %c128_74, %c0_75] : memref<2x512x128xf32, #tpu.memory_space<vmem>>, vector<1x128x128xf32>
    %120 = vector.shape_cast %119 : vector<1x128x128xf32> to vector<128x128xf32>
    %cst_76 = arith.constant dense<0.000000e+00> : vector<32x128xf32>
    %121 = tpu.matmul %41, %108, %cst_76 {dimension_numbers = #tpu.dot_dimension_numbers<[1], [0], [0], [1], [0, 0, 1, 1], [], []>} : vector<32x128xf32>, vector<128x128xf32>, vector<32x128xf32> -> vector<32x128xf32>
    %122 = vector.broadcast %114 : vector<1x128xf32> to vector<32x128xf32>
    %123 = arith.addf %121, %122 : vector<32x128xf32>
    %cst_77 = arith.constant dense<0.000000e+00> : vector<32x128xf32>
    %124 = tpu.matmul %41, %110, %cst_77 {dimension_numbers = #tpu.dot_dimension_numbers<[1], [0], [0], [1], [0, 0, 1, 1], [], []>} : vector<32x128xf32>, vector<128x128xf32>, vector<32x128xf32> -> vector<32x128xf32>
    %125 = vector.broadcast %116 : vector<1x128xf32> to vector<32x128xf32>
    %126 = arith.addf %124, %125 : vector<32x128xf32>
    %cst_78 = arith.constant dense<0.000000e+00> : vector<32x128xf32>
    %127 = tpu.matmul %41, %112, %cst_78 {dimension_numbers = #tpu.dot_dimension_numbers<[1], [0], [0], [1], [0, 0, 1, 1], [], []>} : vector<32x128xf32>, vector<128x128xf32>, vector<32x128xf32> -> vector<32x128xf32>
    %128 = vector.broadcast %118 : vector<1x128xf32> to vector<32x128xf32>
    %129 = arith.addf %127, %128 : vector<32x128xf32>
    %130 = vector.extract_strided_slice %123 {offsets = [0, 0], sizes = [16, 128], strides = [1, 1]} : vector<32x128xf32> to vector<16x128xf32>
    %131 = vector.extract_strided_slice %126 {offsets = [0, 0], sizes = [16, 128], strides = [1, 1]} : vector<32x128xf32> to vector<16x128xf32>
    %132 = vector.extract_strided_slice %129 {offsets = [0, 0], sizes = [16, 128], strides = [1, 1]} : vector<32x128xf32> to vector<16x128xf32>
    %cst_79 = arith.constant dense<0.000000e+00> : vector<16x16xf32>
    %133 = tpu.matmul %130, %131, %cst_79 {dimension_numbers = #tpu.dot_dimension_numbers<[1], [1], [0], [0], [0, 0, 1, 0], [], []>} : vector<16x128xf32>, vector<16x128xf32>, vector<16x16xf32> -> vector<16x16xf32>
    %cst_80 = arith.constant 0.353553385 : f32
    %134 = vector.broadcast %cst_80 : f32 to vector<16x16xf32>
    %135 = arith.mulf %133, %134 : vector<16x16xf32>
    %c0_81 = arith.constant 0 : index
    %c0_82 = arith.constant 0 : index
    %c0_83 = arith.constant 0 : index
    %136 = vector.load %arg5[%c0_81, %c0_82, %c0_83] : memref<2x16x16xf32, #tpu.memory_space<vmem>>, vector<1x16x16xf32>
    %137 = vector.shape_cast %136 : vector<1x16x16xf32> to vector<16x16xf32>
    %138 = arith.addf %135, %137 : vector<16x16xf32>
    %cst_84 = arith.constant dense<0xFF800000> : vector<16xf32>
    %139 = vector.multi_reduction <maximumf>, %138, %cst_84 [1] : vector<16x16xf32> to vector<16xf32>
    %140 = vector.shape_cast %139 : vector<16xf32> to vector<16x1xf32>
    %141 = vector.broadcast %140 : vector<16x1xf32> to vector<16x16xf32>
    %142 = arith.subf %138, %141 : vector<16x16xf32>
    %143 = math.exp %142 : vector<16x16xf32>
    %cst_85 = arith.constant dense<0.000000e+00> : vector<16xf32>
    %144 = vector.multi_reduction <add>, %143, %cst_85 [1] : vector<16x16xf32> to vector<16xf32>
    %145 = vector.shape_cast %144 : vector<16xf32> to vector<16x1xf32>
    %146 = tpu.reciprocal %145 {approx = true} : vector<16x1xf32> -> vector<16x1xf32>
    %147 = vector.broadcast %146 : vector<16x1xf32> to vector<16x16xf32>
    %148 = arith.mulf %143, %147 : vector<16x16xf32>
    %cst_86 = arith.constant dense<0.000000e+00> : vector<16x128xf32>
    %149 = tpu.matmul %148, %132, %cst_86 {dimension_numbers = #tpu.dot_dimension_numbers<[1], [0], [0], [1], [0, 0, 1, 1], [], []>} : vector<16x16xf32>, vector<16x128xf32>, vector<16x128xf32> -> vector<16x128xf32>
    %cst_87 = arith.constant dense<0.000000e+00> : vector<16x128xf32>
    %150 = tpu.matmul %149, %120, %cst_87 {dimension_numbers = #tpu.dot_dimension_numbers<[1], [0], [0], [1], [0, 0, 1, 1], [], []>} : vector<16x128xf32>, vector<128x128xf32>, vector<16x128xf32> -> vector<16x128xf32>
    %151 = arith.addf %85, %150 : vector<16x128xf32>
    %152 = vector.extract_strided_slice %123 {offsets = [16, 0], sizes = [16, 128], strides = [1, 1]} : vector<32x128xf32> to vector<16x128xf32>
    %153 = vector.extract_strided_slice %126 {offsets = [16, 0], sizes = [16, 128], strides = [1, 1]} : vector<32x128xf32> to vector<16x128xf32>
    %154 = vector.extract_strided_slice %129 {offsets = [16, 0], sizes = [16, 128], strides = [1, 1]} : vector<32x128xf32> to vector<16x128xf32>
    %cst_88 = arith.constant dense<0.000000e+00> : vector<16x16xf32>
    %155 = tpu.matmul %152, %153, %cst_88 {dimension_numbers = #tpu.dot_dimension_numbers<[1], [1], [0], [0], [0, 0, 1, 0], [], []>} : vector<16x128xf32>, vector<16x128xf32>, vector<16x16xf32> -> vector<16x16xf32>
    %cst_89 = arith.constant 0.353553385 : f32
    %156 = vector.broadcast %cst_89 : f32 to vector<16x16xf32>
    %157 = arith.mulf %155, %156 : vector<16x16xf32>
    %c1_90 = arith.constant 1 : index
    %c0_91 = arith.constant 0 : index
    %c0_92 = arith.constant 0 : index
    %158 = vector.load %arg5[%c1_90, %c0_91, %c0_92] : memref<2x16x16xf32, #tpu.memory_space<vmem>>, vector<1x16x16xf32>
    %159 = vector.shape_cast %158 : vector<1x16x16xf32> to vector<16x16xf32>
    %160 = arith.addf %157, %159 : vector<16x16xf32>
    %cst_93 = arith.constant dense<0xFF800000> : vector<16xf32>
    %161 = vector.multi_reduction <maximumf>, %160, %cst_93 [1] : vector<16x16xf32> to vector<16xf32>
    %162 = vector.shape_cast %161 : vector<16xf32> to vector<16x1xf32>
    %163 = vector.broadcast %162 : vector<16x1xf32> to vector<16x16xf32>
    %164 = arith.subf %160, %163 : vector<16x16xf32>
    %165 = math.exp %164 : vector<16x16xf32>
    %cst_94 = arith.constant dense<0.000000e+00> : vector<16xf32>
    %166 = vector.multi_reduction <add>, %165, %cst_94 [1] : vector<16x16xf32> to vector<16xf32>
    %167 = vector.shape_cast %166 : vector<16xf32> to vector<16x1xf32>
    %168 = tpu.reciprocal %167 {approx = true} : vector<16x1xf32> -> vector<16x1xf32>
    %169 = vector.broadcast %168 : vector<16x1xf32> to vector<16x16xf32>
    %170 = arith.mulf %165, %169 : vector<16x16xf32>
    %cst_95 = arith.constant dense<0.000000e+00> : vector<16x128xf32>
    %171 = tpu.matmul %170, %154, %cst_95 {dimension_numbers = #tpu.dot_dimension_numbers<[1], [0], [0], [1], [0, 0, 1, 1], [], []>} : vector<16x16xf32>, vector<16x128xf32>, vector<16x128xf32> -> vector<16x128xf32>
    %cst_96 = arith.constant dense<0.000000e+00> : vector<16x128xf32>
    %172 = tpu.matmul %171, %120, %cst_96 {dimension_numbers = #tpu.dot_dimension_numbers<[1], [0], [0], [1], [0, 0, 1, 1], [], []>} : vector<16x128xf32>, vector<128x128xf32>, vector<16x128xf32> -> vector<16x128xf32>
    %173 = arith.addf %106, %172 : vector<16x128xf32>
    %c0_97 = arith.constant 0 : index
    %c0_98 = arith.constant 0 : index
    %c256 = arith.constant 256 : index
    %174 = vector.load %arg8[%c0_97, %c0_98, %c256] : memref<2x128x1536xf32, #tpu.memory_space<vmem>>, vector<1x128x128xf32>
    %175 = vector.shape_cast %174 : vector<1x128x128xf32> to vector<128x128xf32>
    %c0_99 = arith.constant 0 : index
    %c0_100 = arith.constant 0 : index
    %c768 = arith.constant 768 : index
    %176 = vector.load %arg8[%c0_99, %c0_100, %c768] : memref<2x128x1536xf32, #tpu.memory_space<vmem>>, vector<1x128x128xf32>
    %177 = vector.shape_cast %176 : vector<1x128x128xf32> to vector<128x128xf32>
    %c0_101 = arith.constant 0 : index
    %c0_102 = arith.constant 0 : index
    %c1280 = arith.constant 1280 : index
    %178 = vector.load %arg8[%c0_101, %c0_102, %c1280] : memref<2x128x1536xf32, #tpu.memory_space<vmem>>, vector<1x128x128xf32>
    %179 = vector.shape_cast %178 : vector<1x128x128xf32> to vector<128x128xf32>
    %c0_103 = arith.constant 0 : index
    %c0_104 = arith.constant 0 : index
    %c256_105 = arith.constant 256 : index
    %180 = vector.load %arg9[%c0_103, %c0_104, %c256_105] : memref<2x1x1536xf32, #tpu.memory_space<vmem>>, vector<1x1x128xf32>
    %181 = vector.shape_cast %180 : vector<1x1x128xf32> to vector<1x128xf32>
    %c0_106 = arith.constant 0 : index
    %c0_107 = arith.constant 0 : index
    %c768_108 = arith.constant 768 : index
    %182 = vector.load %arg9[%c0_106, %c0_107, %c768_108] : memref<2x1x1536xf32, #tpu.memory_space<vmem>>, vector<1x1x128xf32>
    %183 = vector.shape_cast %182 : vector<1x1x128xf32> to vector<1x128xf32>
    %c0_109 = arith.constant 0 : index
    %c0_110 = arith.constant 0 : index
    %c1280_111 = arith.constant 1280 : index
    %184 = vector.load %arg9[%c0_109, %c0_110, %c1280_111] : memref<2x1x1536xf32, #tpu.memory_space<vmem>>, vector<1x1x128xf32>
    %185 = vector.shape_cast %184 : vector<1x1x128xf32> to vector<1x128xf32>
    %c0_112 = arith.constant 0 : index
    %c256_113 = arith.constant 256 : index
    %c0_114 = arith.constant 0 : index
    %186 = vector.load %arg10[%c0_112, %c256_113, %c0_114] : memref<2x512x128xf32, #tpu.memory_space<vmem>>, vector<1x128x128xf32>
    %187 = vector.shape_cast %186 : vector<1x128x128xf32> to vector<128x128xf32>
    %cst_115 = arith.constant dense<0.000000e+00> : vector<32x128xf32>
    %188 = tpu.matmul %41, %175, %cst_115 {dimension_numbers = #tpu.dot_dimension_numbers<[1], [0], [0], [1], [0, 0, 1, 1], [], []>} : vector<32x128xf32>, vector<128x128xf32>, vector<32x128xf32> -> vector<32x128xf32>
    %189 = vector.broadcast %181 : vector<1x128xf32> to vector<32x128xf32>
    %190 = arith.addf %188, %189 : vector<32x128xf32>
    %cst_116 = arith.constant dense<0.000000e+00> : vector<32x128xf32>
    %191 = tpu.matmul %41, %177, %cst_116 {dimension_numbers = #tpu.dot_dimension_numbers<[1], [0], [0], [1], [0, 0, 1, 1], [], []>} : vector<32x128xf32>, vector<128x128xf32>, vector<32x128xf32> -> vector<32x128xf32>
    %192 = vector.broadcast %183 : vector<1x128xf32> to vector<32x128xf32>
    %193 = arith.addf %191, %192 : vector<32x128xf32>
    %cst_117 = arith.constant dense<0.000000e+00> : vector<32x128xf32>
    %194 = tpu.matmul %41, %179, %cst_117 {dimension_numbers = #tpu.dot_dimension_numbers<[1], [0], [0], [1], [0, 0, 1, 1], [], []>} : vector<32x128xf32>, vector<128x128xf32>, vector<32x128xf32> -> vector<32x128xf32>
    %195 = vector.broadcast %185 : vector<1x128xf32> to vector<32x128xf32>
    %196 = arith.addf %194, %195 : vector<32x128xf32>
    %197 = vector.extract_strided_slice %190 {offsets = [0, 0], sizes = [16, 128], strides = [1, 1]} : vector<32x128xf32> to vector<16x128xf32>
    %198 = vector.extract_strided_slice %193 {offsets = [0, 0], sizes = [16, 128], strides = [1, 1]} : vector<32x128xf32> to vector<16x128xf32>
    %199 = vector.extract_strided_slice %196 {offsets = [0, 0], sizes = [16, 128], strides = [1, 1]} : vector<32x128xf32> to vector<16x128xf32>
    %cst_118 = arith.constant dense<0.000000e+00> : vector<16x16xf32>
    %200 = tpu.matmul %197, %198, %cst_118 {dimension_numbers = #tpu.dot_dimension_numbers<[1], [1], [0], [0], [0, 0, 1, 0], [], []>} : vector<16x128xf32>, vector<16x128xf32>, vector<16x16xf32> -> vector<16x16xf32>
    %cst_119 = arith.constant 0.353553385 : f32
    %201 = vector.broadcast %cst_119 : f32 to vector<16x16xf32>
    %202 = arith.mulf %200, %201 : vector<16x16xf32>
    %c0_120 = arith.constant 0 : index
    %c0_121 = arith.constant 0 : index
    %c0_122 = arith.constant 0 : index
    %203 = vector.load %arg5[%c0_120, %c0_121, %c0_122] : memref<2x16x16xf32, #tpu.memory_space<vmem>>, vector<1x16x16xf32>
    %204 = vector.shape_cast %203 : vector<1x16x16xf32> to vector<16x16xf32>
    %205 = arith.addf %202, %204 : vector<16x16xf32>
    %cst_123 = arith.constant dense<0xFF800000> : vector<16xf32>
    %206 = vector.multi_reduction <maximumf>, %205, %cst_123 [1] : vector<16x16xf32> to vector<16xf32>
    %207 = vector.shape_cast %206 : vector<16xf32> to vector<16x1xf32>
    %208 = vector.broadcast %207 : vector<16x1xf32> to vector<16x16xf32>
    %209 = arith.subf %205, %208 : vector<16x16xf32>
    %210 = math.exp %209 : vector<16x16xf32>
    %cst_124 = arith.constant dense<0.000000e+00> : vector<16xf32>
    %211 = vector.multi_reduction <add>, %210, %cst_124 [1] : vector<16x16xf32> to vector<16xf32>
    %212 = vector.shape_cast %211 : vector<16xf32> to vector<16x1xf32>
    %213 = tpu.reciprocal %212 {approx = true} : vector<16x1xf32> -> vector<16x1xf32>
    %214 = vector.broadcast %213 : vector<16x1xf32> to vector<16x16xf32>
    %215 = arith.mulf %210, %214 : vector<16x16xf32>
    %cst_125 = arith.constant dense<0.000000e+00> : vector<16x128xf32>
    %216 = tpu.matmul %215, %199, %cst_125 {dimension_numbers = #tpu.dot_dimension_numbers<[1], [0], [0], [1], [0, 0, 1, 1], [], []>} : vector<16x16xf32>, vector<16x128xf32>, vector<16x128xf32> -> vector<16x128xf32>
    %cst_126 = arith.constant dense<0.000000e+00> : vector<16x128xf32>
    %217 = tpu.matmul %216, %187, %cst_126 {dimension_numbers = #tpu.dot_dimension_numbers<[1], [0], [0], [1], [0, 0, 1, 1], [], []>} : vector<16x128xf32>, vector<128x128xf32>, vector<16x128xf32> -> vector<16x128xf32>
    %218 = arith.addf %151, %217 : vector<16x128xf32>
    %219 = vector.extract_strided_slice %190 {offsets = [16, 0], sizes = [16, 128], strides = [1, 1]} : vector<32x128xf32> to vector<16x128xf32>
    %220 = vector.extract_strided_slice %193 {offsets = [16, 0], sizes = [16, 128], strides = [1, 1]} : vector<32x128xf32> to vector<16x128xf32>
    %221 = vector.extract_strided_slice %196 {offsets = [16, 0], sizes = [16, 128], strides = [1, 1]} : vector<32x128xf32> to vector<16x128xf32>
    %cst_127 = arith.constant dense<0.000000e+00> : vector<16x16xf32>
    %222 = tpu.matmul %219, %220, %cst_127 {dimension_numbers = #tpu.dot_dimension_numbers<[1], [1], [0], [0], [0, 0, 1, 0], [], []>} : vector<16x128xf32>, vector<16x128xf32>, vector<16x16xf32> -> vector<16x16xf32>
    %cst_128 = arith.constant 0.353553385 : f32
    %223 = vector.broadcast %cst_128 : f32 to vector<16x16xf32>
    %224 = arith.mulf %222, %223 : vector<16x16xf32>
    %c1_129 = arith.constant 1 : index
    %c0_130 = arith.constant 0 : index
    %c0_131 = arith.constant 0 : index
    %225 = vector.load %arg5[%c1_129, %c0_130, %c0_131] : memref<2x16x16xf32, #tpu.memory_space<vmem>>, vector<1x16x16xf32>
    %226 = vector.shape_cast %225 : vector<1x16x16xf32> to vector<16x16xf32>
    %227 = arith.addf %224, %226 : vector<16x16xf32>
    %cst_132 = arith.constant dense<0xFF800000> : vector<16xf32>
    %228 = vector.multi_reduction <maximumf>, %227, %cst_132 [1] : vector<16x16xf32> to vector<16xf32>
    %229 = vector.shape_cast %228 : vector<16xf32> to vector<16x1xf32>
    %230 = vector.broadcast %229 : vector<16x1xf32> to vector<16x16xf32>
    %231 = arith.subf %227, %230 : vector<16x16xf32>
    %232 = math.exp %231 : vector<16x16xf32>
    %cst_133 = arith.constant dense<0.000000e+00> : vector<16xf32>
    %233 = vector.multi_reduction <add>, %232, %cst_133 [1] : vector<16x16xf32> to vector<16xf32>
    %234 = vector.shape_cast %233 : vector<16xf32> to vector<16x1xf32>
    %235 = tpu.reciprocal %234 {approx = true} : vector<16x1xf32> -> vector<16x1xf32>
    %236 = vector.broadcast %235 : vector<16x1xf32> to vector<16x16xf32>
    %237 = arith.mulf %232, %236 : vector<16x16xf32>
    %cst_134 = arith.constant dense<0.000000e+00> : vector<16x128xf32>
    %238 = tpu.matmul %237, %221, %cst_134 {dimension_numbers = #tpu.dot_dimension_numbers<[1], [0], [0], [1], [0, 0, 1, 1], [], []>} : vector<16x16xf32>, vector<16x128xf32>, vector<16x128xf32> -> vector<16x128xf32>
    %cst_135 = arith.constant dense<0.000000e+00> : vector<16x128xf32>
    %239 = tpu.matmul %238, %187, %cst_135 {dimension_numbers = #tpu.dot_dimension_numbers<[1], [0], [0], [1], [0, 0, 1, 1], [], []>} : vector<16x128xf32>, vector<128x128xf32>, vector<16x128xf32> -> vector<16x128xf32>
    %240 = arith.addf %173, %239 : vector<16x128xf32>
    %c0_136 = arith.constant 0 : index
    %c0_137 = arith.constant 0 : index
    %c384 = arith.constant 384 : index
    %241 = vector.load %arg8[%c0_136, %c0_137, %c384] : memref<2x128x1536xf32, #tpu.memory_space<vmem>>, vector<1x128x128xf32>
    %242 = vector.shape_cast %241 : vector<1x128x128xf32> to vector<128x128xf32>
    %c0_138 = arith.constant 0 : index
    %c0_139 = arith.constant 0 : index
    %c896 = arith.constant 896 : index
    %243 = vector.load %arg8[%c0_138, %c0_139, %c896] : memref<2x128x1536xf32, #tpu.memory_space<vmem>>, vector<1x128x128xf32>
    %244 = vector.shape_cast %243 : vector<1x128x128xf32> to vector<128x128xf32>
    %c0_140 = arith.constant 0 : index
    %c0_141 = arith.constant 0 : index
    %c1408 = arith.constant 1408 : index
    %245 = vector.load %arg8[%c0_140, %c0_141, %c1408] : memref<2x128x1536xf32, #tpu.memory_space<vmem>>, vector<1x128x128xf32>
    %246 = vector.shape_cast %245 : vector<1x128x128xf32> to vector<128x128xf32>
    %c0_142 = arith.constant 0 : index
    %c0_143 = arith.constant 0 : index
    %c384_144 = arith.constant 384 : index
    %247 = vector.load %arg9[%c0_142, %c0_143, %c384_144] : memref<2x1x1536xf32, #tpu.memory_space<vmem>>, vector<1x1x128xf32>
    %248 = vector.shape_cast %247 : vector<1x1x128xf32> to vector<1x128xf32>
    %c0_145 = arith.constant 0 : index
    %c0_146 = arith.constant 0 : index
    %c896_147 = arith.constant 896 : index
    %249 = vector.load %arg9[%c0_145, %c0_146, %c896_147] : memref<2x1x1536xf32, #tpu.memory_space<vmem>>, vector<1x1x128xf32>
    %250 = vector.shape_cast %249 : vector<1x1x128xf32> to vector<1x128xf32>
    %c0_148 = arith.constant 0 : index
    %c0_149 = arith.constant 0 : index
    %c1408_150 = arith.constant 1408 : index
    %251 = vector.load %arg9[%c0_148, %c0_149, %c1408_150] : memref<2x1x1536xf32, #tpu.memory_space<vmem>>, vector<1x1x128xf32>
    %252 = vector.shape_cast %251 : vector<1x1x128xf32> to vector<1x128xf32>
    %c0_151 = arith.constant 0 : index
    %c384_152 = arith.constant 384 : index
    %c0_153 = arith.constant 0 : index
    %253 = vector.load %arg10[%c0_151, %c384_152, %c0_153] : memref<2x512x128xf32, #tpu.memory_space<vmem>>, vector<1x128x128xf32>
    %254 = vector.shape_cast %253 : vector<1x128x128xf32> to vector<128x128xf32>
    %cst_154 = arith.constant dense<0.000000e+00> : vector<32x128xf32>
    %255 = tpu.matmul %41, %242, %cst_154 {dimension_numbers = #tpu.dot_dimension_numbers<[1], [0], [0], [1], [0, 0, 1, 1], [], []>} : vector<32x128xf32>, vector<128x128xf32>, vector<32x128xf32> -> vector<32x128xf32>
    %256 = vector.broadcast %248 : vector<1x128xf32> to vector<32x128xf32>
    %257 = arith.addf %255, %256 : vector<32x128xf32>
    %cst_155 = arith.constant dense<0.000000e+00> : vector<32x128xf32>
    %258 = tpu.matmul %41, %244, %cst_155 {dimension_numbers = #tpu.dot_dimension_numbers<[1], [0], [0], [1], [0, 0, 1, 1], [], []>} : vector<32x128xf32>, vector<128x128xf32>, vector<32x128xf32> -> vector<32x128xf32>
    %259 = vector.broadcast %250 : vector<1x128xf32> to vector<32x128xf32>
    %260 = arith.addf %258, %259 : vector<32x128xf32>
    %cst_156 = arith.constant dense<0.000000e+00> : vector<32x128xf32>
    %261 = tpu.matmul %41, %246, %cst_156 {dimension_numbers = #tpu.dot_dimension_numbers<[1], [0], [0], [1], [0, 0, 1, 1], [], []>} : vector<32x128xf32>, vector<128x128xf32>, vector<32x128xf32> -> vector<32x128xf32>
    %262 = vector.broadcast %252 : vector<1x128xf32> to vector<32x128xf32>
    %263 = arith.addf %261, %262 : vector<32x128xf32>
    %264 = vector.extract_strided_slice %257 {offsets = [0, 0], sizes = [16, 128], strides = [1, 1]} : vector<32x128xf32> to vector<16x128xf32>
    %265 = vector.extract_strided_slice %260 {offsets = [0, 0], sizes = [16, 128], strides = [1, 1]} : vector<32x128xf32> to vector<16x128xf32>
    %266 = vector.extract_strided_slice %263 {offsets = [0, 0], sizes = [16, 128], strides = [1, 1]} : vector<32x128xf32> to vector<16x128xf32>
    %cst_157 = arith.constant dense<0.000000e+00> : vector<16x16xf32>
    %267 = tpu.matmul %264, %265, %cst_157 {dimension_numbers = #tpu.dot_dimension_numbers<[1], [1], [0], [0], [0, 0, 1, 0], [], []>} : vector<16x128xf32>, vector<16x128xf32>, vector<16x16xf32> -> vector<16x16xf32>
    %cst_158 = arith.constant 0.353553385 : f32
    %268 = vector.broadcast %cst_158 : f32 to vector<16x16xf32>
    %269 = arith.mulf %267, %268 : vector<16x16xf32>
    %c0_159 = arith.constant 0 : index
    %c0_160 = arith.constant 0 : index
    %c0_161 = arith.constant 0 : index
    %270 = vector.load %arg5[%c0_159, %c0_160, %c0_161] : memref<2x16x16xf32, #tpu.memory_space<vmem>>, vector<1x16x16xf32>
    %271 = vector.shape_cast %270 : vector<1x16x16xf32> to vector<16x16xf32>
    %272 = arith.addf %269, %271 : vector<16x16xf32>
    %cst_162 = arith.constant dense<0xFF800000> : vector<16xf32>
    %273 = vector.multi_reduction <maximumf>, %272, %cst_162 [1] : vector<16x16xf32> to vector<16xf32>
    %274 = vector.shape_cast %273 : vector<16xf32> to vector<16x1xf32>
    %275 = vector.broadcast %274 : vector<16x1xf32> to vector<16x16xf32>
    %276 = arith.subf %272, %275 : vector<16x16xf32>
    %277 = math.exp %276 : vector<16x16xf32>
    %cst_163 = arith.constant dense<0.000000e+00> : vector<16xf32>
    %278 = vector.multi_reduction <add>, %277, %cst_163 [1] : vector<16x16xf32> to vector<16xf32>
    %279 = vector.shape_cast %278 : vector<16xf32> to vector<16x1xf32>
    %280 = tpu.reciprocal %279 {approx = true} : vector<16x1xf32> -> vector<16x1xf32>
    %281 = vector.broadcast %280 : vector<16x1xf32> to vector<16x16xf32>
    %282 = arith.mulf %277, %281 : vector<16x16xf32>
    %cst_164 = arith.constant dense<0.000000e+00> : vector<16x128xf32>
    %283 = tpu.matmul %282, %266, %cst_164 {dimension_numbers = #tpu.dot_dimension_numbers<[1], [0], [0], [1], [0, 0, 1, 1], [], []>} : vector<16x16xf32>, vector<16x128xf32>, vector<16x128xf32> -> vector<16x128xf32>
    %cst_165 = arith.constant dense<0.000000e+00> : vector<16x128xf32>
    %284 = tpu.matmul %283, %254, %cst_165 {dimension_numbers = #tpu.dot_dimension_numbers<[1], [0], [0], [1], [0, 0, 1, 1], [], []>} : vector<16x128xf32>, vector<128x128xf32>, vector<16x128xf32> -> vector<16x128xf32>
    %285 = arith.addf %218, %284 : vector<16x128xf32>
    %286 = vector.extract_strided_slice %257 {offsets = [16, 0], sizes = [16, 128], strides = [1, 1]} : vector<32x128xf32> to vector<16x128xf32>
    %287 = vector.extract_strided_slice %260 {offsets = [16, 0], sizes = [16, 128], strides = [1, 1]} : vector<32x128xf32> to vector<16x128xf32>
    %288 = vector.extract_strided_slice %263 {offsets = [16, 0], sizes = [16, 128], strides = [1, 1]} : vector<32x128xf32> to vector<16x128xf32>
    %cst_166 = arith.constant dense<0.000000e+00> : vector<16x16xf32>
    %289 = tpu.matmul %286, %287, %cst_166 {dimension_numbers = #tpu.dot_dimension_numbers<[1], [1], [0], [0], [0, 0, 1, 0], [], []>} : vector<16x128xf32>, vector<16x128xf32>, vector<16x16xf32> -> vector<16x16xf32>
    %cst_167 = arith.constant 0.353553385 : f32
    %290 = vector.broadcast %cst_167 : f32 to vector<16x16xf32>
    %291 = arith.mulf %289, %290 : vector<16x16xf32>
    %c1_168 = arith.constant 1 : index
    %c0_169 = arith.constant 0 : index
    %c0_170 = arith.constant 0 : index
    %292 = vector.load %arg5[%c1_168, %c0_169, %c0_170] : memref<2x16x16xf32, #tpu.memory_space<vmem>>, vector<1x16x16xf32>
    %293 = vector.shape_cast %292 : vector<1x16x16xf32> to vector<16x16xf32>
    %294 = arith.addf %291, %293 : vector<16x16xf32>
    %cst_171 = arith.constant dense<0xFF800000> : vector<16xf32>
    %295 = vector.multi_reduction <maximumf>, %294, %cst_171 [1] : vector<16x16xf32> to vector<16xf32>
    %296 = vector.shape_cast %295 : vector<16xf32> to vector<16x1xf32>
    %297 = vector.broadcast %296 : vector<16x1xf32> to vector<16x16xf32>
    %298 = arith.subf %294, %297 : vector<16x16xf32>
    %299 = math.exp %298 : vector<16x16xf32>
    %cst_172 = arith.constant dense<0.000000e+00> : vector<16xf32>
    %300 = vector.multi_reduction <add>, %299, %cst_172 [1] : vector<16x16xf32> to vector<16xf32>
    %301 = vector.shape_cast %300 : vector<16xf32> to vector<16x1xf32>
    %302 = tpu.reciprocal %301 {approx = true} : vector<16x1xf32> -> vector<16x1xf32>
    %303 = vector.broadcast %302 : vector<16x1xf32> to vector<16x16xf32>
    %304 = arith.mulf %299, %303 : vector<16x16xf32>
    %cst_173 = arith.constant dense<0.000000e+00> : vector<16x128xf32>
    %305 = tpu.matmul %304, %288, %cst_173 {dimension_numbers = #tpu.dot_dimension_numbers<[1], [0], [0], [1], [0, 0, 1, 1], [], []>} : vector<16x16xf32>, vector<16x128xf32>, vector<16x128xf32> -> vector<16x128xf32>
    %cst_174 = arith.constant dense<0.000000e+00> : vector<16x128xf32>
    %306 = tpu.matmul %305, %254, %cst_174 {dimension_numbers = #tpu.dot_dimension_numbers<[1], [0], [0], [1], [0, 0, 1, 1], [], []>} : vector<16x128xf32>, vector<128x128xf32>, vector<16x128xf32> -> vector<16x128xf32>
    %307 = arith.addf %240, %306 : vector<16x128xf32>
    %308 = tpu.concatenate %285, %307 in 0 : vector<16x128xf32>, vector<16x128xf32> -> vector<32x128xf32>
    %309 = arith.addf %15, %308 : vector<32x128xf32>
    %c0_175 = arith.constant 0 : index
    %c0_176 = arith.constant 0 : index
    %c0_177 = arith.constant 0 : index
    %310 = vector.load %arg11[%c0_175, %c0_176, %c0_177] : memref<2x1x128xf32, #tpu.memory_space<vmem>>, vector<1x1x128xf32>
    %311 = vector.shape_cast %310 : vector<1x1x128xf32> to vector<1x128xf32>
    %312 = vector.broadcast %311 : vector<1x128xf32> to vector<32x128xf32>
    %313 = arith.addf %309, %312 : vector<32x128xf32>
    %c0_178 = arith.constant 0 : index
    %c0_179 = arith.constant 0 : index
    %c0_180 = arith.constant 0 : index
    %314 = vector.load %arg12[%c0_178, %c0_179, %c0_180] : memref<2x1x128xf32, #tpu.memory_space<vmem>>, vector<1x1x128xf32>
    %315 = vector.shape_cast %314 : vector<1x1x128xf32> to vector<1x128xf32>
    %c0_181 = arith.constant 0 : index
    %c0_182 = arith.constant 0 : index
    %c0_183 = arith.constant 0 : index
    %316 = vector.load %arg13[%c0_181, %c0_182, %c0_183] : memref<2x1x128xf32, #tpu.memory_space<vmem>>, vector<1x1x128xf32>
    %317 = vector.shape_cast %316 : vector<1x1x128xf32> to vector<1x128xf32>
    %cst_184 = arith.constant dense<0.000000e+00> : vector<32xf32>
    %318 = vector.multi_reduction <add>, %313, %cst_184 [1] : vector<32x128xf32> to vector<32xf32>
    %319 = vector.shape_cast %318 : vector<32xf32> to vector<32x1xf32>
    %cst_185 = arith.constant 3.125000e-02 : f32
    %320 = vector.broadcast %cst_185 : f32 to vector<32x1xf32>
    %321 = arith.mulf %319, %320 : vector<32x1xf32>
    %322 = arith.mulf %313, %313 : vector<32x128xf32>
    %cst_186 = arith.constant dense<0.000000e+00> : vector<32xf32>
    %323 = vector.multi_reduction <add>, %322, %cst_186 [1] : vector<32x128xf32> to vector<32xf32>
    %324 = vector.shape_cast %323 : vector<32xf32> to vector<32x1xf32>
    %cst_187 = arith.constant 3.125000e-02 : f32
    %325 = vector.broadcast %cst_187 : f32 to vector<32x1xf32>
    %326 = arith.mulf %324, %325 : vector<32x1xf32>
    %327 = arith.mulf %321, %321 : vector<32x1xf32>
    %328 = arith.subf %326, %327 : vector<32x1xf32>
    %329 = vector.broadcast %321 : vector<32x1xf32> to vector<32x128xf32>
    %330 = arith.subf %313, %329 : vector<32x128xf32>
    %cst_188 = arith.constant 9.99999974E-6 : f32
    %331 = vector.broadcast %cst_188 : f32 to vector<32x1xf32>
    %332 = arith.addf %328, %331 : vector<32x1xf32>
    %333 = math.rsqrt %332 : vector<32x1xf32>
    %334 = vector.broadcast %333 : vector<32x1xf32> to vector<32x128xf32>
    %335 = arith.mulf %330, %334 : vector<32x128xf32>
    %336 = vector.broadcast %315 : vector<1x128xf32> to vector<32x128xf32>
    %337 = arith.mulf %335, %336 : vector<32x128xf32>
    %338 = vector.broadcast %317 : vector<1x128xf32> to vector<32x128xf32>
    %339 = arith.addf %337, %338 : vector<32x128xf32>
    %c0_189 = arith.constant 0 : index
    %c0_190 = arith.constant 0 : index
    %c0_191 = arith.constant 0 : index
    %340 = vector.load %arg14[%c0_189, %c0_190, %c0_191] : memref<2x128x128xf32, #tpu.memory_space<vmem>>, vector<1x128x128xf32>
    %341 = vector.shape_cast %340 : vector<1x128x128xf32> to vector<128x128xf32>
    %cst_192 = arith.constant dense<0.000000e+00> : vector<32x128xf32>
    %342 = tpu.matmul %339, %341, %cst_192 {dimension_numbers = #tpu.dot_dimension_numbers<[1], [0], [0], [1], [0, 0, 1, 1], [], []>} : vector<32x128xf32>, vector<128x128xf32>, vector<32x128xf32> -> vector<32x128xf32>
    %c0_193 = arith.constant 0 : index
    %c0_194 = arith.constant 0 : index
    %c0_195 = arith.constant 0 : index
    %343 = vector.load %arg15[%c0_193, %c0_194, %c0_195] : memref<2x1x128xf32, #tpu.memory_space<vmem>>, vector<1x1x128xf32>
    %344 = vector.shape_cast %343 : vector<1x1x128xf32> to vector<1x128xf32>
    %345 = vector.broadcast %344 : vector<1x128xf32> to vector<32x128xf32>
    %346 = arith.addf %342, %345 : vector<32x128xf32>
    %cst_196 = arith.constant 5.000000e-01 : f32
    %347 = vector.broadcast %cst_196 : f32 to vector<32x128xf32>
    %348 = arith.mulf %347, %346 : vector<32x128xf32>
    %349 = arith.mulf %346, %346 : vector<32x128xf32>
    %350 = arith.mulf %349, %346 : vector<32x128xf32>
    %cst_197 = arith.constant 4.471500e-02 : f32
    %351 = vector.broadcast %cst_197 : f32 to vector<32x128xf32>
    %352 = arith.mulf %351, %350 : vector<32x128xf32>
    %353 = arith.addf %346, %352 : vector<32x128xf32>
    %cst_198 = arith.constant 0.797884583 : f32
    %354 = vector.broadcast %cst_198 : f32 to vector<32x128xf32>
    %355 = arith.mulf %354, %353 : vector<32x128xf32>
    %356 = math.tanh %355 : vector<32x128xf32>
    %cst_199 = arith.constant 1.000000e+00 : f32
    %357 = vector.broadcast %cst_199 : f32 to vector<32x128xf32>
    %358 = arith.addf %357, %356 : vector<32x128xf32>
    %359 = arith.mulf %348, %358 : vector<32x128xf32>
    %c0_200 = arith.constant 0 : index
    %c0_201 = arith.constant 0 : index
    %c0_202 = arith.constant 0 : index
    %360 = vector.load %arg16[%c0_200, %c0_201, %c0_202] : memref<2x128x128xf32, #tpu.memory_space<vmem>>, vector<1x128x128xf32>
    %361 = vector.shape_cast %360 : vector<1x128x128xf32> to vector<128x128xf32>
    %cst_203 = arith.constant dense<0.000000e+00> : vector<32x128xf32>
    %362 = tpu.matmul %359, %361, %cst_203 {dimension_numbers = #tpu.dot_dimension_numbers<[1], [0], [0], [1], [0, 0, 1, 1], [], []>} : vector<32x128xf32>, vector<128x128xf32>, vector<32x128xf32> -> vector<32x128xf32>
    %363 = arith.addf %313, %362 : vector<32x128xf32>
    %c0_204 = arith.constant 0 : index
    %c0_205 = arith.constant 0 : index
    %c0_206 = arith.constant 0 : index
    %364 = vector.load %arg17[%c0_204, %c0_205, %c0_206] : memref<2x1x128xf32, #tpu.memory_space<vmem>>, vector<1x1x128xf32>
    %365 = vector.shape_cast %364 : vector<1x1x128xf32> to vector<1x128xf32>
    %366 = vector.broadcast %365 : vector<1x128xf32> to vector<32x128xf32>
    %367 = arith.addf %363, %366 : vector<32x128xf32>
    %c1_207 = arith.constant 1 : index
    %c0_208 = arith.constant 0 : index
    %c0_209 = arith.constant 0 : index
    %368 = vector.load %arg6[%c1_207, %c0_208, %c0_209] : memref<2x1x128xf32, #tpu.memory_space<vmem>>, vector<1x1x128xf32>
    %369 = vector.shape_cast %368 : vector<1x1x128xf32> to vector<1x128xf32>
    %c1_210 = arith.constant 1 : index
    %c0_211 = arith.constant 0 : index
    %c0_212 = arith.constant 0 : index
    %370 = vector.load %arg7[%c1_210, %c0_211, %c0_212] : memref<2x1x128xf32, #tpu.memory_space<vmem>>, vector<1x1x128xf32>
    %371 = vector.shape_cast %370 : vector<1x1x128xf32> to vector<1x128xf32>
    %cst_213 = arith.constant dense<0.000000e+00> : vector<32xf32>
    %372 = vector.multi_reduction <add>, %367, %cst_213 [1] : vector<32x128xf32> to vector<32xf32>
    %373 = vector.shape_cast %372 : vector<32xf32> to vector<32x1xf32>
    %cst_214 = arith.constant 3.125000e-02 : f32
    %374 = vector.broadcast %cst_214 : f32 to vector<32x1xf32>
    %375 = arith.mulf %373, %374 : vector<32x1xf32>
    %376 = arith.mulf %367, %367 : vector<32x128xf32>
    %cst_215 = arith.constant dense<0.000000e+00> : vector<32xf32>
    %377 = vector.multi_reduction <add>, %376, %cst_215 [1] : vector<32x128xf32> to vector<32xf32>
    %378 = vector.shape_cast %377 : vector<32xf32> to vector<32x1xf32>
    %cst_216 = arith.constant 3.125000e-02 : f32
    %379 = vector.broadcast %cst_216 : f32 to vector<32x1xf32>
    %380 = arith.mulf %378, %379 : vector<32x1xf32>
    %381 = arith.mulf %375, %375 : vector<32x1xf32>
    %382 = arith.subf %380, %381 : vector<32x1xf32>
    %383 = vector.broadcast %375 : vector<32x1xf32> to vector<32x128xf32>
    %384 = arith.subf %367, %383 : vector<32x128xf32>
    %cst_217 = arith.constant 9.99999974E-6 : f32
    %385 = vector.broadcast %cst_217 : f32 to vector<32x1xf32>
    %386 = arith.addf %382, %385 : vector<32x1xf32>
    %387 = math.rsqrt %386 : vector<32x1xf32>
    %388 = vector.broadcast %387 : vector<32x1xf32> to vector<32x128xf32>
    %389 = arith.mulf %384, %388 : vector<32x128xf32>
    %390 = vector.broadcast %369 : vector<1x128xf32> to vector<32x128xf32>
    %391 = arith.mulf %389, %390 : vector<32x128xf32>
    %392 = vector.broadcast %371 : vector<1x128xf32> to vector<32x128xf32>
    %393 = arith.addf %391, %392 : vector<32x128xf32>
    %c1_218 = arith.constant 1 : index
    %c0_219 = arith.constant 0 : index
    %c0_220 = arith.constant 0 : index
    %394 = vector.load %arg8[%c1_218, %c0_219, %c0_220] : memref<2x128x1536xf32, #tpu.memory_space<vmem>>, vector<1x128x128xf32>
    %395 = vector.shape_cast %394 : vector<1x128x128xf32> to vector<128x128xf32>
    %c1_221 = arith.constant 1 : index
    %c0_222 = arith.constant 0 : index
    %c512_223 = arith.constant 512 : index
    %396 = vector.load %arg8[%c1_221, %c0_222, %c512_223] : memref<2x128x1536xf32, #tpu.memory_space<vmem>>, vector<1x128x128xf32>
    %397 = vector.shape_cast %396 : vector<1x128x128xf32> to vector<128x128xf32>
    %c1_224 = arith.constant 1 : index
    %c0_225 = arith.constant 0 : index
    %c1024_226 = arith.constant 1024 : index
    %398 = vector.load %arg8[%c1_224, %c0_225, %c1024_226] : memref<2x128x1536xf32, #tpu.memory_space<vmem>>, vector<1x128x128xf32>
    %399 = vector.shape_cast %398 : vector<1x128x128xf32> to vector<128x128xf32>
    %c1_227 = arith.constant 1 : index
    %c0_228 = arith.constant 0 : index
    %c0_229 = arith.constant 0 : index
    %400 = vector.load %arg9[%c1_227, %c0_228, %c0_229] : memref<2x1x1536xf32, #tpu.memory_space<vmem>>, vector<1x1x128xf32>
    %401 = vector.shape_cast %400 : vector<1x1x128xf32> to vector<1x128xf32>
    %c1_230 = arith.constant 1 : index
    %c0_231 = arith.constant 0 : index
    %c512_232 = arith.constant 512 : index
    %402 = vector.load %arg9[%c1_230, %c0_231, %c512_232] : memref<2x1x1536xf32, #tpu.memory_space<vmem>>, vector<1x1x128xf32>
    %403 = vector.shape_cast %402 : vector<1x1x128xf32> to vector<1x128xf32>
    %c1_233 = arith.constant 1 : index
    %c0_234 = arith.constant 0 : index
    %c1024_235 = arith.constant 1024 : index
    %404 = vector.load %arg9[%c1_233, %c0_234, %c1024_235] : memref<2x1x1536xf32, #tpu.memory_space<vmem>>, vector<1x1x128xf32>
    %405 = vector.shape_cast %404 : vector<1x1x128xf32> to vector<1x128xf32>
    %c1_236 = arith.constant 1 : index
    %c0_237 = arith.constant 0 : index
    %c0_238 = arith.constant 0 : index
    %406 = vector.load %arg10[%c1_236, %c0_237, %c0_238] : memref<2x512x128xf32, #tpu.memory_space<vmem>>, vector<1x128x128xf32>
    %407 = vector.shape_cast %406 : vector<1x128x128xf32> to vector<128x128xf32>
    %cst_239 = arith.constant dense<0.000000e+00> : vector<32x128xf32>
    %408 = tpu.matmul %393, %395, %cst_239 {dimension_numbers = #tpu.dot_dimension_numbers<[1], [0], [0], [1], [0, 0, 1, 1], [], []>} : vector<32x128xf32>, vector<128x128xf32>, vector<32x128xf32> -> vector<32x128xf32>
    %409 = vector.broadcast %401 : vector<1x128xf32> to vector<32x128xf32>
    %410 = arith.addf %408, %409 : vector<32x128xf32>
    %cst_240 = arith.constant dense<0.000000e+00> : vector<32x128xf32>
    %411 = tpu.matmul %393, %397, %cst_240 {dimension_numbers = #tpu.dot_dimension_numbers<[1], [0], [0], [1], [0, 0, 1, 1], [], []>} : vector<32x128xf32>, vector<128x128xf32>, vector<32x128xf32> -> vector<32x128xf32>
    %412 = vector.broadcast %403 : vector<1x128xf32> to vector<32x128xf32>
    %413 = arith.addf %411, %412 : vector<32x128xf32>
    %cst_241 = arith.constant dense<0.000000e+00> : vector<32x128xf32>
    %414 = tpu.matmul %393, %399, %cst_241 {dimension_numbers = #tpu.dot_dimension_numbers<[1], [0], [0], [1], [0, 0, 1, 1], [], []>} : vector<32x128xf32>, vector<128x128xf32>, vector<32x128xf32> -> vector<32x128xf32>
    %415 = vector.broadcast %405 : vector<1x128xf32> to vector<32x128xf32>
    %416 = arith.addf %414, %415 : vector<32x128xf32>
    %417 = vector.extract_strided_slice %410 {offsets = [0, 0], sizes = [16, 128], strides = [1, 1]} : vector<32x128xf32> to vector<16x128xf32>
    %418 = vector.extract_strided_slice %413 {offsets = [0, 0], sizes = [16, 128], strides = [1, 1]} : vector<32x128xf32> to vector<16x128xf32>
    %419 = vector.extract_strided_slice %416 {offsets = [0, 0], sizes = [16, 128], strides = [1, 1]} : vector<32x128xf32> to vector<16x128xf32>
    %cst_242 = arith.constant dense<0.000000e+00> : vector<16x16xf32>
    %420 = tpu.matmul %417, %418, %cst_242 {dimension_numbers = #tpu.dot_dimension_numbers<[1], [1], [0], [0], [0, 0, 1, 0], [], []>} : vector<16x128xf32>, vector<16x128xf32>, vector<16x16xf32> -> vector<16x16xf32>
    %cst_243 = arith.constant 0.353553385 : f32
    %421 = vector.broadcast %cst_243 : f32 to vector<16x16xf32>
    %422 = arith.mulf %420, %421 : vector<16x16xf32>
    %c0_244 = arith.constant 0 : index
    %c0_245 = arith.constant 0 : index
    %c0_246 = arith.constant 0 : index
    %423 = vector.load %arg5[%c0_244, %c0_245, %c0_246] : memref<2x16x16xf32, #tpu.memory_space<vmem>>, vector<1x16x16xf32>
    %424 = vector.shape_cast %423 : vector<1x16x16xf32> to vector<16x16xf32>
    %425 = arith.addf %422, %424 : vector<16x16xf32>
    %cst_247 = arith.constant dense<0xFF800000> : vector<16xf32>
    %426 = vector.multi_reduction <maximumf>, %425, %cst_247 [1] : vector<16x16xf32> to vector<16xf32>
    %427 = vector.shape_cast %426 : vector<16xf32> to vector<16x1xf32>
    %428 = vector.broadcast %427 : vector<16x1xf32> to vector<16x16xf32>
    %429 = arith.subf %425, %428 : vector<16x16xf32>
    %430 = math.exp %429 : vector<16x16xf32>
    %cst_248 = arith.constant dense<0.000000e+00> : vector<16xf32>
    %431 = vector.multi_reduction <add>, %430, %cst_248 [1] : vector<16x16xf32> to vector<16xf32>
    %432 = vector.shape_cast %431 : vector<16xf32> to vector<16x1xf32>
    %433 = tpu.reciprocal %432 {approx = true} : vector<16x1xf32> -> vector<16x1xf32>
    %434 = vector.broadcast %433 : vector<16x1xf32> to vector<16x16xf32>
    %435 = arith.mulf %430, %434 : vector<16x16xf32>
    %cst_249 = arith.constant dense<0.000000e+00> : vector<16x128xf32>
    %436 = tpu.matmul %435, %419, %cst_249 {dimension_numbers = #tpu.dot_dimension_numbers<[1], [0], [0], [1], [0, 0, 1, 1], [], []>} : vector<16x16xf32>, vector<16x128xf32>, vector<16x128xf32> -> vector<16x128xf32>
    %cst_250 = arith.constant dense<0.000000e+00> : vector<16x128xf32>
    %437 = tpu.matmul %436, %407, %cst_250 {dimension_numbers = #tpu.dot_dimension_numbers<[1], [0], [0], [1], [0, 0, 1, 1], [], []>} : vector<16x128xf32>, vector<128x128xf32>, vector<16x128xf32> -> vector<16x128xf32>
    %438 = vector.extract_strided_slice %410 {offsets = [16, 0], sizes = [16, 128], strides = [1, 1]} : vector<32x128xf32> to vector<16x128xf32>
    %439 = vector.extract_strided_slice %413 {offsets = [16, 0], sizes = [16, 128], strides = [1, 1]} : vector<32x128xf32> to vector<16x128xf32>
    %440 = vector.extract_strided_slice %416 {offsets = [16, 0], sizes = [16, 128], strides = [1, 1]} : vector<32x128xf32> to vector<16x128xf32>
    %cst_251 = arith.constant dense<0.000000e+00> : vector<16x16xf32>
    %441 = tpu.matmul %438, %439, %cst_251 {dimension_numbers = #tpu.dot_dimension_numbers<[1], [1], [0], [0], [0, 0, 1, 0], [], []>} : vector<16x128xf32>, vector<16x128xf32>, vector<16x16xf32> -> vector<16x16xf32>
    %cst_252 = arith.constant 0.353553385 : f32
    %442 = vector.broadcast %cst_252 : f32 to vector<16x16xf32>
    %443 = arith.mulf %441, %442 : vector<16x16xf32>
    %c1_253 = arith.constant 1 : index
    %c0_254 = arith.constant 0 : index
    %c0_255 = arith.constant 0 : index
    %444 = vector.load %arg5[%c1_253, %c0_254, %c0_255] : memref<2x16x16xf32, #tpu.memory_space<vmem>>, vector<1x16x16xf32>
    %445 = vector.shape_cast %444 : vector<1x16x16xf32> to vector<16x16xf32>
    %446 = arith.addf %443, %445 : vector<16x16xf32>
    %cst_256 = arith.constant dense<0xFF800000> : vector<16xf32>
    %447 = vector.multi_reduction <maximumf>, %446, %cst_256 [1] : vector<16x16xf32> to vector<16xf32>
    %448 = vector.shape_cast %447 : vector<16xf32> to vector<16x1xf32>
    %449 = vector.broadcast %448 : vector<16x1xf32> to vector<16x16xf32>
    %450 = arith.subf %446, %449 : vector<16x16xf32>
    %451 = math.exp %450 : vector<16x16xf32>
    %cst_257 = arith.constant dense<0.000000e+00> : vector<16xf32>
    %452 = vector.multi_reduction <add>, %451, %cst_257 [1] : vector<16x16xf32> to vector<16xf32>
    %453 = vector.shape_cast %452 : vector<16xf32> to vector<16x1xf32>
    %454 = tpu.reciprocal %453 {approx = true} : vector<16x1xf32> -> vector<16x1xf32>
    %455 = vector.broadcast %454 : vector<16x1xf32> to vector<16x16xf32>
    %456 = arith.mulf %451, %455 : vector<16x16xf32>
    %cst_258 = arith.constant dense<0.000000e+00> : vector<16x128xf32>
    %457 = tpu.matmul %456, %440, %cst_258 {dimension_numbers = #tpu.dot_dimension_numbers<[1], [0], [0], [1], [0, 0, 1, 1], [], []>} : vector<16x16xf32>, vector<16x128xf32>, vector<16x128xf32> -> vector<16x128xf32>
    %cst_259 = arith.constant dense<0.000000e+00> : vector<16x128xf32>
    %458 = tpu.matmul %457, %407, %cst_259 {dimension_numbers = #tpu.dot_dimension_numbers<[1], [0], [0], [1], [0, 0, 1, 1], [], []>} : vector<16x128xf32>, vector<128x128xf32>, vector<16x128xf32> -> vector<16x128xf32>
    %c1_260 = arith.constant 1 : index
    %c0_261 = arith.constant 0 : index
    %c128_262 = arith.constant 128 : index
    %459 = vector.load %arg8[%c1_260, %c0_261, %c128_262] : memref<2x128x1536xf32, #tpu.memory_space<vmem>>, vector<1x128x128xf32>
    %460 = vector.shape_cast %459 : vector<1x128x128xf32> to vector<128x128xf32>
    %c1_263 = arith.constant 1 : index
    %c0_264 = arith.constant 0 : index
    %c640_265 = arith.constant 640 : index
    %461 = vector.load %arg8[%c1_263, %c0_264, %c640_265] : memref<2x128x1536xf32, #tpu.memory_space<vmem>>, vector<1x128x128xf32>
    %462 = vector.shape_cast %461 : vector<1x128x128xf32> to vector<128x128xf32>
    %c1_266 = arith.constant 1 : index
    %c0_267 = arith.constant 0 : index
    %c1152_268 = arith.constant 1152 : index
    %463 = vector.load %arg8[%c1_266, %c0_267, %c1152_268] : memref<2x128x1536xf32, #tpu.memory_space<vmem>>, vector<1x128x128xf32>
    %464 = vector.shape_cast %463 : vector<1x128x128xf32> to vector<128x128xf32>
    %c1_269 = arith.constant 1 : index
    %c0_270 = arith.constant 0 : index
    %c128_271 = arith.constant 128 : index
    %465 = vector.load %arg9[%c1_269, %c0_270, %c128_271] : memref<2x1x1536xf32, #tpu.memory_space<vmem>>, vector<1x1x128xf32>
    %466 = vector.shape_cast %465 : vector<1x1x128xf32> to vector<1x128xf32>
    %c1_272 = arith.constant 1 : index
    %c0_273 = arith.constant 0 : index
    %c640_274 = arith.constant 640 : index
    %467 = vector.load %arg9[%c1_272, %c0_273, %c640_274] : memref<2x1x1536xf32, #tpu.memory_space<vmem>>, vector<1x1x128xf32>
    %468 = vector.shape_cast %467 : vector<1x1x128xf32> to vector<1x128xf32>
    %c1_275 = arith.constant 1 : index
    %c0_276 = arith.constant 0 : index
    %c1152_277 = arith.constant 1152 : index
    %469 = vector.load %arg9[%c1_275, %c0_276, %c1152_277] : memref<2x1x1536xf32, #tpu.memory_space<vmem>>, vector<1x1x128xf32>
    %470 = vector.shape_cast %469 : vector<1x1x128xf32> to vector<1x128xf32>
    %c1_278 = arith.constant 1 : index
    %c128_279 = arith.constant 128 : index
    %c0_280 = arith.constant 0 : index
    %471 = vector.load %arg10[%c1_278, %c128_279, %c0_280] : memref<2x512x128xf32, #tpu.memory_space<vmem>>, vector<1x128x128xf32>
    %472 = vector.shape_cast %471 : vector<1x128x128xf32> to vector<128x128xf32>
    %cst_281 = arith.constant dense<0.000000e+00> : vector<32x128xf32>
    %473 = tpu.matmul %393, %460, %cst_281 {dimension_numbers = #tpu.dot_dimension_numbers<[1], [0], [0], [1], [0, 0, 1, 1], [], []>} : vector<32x128xf32>, vector<128x128xf32>, vector<32x128xf32> -> vector<32x128xf32>
    %474 = vector.broadcast %466 : vector<1x128xf32> to vector<32x128xf32>
    %475 = arith.addf %473, %474 : vector<32x128xf32>
    %cst_282 = arith.constant dense<0.000000e+00> : vector<32x128xf32>
    %476 = tpu.matmul %393, %462, %cst_282 {dimension_numbers = #tpu.dot_dimension_numbers<[1], [0], [0], [1], [0, 0, 1, 1], [], []>} : vector<32x128xf32>, vector<128x128xf32>, vector<32x128xf32> -> vector<32x128xf32>
    %477 = vector.broadcast %468 : vector<1x128xf32> to vector<32x128xf32>
    %478 = arith.addf %476, %477 : vector<32x128xf32>
    %cst_283 = arith.constant dense<0.000000e+00> : vector<32x128xf32>
    %479 = tpu.matmul %393, %464, %cst_283 {dimension_numbers = #tpu.dot_dimension_numbers<[1], [0], [0], [1], [0, 0, 1, 1], [], []>} : vector<32x128xf32>, vector<128x128xf32>, vector<32x128xf32> -> vector<32x128xf32>
    %480 = vector.broadcast %470 : vector<1x128xf32> to vector<32x128xf32>
    %481 = arith.addf %479, %480 : vector<32x128xf32>
    %482 = vector.extract_strided_slice %475 {offsets = [0, 0], sizes = [16, 128], strides = [1, 1]} : vector<32x128xf32> to vector<16x128xf32>
    %483 = vector.extract_strided_slice %478 {offsets = [0, 0], sizes = [16, 128], strides = [1, 1]} : vector<32x128xf32> to vector<16x128xf32>
    %484 = vector.extract_strided_slice %481 {offsets = [0, 0], sizes = [16, 128], strides = [1, 1]} : vector<32x128xf32> to vector<16x128xf32>
    %cst_284 = arith.constant dense<0.000000e+00> : vector<16x16xf32>
    %485 = tpu.matmul %482, %483, %cst_284 {dimension_numbers = #tpu.dot_dimension_numbers<[1], [1], [0], [0], [0, 0, 1, 0], [], []>} : vector<16x128xf32>, vector<16x128xf32>, vector<16x16xf32> -> vector<16x16xf32>
    %cst_285 = arith.constant 0.353553385 : f32
    %486 = vector.broadcast %cst_285 : f32 to vector<16x16xf32>
    %487 = arith.mulf %485, %486 : vector<16x16xf32>
    %c0_286 = arith.constant 0 : index
    %c0_287 = arith.constant 0 : index
    %c0_288 = arith.constant 0 : index
    %488 = vector.load %arg5[%c0_286, %c0_287, %c0_288] : memref<2x16x16xf32, #tpu.memory_space<vmem>>, vector<1x16x16xf32>
    %489 = vector.shape_cast %488 : vector<1x16x16xf32> to vector<16x16xf32>
    %490 = arith.addf %487, %489 : vector<16x16xf32>
    %cst_289 = arith.constant dense<0xFF800000> : vector<16xf32>
    %491 = vector.multi_reduction <maximumf>, %490, %cst_289 [1] : vector<16x16xf32> to vector<16xf32>
    %492 = vector.shape_cast %491 : vector<16xf32> to vector<16x1xf32>
    %493 = vector.broadcast %492 : vector<16x1xf32> to vector<16x16xf32>
    %494 = arith.subf %490, %493 : vector<16x16xf32>
    %495 = math.exp %494 : vector<16x16xf32>
    %cst_290 = arith.constant dense<0.000000e+00> : vector<16xf32>
    %496 = vector.multi_reduction <add>, %495, %cst_290 [1] : vector<16x16xf32> to vector<16xf32>
    %497 = vector.shape_cast %496 : vector<16xf32> to vector<16x1xf32>
    %498 = tpu.reciprocal %497 {approx = true} : vector<16x1xf32> -> vector<16x1xf32>
    %499 = vector.broadcast %498 : vector<16x1xf32> to vector<16x16xf32>
    %500 = arith.mulf %495, %499 : vector<16x16xf32>
    %cst_291 = arith.constant dense<0.000000e+00> : vector<16x128xf32>
    %501 = tpu.matmul %500, %484, %cst_291 {dimension_numbers = #tpu.dot_dimension_numbers<[1], [0], [0], [1], [0, 0, 1, 1], [], []>} : vector<16x16xf32>, vector<16x128xf32>, vector<16x128xf32> -> vector<16x128xf32>
    %cst_292 = arith.constant dense<0.000000e+00> : vector<16x128xf32>
    %502 = tpu.matmul %501, %472, %cst_292 {dimension_numbers = #tpu.dot_dimension_numbers<[1], [0], [0], [1], [0, 0, 1, 1], [], []>} : vector<16x128xf32>, vector<128x128xf32>, vector<16x128xf32> -> vector<16x128xf32>
    %503 = arith.addf %437, %502 : vector<16x128xf32>
    %504 = vector.extract_strided_slice %475 {offsets = [16, 0], sizes = [16, 128], strides = [1, 1]} : vector<32x128xf32> to vector<16x128xf32>
    %505 = vector.extract_strided_slice %478 {offsets = [16, 0], sizes = [16, 128], strides = [1, 1]} : vector<32x128xf32> to vector<16x128xf32>
    %506 = vector.extract_strided_slice %481 {offsets = [16, 0], sizes = [16, 128], strides = [1, 1]} : vector<32x128xf32> to vector<16x128xf32>
    %cst_293 = arith.constant dense<0.000000e+00> : vector<16x16xf32>
    %507 = tpu.matmul %504, %505, %cst_293 {dimension_numbers = #tpu.dot_dimension_numbers<[1], [1], [0], [0], [0, 0, 1, 0], [], []>} : vector<16x128xf32>, vector<16x128xf32>, vector<16x16xf32> -> vector<16x16xf32>
    %cst_294 = arith.constant 0.353553385 : f32
    %508 = vector.broadcast %cst_294 : f32 to vector<16x16xf32>
    %509 = arith.mulf %507, %508 : vector<16x16xf32>
    %c1_295 = arith.constant 1 : index
    %c0_296 = arith.constant 0 : index
    %c0_297 = arith.constant 0 : index
    %510 = vector.load %arg5[%c1_295, %c0_296, %c0_297] : memref<2x16x16xf32, #tpu.memory_space<vmem>>, vector<1x16x16xf32>
    %511 = vector.shape_cast %510 : vector<1x16x16xf32> to vector<16x16xf32>
    %512 = arith.addf %509, %511 : vector<16x16xf32>
    %cst_298 = arith.constant dense<0xFF800000> : vector<16xf32>
    %513 = vector.multi_reduction <maximumf>, %512, %cst_298 [1] : vector<16x16xf32> to vector<16xf32>
    %514 = vector.shape_cast %513 : vector<16xf32> to vector<16x1xf32>
    %515 = vector.broadcast %514 : vector<16x1xf32> to vector<16x16xf32>
    %516 = arith.subf %512, %515 : vector<16x16xf32>
    %517 = math.exp %516 : vector<16x16xf32>
    %cst_299 = arith.constant dense<0.000000e+00> : vector<16xf32>
    %518 = vector.multi_reduction <add>, %517, %cst_299 [1] : vector<16x16xf32> to vector<16xf32>
    %519 = vector.shape_cast %518 : vector<16xf32> to vector<16x1xf32>
    %520 = tpu.reciprocal %519 {approx = true} : vector<16x1xf32> -> vector<16x1xf32>
    %521 = vector.broadcast %520 : vector<16x1xf32> to vector<16x16xf32>
    %522 = arith.mulf %517, %521 : vector<16x16xf32>
    %cst_300 = arith.constant dense<0.000000e+00> : vector<16x128xf32>
    %523 = tpu.matmul %522, %506, %cst_300 {dimension_numbers = #tpu.dot_dimension_numbers<[1], [0], [0], [1], [0, 0, 1, 1], [], []>} : vector<16x16xf32>, vector<16x128xf32>, vector<16x128xf32> -> vector<16x128xf32>
    %cst_301 = arith.constant dense<0.000000e+00> : vector<16x128xf32>
    %524 = tpu.matmul %523, %472, %cst_301 {dimension_numbers = #tpu.dot_dimension_numbers<[1], [0], [0], [1], [0, 0, 1, 1], [], []>} : vector<16x128xf32>, vector<128x128xf32>, vector<16x128xf32> -> vector<16x128xf32>
    %525 = arith.addf %458, %524 : vector<16x128xf32>
    %c1_302 = arith.constant 1 : index
    %c0_303 = arith.constant 0 : index
    %c256_304 = arith.constant 256 : index
    %526 = vector.load %arg8[%c1_302, %c0_303, %c256_304] : memref<2x128x1536xf32, #tpu.memory_space<vmem>>, vector<1x128x128xf32>
    %527 = vector.shape_cast %526 : vector<1x128x128xf32> to vector<128x128xf32>
    %c1_305 = arith.constant 1 : index
    %c0_306 = arith.constant 0 : index
    %c768_307 = arith.constant 768 : index
    %528 = vector.load %arg8[%c1_305, %c0_306, %c768_307] : memref<2x128x1536xf32, #tpu.memory_space<vmem>>, vector<1x128x128xf32>
    %529 = vector.shape_cast %528 : vector<1x128x128xf32> to vector<128x128xf32>
    %c1_308 = arith.constant 1 : index
    %c0_309 = arith.constant 0 : index
    %c1280_310 = arith.constant 1280 : index
    %530 = vector.load %arg8[%c1_308, %c0_309, %c1280_310] : memref<2x128x1536xf32, #tpu.memory_space<vmem>>, vector<1x128x128xf32>
    %531 = vector.shape_cast %530 : vector<1x128x128xf32> to vector<128x128xf32>
    %c1_311 = arith.constant 1 : index
    %c0_312 = arith.constant 0 : index
    %c256_313 = arith.constant 256 : index
    %532 = vector.load %arg9[%c1_311, %c0_312, %c256_313] : memref<2x1x1536xf32, #tpu.memory_space<vmem>>, vector<1x1x128xf32>
    %533 = vector.shape_cast %532 : vector<1x1x128xf32> to vector<1x128xf32>
    %c1_314 = arith.constant 1 : index
    %c0_315 = arith.constant 0 : index
    %c768_316 = arith.constant 768 : index
    %534 = vector.load %arg9[%c1_314, %c0_315, %c768_316] : memref<2x1x1536xf32, #tpu.memory_space<vmem>>, vector<1x1x128xf32>
    %535 = vector.shape_cast %534 : vector<1x1x128xf32> to vector<1x128xf32>
    %c1_317 = arith.constant 1 : index
    %c0_318 = arith.constant 0 : index
    %c1280_319 = arith.constant 1280 : index
    %536 = vector.load %arg9[%c1_317, %c0_318, %c1280_319] : memref<2x1x1536xf32, #tpu.memory_space<vmem>>, vector<1x1x128xf32>
    %537 = vector.shape_cast %536 : vector<1x1x128xf32> to vector<1x128xf32>
    %c1_320 = arith.constant 1 : index
    %c256_321 = arith.constant 256 : index
    %c0_322 = arith.constant 0 : index
    %538 = vector.load %arg10[%c1_320, %c256_321, %c0_322] : memref<2x512x128xf32, #tpu.memory_space<vmem>>, vector<1x128x128xf32>
    %539 = vector.shape_cast %538 : vector<1x128x128xf32> to vector<128x128xf32>
    %cst_323 = arith.constant dense<0.000000e+00> : vector<32x128xf32>
    %540 = tpu.matmul %393, %527, %cst_323 {dimension_numbers = #tpu.dot_dimension_numbers<[1], [0], [0], [1], [0, 0, 1, 1], [], []>} : vector<32x128xf32>, vector<128x128xf32>, vector<32x128xf32> -> vector<32x128xf32>
    %541 = vector.broadcast %533 : vector<1x128xf32> to vector<32x128xf32>
    %542 = arith.addf %540, %541 : vector<32x128xf32>
    %cst_324 = arith.constant dense<0.000000e+00> : vector<32x128xf32>
    %543 = tpu.matmul %393, %529, %cst_324 {dimension_numbers = #tpu.dot_dimension_numbers<[1], [0], [0], [1], [0, 0, 1, 1], [], []>} : vector<32x128xf32>, vector<128x128xf32>, vector<32x128xf32> -> vector<32x128xf32>
    %544 = vector.broadcast %535 : vector<1x128xf32> to vector<32x128xf32>
    %545 = arith.addf %543, %544 : vector<32x128xf32>
    %cst_325 = arith.constant dense<0.000000e+00> : vector<32x128xf32>
    %546 = tpu.matmul %393, %531, %cst_325 {dimension_numbers = #tpu.dot_dimension_numbers<[1], [0], [0], [1], [0, 0, 1, 1], [], []>} : vector<32x128xf32>, vector<128x128xf32>, vector<32x128xf32> -> vector<32x128xf32>
    %547 = vector.broadcast %537 : vector<1x128xf32> to vector<32x128xf32>
    %548 = arith.addf %546, %547 : vector<32x128xf32>
    %549 = vector.extract_strided_slice %542 {offsets = [0, 0], sizes = [16, 128], strides = [1, 1]} : vector<32x128xf32> to vector<16x128xf32>
    %550 = vector.extract_strided_slice %545 {offsets = [0, 0], sizes = [16, 128], strides = [1, 1]} : vector<32x128xf32> to vector<16x128xf32>
    %551 = vector.extract_strided_slice %548 {offsets = [0, 0], sizes = [16, 128], strides = [1, 1]} : vector<32x128xf32> to vector<16x128xf32>
    %cst_326 = arith.constant dense<0.000000e+00> : vector<16x16xf32>
    %552 = tpu.matmul %549, %550, %cst_326 {dimension_numbers = #tpu.dot_dimension_numbers<[1], [1], [0], [0], [0, 0, 1, 0], [], []>} : vector<16x128xf32>, vector<16x128xf32>, vector<16x16xf32> -> vector<16x16xf32>
    %cst_327 = arith.constant 0.353553385 : f32
    %553 = vector.broadcast %cst_327 : f32 to vector<16x16xf32>
    %554 = arith.mulf %552, %553 : vector<16x16xf32>
    %c0_328 = arith.constant 0 : index
    %c0_329 = arith.constant 0 : index
    %c0_330 = arith.constant 0 : index
    %555 = vector.load %arg5[%c0_328, %c0_329, %c0_330] : memref<2x16x16xf32, #tpu.memory_space<vmem>>, vector<1x16x16xf32>
    %556 = vector.shape_cast %555 : vector<1x16x16xf32> to vector<16x16xf32>
    %557 = arith.addf %554, %556 : vector<16x16xf32>
    %cst_331 = arith.constant dense<0xFF800000> : vector<16xf32>
    %558 = vector.multi_reduction <maximumf>, %557, %cst_331 [1] : vector<16x16xf32> to vector<16xf32>
    %559 = vector.shape_cast %558 : vector<16xf32> to vector<16x1xf32>
    %560 = vector.broadcast %559 : vector<16x1xf32> to vector<16x16xf32>
    %561 = arith.subf %557, %560 : vector<16x16xf32>
    %562 = math.exp %561 : vector<16x16xf32>
    %cst_332 = arith.constant dense<0.000000e+00> : vector<16xf32>
    %563 = vector.multi_reduction <add>, %562, %cst_332 [1] : vector<16x16xf32> to vector<16xf32>
    %564 = vector.shape_cast %563 : vector<16xf32> to vector<16x1xf32>
    %565 = tpu.reciprocal %564 {approx = true} : vector<16x1xf32> -> vector<16x1xf32>
    %566 = vector.broadcast %565 : vector<16x1xf32> to vector<16x16xf32>
    %567 = arith.mulf %562, %566 : vector<16x16xf32>
    %cst_333 = arith.constant dense<0.000000e+00> : vector<16x128xf32>
    %568 = tpu.matmul %567, %551, %cst_333 {dimension_numbers = #tpu.dot_dimension_numbers<[1], [0], [0], [1], [0, 0, 1, 1], [], []>} : vector<16x16xf32>, vector<16x128xf32>, vector<16x128xf32> -> vector<16x128xf32>
    %cst_334 = arith.constant dense<0.000000e+00> : vector<16x128xf32>
    %569 = tpu.matmul %568, %539, %cst_334 {dimension_numbers = #tpu.dot_dimension_numbers<[1], [0], [0], [1], [0, 0, 1, 1], [], []>} : vector<16x128xf32>, vector<128x128xf32>, vector<16x128xf32> -> vector<16x128xf32>
    %570 = arith.addf %503, %569 : vector<16x128xf32>
    %571 = vector.extract_strided_slice %542 {offsets = [16, 0], sizes = [16, 128], strides = [1, 1]} : vector<32x128xf32> to vector<16x128xf32>
    %572 = vector.extract_strided_slice %545 {offsets = [16, 0], sizes = [16, 128], strides = [1, 1]} : vector<32x128xf32> to vector<16x128xf32>
    %573 = vector.extract_strided_slice %548 {offsets = [16, 0], sizes = [16, 128], strides = [1, 1]} : vector<32x128xf32> to vector<16x128xf32>
    %cst_335 = arith.constant dense<0.000000e+00> : vector<16x16xf32>
    %574 = tpu.matmul %571, %572, %cst_335 {dimension_numbers = #tpu.dot_dimension_numbers<[1], [1], [0], [0], [0, 0, 1, 0], [], []>} : vector<16x128xf32>, vector<16x128xf32>, vector<16x16xf32> -> vector<16x16xf32>
    %cst_336 = arith.constant 0.353553385 : f32
    %575 = vector.broadcast %cst_336 : f32 to vector<16x16xf32>
    %576 = arith.mulf %574, %575 : vector<16x16xf32>
    %c1_337 = arith.constant 1 : index
    %c0_338 = arith.constant 0 : index
    %c0_339 = arith.constant 0 : index
    %577 = vector.load %arg5[%c1_337, %c0_338, %c0_339] : memref<2x16x16xf32, #tpu.memory_space<vmem>>, vector<1x16x16xf32>
    %578 = vector.shape_cast %577 : vector<1x16x16xf32> to vector<16x16xf32>
    %579 = arith.addf %576, %578 : vector<16x16xf32>
    %cst_340 = arith.constant dense<0xFF800000> : vector<16xf32>
    %580 = vector.multi_reduction <maximumf>, %579, %cst_340 [1] : vector<16x16xf32> to vector<16xf32>
    %581 = vector.shape_cast %580 : vector<16xf32> to vector<16x1xf32>
    %582 = vector.broadcast %581 : vector<16x1xf32> to vector<16x16xf32>
    %583 = arith.subf %579, %582 : vector<16x16xf32>
    %584 = math.exp %583 : vector<16x16xf32>
    %cst_341 = arith.constant dense<0.000000e+00> : vector<16xf32>
    %585 = vector.multi_reduction <add>, %584, %cst_341 [1] : vector<16x16xf32> to vector<16xf32>
    %586 = vector.shape_cast %585 : vector<16xf32> to vector<16x1xf32>
    %587 = tpu.reciprocal %586 {approx = true} : vector<16x1xf32> -> vector<16x1xf32>
    %588 = vector.broadcast %587 : vector<16x1xf32> to vector<16x16xf32>
    %589 = arith.mulf %584, %588 : vector<16x16xf32>
    %cst_342 = arith.constant dense<0.000000e+00> : vector<16x128xf32>
    %590 = tpu.matmul %589, %573, %cst_342 {dimension_numbers = #tpu.dot_dimension_numbers<[1], [0], [0], [1], [0, 0, 1, 1], [], []>} : vector<16x16xf32>, vector<16x128xf32>, vector<16x128xf32> -> vector<16x128xf32>
    %cst_343 = arith.constant dense<0.000000e+00> : vector<16x128xf32>
    %591 = tpu.matmul %590, %539, %cst_343 {dimension_numbers = #tpu.dot_dimension_numbers<[1], [0], [0], [1], [0, 0, 1, 1], [], []>} : vector<16x128xf32>, vector<128x128xf32>, vector<16x128xf32> -> vector<16x128xf32>
    %592 = arith.addf %525, %591 : vector<16x128xf32>
    %c1_344 = arith.constant 1 : index
    %c0_345 = arith.constant 0 : index
    %c384_346 = arith.constant 384 : index
    %593 = vector.load %arg8[%c1_344, %c0_345, %c384_346] : memref<2x128x1536xf32, #tpu.memory_space<vmem>>, vector<1x128x128xf32>
    %594 = vector.shape_cast %593 : vector<1x128x128xf32> to vector<128x128xf32>
    %c1_347 = arith.constant 1 : index
    %c0_348 = arith.constant 0 : index
    %c896_349 = arith.constant 896 : index
    %595 = vector.load %arg8[%c1_347, %c0_348, %c896_349] : memref<2x128x1536xf32, #tpu.memory_space<vmem>>, vector<1x128x128xf32>
    %596 = vector.shape_cast %595 : vector<1x128x128xf32> to vector<128x128xf32>
    %c1_350 = arith.constant 1 : index
    %c0_351 = arith.constant 0 : index
    %c1408_352 = arith.constant 1408 : index
    %597 = vector.load %arg8[%c1_350, %c0_351, %c1408_352] : memref<2x128x1536xf32, #tpu.memory_space<vmem>>, vector<1x128x128xf32>
    %598 = vector.shape_cast %597 : vector<1x128x128xf32> to vector<128x128xf32>
    %c1_353 = arith.constant 1 : index
    %c0_354 = arith.constant 0 : index
    %c384_355 = arith.constant 384 : index
    %599 = vector.load %arg9[%c1_353, %c0_354, %c384_355] : memref<2x1x1536xf32, #tpu.memory_space<vmem>>, vector<1x1x128xf32>
    %600 = vector.shape_cast %599 : vector<1x1x128xf32> to vector<1x128xf32>
    %c1_356 = arith.constant 1 : index
    %c0_357 = arith.constant 0 : index
    %c896_358 = arith.constant 896 : index
    %601 = vector.load %arg9[%c1_356, %c0_357, %c896_358] : memref<2x1x1536xf32, #tpu.memory_space<vmem>>, vector<1x1x128xf32>
    %602 = vector.shape_cast %601 : vector<1x1x128xf32> to vector<1x128xf32>
    %c1_359 = arith.constant 1 : index
    %c0_360 = arith.constant 0 : index
    %c1408_361 = arith.constant 1408 : index
    %603 = vector.load %arg9[%c1_359, %c0_360, %c1408_361] : memref<2x1x1536xf32, #tpu.memory_space<vmem>>, vector<1x1x128xf32>
    %604 = vector.shape_cast %603 : vector<1x1x128xf32> to vector<1x128xf32>
    %c1_362 = arith.constant 1 : index
    %c384_363 = arith.constant 384 : index
    %c0_364 = arith.constant 0 : index
    %605 = vector.load %arg10[%c1_362, %c384_363, %c0_364] : memref<2x512x128xf32, #tpu.memory_space<vmem>>, vector<1x128x128xf32>
    %606 = vector.shape_cast %605 : vector<1x128x128xf32> to vector<128x128xf32>
    %cst_365 = arith.constant dense<0.000000e+00> : vector<32x128xf32>
    %607 = tpu.matmul %393, %594, %cst_365 {dimension_numbers = #tpu.dot_dimension_numbers<[1], [0], [0], [1], [0, 0, 1, 1], [], []>} : vector<32x128xf32>, vector<128x128xf32>, vector<32x128xf32> -> vector<32x128xf32>
    %608 = vector.broadcast %600 : vector<1x128xf32> to vector<32x128xf32>
    %609 = arith.addf %607, %608 : vector<32x128xf32>
    %cst_366 = arith.constant dense<0.000000e+00> : vector<32x128xf32>
    %610 = tpu.matmul %393, %596, %cst_366 {dimension_numbers = #tpu.dot_dimension_numbers<[1], [0], [0], [1], [0, 0, 1, 1], [], []>} : vector<32x128xf32>, vector<128x128xf32>, vector<32x128xf32> -> vector<32x128xf32>
    %611 = vector.broadcast %602 : vector<1x128xf32> to vector<32x128xf32>
    %612 = arith.addf %610, %611 : vector<32x128xf32>
    %cst_367 = arith.constant dense<0.000000e+00> : vector<32x128xf32>
    %613 = tpu.matmul %393, %598, %cst_367 {dimension_numbers = #tpu.dot_dimension_numbers<[1], [0], [0], [1], [0, 0, 1, 1], [], []>} : vector<32x128xf32>, vector<128x128xf32>, vector<32x128xf32> -> vector<32x128xf32>
    %614 = vector.broadcast %604 : vector<1x128xf32> to vector<32x128xf32>
    %615 = arith.addf %613, %614 : vector<32x128xf32>
    %616 = vector.extract_strided_slice %609 {offsets = [0, 0], sizes = [16, 128], strides = [1, 1]} : vector<32x128xf32> to vector<16x128xf32>
    %617 = vector.extract_strided_slice %612 {offsets = [0, 0], sizes = [16, 128], strides = [1, 1]} : vector<32x128xf32> to vector<16x128xf32>
    %618 = vector.extract_strided_slice %615 {offsets = [0, 0], sizes = [16, 128], strides = [1, 1]} : vector<32x128xf32> to vector<16x128xf32>
    %cst_368 = arith.constant dense<0.000000e+00> : vector<16x16xf32>
    %619 = tpu.matmul %616, %617, %cst_368 {dimension_numbers = #tpu.dot_dimension_numbers<[1], [1], [0], [0], [0, 0, 1, 0], [], []>} : vector<16x128xf32>, vector<16x128xf32>, vector<16x16xf32> -> vector<16x16xf32>
    %cst_369 = arith.constant 0.353553385 : f32
    %620 = vector.broadcast %cst_369 : f32 to vector<16x16xf32>
    %621 = arith.mulf %619, %620 : vector<16x16xf32>
    %c0_370 = arith.constant 0 : index
    %c0_371 = arith.constant 0 : index
    %c0_372 = arith.constant 0 : index
    %622 = vector.load %arg5[%c0_370, %c0_371, %c0_372] : memref<2x16x16xf32, #tpu.memory_space<vmem>>, vector<1x16x16xf32>
    %623 = vector.shape_cast %622 : vector<1x16x16xf32> to vector<16x16xf32>
    %624 = arith.addf %621, %623 : vector<16x16xf32>
    %cst_373 = arith.constant dense<0xFF800000> : vector<16xf32>
    %625 = vector.multi_reduction <maximumf>, %624, %cst_373 [1] : vector<16x16xf32> to vector<16xf32>
    %626 = vector.shape_cast %625 : vector<16xf32> to vector<16x1xf32>
    %627 = vector.broadcast %626 : vector<16x1xf32> to vector<16x16xf32>
    %628 = arith.subf %624, %627 : vector<16x16xf32>
    %629 = math.exp %628 : vector<16x16xf32>
    %cst_374 = arith.constant dense<0.000000e+00> : vector<16xf32>
    %630 = vector.multi_reduction <add>, %629, %cst_374 [1] : vector<16x16xf32> to vector<16xf32>
    %631 = vector.shape_cast %630 : vector<16xf32> to vector<16x1xf32>
    %632 = tpu.reciprocal %631 {approx = true} : vector<16x1xf32> -> vector<16x1xf32>
    %633 = vector.broadcast %632 : vector<16x1xf32> to vector<16x16xf32>
    %634 = arith.mulf %629, %633 : vector<16x16xf32>
    %cst_375 = arith.constant dense<0.000000e+00> : vector<16x128xf32>
    %635 = tpu.matmul %634, %618, %cst_375 {dimension_numbers = #tpu.dot_dimension_numbers<[1], [0], [0], [1], [0, 0, 1, 1], [], []>} : vector<16x16xf32>, vector<16x128xf32>, vector<16x128xf32> -> vector<16x128xf32>
    %cst_376 = arith.constant dense<0.000000e+00> : vector<16x128xf32>
    %636 = tpu.matmul %635, %606, %cst_376 {dimension_numbers = #tpu.dot_dimension_numbers<[1], [0], [0], [1], [0, 0, 1, 1], [], []>} : vector<16x128xf32>, vector<128x128xf32>, vector<16x128xf32> -> vector<16x128xf32>
    %637 = arith.addf %570, %636 : vector<16x128xf32>
    %638 = vector.extract_strided_slice %609 {offsets = [16, 0], sizes = [16, 128], strides = [1, 1]} : vector<32x128xf32> to vector<16x128xf32>
    %639 = vector.extract_strided_slice %612 {offsets = [16, 0], sizes = [16, 128], strides = [1, 1]} : vector<32x128xf32> to vector<16x128xf32>
    %640 = vector.extract_strided_slice %615 {offsets = [16, 0], sizes = [16, 128], strides = [1, 1]} : vector<32x128xf32> to vector<16x128xf32>
    %cst_377 = arith.constant dense<0.000000e+00> : vector<16x16xf32>
    %641 = tpu.matmul %638, %639, %cst_377 {dimension_numbers = #tpu.dot_dimension_numbers<[1], [1], [0], [0], [0, 0, 1, 0], [], []>} : vector<16x128xf32>, vector<16x128xf32>, vector<16x16xf32> -> vector<16x16xf32>
    %cst_378 = arith.constant 0.353553385 : f32
    %642 = vector.broadcast %cst_378 : f32 to vector<16x16xf32>
    %643 = arith.mulf %641, %642 : vector<16x16xf32>
    %c1_379 = arith.constant 1 : index
    %c0_380 = arith.constant 0 : index
    %c0_381 = arith.constant 0 : index
    %644 = vector.load %arg5[%c1_379, %c0_380, %c0_381] : memref<2x16x16xf32, #tpu.memory_space<vmem>>, vector<1x16x16xf32>
    %645 = vector.shape_cast %644 : vector<1x16x16xf32> to vector<16x16xf32>
    %646 = arith.addf %643, %645 : vector<16x16xf32>
    %cst_382 = arith.constant dense<0xFF800000> : vector<16xf32>
    %647 = vector.multi_reduction <maximumf>, %646, %cst_382 [1] : vector<16x16xf32> to vector<16xf32>
    %648 = vector.shape_cast %647 : vector<16xf32> to vector<16x1xf32>
    %649 = vector.broadcast %648 : vector<16x1xf32> to vector<16x16xf32>
    %650 = arith.subf %646, %649 : vector<16x16xf32>
    %651 = math.exp %650 : vector<16x16xf32>
    %cst_383 = arith.constant dense<0.000000e+00> : vector<16xf32>
    %652 = vector.multi_reduction <add>, %651, %cst_383 [1] : vector<16x16xf32> to vector<16xf32>
    %653 = vector.shape_cast %652 : vector<16xf32> to vector<16x1xf32>
    %654 = tpu.reciprocal %653 {approx = true} : vector<16x1xf32> -> vector<16x1xf32>
    %655 = vector.broadcast %654 : vector<16x1xf32> to vector<16x16xf32>
    %656 = arith.mulf %651, %655 : vector<16x16xf32>
    %cst_384 = arith.constant dense<0.000000e+00> : vector<16x128xf32>
    %657 = tpu.matmul %656, %640, %cst_384 {dimension_numbers = #tpu.dot_dimension_numbers<[1], [0], [0], [1], [0, 0, 1, 1], [], []>} : vector<16x16xf32>, vector<16x128xf32>, vector<16x128xf32> -> vector<16x128xf32>
    %cst_385 = arith.constant dense<0.000000e+00> : vector<16x128xf32>
    %658 = tpu.matmul %657, %606, %cst_385 {dimension_numbers = #tpu.dot_dimension_numbers<[1], [0], [0], [1], [0, 0, 1, 1], [], []>} : vector<16x128xf32>, vector<128x128xf32>, vector<16x128xf32> -> vector<16x128xf32>
    %659 = arith.addf %592, %658 : vector<16x128xf32>
    %660 = tpu.concatenate %637, %659 in 0 : vector<16x128xf32>, vector<16x128xf32> -> vector<32x128xf32>
    %661 = arith.addf %367, %660 : vector<32x128xf32>
    %c1_386 = arith.constant 1 : index
    %c0_387 = arith.constant 0 : index
    %c0_388 = arith.constant 0 : index
    %662 = vector.load %arg11[%c1_386, %c0_387, %c0_388] : memref<2x1x128xf32, #tpu.memory_space<vmem>>, vector<1x1x128xf32>
    %663 = vector.shape_cast %662 : vector<1x1x128xf32> to vector<1x128xf32>
    %664 = vector.broadcast %663 : vector<1x128xf32> to vector<32x128xf32>
    %665 = arith.addf %661, %664 : vector<32x128xf32>
    %c1_389 = arith.constant 1 : index
    %c0_390 = arith.constant 0 : index
    %c0_391 = arith.constant 0 : index
    %666 = vector.load %arg12[%c1_389, %c0_390, %c0_391] : memref<2x1x128xf32, #tpu.memory_space<vmem>>, vector<1x1x128xf32>
    %667 = vector.shape_cast %666 : vector<1x1x128xf32> to vector<1x128xf32>
    %c1_392 = arith.constant 1 : index
    %c0_393 = arith.constant 0 : index
    %c0_394 = arith.constant 0 : index
    %668 = vector.load %arg13[%c1_392, %c0_393, %c0_394] : memref<2x1x128xf32, #tpu.memory_space<vmem>>, vector<1x1x128xf32>
    %669 = vector.shape_cast %668 : vector<1x1x128xf32> to vector<1x128xf32>
    %cst_395 = arith.constant dense<0.000000e+00> : vector<32xf32>
    %670 = vector.multi_reduction <add>, %665, %cst_395 [1] : vector<32x128xf32> to vector<32xf32>
    %671 = vector.shape_cast %670 : vector<32xf32> to vector<32x1xf32>
    %cst_396 = arith.constant 3.125000e-02 : f32
    %672 = vector.broadcast %cst_396 : f32 to vector<32x1xf32>
    %673 = arith.mulf %671, %672 : vector<32x1xf32>
    %674 = arith.mulf %665, %665 : vector<32x128xf32>
    %cst_397 = arith.constant dense<0.000000e+00> : vector<32xf32>
    %675 = vector.multi_reduction <add>, %674, %cst_397 [1] : vector<32x128xf32> to vector<32xf32>
    %676 = vector.shape_cast %675 : vector<32xf32> to vector<32x1xf32>
    %cst_398 = arith.constant 3.125000e-02 : f32
    %677 = vector.broadcast %cst_398 : f32 to vector<32x1xf32>
    %678 = arith.mulf %676, %677 : vector<32x1xf32>
    %679 = arith.mulf %673, %673 : vector<32x1xf32>
    %680 = arith.subf %678, %679 : vector<32x1xf32>
    %681 = vector.broadcast %673 : vector<32x1xf32> to vector<32x128xf32>
    %682 = arith.subf %665, %681 : vector<32x128xf32>
    %cst_399 = arith.constant 9.99999974E-6 : f32
    %683 = vector.broadcast %cst_399 : f32 to vector<32x1xf32>
    %684 = arith.addf %680, %683 : vector<32x1xf32>
    %685 = math.rsqrt %684 : vector<32x1xf32>
    %686 = vector.broadcast %685 : vector<32x1xf32> to vector<32x128xf32>
    %687 = arith.mulf %682, %686 : vector<32x128xf32>
    %688 = vector.broadcast %667 : vector<1x128xf32> to vector<32x128xf32>
    %689 = arith.mulf %687, %688 : vector<32x128xf32>
    %690 = vector.broadcast %669 : vector<1x128xf32> to vector<32x128xf32>
    %691 = arith.addf %689, %690 : vector<32x128xf32>
    %c1_400 = arith.constant 1 : index
    %c0_401 = arith.constant 0 : index
    %c0_402 = arith.constant 0 : index
    %692 = vector.load %arg14[%c1_400, %c0_401, %c0_402] : memref<2x128x128xf32, #tpu.memory_space<vmem>>, vector<1x128x128xf32>
    %693 = vector.shape_cast %692 : vector<1x128x128xf32> to vector<128x128xf32>
    %cst_403 = arith.constant dense<0.000000e+00> : vector<32x128xf32>
    %694 = tpu.matmul %691, %693, %cst_403 {dimension_numbers = #tpu.dot_dimension_numbers<[1], [0], [0], [1], [0, 0, 1, 1], [], []>} : vector<32x128xf32>, vector<128x128xf32>, vector<32x128xf32> -> vector<32x128xf32>
    %c1_404 = arith.constant 1 : index
    %c0_405 = arith.constant 0 : index
    %c0_406 = arith.constant 0 : index
    %695 = vector.load %arg15[%c1_404, %c0_405, %c0_406] : memref<2x1x128xf32, #tpu.memory_space<vmem>>, vector<1x1x128xf32>
    %696 = vector.shape_cast %695 : vector<1x1x128xf32> to vector<1x128xf32>
    %697 = vector.broadcast %696 : vector<1x128xf32> to vector<32x128xf32>
    %698 = arith.addf %694, %697 : vector<32x128xf32>
    %cst_407 = arith.constant 5.000000e-01 : f32
    %699 = vector.broadcast %cst_407 : f32 to vector<32x128xf32>
    %700 = arith.mulf %699, %698 : vector<32x128xf32>
    %701 = arith.mulf %698, %698 : vector<32x128xf32>
    %702 = arith.mulf %701, %698 : vector<32x128xf32>
    %cst_408 = arith.constant 4.471500e-02 : f32
    %703 = vector.broadcast %cst_408 : f32 to vector<32x128xf32>
    %704 = arith.mulf %703, %702 : vector<32x128xf32>
    %705 = arith.addf %698, %704 : vector<32x128xf32>
    %cst_409 = arith.constant 0.797884583 : f32
    %706 = vector.broadcast %cst_409 : f32 to vector<32x128xf32>
    %707 = arith.mulf %706, %705 : vector<32x128xf32>
    %708 = math.tanh %707 : vector<32x128xf32>
    %cst_410 = arith.constant 1.000000e+00 : f32
    %709 = vector.broadcast %cst_410 : f32 to vector<32x128xf32>
    %710 = arith.addf %709, %708 : vector<32x128xf32>
    %711 = arith.mulf %700, %710 : vector<32x128xf32>
    %c1_411 = arith.constant 1 : index
    %c0_412 = arith.constant 0 : index
    %c0_413 = arith.constant 0 : index
    %712 = vector.load %arg16[%c1_411, %c0_412, %c0_413] : memref<2x128x128xf32, #tpu.memory_space<vmem>>, vector<1x128x128xf32>
    %713 = vector.shape_cast %712 : vector<1x128x128xf32> to vector<128x128xf32>
    %cst_414 = arith.constant dense<0.000000e+00> : vector<32x128xf32>
    %714 = tpu.matmul %711, %713, %cst_414 {dimension_numbers = #tpu.dot_dimension_numbers<[1], [0], [0], [1], [0, 0, 1, 1], [], []>} : vector<32x128xf32>, vector<128x128xf32>, vector<32x128xf32> -> vector<32x128xf32>
    %715 = arith.addf %665, %714 : vector<32x128xf32>
    %c1_415 = arith.constant 1 : index
    %c0_416 = arith.constant 0 : index
    %c0_417 = arith.constant 0 : index
    %716 = vector.load %arg17[%c1_415, %c0_416, %c0_417] : memref<2x1x128xf32, #tpu.memory_space<vmem>>, vector<1x1x128xf32>
    %717 = vector.shape_cast %716 : vector<1x1x128xf32> to vector<1x128xf32>
    %718 = vector.broadcast %717 : vector<1x128xf32> to vector<32x128xf32>
    %719 = arith.addf %715, %718 : vector<32x128xf32>
    %c0_418 = arith.constant 0 : index
    %c0_419 = arith.constant 0 : index
    %720 = vector.load %arg18[%c0_418, %c0_419] : memref<1x128xf32, #tpu.memory_space<vmem>>, vector<1x128xf32>
    %c0_420 = arith.constant 0 : index
    %c0_421 = arith.constant 0 : index
    %721 = vector.load %arg19[%c0_420, %c0_421] : memref<1x128xf32, #tpu.memory_space<vmem>>, vector<1x128xf32>
    %cst_422 = arith.constant dense<0.000000e+00> : vector<32xf32>
    %722 = vector.multi_reduction <add>, %719, %cst_422 [1] : vector<32x128xf32> to vector<32xf32>
    %723 = vector.shape_cast %722 : vector<32xf32> to vector<32x1xf32>
    %cst_423 = arith.constant 3.125000e-02 : f32
    %724 = vector.broadcast %cst_423 : f32 to vector<32x1xf32>
    %725 = arith.mulf %723, %724 : vector<32x1xf32>
    %726 = arith.mulf %719, %719 : vector<32x128xf32>
    %cst_424 = arith.constant dense<0.000000e+00> : vector<32xf32>
    %727 = vector.multi_reduction <add>, %726, %cst_424 [1] : vector<32x128xf32> to vector<32xf32>
    %728 = vector.shape_cast %727 : vector<32xf32> to vector<32x1xf32>
    %cst_425 = arith.constant 3.125000e-02 : f32
    %729 = vector.broadcast %cst_425 : f32 to vector<32x1xf32>
    %730 = arith.mulf %728, %729 : vector<32x1xf32>
    %731 = arith.mulf %725, %725 : vector<32x1xf32>
    %732 = arith.subf %730, %731 : vector<32x1xf32>
    %733 = vector.broadcast %725 : vector<32x1xf32> to vector<32x128xf32>
    %734 = arith.subf %719, %733 : vector<32x128xf32>
    %cst_426 = arith.constant 9.99999974E-6 : f32
    %735 = vector.broadcast %cst_426 : f32 to vector<32x1xf32>
    %736 = arith.addf %732, %735 : vector<32x1xf32>
    %737 = math.rsqrt %736 : vector<32x1xf32>
    %738 = vector.broadcast %737 : vector<32x1xf32> to vector<32x128xf32>
    %739 = arith.mulf %734, %738 : vector<32x128xf32>
    %740 = vector.broadcast %720 : vector<1x128xf32> to vector<32x128xf32>
    %741 = arith.mulf %739, %740 : vector<32x128xf32>
    %742 = vector.broadcast %721 : vector<1x128xf32> to vector<32x128xf32>
    %743 = arith.addf %741, %742 : vector<32x128xf32>
    %c0_427 = arith.constant 0 : index
    %c0_428 = arith.constant 0 : index
    %744 = vector.load %arg20[%c0_427, %c0_428] : memref<128x128xf32, #tpu.memory_space<vmem>>, vector<128x128xf32>
    %cst_429 = arith.constant dense<0.000000e+00> : vector<32x128xf32>
    %745 = tpu.matmul %743, %744, %cst_429 {dimension_numbers = #tpu.dot_dimension_numbers<[1], [1], [0], [0], [0, 0, 1, 0], [], []>} : vector<32x128xf32>, vector<128x128xf32>, vector<32x128xf32> -> vector<32x128xf32>
    %c0_430 = arith.constant 0 : index
    %c0_431 = arith.constant 0 : index
    %746 = vector.load %arg21[%c0_430, %c0_431] : memref<32x128xf32, #tpu.memory_space<vmem>>, vector<32x128xf32>
    tpu.vector_store %arg21[%c0_430, %c0_431], %745 {strides = array<i32>} : memref<32x128xf32, #tpu.memory_space<vmem>>, vector<32x128xf32>,
    return
  }
  func.func @transform_0(%arg0: i32) -> (i32, i32) {
    %c0_i32 = arith.constant 0 : i32
    %c0_i32_0 = arith.constant 0 : i32
    %c0_i32_1 = arith.constant 0 : i32
    return %c0_i32, %c0_i32_0 : i32, i32
  }
  func.func @transform_1(%arg0: i32) -> (i32, i32) {
    %c0_i32 = arith.constant 0 : i32
    %c0_i32_0 = arith.constant 0 : i32
    %c0_i32_1 = arith.constant 0 : i32
    return %c0_i32, %c0_i32_0 : i32, i32
  }
  func.func @transform_2(%arg0: i32) -> (i32, i32) {
    %c0_i32 = arith.constant 0 : i32
    %c0_i32_0 = arith.constant 0 : i32
    %c0_i32_1 = arith.constant 0 : i32
    return %c0_i32, %c0_i32_0 : i32, i32
  }
  func.func @transform_3(%arg0: i32) -> (i32, i32) {
    %c0_i32 = arith.constant 0 : i32
    %c0_i32_0 = arith.constant 0 : i32
    %c0_i32_1 = arith.constant 0 : i32
    return %c0_i32, %c0_i32_0 : i32, i32
  }
  func.func @transform_4(%arg0: i32) -> (i32, i32, i32) {
    %c0_i32 = arith.constant 0 : i32
    %c0_i32_0 = arith.constant 0 : i32
    %c0_i32_1 = arith.constant 0 : i32
    %c0_i32_2 = arith.constant 0 : i32
    return %c0_i32, %c0_i32_0, %c0_i32_1 : i32, i32, i32
  }
  func.func @transform_5(%arg0: i32) -> (i32, i32, i32) {
    %c0_i32 = arith.constant 0 : i32
    %c0_i32_0 = arith.constant 0 : i32
    %c0_i32_1 = arith.constant 0 : i32
    %c0_i32_2 = arith.constant 0 : i32
    return %c0_i32, %c0_i32_0, %c0_i32_1 : i32, i32, i32
  }
  func.func @transform_6(%arg0: i32) -> (i32, i32, i32) {
    %c0_i32 = arith.constant 0 : i32
    %c0_i32_0 = arith.constant 0 : i32
    %c0_i32_1 = arith.constant 0 : i32
    %c0_i32_2 = arith.constant 0 : i32
    return %c0_i32, %c0_i32_0, %c0_i32_1 : i32, i32, i32
  }
  func.func @transform_7(%arg0: i32) -> (i32, i32, i32) {
    %c0_i32 = arith.constant 0 : i32
    %c0_i32_0 = arith.constant 0 : i32
    %c0_i32_1 = arith.constant 0 : i32
    %c0_i32_2 = arith.constant 0 : i32
    return %c0_i32, %c0_i32_0, %c0_i32_1 : i32, i32, i32
  }
  func.func @transform_8(%arg0: i32) -> (i32, i32, i32) {
    %c0_i32 = arith.constant 0 : i32
    %c0_i32_0 = arith.constant 0 : i32
    %c0_i32_1 = arith.constant 0 : i32
    %c0_i32_2 = arith.constant 0 : i32
    return %c0_i32, %c0_i32_0, %c0_i32_1 : i32, i32, i32
  }
  func.func @transform_9(%arg0: i32) -> (i32, i32, i32) {
    %c0_i32 = arith.constant 0 : i32
    %c0_i32_0 = arith.constant 0 : i32
    %c0_i32_1 = arith.constant 0 : i32
    %c0_i32_2 = arith.constant 0 : i32
    return %c0_i32, %c0_i32_0, %c0_i32_1 : i32, i32, i32
  }
  func.func @transform_10(%arg0: i32) -> (i32, i32, i32) {
    %c0_i32 = arith.constant 0 : i32
    %c0_i32_0 = arith.constant 0 : i32
    %c0_i32_1 = arith.constant 0 : i32
    %c0_i32_2 = arith.constant 0 : i32
    return %c0_i32, %c0_i32_0, %c0_i32_1 : i32, i32, i32
  }
  func.func @transform_11(%arg0: i32) -> (i32, i32, i32) {
    %c0_i32 = arith.constant 0 : i32
    %c0_i32_0 = arith.constant 0 : i32
    %c0_i32_1 = arith.constant 0 : i32
    %c0_i32_2 = arith.constant 0 : i32
    return %c0_i32, %c0_i32_0, %c0_i32_1 : i32, i32, i32
  }
  func.func @transform_12(%arg0: i32) -> (i32, i32, i32) {
    %c0_i32 = arith.constant 0 : i32
    %c0_i32_0 = arith.constant 0 : i32
    %c0_i32_1 = arith.constant 0 : i32
    %c0_i32_2 = arith.constant 0 : i32
    return %c0_i32, %c0_i32_0, %c0_i32_1 : i32, i32, i32
  }
  func.func @transform_13(%arg0: i32) -> (i32, i32, i32) {
    %c0_i32 = arith.constant 0 : i32
    %c0_i32_0 = arith.constant 0 : i32
    %c0_i32_1 = arith.constant 0 : i32
    %c0_i32_2 = arith.constant 0 : i32
    return %c0_i32, %c0_i32_0, %c0_i32_1 : i32, i32, i32
  }
  func.func @transform_14(%arg0: i32) -> (i32, i32, i32) {
    %c0_i32 = arith.constant 0 : i32
    %c0_i32_0 = arith.constant 0 : i32
    %c0_i32_1 = arith.constant 0 : i32
    %c0_i32_2 = arith.constant 0 : i32
    return %c0_i32, %c0_i32_0, %c0_i32_1 : i32, i32, i32
  }
  func.func @transform_15(%arg0: i32) -> (i32, i32, i32) {
    %c0_i32 = arith.constant 0 : i32
    %c0_i32_0 = arith.constant 0 : i32
    %c0_i32_1 = arith.constant 0 : i32
    %c0_i32_2 = arith.constant 0 : i32
    return %c0_i32, %c0_i32_0, %c0_i32_1 : i32, i32, i32
  }
  func.func @transform_16(%arg0: i32) -> (i32, i32, i32) {
    %c0_i32 = arith.constant 0 : i32
    %c0_i32_0 = arith.constant 0 : i32
    %c0_i32_1 = arith.constant 0 : i32
    %c0_i32_2 = arith.constant 0 : i32
    return %c0_i32, %c0_i32_0, %c0_i32_1 : i32, i32, i32
  }
  func.func @transform_17(%arg0: i32) -> (i32, i32) {
    %c0_i32 = arith.constant 0 : i32
    %c0_i32_0 = arith.constant 0 : i32
    %c0_i32_1 = arith.constant 0 : i32
    return %c0_i32, %c0_i32_0 : i32, i32
  }
  func.func @transform_18(%arg0: i32) -> (i32, i32) {
    %c0_i32 = arith.constant 0 : i32
    %c0_i32_0 = arith.constant 0 : i32
    %c0_i32_1 = arith.constant 0 : i32
    return %c0_i32, %c0_i32_0 : i32, i32
  }
  func.func @transform_19(%arg0: i32) -> (i32, i32) {
    %c0_i32 = arith.constant 0 : i32
    %c0_i32_0 = arith.constant 0 : i32
    %c0_i32_1 = arith.constant 0 : i32
    return %c0_i32, %c0_i32_0 : i32, i32
  }
  func.func @transform_20(%arg0: i32) -> (i32, i32) {
    %c0_i32 = arith.constant 0 : i32
    %c0_i32_0 = arith.constant 0 : i32
    %c0_i32_1 = arith.constant 0 : i32
    return %c0_i32, %c0_i32_0 : i32, i32
  }
}

</mosaic_0001>

<bundles_post_ra>
// kernel: fused_decoder_forward.1
= control target key start
LH: loop header
LB: loop body
LE: loop exit
PB: predicated region body
PF: predicated region fallthrough
CT: control target
= control target key end

     0   :  { %s13450_s0 = inlined_call_operand.vmem [shape: f32[8,128], index: 0, kind: input, shape index: {}]   ;;  %s13451_s1 = inlined_call_operand.hbm [shape: f32[128,128], index: 1, kind: input, shape index: {}]   ;;  %s13452_s2 = inlined_call_operand.hbm [shape: f32[1,128], index: 2, kind: input, shape index: {}]   ;;  %s13453_s3 = inlined_call_operand.vmem [shape: f32[32,128], index: 3, kind: input, shape index: {}]   ;;  %s13454_s4 = inlined_call_operand.vmem [shape: f32[2,16,16], index: 4, kind: input, shape index: {}]   ;;  %s13455_s5 = inlined_call_operand.hbm [shape: f32[2,1,128], index: 5, kind: input, shape index: {}]   ;;  %s13456_s6 = inlined_call_operand.hbm [shape: f32[2,1,128], index: 6, kind: input, shape index: {}]   ;;  %s13457_s7 = inlined_call_operand.hbm [shape: f32[2,128,1536], index: 7, kind: input, shape index: {}]   ;;  %s13458_s8 = inlined_call_operand.hbm [shape: f32[2,1,1536], index: 8, kind: input, shape index: {}]   ;;  %s13459_s9 = inlined_call_operand.hbm [shape: f32[2,512,128], index: 9, kind: input, shape index: {}]   ;;  %s13460_s10 = inlined_call_operand.hbm [shape: f32[2,1,128], index: 10, kind: input, shape index: {}]   ;;  %s13461_s11 = inlined_call_operand.hbm [shape: f32[2,1,128], index: 11, kind: input, shape index: {}]   ;;  %s13462_s12 = inlined_call_operand.hbm [shape: f32[2,1,128], index: 12, kind: input, shape index: {}]   ;;  %s13463_s13 = inlined_call_operand.hbm [shape: f32[2,128,128], index: 13, kind: input, shape index: {}]   ;;  %s13464_s14 = inlined_call_operand.hbm [shape: f32[2,1,128], index: 14, kind: input, shape index: {}]   ;;  %s13465_s15 = inlined_call_operand.hbm [shape: f32[2,128,128], index: 15, kind: input, shape index: {}]   ;;  %s13466_s16 = inlined_call_operand.hbm [shape: f32[2,1,128], index: 16, kind: input, shape index: {}]   ;;  %s13467_s17 = inlined_call_operand.hbm [shape: f32[1,128], index: 17, kind: input, shape index: {}]   ;;  %s13468_s18 = inlined_call_operand.hbm [shape: f32[1,128], index: 18, kind: input, shape index: {}]   ;;  %s13469_s19 = inlined_call_operand.hbm [shape: f32[128,128], index: 19, kind: input, shape index: {}]   ;;  %s13470_s20 = inlined_call_operand.vmem [shape: f32[32,128], index: 20, kind: output, shape index: {}]  }
   0x1   :  { %13473 = sst [smem:[#allocation37_spill]] %s13450_s0 }
   0x2   :  { %13474 = sst [smem:[#allocation38_spill]] %s13451_s1 }
   0x3   :  { %13475 = sst [smem:[#allocation39_spill]] %s13452_s2 }
   0x4   :  { %13476 = sst [smem:[#allocation40_spill]] %s13453_s3 }
   0x5   :  { %13477 = sst [smem:[#allocation41_spill]] %s13454_s4 }
   0x6   :  { %25 = vsyncpa [#allocation3], 0 }
   0x7   :  { %26 = vsyncpa [#allocation5], 0 }
   0x8   :  { %27 = vsyncpa [#allocation8], 0 }
   0x9   :  { %28 = vsyncpa [#allocation11], 0 }
   0xa   :  { %29 = vsyncpa [#allocation14], 0 }
   0xb   :  { %30 = vsyncpa [#allocation17], 0 }
   0xc   :  { %31 = vsyncpa [#allocation20], 0 }
   0xd   :  { %32 = vsyncpa [#allocation23], 0 }
   0xe   :  { %33 = vsyncpa [#allocation26], 0  ;;  %s12024_s1 = smov [#allocation4]  }
   0xf   :  { %s54_s22 = sshll.u32 %s12024_s1, 4  ;;  %s55_s22 = int_to_ptr.vmem [resolvable:$true] %s54_s22 }
  0x10   :  { %s11674_s23 = scalar_lea.vmem %s55_s22, 16  ;;  %s11678_s24 = scalar_lea.vmem %s55_s22, 32 }
  0x11   :  { %p11675_p0 = scmp.ne.s32.totalorder %s55_s22, %s11674_s23  ;;  %p11679_p1 = scmp.lt.s32.totalorder %s55_s22, %s55_s22 }
  0x12   :  { %p11680_p2 = scmp.lt.s32.totalorder %s11678_s24, %s11674_s23 }
  0x14   :  { %p11681_p3 = por %p11680_p2, %p11679_p1 }
  0x16   :  { %p11682_p4 = pnand %p11681_p3, %p11675_p0 }
  0x18   :  { %11685 = shalt.err (!%p11682_p4)
}
  0x19   :  { %s13478_s3 = sld [smem:[#allocation39_spill]]  ;;  %s12025_s26 = smov [#allocation7]  }
  0x1a   :  { %s79_s27 = sshll.u32 %s12025_s26, 4  ;;  %s12026_s28 = smov [#allocation10]   ;;  %s80_s27 = int_to_ptr.vmem [resolvable:$true] %s79_s27 }
  0x1b   :  { %s103_s4 = sshll.u32 %s12026_s28, 4  ;;  %s11694_s29 = scalar_lea.vmem %s80_s27, 32  ;;  %s104_s4 = int_to_ptr.vmem [resolvable:$true] %s103_s4 }
  0x1c   :  { %p11695_p5 = scmp.ne.s32.totalorder %s80_s27, %s11694_s29  ;;  %p11699_p6 = scmp.lt.s32.totalorder %s80_s27, %s80_s27 }
  0x1d   :  { %p11700_p7 = scmp.lt.s32.totalorder %s11694_s29, %s11694_s29 }
  0x1f   :  { %57 = dma.hbm_to_vmem [thread:$0]  %s13478_s3, 16, %s55_s22, [#allocation5]  }
  0x20   :  { %p11701_p8 = por %p11700_p7, %p11699_p6 }
  0x22   :  { %p11702_p9 = pnand %p11701_p8, %p11695_p5 }
  0x24   :  { %11705 = shalt.err (!%p11702_p9)
}
  0x25   :  { %s12027_s30 = smov 16   ;;  %s12028_s0 = smov 1  }
  0x26   :  { %85 = dma.hbm_to_vmem [thread:$0]  %s13456_s6, 32, %s80_s27, [#allocation8], %s12027_s30, %s12027_s30, %s12028_s0  }
  0x27   :  { %s11714_s22 = scalar_lea.vmem %s104_s4, 384  ;;  %p11719_p11 = scmp.lt.s32.totalorder %s104_s4, %s104_s4 }
  0x28   :  { %p11715_p10 = scmp.ne.s32.totalorder %s104_s4, %s11714_s22  ;;  %p11720_p12 = scmp.lt.s32.totalorder %s11714_s22, %s11714_s22 }
  0x2a   :  { %p11721_p13 = por %p11720_p12, %p11719_p11 }
  0x2c   :  { %p11722_p0 = pnand %p11721_p13, %p11715_p10 }
  0x2e   :  { %11725 = shalt.err (!%p11722_p0)
}
  0x2f   :  { %s12029_s23 = smov 192   ;;  %s12030_s24 = smov 12  }
  0x30   :  { %109 = dma.hbm_to_vmem [thread:$0]  %s13458_s8, 384, %s104_s4, [#allocation11], %s12029_s23, %s12029_s23, %s12030_s24  }
  0x31   :  { %s12031_s3 = smov [#allocation13]   ;;  %s12032_s28 = smov [#allocation16]  }
  0x32   :  { %s127_s26 = sshll.u32 %s12031_s3, 4  ;;  %s151_s29 = sshll.u32 %s12032_s28, 4  ;;  %s128_s26 = int_to_ptr.vmem [resolvable:$true] %s127_s26  ;;  %s152_s29 = int_to_ptr.vmem [resolvable:$true] %s151_s29 }
  0x33   :  { %s11734_s6 = scalar_lea.vmem %s128_s26, 32  ;;  %p11739_p2 = scmp.lt.s32.totalorder %s128_s26, %s128_s26 }
  0x34   :  { %p11735_p1 = scmp.ne.s32.totalorder %s128_s26, %s11734_s6  ;;  %p11740_p3 = scmp.lt.s32.totalorder %s11734_s6, %s11734_s6 }
  0x36   :  { %p11741_p4 = por %p11740_p3, %p11739_p2 }
  0x38   :  { %p11742_p5 = pnand %p11741_p4, %p11735_p1 }
  0x3a   :  { %11745 = shalt.err (!%p11742_p5)
}
  0x3b   :  { %133 = dma.hbm_to_vmem [thread:$0]  %s13460_s10, 32, %s128_s26, [#allocation14], %s12027_s30, %s12027_s30, %s12028_s0  }
  0x3c   :  { %s11754_s8 = scalar_lea.vmem %s152_s29, 32  ;;  %p11759_p7 = scmp.lt.s32.totalorder %s152_s29, %s152_s29 }
  0x3d   :  { %p11755_p6 = scmp.ne.s32.totalorder %s152_s29, %s11754_s8  ;;  %p11760_p8 = scmp.lt.s32.totalorder %s11754_s8, %s11754_s8 }
  0x3f   :  { %p11761_p9 = por %p11760_p8, %p11759_p7 }
  0x41   :  { %p11762_p10 = pnand %p11761_p9, %p11755_p6 }
  0x43   :  { %11765 = shalt.err (!%p11762_p10)
}
  0x44   :  { %157 = dma.hbm_to_vmem [thread:$0]  %s13462_s12, 32, %s152_s29, [#allocation17], %s12027_s30, %s12027_s30, %s12028_s0  }
  0x45   :  { %s12033_s22 = smov [#allocation19]   ;;  %s12034_s24 = smov [#allocation22]  }
  0x46   :  { %s175_s23 = sshll.u32 %s12033_s22, 4  ;;  %s199_s10 = sshll.u32 %s12034_s24, 4  ;;  %s176_s23 = int_to_ptr.vmem [resolvable:$true] %s175_s23  ;;  %s200_s10 = int_to_ptr.vmem [resolvable:$true] %s199_s10 }
  0x47   :  { %s11774_s2 = scalar_lea.vmem %s176_s23, 32  ;;  %p11779_p12 = scmp.lt.s32.totalorder %s176_s23, %s176_s23 }
  0x48   :  { %p11775_p11 = scmp.ne.s32.totalorder %s176_s23, %s11774_s2  ;;  %p11780_p13 = scmp.lt.s32.totalorder %s11774_s2, %s11774_s2 }
  0x4a   :  { %p11781_p0 = por %p11780_p13, %p11779_p12 }
  0x4c   :  { %p11782_p1 = pnand %p11781_p0, %p11775_p11 }
  0x4e   :  { %11785 = shalt.err (!%p11782_p1)
}
  0x4f   :  { %181 = dma.hbm_to_vmem [thread:$0]  %s13464_s14, 32, %s176_s23, [#allocation20], %s12027_s30, %s12027_s30, %s12028_s0  }
  0x50   :  { %s11794_s12 = scalar_lea.vmem %s200_s10, 32  ;;  %p11799_p3 = scmp.lt.s32.totalorder %s200_s10, %s200_s10 }
  0x51   :  { %p11795_p2 = scmp.ne.s32.totalorder %s200_s10, %s11794_s12  ;;  %p11800_p4 = scmp.lt.s32.totalorder %s11794_s12, %s11794_s12 }
  0x53   :  { %p11801_p5 = por %p11800_p4, %p11799_p3 }
  0x55   :  { %p11802_p6 = pnand %p11801_p5, %p11795_p2 }
  0x57   :  { %11805 = shalt.err (!%p11802_p6)
}
  0x58   :  { %205 = dma.hbm_to_vmem [thread:$0]  %s13466_s16, 32, %s200_s10, [#allocation23], %s12027_s30, %s12027_s30, %s12028_s0  }
  0x59   :  { %s12035_s29 = smov [#allocation25]   ;;  %s12036_s27 = smov [#allocation2]  }
  0x5a   :  { %s222_s6 = sshll.u32 %s12035_s29, 4  ;;  %s41_s14 = sshll.u32 %s12036_s27, 4  ;;  %s223_s6 = int_to_ptr.vmem [resolvable:$true] %s222_s6  ;;  %s42_s14 = int_to_ptr.vmem [resolvable:$true] %s41_s14 }
  0x5b   :  { %s11814_s21 = scalar_lea.vmem %s223_s6, 16  ;;  %s11818_s8 = scalar_lea.vmem %s223_s6, 32 }
  0x5c   :  { %p11815_p7 = scmp.ne.s32.totalorder %s223_s6, %s11814_s21  ;;  %p11819_p8 = scmp.lt.s32.totalorder %s223_s6, %s223_s6 }
  0x5d   :  { %p11820_p9 = scmp.lt.s32.totalorder %s11818_s8, %s11814_s21 }
  0x5f   :  { %p11821_p10 = por %p11820_p9, %p11819_p8 }
  0x61   :  { %p11822_p11 = pnand %p11821_p10, %p11815_p7 }
  0x63   :  { %11825 = shalt.err (!%p11822_p11)
}
  0x64   :  { %225 = dma.hbm_to_vmem [thread:$0]  %s13468_s18, 16, %s223_s6, [#allocation26]  }
  0x65   :  { %s11834_s22 = scalar_lea.vmem %s42_s14, 2048  ;;  %p11839_p13 = scmp.lt.s32.totalorder %s42_s14, %s42_s14 }
  0x66   :  { %p11835_p12 = scmp.ne.s32.totalorder %s42_s14, %s11834_s22  ;;  %p11840_p0 = scmp.lt.s32.totalorder %s11834_s22, %s11834_s22 }
  0x68   :  { %p11841_p1 = por %p11840_p0, %p11839_p13 }
  0x6a   :  { %p11842_p2 = pnand %p11841_p1, %p11835_p12 }
  0x6c   :  { %11845 = shalt.err (!%p11842_p2)
}
  0x6d   :  { %s12037_s16 = smov 128   ;;  %s12038_s23 = smov 8  }
  0x6e   :  { %s13479_s2 = sld [smem:[#allocation38_spill]]  ;;  %s12039_s25 = smov [#allocation6]  }
  0x6f   :  { %s67_s3 = sshll.u32 %s12039_s25, 4  ;;  %s12040_s18 = smov [#allocation9]   ;;  %s68_s3 = int_to_ptr.vmem [resolvable:$true] %s67_s3 }
  0x70   :  { %s91_s12 = sshll.u32 %s12040_s18, 4  ;;  %s11854_s26 = scalar_lea.vmem %s68_s3, 32  ;;  %s92_s12 = int_to_ptr.vmem [resolvable:$true] %s91_s12 }
  0x71   :  { %p11855_p3 = scmp.ne.s32.totalorder %s68_s3, %s11854_s26  ;;  %p11859_p4 = scmp.lt.s32.totalorder %s68_s3, %s68_s3 }
  0x72   :  { %p11860_p5 = scmp.lt.s32.totalorder %s11854_s26, %s11854_s26 }
  0x74   :  { %47 = dma.hbm_to_vmem [thread:$0]  %s13479_s2, 2048, %s42_s14, [#allocation3], %s12037_s16, %s12037_s16, %s12038_s23  }
  0x75   :  { %p11861_p6 = por %p11860_p5, %p11859_p4 }
  0x77   :  { %p11862_p7 = pnand %p11861_p6, %p11855_p3 }
  0x79   :  { %11865 = shalt.err (!%p11862_p7)
}
  0x7a   :  { %73 = dma.hbm_to_vmem [thread:$0]  %s13455_s5, 32, %s68_s3, [#allocation5], %s12027_s30, %s12027_s30, %s12028_s0  }
  0x7b   :  { %s11874_s6 = scalar_lea.vmem %s92_s12, 49152  ;;  %p11879_p9 = scmp.lt.s32.totalorder %s92_s12, %s92_s12 }
  0x7c   :  { %p11875_p8 = scmp.ne.s32.totalorder %s92_s12, %s11874_s6  ;;  %p11880_p10 = scmp.lt.s32.totalorder %s11874_s6, %s11874_s6 }
  0x7e   :  { %p11881_p11 = por %p11880_p10, %p11879_p9 }
  0x80   :  { %p11882_p12 = pnand %p11881_p11, %p11875_p8 }
  0x82   :  { %11885 = shalt.err (!%p11882_p12)
}
  0x83   :  { %s12041_s27 = smov 1536   ;;  %s12042_s14 = smov 96  }
  0x84   :  { %97 = dma.hbm_to_vmem [thread:$0]  %s13457_s7, 49152, %s92_s12, [#allocation8], %s12041_s27, %s12041_s27, %s12042_s14  }
  0x85   :  { %s12043_s4 = smov [#allocation12]   ;;  %s12044_s22 = smov [#allocation15]  }
  0x86   :  { %s115_s1 = sshll.u32 %s12043_s4, 4  ;;  %s139_s24 = sshll.u32 %s12044_s22, 4  ;;  %s116_s1 = int_to_ptr.vmem [resolvable:$true] %s115_s1  ;;  %s140_s24 = int_to_ptr.vmem [resolvable:$true] %s139_s24 }
  0x87   :  { %s11894_s5 = scalar_lea.vmem %s116_s1, 16384  ;;  %p11899_p0 = scmp.lt.s32.totalorder %s116_s1, %s116_s1 }
  0x88   :  { %p11895_p13 = scmp.ne.s32.totalorder %s116_s1, %s11894_s5  ;;  %p11900_p1 = scmp.lt.s32.totalorder %s11894_s5, %s11894_s5 }
  0x8a   :  { %p11901_p2 = por %p11900_p1, %p11899_p0 }
  0x8c   :  { %p11902_p3 = pnand %p11901_p2, %p11895_p13 }
  0x8e   :  { %11905 = shalt.err (!%p11902_p3)
}
  0x8f   :  { %121 = dma.hbm_to_vmem [thread:$0]  %s13459_s9, 16384, %s116_s1, [#allocation11], %s12037_s16, %s12037_s16, %s12038_s23  }
  0x90   :  { %s11914_s7 = scalar_lea.vmem %s140_s24, 32  ;;  %p11919_p5 = scmp.lt.s32.totalorder %s140_s24, %s140_s24 }
  0x91   :  { %p11915_p4 = scmp.ne.s32.totalorder %s140_s24, %s11914_s7  ;;  %p11920_p6 = scmp.lt.s32.totalorder %s11914_s7, %s11914_s7 }
  0x93   :  { %p11921_p7 = por %p11920_p6, %p11919_p5 }
  0x95   :  { %p11922_p8 = pnand %p11921_p7, %p11915_p4 }
  0x97   :  { %11925 = shalt.err (!%p11922_p8)
}
  0x98   :  { %145 = dma.hbm_to_vmem [thread:$0]  %s13461_s11, 32, %s140_s24, [#allocation14], %s12027_s30, %s12027_s30, %s12028_s0  }
  0x99   :  { %s12045_s18 = smov [#allocation18]   ;;  %s12046_s26 = smov [#allocation21]  }
  0x9a   :  { %s163_s12 = sshll.u32 %s12045_s18, 4  ;;  %s187_s9 = sshll.u32 %s12046_s26, 4  ;;  %s164_s12 = int_to_ptr.vmem [resolvable:$true] %s163_s12  ;;  %s188_s9 = int_to_ptr.vmem [resolvable:$true] %s187_s9 }
  0x9b   :  { %s11934_s28 = scalar_lea.vmem %s164_s12, 4096  ;;  %p11939_p10 = scmp.lt.s32.totalorder %s164_s12, %s164_s12 }
  0x9c   :  { %p11935_p9 = scmp.ne.s32.totalorder %s164_s12, %s11934_s28  ;;  %p11940_p11 = scmp.lt.s32.totalorder %s11934_s28, %s11934_s28 }
  0x9e   :  { %p11941_p12 = por %p11940_p11, %p11939_p10 }
  0xa0   :  { %p11942_p13 = pnand %p11941_p12, %p11935_p9 }
  0xa2   :  { %11945 = shalt.err (!%p11942_p13)
}
  0xa3   :  { %169 = dma.hbm_to_vmem [thread:$0]  %s13463_s13, 4096, %s164_s12, [#allocation17], %s12037_s16, %s12037_s16, %s12038_s23  }
  0xa4   :  { %s11954_s11 = scalar_lea.vmem %s188_s9, 4096  ;;  %p11959_p1 = scmp.lt.s32.totalorder %s188_s9, %s188_s9 }
  0xa5   :  { %p11955_p0 = scmp.ne.s32.totalorder %s188_s9, %s11954_s11  ;;  %p11960_p2 = scmp.lt.s32.totalorder %s11954_s11, %s11954_s11 }
  0xa7   :  { %p11961_p3 = por %p11960_p2, %p11959_p1 }
  0xa9   :  { %p11962_p4 = pnand %p11961_p3, %p11955_p0 }
  0xab   :  { %11965 = shalt.err (!%p11962_p4)
}
  0xac   :  { %193 = dma.hbm_to_vmem [thread:$0]  %s13465_s15, 4096, %s188_s9, [#allocation20], %s12037_s16, %s12037_s16, %s12038_s23  }
  0xad   :  { %s12047_s27 = smov [#allocation24]   ;;  %s12048_s21 = smov [#allocation27]  }
  0xae   :  { %s212_s14 = sshll.u32 %s12047_s27, 4  ;;  %s231_s13 = sshll.u32 %s12048_s21, 4  ;;  %s213_s14 = int_to_ptr.vmem [resolvable:$true] %s212_s14  ;;  %s232_s13 = int_to_ptr.vmem [resolvable:$true] %s231_s13 }
  0xaf   :  { %s11974_s8 = scalar_lea.vmem %s213_s14, 16  ;;  %s11978_s4 = scalar_lea.vmem %s213_s14, 32 }
  0xb0   :  { %p11975_p5 = scmp.ne.s32.totalorder %s213_s14, %s11974_s8  ;;  %p11979_p6 = scmp.lt.s32.totalorder %s213_s14, %s213_s14 }
  0xb1   :  { %p11980_p7 = scmp.lt.s32.totalorder %s11978_s4, %s11974_s8 }
  0xb3   :  { %p11981_p8 = por %p11980_p7, %p11979_p6 }
  0xb5   :  { %p11982_p9 = pnand %p11981_p8, %p11975_p5 }
  0xb7   :  { %11985 = shalt.err (!%p11982_p9)
}
  0xb8   :  { %215 = dma.hbm_to_vmem [thread:$0]  %s13467_s17, 16, %s213_s14, [#allocation23]  }
  0xb9   :  { %s11994_s24 = scalar_lea.vmem %s232_s13, 2048  ;;  %p11999_p11 = scmp.lt.s32.totalorder %s232_s13, %s232_s13 }
  0xba   :  { %p11995_p10 = scmp.ne.s32.totalorder %s232_s13, %s11994_s24  ;;  %p12000_p12 = scmp.lt.s32.totalorder %s11994_s24, %s11994_s24 }
  0xbc   :  { %p12001_p13 = por %p12000_p12, %p11999_p11 }
  0xbe   :  { %p12002_p0 = pnand %p12001_p13, %p11995_p10 }
  0xc0   :  { %12005 = shalt.err (!%p12002_p0)
}
  0xc1   :  { %237 = dma.hbm_to_vmem [thread:$0]  %s13469_s19, 2048, %s232_s13, [#allocation26], %s12037_s16, %s12037_s16, %s12038_s23  }
  0xc2   :  { %12006 = dma.done.wait [#allocation3], 2048  }
  0xc3   :  { %12007 = vsyncadd [#allocation3], 4294965248 }
  0xc4   :  { %12008 = dma.done.wait [#allocation5], 48  }
  0xc5   :  { %12009 = vsyncadd [#allocation5], 4294967248 }
  0xc6   :  { %12010 = dma.done.wait [#allocation8], 49184  }
  0xc7   :  { %12011 = vsyncadd [#allocation8], 4294918112 }
  0xc8   :  { %12012 = dma.done.wait [#allocation11], 16768  }
  0xc9   :  { %12013 = vsyncadd [#allocation11], 4294950528 }
  0xca   :  { %12014 = dma.done.wait [#allocation14], 64  }
  0xcb   :  { %12015 = vsyncadd [#allocation14], 4294967232 }
  0xcc   :  { %12016 = dma.done.wait [#allocation17], 4128  }
  0xcd   :  { %12017 = vsyncadd [#allocation17], 4294963168 }
  0xce   :  { %12018 = dma.done.wait [#allocation20], 4128  }
  0xcf   :  { %12019 = vsyncadd [#allocation20], 4294963168 }
  0xd0   :  { %12020 = dma.done.wait [#allocation23], 48  }
  0xd1   :  { %12021 = vsyncadd [#allocation23], 4294967248 }
  0xd2   :  { %12022 = dma.done.wait [#allocation26], 2064  }
  0xd3   :  { %12023 = vsyncadd [#allocation26], 4294965232  ;;  %v12049_v0 = vmov 0.0   ;;  %vm12050_vm0 = vmmov 0   ;;  %v305_v1 = vld [vmem:[#allocation2 + $0x78] sm:$0xff]  ;;  %v304_v2 = vld [vmem:[#allocation2 + $0x70] sm:$0xff]  ;;  %v383_v18 = vlaneseq }
  0xd4   :  { %9514 = vmatprep.subr.mxu0 %v12049_v0  ;;  %9546 = vmatprep.mubr.msk.f32.mxu0 %vm12050_vm0, %v12049_v0  ;;  %v303_v3 = vld [vmem:[#allocation2 + $0x68] sm:$0xff]  ;;  %v302_v4 = vld [vmem:[#allocation2 + $0x60] sm:$0xff]  ;;  %v301_v5 = vld [vmem:[#allocation2 + $0x58] sm:$0xff]  ;;  %s13480_s16 = sld [smem:[#allocation37_spill]]  ;;  %vm407_vm2 = vcmask 64512   ;;  %vm1004_vm6 = vcmask 130048  }
  0xd5   :  { %9515 = vmatpush3.msra.mxu0 %v305_v1  ;;  %v300_v6 = vld [vmem:[#allocation2 + $0x50] sm:$0xff]  ;;  %v299_v7 = vld [vmem:[#allocation2 + $0x48] sm:$0xff]  ;;  %v298_v8 = vld [vmem:[#allocation2 + $0x40] sm:$0xff]  ;;  %v389_v19 = vand.u32 127, %v383_v18  ;;  %v384_v20 = vshrl.u32 %v383_v18, 7  ;;  %s13481_s2 = sld [smem:[#allocation40_spill]] }
  0xd6   :  { %9516 = vmatprep.subr.mxu0 %v12049_v0  ;;  %v297_v9 = vld [vmem:[#allocation2 + $0x38] sm:$0xff]  ;;  %v296_v10 = vld [vmem:[#allocation2 + $0x30] sm:$0xff]  ;;  %v295_v11 = vld [vmem:[#allocation2 + $0x28] sm:$0xff]  ;;  %s13482_s29 = sld [smem:[#allocation41_spill]] }
  0xd7   :  { %9517 = vmatpush3.msra.mxu0 %v304_v2  ;;  %v294_v12 = vld [vmem:[#allocation2 + $0x20] sm:$0xff]  ;;  %v293_v13 = vld [vmem:[#allocation2 + $0x18] sm:$0xff]  ;;  %v292_v14 = vld [vmem:[#allocation2 + $0x10] sm:$0xff]  ;;  %v390_v21 = vmul.u32 16, %v389_v19  ;;  %v385_v22 = vadd.s32 8, %v384_v20  ;;  %v386_v24 = vadd.s32 16, %v384_v20 }
  0xd8   :  { %9518 = vmatprep.subr.mxu0 %v12049_v0  ;;  %v291_v15 = vld [vmem:[#allocation2 + $0x8] sm:$0xff]  ;;  %v290_v16 = vld [vmem:[#allocation2] sm:$0xff]  ;;  %v387_v25 = vadd.s32 24, %v384_v20 }
  0xd9   :  { %9519 = vmatpush3.msra.mxu0 %v303_v3  ;;  %vm391_vm1 = vcmp.eq.s32.totalorder %v384_v20, %v390_v21  ;;  %vm392_vm3 = vcmp.eq.s32.totalorder %v385_v22, %v390_v21  ;;  %vm393_vm4 = vcmp.eq.s32.totalorder %v386_v24, %v390_v21  ;;  %v8413_v26 = vld [vmem:[#allocation4] ss:$0 sm:$0xff]  ;;  %v598_v33 = vld [vmem:[#allocation9 + $0x5a0] sm:$0xff] }
  0xda   :  { %9520 = vmatprep.subr.mxu0 %v12049_v0  ;;  %v289_v17 = vld [vmem:[%s13480_s16] sm:$0xff]  ;;  %v8414_v23 = vsel %vm391_vm1, 1.0, %v12049_v0  ;;  %vm394_vm5 = vcmp.eq.s32.totalorder %v387_v25, %v390_v21  ;;  %v8415_v30 = vsel %vm392_vm3, 1.0, %v12049_v0  ;;  %v8416_v31 = vsel %vm393_vm4, 1.0, %v12049_v0  ;;  %9557 = vmatprep.subr.mxu1 %v598_v33 }
  0xdb   :  { %9521 = vmatpush3.msra.mxu0 %v302_v4  ;;  %v8417_v32 = vsel %vm394_vm5, 1.0, %v12049_v0  ;;  %9558 = vmatpush3.msra.mxu1 %v598_v33  ;;  %v403_v35 = vld [vmem:[%s13481_s2] sm:$0xff]  ;;  %v404_v36 = vld [vmem:[%s13481_s2 + $0x8] sm:$0xff]  ;;  %v405_v42 = vld [vmem:[%s13481_s2 + $0x10] sm:$0xff] }
  0xdc   :  { %9522 = vmatprep.subr.mxu0 %v12049_v0  ;;  %v406_v44 = vld [vmem:[%s13481_s2 + $0x18] sm:$0xff]  ;;  %v597_v50 = vld [vmem:[#allocation9 + $0x540] sm:$0xff] }
  0xdd   :  { %9523 = vmatpush3.msra.mxu0 %v301_v5  ;;  %9559 = vmatprep.subr.mxu1 %v597_v50  ;;  %v596_v51 = vld [vmem:[#allocation9 + $0x4e0] sm:$0xff] }
  0xde   :  { %9524 = vmatprep.subr.mxu0 %v12049_v0  ;;  %9560 = vmatpush3.msra.mxu1 %v597_v50  ;;  %v595_v52 = vld [vmem:[#allocation9 + $0x480] sm:$0xff] }
  0xdf   :  { %9525 = vmatpush3.msra.mxu0 %v300_v6  ;;  %9561 = vmatprep.subr.mxu1 %v596_v51  ;;  %v594_v53 = vld [vmem:[#allocation9 + $0x420] sm:$0xff] }
  0xe0   :  { %9526 = vmatprep.subr.mxu0 %v12049_v0  ;;  %9562 = vmatpush3.msra.mxu1 %v596_v51  ;;  %v593_v54 = vld [vmem:[#allocation9 + $0x3c0] sm:$0xff] }
  0xe1   :  { %9527 = vmatpush3.msra.mxu0 %v299_v7  ;;  %9563 = vmatprep.subr.mxu1 %v595_v52  ;;  %v592_v55 = vld [vmem:[#allocation9 + $0x360] sm:$0xff] }
  0xe2   :  { %9528 = vmatprep.subr.mxu0 %v12049_v0  ;;  %9564 = vmatpush3.msra.mxu1 %v595_v52  ;;  %v591_v56 = vld [vmem:[#allocation9 + $0x300] sm:$0xff] }
  0xe3   :  { %9529 = vmatpush3.msra.mxu0 %v298_v8  ;;  %9565 = vmatprep.subr.mxu1 %v594_v53  ;;  %v590_v57 = vld [vmem:[#allocation9 + $0x2a0] sm:$0xff] }
  0xe4   :  { %9530 = vmatprep.subr.mxu0 %v12049_v0  ;;  %9566 = vmatpush3.msra.mxu1 %v594_v53  ;;  %v589_v58 = vld [vmem:[#allocation9 + $0x240] sm:$0xff] }
  0xe5   :  { %9531 = vmatpush3.msra.mxu0 %v297_v9  ;;  %9567 = vmatprep.subr.mxu1 %v593_v54  ;;  %v588_v59 = vld [vmem:[#allocation9 + $0x1e0] sm:$0xff] }
  0xe6   :  { %9532 = vmatprep.subr.mxu0 %v12049_v0  ;;  %9568 = vmatpush3.msra.mxu1 %v593_v54  ;;  %v587_v60 = vld [vmem:[#allocation9 + $0x180] sm:$0xff] }
  0xe7   :  { %9533 = vmatpush3.msra.mxu0 %v296_v10  ;;  %9569 = vmatprep.subr.mxu1 %v592_v55  ;;  %v586_v61 = vld [vmem:[#allocation9 + $0x120] sm:$0xff] }
  0xe8   :  { %9534 = vmatprep.subr.mxu0 %v12049_v0  ;;  %9570 = vmatpush3.msra.mxu1 %v592_v55  ;;  %v585_v62 = vld [vmem:[#allocation9 + $0xc0] sm:$0xff] }
  0xe9   :  { %9535 = vmatpush3.msra.mxu0 %v295_v11  ;;  %9571 = vmatprep.subr.mxu1 %v591_v56  ;;  %v584_v63 = vld [vmem:[#allocation9 + $0x60] sm:$0xff] }
  0xea   :  { %9536 = vmatprep.subr.mxu0 %v12049_v0  ;;  %9572 = vmatpush3.msra.mxu1 %v591_v56  ;;  %v614_v1 = vld [vmem:[#allocation9 + $0x5c0] sm:$0xff] }
  0xeb   :  { %9537 = vmatpush3.msra.mxu0 %v294_v12  ;;  %9573 = vmatprep.subr.mxu1 %v590_v57  ;;  %v612_v52 = vld [vmem:[#allocation9 + $0x500] sm:$0xff] }
  0xec   :  { %9538 = vmatprep.subr.mxu0 %v12049_v0  ;;  %9574 = vmatpush3.msra.mxu1 %v590_v57  ;;  %v611_v55 = vld [vmem:[#allocation9 + $0x4a0] sm:$0xff] }
  0xed   :  { %9539 = vmatpush3.msra.mxu0 %v293_v13  ;;  %9575 = vmatprep.subr.mxu1 %v589_v58 }
  0xee   :  { %9540 = vmatprep.subr.mxu0 %v12049_v0  ;;  %9576 = vmatpush3.msra.mxu1 %v589_v58  ;;  %v610_v58 = vld [vmem:[#allocation9 + $0x440] sm:$0xff] }
  0xef   :  { %9541 = vmatpush3.msra.mxu0 %v292_v14  ;;  %9577 = vmatprep.subr.mxu1 %v588_v59 }
  0xf0   :  { %9542 = vmatprep.subr.mxu0 %v12049_v0  ;;  %9578 = vmatpush3.msra.mxu1 %v588_v59 }
  0xf1   :  { %9543 = vmatpush3.msra.mxu0 %v291_v15  ;;  %9579 = vmatprep.subr.mxu1 %v587_v60 }
  0xf2   :  { %9544 = vmatprep.subr.mxu0 %v12049_v0  ;;  %9580 = vmatpush3.msra.mxu1 %v587_v60  ;;  %v583_v0 = vld [vmem:[#allocation9] sm:$0xff] }
  0xf3   :  { %9545 = vmatpush3.msra.mxu0 %v290_v16  ;;  %9581 = vmatprep.subr.mxu1 %v586_v61  ;;  %v609_v60 = vld [vmem:[#allocation9 + $0x3e0] sm:$0xff] }
  0xf4   :  { %9547 = vmatmul.mubr.f32.vlgmr.msra.gmra.mxu0 %v289_v17  ;;  %9582 = vmatpush3.msra.mxu1 %v586_v61  ;;  %v608_v61 = vld [vmem:[#allocation9 + $0x380] sm:$0xff] }
  0xf5   :  { %9551 = vmatprep.mubr.msk.f32.mxu0 %vm407_vm2, %v8414_v23  ;;  %9583 = vmatprep.subr.mxu1 %v585_v62 }
  0xf6   :  { %9584 = vmatpush3.msra.mxu1 %v585_v62  ;;  %v607_v62 = vld [vmem:[#allocation9 + $0x320] sm:$0xff] }
  0xf7   :  { %9585 = vmatprep.subr.mxu1 %v584_v63 }
  0xf8   :  { %9586 = vmatpush3.msra.mxu1 %v584_v63  ;;  %v606_v63 = vld [vmem:[#allocation9 + $0x2c0] sm:$0xff] }
  0xf9   :  { %9587 = vmatprep.subr.mxu1 %v583_v0 }
  0xfa   :  { %9588 = vmatpush3.msra.mxu1 %v583_v0  ;;  %v605_v0 = vld [vmem:[#allocation9 + $0x260] sm:$0xff] }
  0xfb   :  { %9595 = vmatprep.subr.mxu1 %v614_v1 }
 0x1b4   :  { %v379_v27 = vpop.f32.mrf.mxu0 }
 0x1b5   :  { %v380_v28 = vadd.f32 %v8413_v26, %v379_v27 }
 0x1b6   :  { %v9548_v29 = vpop.f32.mrf.mxu0 }
 0x1b7   :  { %9549 = vmatprep.subr.mxu0 %v380_v28 }
 0x1b8   :  { %9550 = vmatpush3.msra.mxu0 %v380_v28 }
 0x1b9   :  { %9552 = vmatmul.mubr.msk.f32.vlgmr.msra.gmra.mxu0 %vm407_vm2, %v8415_v30 }
 0x1ba   :  { %9554 = vmatprep.mubr.msk.f32.mxu0 %vm407_vm2, %v8416_v31 }
 0x1bd   :  { %9555 = vmatmul.mubr.msk.f32.gmra.mxu0 %vm407_vm2, %v8417_v32  ;;  %v8422_v32 = vld [vmem:[#allocation6] ss:$0 sm:$0xff] }
 0x279   :  { %v9553_v34 = vpop.f32.mrf.mxu0 }
 0x27a   :  { %v12279_v40 = vadd.f32 %v9553_v34, %v404_v36  ;;  %v8423_v34 = vld [vmem:[#allocation7] ss:$0 sm:$0xff] }
 0x27b   :  { %v486_v37 = vpop.f32.mrf.mxu0 }
 0x27c   :  { %v12277_v38 = vadd.f32 %v486_v37, %v403_v35  ;;  %v524_v46 = vmul.f32 %v12279_v40, %v12279_v40 }
 0x27d   :  { %v9556_v39 = vpop.f32.mrf.mxu0 }
 0x27e   :  { %511 = vadd.xlane.f32.xlu0 %v12277_v38  ;;  %v523_v41 = vmul.f32 %v12277_v38, %v12277_v38  ;;  %v12295_v47 = vadd.f32 %v9556_v39, %v406_v44 }
 0x27f   :  { %v496_v43 = vpop.f32.mrf.mxu0 }
 0x280   :  { %527 = vadd.xlane.f32.xlu1 %v523_v41  ;;  %v12291_v45 = vadd.f32 %v496_v43, %v405_v42  ;;  %v526_v49 = vmul.f32 %v12295_v47, %v12295_v47 }
 0x282   :  { %513 = vadd.xlane.f32.xlu0 %v12279_v40  ;;  %v525_v48 = vmul.f32 %v12291_v45, %v12291_v45 }
 0x284   :  { %529 = vadd.xlane.f32.xlu1 %v524_v46 }
 0x286   :  { %515 = vadd.xlane.f32.xlu0 %v12291_v45 }
 0x288   :  { %517 = vadd.xlane.f32.xlu1 %v12295_v47 }
 0x28a   :  { %531 = vadd.xlane.f32.xlu0 %v525_v48  ;;  %v613_v48 = vld [vmem:[#allocation9 + $0x560] sm:$0xff] }
 0x28c   :  { %533 = vadd.xlane.f32.xlu1 %v526_v49 }
 0x307   :  { %v512_v2 = vpop.xlane.xlu0 %511 }
 0x308   :  { %v519_v3 = vmul.f32 0.03125, %v512_v2  ;;  %v603_v2 = vld [vmem:[#allocation9 + $0x1a0] sm:$0xff] }
 0x309   :  { %v528_v4 = vpop.xlane.xlu1 %527 }
 0x30a   :  { %v539_v5 = vmul.f32 %v519_v3, %v519_v3  ;;  %v535_v6 = vmul.f32 0.03125, %v528_v4  ;;  %v547_v30 = vsub.f32 %v12277_v38, %v519_v3  ;;  %v602_v3 = vld [vmem:[#allocation9 + $0x140] sm:$0xff] }
 0x30b   :  { %v514_v7 = vpop.xlane.xlu0 %513  ;;  %v601_v4 = vld [vmem:[#allocation9 + $0xe0] sm:$0xff] }
 0x30c   :  { %v543_v8 = vsub.f32 %v535_v6, %v539_v5  ;;  %v520_v9 = vmul.f32 0.03125, %v514_v7  ;;  %v600_v5 = vld [vmem:[#allocation9 + $0x80] sm:$0xff] }
 0x30d   :  { %v530_v10 = vpop.xlane.xlu1 %529  ;;  %v599_v6 = vld [vmem:[#allocation9 + $0x20] sm:$0xff] }
 0x30e   :  { %v551_v11 = vadd.f32 1e-05, %v543_v8  ;;  %v540_v12 = vmul.f32 %v520_v9, %v520_v9  ;;  %v536_v13 = vmul.f32 0.03125, %v530_v10  ;;  %v548_v36 = vsub.f32 %v12279_v40, %v520_v9  ;;  %v630_v7 = vld [vmem:[#allocation9 + $0x5e0] sm:$0xff] }
 0x30f   :  { %v516_v14 = vpop.xlane.xlu0 %515  ;;  %v629_v8 = vld [vmem:[#allocation9 + $0x580] sm:$0xff] }
 0x310   :  { %11470 = vrsqrt.f32 %v551_v11  ;;  %v544_v15 = vsub.f32 %v536_v13, %v540_v12  ;;  %v521_v16 = vmul.f32 0.03125, %v516_v14  ;;  %v628_v9 = vld [vmem:[#allocation9 + $0x520] sm:$0xff] }
 0x311   :  { %v518_v17 = vpop.xlane.xlu1 %517  ;;  %v627_v10 = vld [vmem:[#allocation9 + $0x4c0] sm:$0xff] }
 0x312   :  { %v552_v18 = vadd.f32 1e-05, %v544_v15  ;;  %v541_v19 = vmul.f32 %v521_v16, %v521_v16  ;;  %v522_v20 = vmul.f32 0.03125, %v518_v17  ;;  %v549_v44 = vsub.f32 %v12291_v45, %v521_v16  ;;  %v626_v11 = vld [vmem:[#allocation9 + $0x460] sm:$0xff] }
 0x313   :  { %v532_v21 = vpop.xlane.xlu0 %531  ;;  %v625_v12 = vld [vmem:[#allocation9 + $0x400] sm:$0xff] }
 0x314   :  { %11472 = vrsqrt.f32 %v552_v18  ;;  %v542_v22 = vmul.f32 %v522_v20, %v522_v20  ;;  %v537_v23 = vmul.f32 0.03125, %v532_v21  ;;  %v550_v49 = vsub.f32 %v12295_v47, %v522_v20  ;;  %v624_v13 = vld [vmem:[#allocation9 + $0x3a0] sm:$0xff] }
 0x315   :  { %v534_v24 = vpop.xlane.xlu1 %533  ;;  %v623_v14 = vld [vmem:[#allocation9 + $0x340] sm:$0xff] }
 0x316   :  { %v545_v25 = vsub.f32 %v537_v23, %v541_v19  ;;  %v538_v26 = vmul.f32 0.03125, %v534_v24  ;;  %v622_v15 = vld [vmem:[#allocation9 + $0x2e0] sm:$0xff] }
 0x317   :  { %v621_v16 = vld [vmem:[#allocation9 + $0x280] sm:$0xff] }
 0x318   :  { %v553_v27 = vadd.f32 1e-05, %v545_v25  ;;  %v546_v28 = vsub.f32 %v538_v26, %v542_v22  ;;  %v620_v17 = vld [vmem:[#allocation9 + $0x220] sm:$0xff] }
 0x319   :  { %v619_v18 = vld [vmem:[#allocation9 + $0x1c0] sm:$0xff] }
 0x31a   :  { %11474 = vrsqrt.f32 %v553_v27  ;;  %v554_v29 = vadd.f32 1e-05, %v546_v28  ;;  %v618_v19 = vld [vmem:[#allocation9 + $0x160] sm:$0xff] }
 0x31b   :  { %v617_v20 = vld [vmem:[#allocation9 + $0x100] sm:$0xff] }
 0x31c   :  { %11476 = vrsqrt.f32 %v554_v29  ;;  %v616_v21 = vld [vmem:[#allocation9 + $0xa0] sm:$0xff] }
 0x31d   :  { %v11471_v31 = vpop.eup %11470  ;;  %v615_v22 = vld [vmem:[#allocation9 + $0x40] sm:$0xff] }
 0x31e   :  { %v559_v33 = vmul.f32 %v11471_v31, %v547_v30  ;;  %v8424_v24 = vld [vmem:[#allocation10] ss:$0 sm:$0xff]  ;;  %v8425_v29 = vld [vmem:[#allocation10 + $0x4] ss:$0 sm:$0xff] }
 0x320   :  { %v569_v35 = vmul.f32 %v8422_v32, %v559_v33 }
 0x321   :  { %v11473_v37 = vpop.eup %11472 }
 0x322   :  { %v12305_v39 = vadd.f32 %v8423_v34, %v569_v35  ;;  %v560_v41 = vmul.f32 %v11473_v37, %v548_v36 }
 0x324   :  { %v570_v42 = vmul.f32 %v8422_v32, %v560_v41  ;;  %9589 = vmatprep.mubr.f32.mxu1 %v12305_v39 }
 0x326   :  { %v12308_v43 = vadd.f32 %v8423_v34, %v570_v42 }
 0x327   :  { %v11475_v46 = vpop.eup %11474 }
 0x328   :  { %v561_v50 = vmul.f32 %v11475_v46, %v549_v44  ;;  %9590 = vmatmul.mubr.f32.vlgmr.msra.gmra.mxu1 %v12308_v43  ;;  %v1324_v44 = vld [vmem:[#allocation9 + $0x5c8] sm:$0xff] }
 0x329   :  { %v11477_v51 = vpop.eup %11476  ;;  %9596 = vmatpush3.msra.mxu1 %v614_v1  ;;  %v604_v1 = vld [vmem:[#allocation9 + $0x200] sm:$0xff] }
 0x32a   :  { %v571_v53 = vmul.f32 %v8422_v32, %v561_v50  ;;  %v562_v54 = vmul.f32 %v11477_v51, %v550_v49  ;;  %9597 = vmatprep.subr.mxu1 %v613_v48  ;;  %v1322_v49 = vld [vmem:[#allocation9 + $0x508] sm:$0xff] }
 0x32b   :  { %9598 = vmatpush3.msra.mxu1 %v613_v48  ;;  %v1323_v48 = vld [vmem:[#allocation9 + $0x568] sm:$0xff] }
 0x32c   :  { %v12313_v56 = vadd.f32 %v8423_v34, %v571_v53  ;;  %v572_v57 = vmul.f32 %v8422_v32, %v562_v54  ;;  %9599 = vmatprep.subr.mxu1 %v612_v52  ;;  %v1321_v50 = vld [vmem:[#allocation9 + $0x4a8] sm:$0xff] }
 0x32d   :  { %9600 = vmatpush3.msra.mxu1 %v612_v52  ;;  %v1320_v51 = vld [vmem:[#allocation9 + $0x448] sm:$0xff] }
 0x32e   :  { %v12315_v59 = vadd.f32 %v8423_v34, %v572_v57  ;;  %9601 = vmatprep.subr.mxu1 %v611_v55  ;;  %9592 = vmatprep.mubr.f32.mxu1 %v12313_v56  ;;  %v1319_v52 = vld [vmem:[#allocation9 + $0x3e8] sm:$0xff] }
 0x32f   :  { %9602 = vmatpush3.msra.mxu1 %v611_v55  ;;  %v1318_v53 = vld [vmem:[#allocation9 + $0x388] sm:$0xff] }
 0x330   :  { %9603 = vmatprep.subr.mxu1 %v610_v58  ;;  %9593 = vmatmul.mubr.f32.gmra.mxu1 %v12315_v59  ;;  %v12328_v54 = vld [vmem:[#allocation10 + $0x8] ss:$0 sm:$0xff] }
 0x331   :  { %9604 = vmatpush3.msra.mxu1 %v610_v58  ;;  %9627 = vmatprep.mubr.f32.mxu1 %v12305_v39  ;;  %v1317_v55 = vld [vmem:[#allocation9 + $0x328] sm:$0xff] }
 0x332   :  { %9605 = vmatprep.subr.mxu1 %v609_v60  ;;  %v1316_v58 = vld [vmem:[#allocation9 + $0x2c8] sm:$0xff] }
 0x333   :  { %9606 = vmatpush3.msra.mxu1 %v609_v60 }
 0x334   :  { %9607 = vmatprep.subr.mxu1 %v608_v61 }
 0x335   :  { %9608 = vmatpush3.msra.mxu1 %v608_v61 }
 0x336   :  { %9609 = vmatprep.subr.mxu1 %v607_v62 }
 0x337   :  { %9610 = vmatpush3.msra.mxu1 %v607_v62  ;;  %v1315_v62 = vld [vmem:[#allocation9 + $0x268] sm:$0xff] }
 0x338   :  { %9611 = vmatprep.subr.mxu1 %v606_v63 }
 0x339   :  { %9612 = vmatpush3.msra.mxu1 %v606_v63 }
 0x33a   :  { %9613 = vmatprep.subr.mxu1 %v605_v0 }
 0x33b   :  { %9614 = vmatpush3.msra.mxu1 %v605_v0 }
 0x33c   :  { %9615 = vmatprep.subr.mxu1 %v604_v1 }
 0x33d   :  { %9616 = vmatpush3.msra.mxu1 %v604_v1  ;;  %v1314_v1 = vld [vmem:[#allocation9 + $0x208] sm:$0xff] }
 0x33e   :  { %9617 = vmatprep.subr.mxu1 %v603_v2 }
 0x33f   :  { %9618 = vmatpush3.msra.mxu1 %v603_v2 }
 0x340   :  { %9619 = vmatprep.subr.mxu1 %v602_v3 }
 0x341   :  { %9620 = vmatpush3.msra.mxu1 %v602_v3  ;;  %v1313_v3 = vld [vmem:[#allocation9 + $0x1a8] sm:$0xff] }
 0x342   :  { %9621 = vmatprep.subr.mxu1 %v601_v4 }
 0x343   :  { %9622 = vmatpush3.msra.mxu1 %v601_v4  ;;  %v1312_v4 = vld [vmem:[#allocation9 + $0x148] sm:$0xff] }
 0x344   :  { %9623 = vmatprep.subr.mxu1 %v600_v5 }
 0x345   :  { %9624 = vmatpush3.msra.mxu1 %v600_v5  ;;  %v1311_v5 = vld [vmem:[#allocation9 + $0xe8] sm:$0xff] }
 0x346   :  { %9625 = vmatprep.subr.mxu1 %v599_v6 }
 0x347   :  { %9626 = vmatpush3.msra.mxu1 %v599_v6  ;;  %v1310_v6 = vld [vmem:[#allocation9 + $0x88] sm:$0xff] }
 0x348   :  { %9628 = vmatmul.mubr.f32.vlgmr.msra.gmra.mxu1 %v12308_v43  ;;  %9633 = vmatprep.subr.mxu1 %v630_v7 }
 0x349   :  { %9630 = vmatprep.mubr.f32.mxu1 %v12313_v56  ;;  %9634 = vmatpush3.msra.mxu1 %v630_v7  ;;  %v1309_v7 = vld [vmem:[#allocation9 + $0x28] sm:$0xff] }
 0x34a   :  { %9635 = vmatprep.subr.mxu1 %v629_v8 }
 0x34b   :  { %9636 = vmatpush3.msra.mxu1 %v629_v8 }
 0x34c   :  { %9631 = vmatmul.mubr.f32.gmra.mxu1 %v12315_v59  ;;  %9637 = vmatprep.subr.mxu1 %v628_v9 }
 0x34d   :  { %9638 = vmatpush3.msra.mxu1 %v628_v9  ;;  %9665 = vmatprep.mubr.f32.mxu1 %v12305_v39  ;;  %v12342_v9 = vld [vmem:[%s13482_s29 + $0x8] sm:$0xff] }
 0x34e   :  { %9639 = vmatprep.subr.mxu1 %v627_v10 }
 0x34f   :  { %9640 = vmatpush3.msra.mxu1 %v627_v10 }
 0x350   :  { %9641 = vmatprep.subr.mxu1 %v626_v11 }
 0x351   :  { %9642 = vmatpush3.msra.mxu1 %v626_v11 }
 0x352   :  { %9643 = vmatprep.subr.mxu1 %v625_v12 }
 0x353   :  { %9644 = vmatpush3.msra.mxu1 %v625_v12  ;;  %v12347_v12 = vld [vmem:[%s13482_s29] sm:$0xff] }
 0x354   :  { %9645 = vmatprep.subr.mxu1 %v624_v13 }
 0x355   :  { %9646 = vmatpush3.msra.mxu1 %v624_v13 }
 0x356   :  { %9647 = vmatprep.subr.mxu1 %v623_v14 }
 0x357   :  { %9648 = vmatpush3.msra.mxu1 %v623_v14 }
 0x358   :  { %9649 = vmatprep.subr.mxu1 %v622_v15 }
 0x359   :  { %9650 = vmatpush3.msra.mxu1 %v622_v15 }
 0x35a   :  { %9651 = vmatprep.subr.mxu1 %v621_v16 }
 0x35b   :  { %9652 = vmatpush3.msra.mxu1 %v621_v16 }
 0x35c   :  { %9653 = vmatprep.subr.mxu1 %v620_v17 }
 0x35d   :  { %9654 = vmatpush3.msra.mxu1 %v620_v17 }
 0x35e   :  { %9655 = vmatprep.subr.mxu1 %v619_v18 }
 0x35f   :  { %9656 = vmatpush3.msra.mxu1 %v619_v18 }
 0x360   :  { %9657 = vmatprep.subr.mxu1 %v618_v19 }
 0x361   :  { %9658 = vmatpush3.msra.mxu1 %v618_v19  ;;  %v12356_v19 = vld [vmem:[%s13482_s29 + $0x18] sm:$0xff] }
 0x362   :  { %9659 = vmatprep.subr.mxu1 %v617_v20 }
 0x363   :  { %9660 = vmatpush3.msra.mxu1 %v617_v20 }
 0x364   :  { %9661 = vmatprep.subr.mxu1 %v616_v21 }
 0x365   :  { %9662 = vmatpush3.msra.mxu1 %v616_v21 }
 0x366   :  { %9663 = vmatprep.subr.mxu1 %v615_v22 }
 0x367   :  { %9664 = vmatpush3.msra.mxu1 %v615_v22  ;;  %v12361_v22 = vld [vmem:[%s13482_s29 + $0x10] sm:$0xff] }
 0x368   :  { %9666 = vmatmul.mubr.f32.vlgmr.msra.gmra.mxu1 %v12308_v43 }
 0x369   :  { %9668 = vmatprep.mubr.f32.mxu1 %v12313_v56 }
 0x36c   :  { %9669 = vmatmul.mubr.f32.gmra.mxu1 %v12315_v59 }
 0x3e8   :  { %v9591_v23 = vpop.f32.mrf.mxu1 }
 0x3e9   :  { %v728_v37 = vadd.f32 %v9591_v23, %v8424_v24 }
 0x3ea   :  { %v722_v25 = vpop.f32.mrf.mxu1 }
 0x3eb   :  { %v723_v26 = vadd.f32 %v8424_v24, %v722_v25 }
 0x3ed   :  { %9675 = vmatprep.mubr.f32.mxu0 %v723_v26 }
 0x3f0   :  { %v9594_v27 = vpop.f32.mrf.mxu1 }
 0x3f1   :  { %v738_v46 = vadd.f32 %v9594_v27, %v8424_v24 }
 0x3f2   :  { %v732_v28 = vpop.f32.mrf.mxu1 }
 0x3f3   :  { %v733_v41 = vadd.f32 %v8424_v24, %v732_v28  ;;  %v12367_v28 = vld [vmem:[#allocation10 + $0x5] ss:$0 sm:$0xff] }
 0x408   :  { %v9629_v30 = vpop.f32.mrf.mxu1 }
 0x409   :  { %v819_v31 = vadd.f32 %v9629_v30, %v8425_v29 }
 0x40a   :  { %v813_v32 = vpop.f32.mrf.mxu1 }
 0x40b   :  { %v814_v33 = vadd.f32 %v8425_v29, %v813_v32  ;;  %9671 = vmatprep.subr.mxu0 %v819_v31 }
 0x40c   :  { %v9632_v34 = vpop.f32.mrf.mxu1  ;;  %9672 = vmatpush3.xpose.msra.mxu0 %v819_v31 }
 0x40d   :  { %9673 = vmatprep.subr.mxu0 %v814_v33  ;;  %v829_v35 = vadd.f32 %v9632_v34, %v8425_v29 }
 0x40e   :  { %v823_v36 = vpop.f32.mrf.mxu1 }
 0x40f   :  { %v824_v42 = vadd.f32 %v8425_v29, %v823_v36 }
 0x410   :  { %9674 = vmatpush3.xpose.msra.mxu0 %v814_v33 }
 0x411   :  { %9685 = vmatprep.subr.mxu0 %v829_v35 }
 0x413   :  { %9676 = vmatmul.mubr.f32.vlgmr.msra.gmra.mxu0 %v728_v37 }
 0x414   :  { %9686 = vmatpush3.xpose.msra.mxu0 %v829_v35  ;;  %9689 = vmatprep.mubr.f32.mxu0 %v733_v41 }
 0x415   :  { %9687 = vmatprep.subr.mxu0 %v824_v42 }
 0x418   :  { %9688 = vmatpush3.xpose.msra.mxu0 %v824_v42 }
 0x419   :  { %9737 = vmatprep.subr.mxu0 %v1324_v44 }
 0x41b   :  { %9690 = vmatmul.mubr.f32.vlgmr.msra.gmra.mxu0 %v738_v46 }
 0x41c   :  { %9738 = vmatpush3.msra.mxu0 %v1324_v44  ;;  %9769 = vmatprep.mubr.f32.mxu0 %v12305_v39 }
 0x41d   :  { %9739 = vmatprep.subr.mxu0 %v1323_v48 }
 0x41e   :  { %9740 = vmatpush3.msra.mxu0 %v1323_v48 }
 0x41f   :  { %9741 = vmatprep.subr.mxu0 %v1322_v49 }
 0x420   :  { %9742 = vmatpush3.msra.mxu0 %v1322_v49 }
 0x421   :  { %9743 = vmatprep.subr.mxu0 %v1321_v50 }
 0x422   :  { %9744 = vmatpush3.msra.mxu0 %v1321_v50 }
 0x423   :  { %9745 = vmatprep.subr.mxu0 %v1320_v51 }
 0x424   :  { %9746 = vmatpush3.msra.mxu0 %v1320_v51 }
 0x425   :  { %9747 = vmatprep.subr.mxu0 %v1319_v52 }
 0x426   :  { %9748 = vmatpush3.msra.mxu0 %v1319_v52 }
 0x427   :  { %9749 = vmatprep.subr.mxu0 %v1318_v53 }
 0x428   :  { %v9667_v57 = vpop.f32.mrf.mxu1  ;;  %9750 = vmatpush3.msra.mxu0 %v1318_v53 }
 0x429   :  { %v910_v60 = vadd.f32 %v9667_v57, %v12328_v54  ;;  %9751 = vmatprep.subr.mxu0 %v1317_v55 }
 0x42a   :  { %v904_v61 = vpop.f32.mrf.mxu1  ;;  %9752 = vmatpush3.msra.mxu0 %v1317_v55 }
 0x42b   :  { %v905_v63 = vadd.f32 %v12328_v54, %v904_v61  ;;  %9678 = vmatprep.subr.mxu1 %v910_v60  ;;  %9753 = vmatprep.subr.mxu0 %v1316_v58 }
 0x42c   :  { %v9670_v0 = vpop.f32.mrf.mxu1  ;;  %9679 = vmatpush3.msra.mxu1 %v910_v60  ;;  %9754 = vmatpush3.msra.mxu0 %v1316_v58 }
 0x42d   :  { %v12333_v2 = vadd.f32 %v9670_v0, %v12328_v54  ;;  %9680 = vmatprep.subr.mxu1 %v905_v63  ;;  %9755 = vmatprep.subr.mxu0 %v1315_v62 }
 0x42e   :  { %9681 = vmatpush3.msra.mxu1 %v905_v63  ;;  %9756 = vmatpush3.msra.mxu0 %v1315_v62 }
 0x42f   :  { %9692 = vmatprep.subr.mxu1 %v12333_v2  ;;  %9757 = vmatprep.subr.mxu0 %v1314_v1 }
 0x430   :  { %9758 = vmatpush3.msra.mxu0 %v1314_v1 }
 0x431   :  { %9759 = vmatprep.subr.mxu0 %v1313_v3 }
 0x432   :  { %9760 = vmatpush3.msra.mxu0 %v1313_v3 }
 0x433   :  { %9761 = vmatprep.subr.mxu0 %v1312_v4 }
 0x434   :  { %9762 = vmatpush3.msra.mxu0 %v1312_v4 }
 0x435   :  { %9763 = vmatprep.subr.mxu0 %v1311_v5 }
 0x436   :  { %9764 = vmatpush3.msra.mxu0 %v1311_v5 }
 0x437   :  { %9765 = vmatprep.subr.mxu0 %v1310_v6 }
 0x438   :  { %9766 = vmatpush3.msra.mxu0 %v1310_v6 }
 0x439   :  { %9767 = vmatprep.subr.mxu0 %v1309_v7 }
 0x43a   :  { %9768 = vmatpush3.msra.mxu0 %v1309_v7  ;;  %v914_v7 = vpop.f32.mrf.mxu1 }
 0x43b   :  { %9770 = vmatmul.mubr.f32.vlgmr.msra.gmra.mxu0 %v12308_v43 }
 0x43c   :  { %9772 = vmatprep.mubr.f32.mxu0 %v12313_v56 }
 0x43f   :  { %9773 = vmatmul.mubr.f32.gmra.mxu0 %v12315_v59 }
 0x4d3   :  { %v9677_v8 = vpop.f32.mrf.mxu0 }
 0x4d4   :  { %v999_v10 = vmul.f32 0.35355338, %v9677_v8 }
 0x4d5   :  { %v989_v11 = vpop.f32.mrf.mxu0 }
 0x4d6   :  { %v998_v13 = vmul.f32 0.35355338, %v989_v11  ;;  %v1003_v14 = vadd.f32 %v12342_v9, %v999_v10  ;;  %v915_v11 = vadd.f32 %v12328_v54, %v914_v7  ;;  %v1306_v54 = vld [vmem:[#allocation9 + $0x4e8] sm:$0xff]  ;;  %v639_v7 = vld [vmem:[#allocation12 + $0x28] sm:$0xff] }
 0x4d8   :  { %v1008_v15 = vsel %vm1004_vm6, %v1003_v14, -inf  ;;  %v1002_v16 = vadd.f32 %v12347_v12, %v998_v13  ;;  %v1308_v13 = vld [vmem:[#allocation9 + $0x5a8] sm:$0xff] }
 0x4d9   :  { %1009 = vmax.xlane.f32.xlu1 %v1008_v15 }
 0x4da   :  { %v1005_v17 = vsel %vm1004_vm6, %v1002_v16, -inf }
 0x4db   :  { %1006 = vmax.xlane.f32.xlu0 %v1005_v17  ;;  %v9691_v18 = vpop.f32.mrf.mxu0 }
 0x4dc   :  { %v1184_v20 = vmul.f32 0.35355338, %v9691_v18  ;;  %v1307_v18 = vld [vmem:[#allocation9 + $0x548] sm:$0xff] }
 0x4dd   :  { %v1174_v21 = vpop.f32.mrf.mxu0 }
 0x4de   :  { %v1183_v23 = vmul.f32 0.35355338, %v1174_v21  ;;  %v1189_v24 = vadd.f32 %v12356_v19, %v1184_v20  ;;  %v1304_v20 = vld [vmem:[#allocation9 + $0x428] sm:$0xff] }
 0x4df   :  { %v1303_v21 = vld [vmem:[#allocation9 + $0x3c8] sm:$0xff] }
 0x4e0   :  { %v1193_v25 = vsel %vm1004_vm6, %v1189_v24, -inf  ;;  %v1188_v26 = vadd.f32 %v12361_v22, %v1183_v23  ;;  %v1302_v23 = vld [vmem:[#allocation9 + $0x368] sm:$0xff] }
 0x4e1   :  { %1194 = vmax.xlane.f32.xlu1 %v1193_v25  ;;  %v1300_v25 = vld [vmem:[#allocation9 + $0x2a8] sm:$0xff] }
 0x4e2   :  { %v1190_v27 = vsel %vm1004_vm6, %v1188_v26, -inf }
 0x4e3   :  { %1191 = vmax.xlane.f32.xlu0 %v1190_v27  ;;  %v1298_v27 = vld [vmem:[#allocation9 + $0x1e8] sm:$0xff] }
 0x4fb   :  { %v9771_v29 = vpop.f32.mrf.mxu0 }
 0x4fc   :  { %v1529_v30 = vadd.f32 %v9771_v29, %v12367_v28  ;;  %v1297_v29 = vld [vmem:[#allocation9 + $0x188] sm:$0xff] }
 0x4fd   :  { %v1523_v31 = vpop.f32.mrf.mxu0 }
 0x4fe   :  { %v1524_v32 = vadd.f32 %v12367_v28, %v1523_v31  ;;  %9813 = vmatprep.subr.mxu0 %v1529_v30  ;;  %v1295_v31 = vld [vmem:[#allocation9 + $0xc8] sm:$0xff] }
 0x4ff   :  { %v9774_v33 = vpop.f32.mrf.mxu0  ;;  %9814 = vmatpush3.xpose.msra.mxu0 %v1529_v30  ;;  %v1296_v30 = vld [vmem:[#allocation9 + $0x128] sm:$0xff] }
 0x500   :  { %v12372_v34 = vadd.f32 %v9774_v33, %v12367_v28  ;;  %9815 = vmatprep.subr.mxu0 %v1524_v32  ;;  %v1293_v33 = vld [vmem:[#allocation9 + $0x8] sm:$0xff] }
 0x503   :  { %9816 = vmatpush3.xpose.msra.mxu0 %v1524_v32  ;;  %v1294_v32 = vld [vmem:[#allocation9 + $0x68] sm:$0xff] }
 0x562   :  { %v1010_v35 = vpop.xlane.xlu1 %1009 }
 0x563   :  { %v1012_v36 = vsub.f32 %v1003_v14, %v1010_v35  ;;  %v1340_v35 = vld [vmem:[#allocation9 + $0x5e8] sm:$0xff] }
 0x564   :  { %v1007_v37 = vpop.xlane.xlu0 %1006 }
 0x565   :  { %v1015_v41 = vmul.f32 1.442695, %v1012_v36  ;;  %v1011_v42 = vsub.f32 %v1002_v16, %v1007_v37  ;;  %v1339_v36 = vld [vmem:[#allocation9 + $0x588] sm:$0xff] }
 0x566   :  { %v1338_v37 = vld [vmem:[#allocation9 + $0x528] sm:$0xff] }
 0x567   :  { %11478 = vpow2.f32 %v1015_v41  ;;  %v1013_v44 = vmul.f32 1.442695, %v1011_v42  ;;  %v1337_v41 = vld [vmem:[#allocation9 + $0x4c8] sm:$0xff] }
 0x568   :  { %v1336_v42 = vld [vmem:[#allocation9 + $0x468] sm:$0xff] }
 0x569   :  { %11480 = vpow2.f32 %v1013_v44  ;;  %v1335_v44 = vld [vmem:[#allocation9 + $0x408] sm:$0xff] }
 0x56a   :  { %v1195_v46 = vpop.xlane.xlu1 %1194 }
 0x56b   :  { %v1197_v48 = vsub.f32 %v1189_v24, %v1195_v46  ;;  %v1301_v24 = vld [vmem:[#allocation9 + $0x308] sm:$0xff] }
 0x56c   :  { %v1192_v49 = vpop.xlane.xlu0 %1191  ;;  %v1334_v46 = vld [vmem:[#allocation9 + $0x3a8] sm:$0xff] }
 0x56d   :  { %v1200_v50 = vmul.f32 1.442695, %v1197_v48  ;;  %v1196_v51 = vsub.f32 %v1188_v26, %v1192_v49  ;;  %v1299_v26 = vld [vmem:[#allocation9 + $0x248] sm:$0xff] }
 0x56e   :  { %v1333_v48 = vld [vmem:[#allocation9 + $0x348] sm:$0xff] }
 0x56f   :  { %11482 = vpow2.f32 %v1200_v50  ;;  %v1198_v52 = vmul.f32 1.442695, %v1196_v51  ;;  %v1332_v49 = vld [vmem:[#allocation9 + $0x2e8] sm:$0xff] }
 0x570   :  { %v1331_v50 = vld [vmem:[#allocation9 + $0x288] sm:$0xff] }
 0x571   :  { %11484 = vpow2.f32 %v1198_v52  ;;  %v1330_v51 = vld [vmem:[#allocation9 + $0x228] sm:$0xff] }
 0x572   :  { %v1329_v52 = vld [vmem:[#allocation9 + $0x1c8] sm:$0xff] }
 0x574   :  { %v11479_v53 = vpop.eup %11478 }
 0x575   :  { %v1020_v55 = vsel %vm1004_vm6, %v11479_v53, 0.0 }
 0x576   :  { %v11481_v57 = vpop.eup %11480  ;;  %1021 = vadd.xlane.f32.xlu1 %v1020_v55  ;;  %v1327_v55 = vld [vmem:[#allocation9 + $0x108] sm:$0xff] }
 0x577   :  { %v1017_v58 = vsel %vm1004_vm6, %v11481_v57, 0.0 }
 0x578   :  { %1018 = vadd.xlane.f32.xlu0 %v1017_v58  ;;  %v1325_v58 = vld [vmem:[#allocation9 + $0x48] sm:$0xff] }
 0x57c   :  { %v11483_v60 = vpop.eup %11482 }
 0x57d   :  { %v1205_v61 = vsel %vm1004_vm6, %v11483_v60, 0.0 }
 0x57e   :  { %v11485_v62 = vpop.eup %11484  ;;  %1206 = vadd.xlane.f32.xlu1 %v1205_v61  ;;  %v648_v61 = vld [vmem:[#allocation12 + $0x70] sm:$0xff] }
 0x57f   :  { %v1202_v63 = vsel %vm1004_vm6, %v11485_v62, 0.0 }
 0x580   :  { %1203 = vadd.xlane.f32.xlu0 %v1202_v63  ;;  %v646_v63 = vld [vmem:[#allocation12 + $0x60] sm:$0xff] }
 0x5ff   :  { %v1022_v0 = vpop.xlane.xlu1 %1021 }
 0x600   :  { %11486 = vrcp.f32 %v1022_v0  ;;  %v645_v0 = vld [vmem:[#allocation12 + $0x58] sm:$0xff] }
 0x601   :  { %v1019_v1 = vpop.xlane.xlu0 %1018 }
 0x602   :  { %11488 = vrcp.f32 %v1019_v1  ;;  %v644_v1 = vld [vmem:[#allocation12 + $0x50] sm:$0xff] }
 0x607   :  { %v1207_v3 = vpop.xlane.xlu1 %1206 }
 0x608   :  { %11490 = vrcp.f32 %v1207_v3  ;;  %v643_v3 = vld [vmem:[#allocation12 + $0x48] sm:$0xff] }
 0x609   :  { %v1204_v4 = vpop.xlane.xlu0 %1203 }
 0x60a   :  { %11492 = vrcp.f32 %v1204_v4  ;;  %v642_v4 = vld [vmem:[#allocation12 + $0x40] sm:$0xff] }
 0x60d   :  { %v11487_v5 = vpop.eup %11486 }
 0x60e   :  { %v1026_v10 = vmul.f32 %v11487_v5, %v11479_v53  ;;  %v1328_v53 = vld [vmem:[#allocation9 + $0x168] sm:$0xff]  ;;  %v641_v5 = vld [vmem:[#allocation12 + $0x38] sm:$0xff] }
 0x60f   :  { %v11489_v6 = vpop.eup %11488 }
 0x610   :  { %v1025_v8 = vmul.f32 %v11489_v6, %v11481_v57  ;;  %v1326_v57 = vld [vmem:[#allocation9 + $0xa8] sm:$0xff] }
 0x611   :  { %v640_v6 = vld [vmem:[#allocation12 + $0x30] sm:$0xff] }
 0x612   :  { %9682 = vmatprep.mubr.msk.f32.mxu1 %vm1004_vm6, %v1025_v8  ;;  %v638_v8 = vld [vmem:[#allocation12 + $0x20] sm:$0xff] }
 0x613   :  { %9683 = vmatmul.mubr.msk.f32.vlgmr.msra.gmra.mxu1 %vm1004_vm6, %v1026_v10  ;;  %v637_v10 = vld [vmem:[#allocation12 + $0x18] sm:$0xff] }
 0x614   :  { %9693 = vmatpush3.msra.mxu1 %v12333_v2  ;;  %v1305_v2 = vld [vmem:[#allocation9 + $0x488] sm:$0xff] }
 0x615   :  { %9694 = vmatprep.subr.mxu1 %v915_v11  ;;  %v11491_v14 = vpop.eup %11490 }
 0x616   :  { %9695 = vmatpush3.msra.mxu1 %v915_v11  ;;  %v1211_v17 = vmul.f32 %v11491_v14, %v11483_v60  ;;  %v649_v60 = vld [vmem:[#allocation12 + $0x78] sm:$0xff]  ;;  %v636_v11 = vld [vmem:[#allocation12 + $0x10] sm:$0xff]  ;;  %v634_v14 = vld [vmem:[#allocation12] sm:$0xff] }
 0x617   :  { %v11493_v15 = vpop.eup %11492  ;;  %9699 = vmatprep.subr.mxu1 %v1308_v13 }
 0x618   :  { %v1210_v16 = vmul.f32 %v11493_v15, %v11485_v62  ;;  %v647_v62 = vld [vmem:[#allocation12 + $0x68] sm:$0xff] }
 0x61a   :  { %9696 = vmatprep.mubr.msk.f32.mxu1 %vm1004_vm6, %v1210_v16 }
 0x61b   :  { %9697 = vmatmul.mubr.msk.f32.vlgmr.msra.gmra.mxu1 %vm1004_vm6, %v1211_v17 }
 0x61c   :  { %9700 = vmatpush3.msra.mxu1 %v1308_v13  ;;  %9731 = vmatprep.mubr.f32.mxu1 %v12305_v39  ;;  %v635_v13 = vld [vmem:[#allocation12 + $0x8] sm:$0xff] }
 0x61d   :  { %9701 = vmatprep.subr.mxu1 %v1307_v18 }
 0x61e   :  { %9702 = vmatpush3.msra.mxu1 %v1307_v18 }
 0x61f   :  { %9703 = vmatprep.subr.mxu1 %v1306_v54 }
 0x620   :  { %9704 = vmatpush3.msra.mxu1 %v1306_v54  ;;  %v2328_v54 = vld [vmem:[#allocation9 + $0x5d0] sm:$0xff] }
 0x621   :  { %9705 = vmatprep.subr.mxu1 %v1305_v2 }
 0x622   :  { %9706 = vmatpush3.msra.mxu1 %v1305_v2  ;;  %v2327_v2 = vld [vmem:[#allocation9 + $0x570] sm:$0xff] }
 0x623   :  { %9707 = vmatprep.subr.mxu1 %v1304_v20 }
 0x624   :  { %9708 = vmatpush3.msra.mxu1 %v1304_v20  ;;  %v2326_v20 = vld [vmem:[#allocation9 + $0x510] sm:$0xff] }
 0x625   :  { %9709 = vmatprep.subr.mxu1 %v1303_v21 }
 0x626   :  { %9710 = vmatpush3.msra.mxu1 %v1303_v21  ;;  %v2325_v21 = vld [vmem:[#allocation9 + $0x4b0] sm:$0xff] }
 0x627   :  { %9711 = vmatprep.subr.mxu1 %v1302_v23 }
 0x628   :  { %9712 = vmatpush3.msra.mxu1 %v1302_v23 }
 0x629   :  { %9713 = vmatprep.subr.mxu1 %v1301_v24 }
 0x62a   :  { %9714 = vmatpush3.msra.mxu1 %v1301_v24  ;;  %v8433_v24 = vld [vmem:[#allocation10 + $0x1] ss:$0 sm:$0xff] }
 0x62b   :  { %9715 = vmatprep.subr.mxu1 %v1300_v25 }
 0x62c   :  { %9716 = vmatpush3.msra.mxu1 %v1300_v25  ;;  %v2324_v25 = vld [vmem:[#allocation9 + $0x450] sm:$0xff] }
 0x62d   :  { %9717 = vmatprep.subr.mxu1 %v1299_v26 }
 0x62e   :  { %9718 = vmatpush3.msra.mxu1 %v1299_v26 }
 0x62f   :  { %9719 = vmatprep.subr.mxu1 %v1298_v27 }
 0x630   :  { %9720 = vmatpush3.msra.mxu1 %v1298_v27 }
 0x631   :  { %9721 = vmatprep.subr.mxu1 %v1297_v29 }
 0x632   :  { %9722 = vmatpush3.msra.mxu1 %v1297_v29  ;;  %v2323_v29 = vld [vmem:[#allocation9 + $0x3f0] sm:$0xff] }
 0x633   :  { %9723 = vmatprep.subr.mxu1 %v1296_v30 }
 0x634   :  { %9724 = vmatpush3.msra.mxu1 %v1296_v30 }
 0x635   :  { %9725 = vmatprep.subr.mxu1 %v1295_v31 }
 0x636   :  { %9726 = vmatpush3.msra.mxu1 %v1295_v31 }
 0x637   :  { %9727 = vmatprep.subr.mxu1 %v1294_v32 }
 0x638   :  { %9728 = vmatpush3.msra.mxu1 %v1294_v32 }
 0x639   :  { %9729 = vmatprep.subr.mxu1 %v1293_v33 }
 0x63a   :  { %9730 = vmatpush3.msra.mxu1 %v1293_v33  ;;  %v2322_v33 = vld [vmem:[#allocation9 + $0x390] sm:$0xff] }
 0x63b   :  { %9732 = vmatmul.mubr.f32.vlgmr.msra.gmra.mxu1 %v12308_v43  ;;  %9775 = vmatprep.subr.mxu1 %v1340_v35 }
 0x63c   :  { %9734 = vmatprep.mubr.f32.mxu1 %v12313_v56  ;;  %9776 = vmatpush3.msra.mxu1 %v1340_v35 }
 0x63d   :  { %9777 = vmatprep.subr.mxu1 %v1339_v36 }
 0x63e   :  { %9778 = vmatpush3.msra.mxu1 %v1339_v36 }
 0x63f   :  { %9735 = vmatmul.mubr.f32.gmra.mxu1 %v12315_v59  ;;  %9779 = vmatprep.subr.mxu1 %v1338_v37 }
 0x640   :  { %9780 = vmatpush3.msra.mxu1 %v1338_v37  ;;  %9807 = vmatprep.mubr.f32.mxu1 %v12305_v39  ;;  %v2321_v37 = vld [vmem:[#allocation9 + $0x330] sm:$0xff] }
 0x641   :  { %9781 = vmatprep.subr.mxu1 %v1337_v41 }
 0x642   :  { %9782 = vmatpush3.msra.mxu1 %v1337_v41  ;;  %v2320_v41 = vld [vmem:[#allocation9 + $0x2d0] sm:$0xff] }
 0x643   :  { %9783 = vmatprep.subr.mxu1 %v1336_v42 }
 0x644   :  { %9784 = vmatpush3.msra.mxu1 %v1336_v42  ;;  %v2319_v42 = vld [vmem:[#allocation9 + $0x270] sm:$0xff] }
 0x645   :  { %9785 = vmatprep.subr.mxu1 %v1335_v44 }
 0x646   :  { %9786 = vmatpush3.msra.mxu1 %v1335_v44  ;;  %v2318_v44 = vld [vmem:[#allocation9 + $0x210] sm:$0xff] }
 0x647   :  { %9787 = vmatprep.subr.mxu1 %v1334_v46 }
 0x648   :  { %9788 = vmatpush3.msra.mxu1 %v1334_v46  ;;  %v2317_v46 = vld [vmem:[#allocation9 + $0x1b0] sm:$0xff] }
 0x649   :  { %9789 = vmatprep.subr.mxu1 %v1333_v48 }
 0x64a   :  { %9790 = vmatpush3.msra.mxu1 %v1333_v48  ;;  %v2316_v48 = vld [vmem:[#allocation9 + $0x150] sm:$0xff] }
 0x64b   :  { %9791 = vmatprep.subr.mxu1 %v1332_v49 }
 0x64c   :  { %9792 = vmatpush3.msra.mxu1 %v1332_v49  ;;  %v2315_v49 = vld [vmem:[#allocation9 + $0xf0] sm:$0xff] }
 0x64d   :  { %9793 = vmatprep.subr.mxu1 %v1331_v50 }
 0x64e   :  { %9794 = vmatpush3.msra.mxu1 %v1331_v50  ;;  %v2314_v50 = vld [vmem:[#allocation9 + $0x90] sm:$0xff] }
 0x64f   :  { %9795 = vmatprep.subr.mxu1 %v1330_v51 }
 0x650   :  { %9796 = vmatpush3.msra.mxu1 %v1330_v51  ;;  %v2313_v51 = vld [vmem:[#allocation9 + $0x30] sm:$0xff] }
 0x651   :  { %9797 = vmatprep.subr.mxu1 %v1329_v52 }
 0x652   :  { %9798 = vmatpush3.msra.mxu1 %v1329_v52  ;;  %v12399_v52 = vld [vmem:[#allocation10 + $0x9] ss:$0 sm:$0xff] }
 0x653   :  { %9799 = vmatprep.subr.mxu1 %v1328_v53 }
 0x654   :  { %9800 = vmatpush3.msra.mxu1 %v1328_v53 }
 0x655   :  { %9801 = vmatprep.subr.mxu1 %v1327_v55 }
 0x656   :  { %9802 = vmatpush3.msra.mxu1 %v1327_v55 }
 0x657   :  { %9803 = vmatprep.subr.mxu1 %v1326_v57 }
 0x658   :  { %9804 = vmatpush3.msra.mxu1 %v1326_v57 }
 0x659   :  { %9805 = vmatprep.subr.mxu1 %v1325_v58 }
 0x65a   :  { %9806 = vmatpush3.msra.mxu1 %v1325_v58 }
 0x65b   :  { %9808 = vmatmul.mubr.f32.vlgmr.msra.gmra.mxu1 %v12308_v43  ;;  %9862 = vmatprep.subr.mxu1 %v649_v60 }
 0x65c   :  { %9810 = vmatprep.mubr.f32.mxu1 %v12313_v56  ;;  %9863 = vmatpush3.msra.mxu1 %v649_v60 }
 0x65d   :  { %9864 = vmatprep.subr.mxu1 %v648_v61 }
 0x65e   :  { %9865 = vmatpush3.msra.mxu1 %v648_v61 }
 0x65f   :  { %9811 = vmatmul.mubr.f32.gmra.mxu1 %v12315_v59  ;;  %9866 = vmatprep.subr.mxu1 %v647_v62 }
 0x660   :  { %9867 = vmatpush3.msra.mxu1 %v647_v62 }
 0x661   :  { %9868 = vmatprep.subr.mxu1 %v646_v63 }
 0x662   :  { %9869 = vmatpush3.msra.mxu1 %v646_v63 }
 0x663   :  { %9870 = vmatprep.subr.mxu1 %v645_v0 }
 0x664   :  { %9871 = vmatpush3.msra.mxu1 %v645_v0 }
 0x665   :  { %9872 = vmatprep.subr.mxu1 %v644_v1 }
 0x666   :  { %9873 = vmatpush3.msra.mxu1 %v644_v1 }
 0x667   :  { %9874 = vmatprep.subr.mxu1 %v643_v3 }
 0x668   :  { %9875 = vmatpush3.msra.mxu1 %v643_v3 }
 0x669   :  { %9876 = vmatprep.subr.mxu1 %v642_v4 }
 0x66a   :  { %9877 = vmatpush3.msra.mxu1 %v642_v4 }
 0x66b   :  { %9878 = vmatprep.subr.mxu1 %v641_v5 }
 0x66c   :  { %9879 = vmatpush3.msra.mxu1 %v641_v5 }
 0x66d   :  { %9880 = vmatprep.subr.mxu1 %v640_v6 }
 0x66e   :  { %9881 = vmatpush3.msra.mxu1 %v640_v6 }
 0x66f   :  { %9882 = vmatprep.subr.mxu1 %v639_v7 }
 0x670   :  { %9883 = vmatpush3.msra.mxu1 %v639_v7 }
 0x671   :  { %9884 = vmatprep.subr.mxu1 %v638_v8 }
 0x672   :  { %9885 = vmatpush3.msra.mxu1 %v638_v8 }
 0x673   :  { %9886 = vmatprep.subr.mxu1 %v637_v10 }
 0x674   :  { %9887 = vmatpush3.msra.mxu1 %v637_v10 }
 0x675   :  { %9888 = vmatprep.subr.mxu1 %v636_v11 }
 0x676   :  { %9889 = vmatpush3.msra.mxu1 %v636_v11 }
 0x677   :  { %9890 = vmatprep.subr.mxu1 %v635_v13 }
 0x678   :  { %9891 = vmatpush3.msra.mxu1 %v635_v13 }
 0x679   :  { %9892 = vmatprep.subr.mxu1 %v634_v14 }
 0x67a   :  { %9893 = vmatpush3.msra.mxu1 %v634_v14 }
 0x67b   :  { %9946 = vmatprep.subr.mxu1 %v649_v60 }
 0x6d3   :  { %v9684_v15 = vpop.f32.mrf.mxu1 }
 0x6d5   :  { %v1099_v16 = vpop.f32.mrf.mxu1 }
 0x6d6   :  { %9894 = vmatprep.mubr.f32.mxu1 %v1099_v16 }
 0x6d7   :  { %9895 = vmatmul.mubr.f32.vlgmr.msra.gmra.mxu1 %v9684_v15  ;;  %v12423_v15 = vld [vmem:[#allocation10 + $0x6] ss:$0 sm:$0xff] }
 0x6d8   :  { %9947 = vmatpush3.msra.mxu1 %v649_v60 }
 0x6d9   :  { %9948 = vmatprep.subr.mxu1 %v648_v61 }
 0x6da   :  { %9949 = vmatpush3.msra.mxu1 %v648_v61 }
 0x6db   :  { %9950 = vmatprep.subr.mxu1 %v647_v62  ;;  %v9698_v17 = vpop.f32.mrf.mxu1 }
 0x6dc   :  { %9951 = vmatpush3.msra.mxu1 %v647_v62  ;;  %v12407_v62 = vpop.f32.mrf.mxu0 }
 0x6dd   :  { %9952 = vmatprep.subr.mxu1 %v646_v63  ;;  %v1284_v18 = vpop.f32.mrf.mxu1 }
 0x6de   :  { %9953 = vmatpush3.msra.mxu1 %v646_v63  ;;  %9978 = vmatprep.mubr.f32.mxu1 %v1284_v18 }
 0x6df   :  { %9954 = vmatprep.subr.mxu1 %v645_v0 }
 0x6e0   :  { %9955 = vmatpush3.msra.mxu1 %v645_v0 }
 0x6e1   :  { %9956 = vmatprep.subr.mxu1 %v644_v1 }
 0x6e2   :  { %9957 = vmatpush3.msra.mxu1 %v644_v1 }
 0x6e3   :  { %9958 = vmatprep.subr.mxu1 %v643_v3 }
 0x6e4   :  { %9959 = vmatpush3.msra.mxu1 %v643_v3 }
 0x6e5   :  { %9960 = vmatprep.subr.mxu1 %v642_v4 }
 0x6e6   :  { %9961 = vmatpush3.msra.mxu1 %v642_v4 }
 0x6e7   :  { %9962 = vmatprep.subr.mxu1 %v641_v5 }
 0x6e8   :  { %9963 = vmatpush3.msra.mxu1 %v641_v5 }
 0x6e9   :  { %9964 = vmatprep.subr.mxu1 %v640_v6 }
 0x6ea   :  { %9965 = vmatpush3.msra.mxu1 %v640_v6 }
 0x6eb   :  { %9966 = vmatprep.subr.mxu1 %v639_v7 }
 0x6ec   :  { %9967 = vmatpush3.msra.mxu1 %v639_v7 }
 0x6ed   :  { %9968 = vmatprep.subr.mxu1 %v638_v8 }
 0x6ee   :  { %9969 = vmatpush3.msra.mxu1 %v638_v8 }
 0x6ef   :  { %9970 = vmatprep.subr.mxu1 %v637_v10 }
 0x6f0   :  { %9971 = vmatpush3.msra.mxu1 %v637_v10 }
 0x6f1   :  { %9972 = vmatprep.subr.mxu1 %v636_v11 }
 0x6f2   :  { %9973 = vmatpush3.msra.mxu1 %v636_v11 }
 0x6f3   :  { %9974 = vmatprep.subr.mxu1 %v635_v13 }
 0x6f4   :  { %9975 = vmatpush3.msra.mxu1 %v635_v13 }
 0x6f5   :  { %9976 = vmatprep.subr.mxu1 %v634_v14 }
 0x6f6   :  { %9977 = vmatpush3.msra.mxu1 %v634_v14 }
 0x6f7   :  { %9979 = vmatmul.mubr.f32.vlgmr.msra.gmra.mxu1 %v9698_v17  ;;  %10019 = vmatprep.subr.mxu1 %v2328_v54 }
 0x6f8   :  { %10020 = vmatpush3.msra.mxu1 %v2328_v54  ;;  %10051 = vmatprep.mubr.f32.mxu1 %v12305_v39 }
 0x6f9   :  { %10021 = vmatprep.subr.mxu1 %v2327_v2 }
 0x6fa   :  { %10022 = vmatpush3.msra.mxu1 %v2327_v2 }
 0x6fb   :  { %v9733_v23 = vpop.f32.mrf.mxu1  ;;  %10023 = vmatprep.subr.mxu1 %v2326_v20 }
 0x6fc   :  { %10024 = vmatpush3.msra.mxu1 %v2326_v20  ;;  %v1438_v30 = vadd.f32 %v9733_v23, %v8433_v24 }
 0x6fd   :  { %v1432_v26 = vpop.f32.mrf.mxu1  ;;  %10025 = vmatprep.subr.mxu1 %v2325_v21 }
 0x6fe   :  { %v1433_v27 = vadd.f32 %v8433_v24, %v1432_v26  ;;  %10026 = vmatpush3.msra.mxu1 %v2325_v21 }
 0x6ff   :  { %v9736_v31 = vpop.f32.mrf.mxu1  ;;  %10027 = vmatprep.subr.mxu1 %v2324_v25 }
 0x700   :  { %v12393_v32 = vadd.f32 %v9736_v31, %v8433_v24  ;;  %9817 = vmatprep.mubr.f32.mxu0 %v1433_v27  ;;  %10028 = vmatpush3.msra.mxu1 %v2324_v25 }
 0x701   :  { %v1442_v35 = vpop.f32.mrf.mxu1  ;;  %9818 = vmatmul.mubr.f32.vlgmr.msra.gmra.mxu0 %v1438_v30  ;;  %10029 = vmatprep.subr.mxu1 %v2323_v29 }
 0x702   :  { %v12395_v36 = vadd.f32 %v8433_v24, %v1442_v35  ;;  %10030 = vmatpush3.msra.mxu1 %v2323_v29  ;;  %v12429_v29 = vld [vmem:[#allocation12 + $0xf8] sm:$0xff] }
 0x703   :  { %10031 = vmatprep.subr.mxu1 %v2322_v33 }
 0x704   :  { %10032 = vmatpush3.msra.mxu1 %v2322_v33 }
 0x705   :  { %10033 = vmatprep.subr.mxu1 %v2321_v37 }
 0x706   :  { %10034 = vmatpush3.msra.mxu1 %v2321_v37 }
 0x707   :  { %10035 = vmatprep.subr.mxu1 %v2320_v41 }
 0x708   :  { %10036 = vmatpush3.msra.mxu1 %v2320_v41 }
 0x709   :  { %10037 = vmatprep.subr.mxu1 %v2319_v42 }
 0x70a   :  { %10038 = vmatpush3.msra.mxu1 %v2319_v42  ;;  %v12433_v42 = vld [vmem:[#allocation12 + $0xf0] sm:$0xff] }
 0x70b   :  { %10039 = vmatprep.subr.mxu1 %v2318_v44 }
 0x70c   :  { %10040 = vmatpush3.msra.mxu1 %v2318_v44  ;;  %v12437_v44 = vld [vmem:[#allocation12 + $0xe8] sm:$0xff] }
 0x70d   :  { %10041 = vmatprep.subr.mxu1 %v2317_v46 }
 0x70e   :  { %10042 = vmatpush3.msra.mxu1 %v2317_v46  ;;  %v12441_v46 = vld [vmem:[#allocation12 + $0xe0] sm:$0xff] }
 0x70f   :  { %10043 = vmatprep.subr.mxu1 %v2316_v48 }
 0x710   :  { %10044 = vmatpush3.msra.mxu1 %v2316_v48  ;;  %v12445_v48 = vld [vmem:[#allocation12 + $0xd8] sm:$0xff] }
 0x711   :  { %10045 = vmatprep.subr.mxu1 %v2315_v49 }
 0x712   :  { %10046 = vmatpush3.msra.mxu1 %v2315_v49  ;;  %v12449_v49 = vld [vmem:[#allocation12 + $0xd0] sm:$0xff] }
 0x713   :  { %10047 = vmatprep.subr.mxu1 %v2314_v50 }
 0x714   :  { %10048 = vmatpush3.msra.mxu1 %v2314_v50  ;;  %v12453_v50 = vld [vmem:[#allocation12 + $0xc8] sm:$0xff] }
 0x715   :  { %10049 = vmatprep.subr.mxu1 %v2313_v51 }
 0x716   :  { %10050 = vmatpush3.msra.mxu1 %v2313_v51  ;;  %v12457_v51 = vld [vmem:[#allocation12 + $0xc0] sm:$0xff] }
 0x717   :  { %10052 = vmatmul.mubr.f32.vlgmr.msra.gmra.mxu1 %v12308_v43 }
 0x718   :  { %10054 = vmatprep.mubr.f32.mxu1 %v12313_v56 }
 0x71b   :  { %v9809_v53 = vpop.f32.mrf.mxu1  ;;  %10055 = vmatmul.mubr.f32.gmra.mxu1 %v12315_v59 }
 0x71c   :  { %v1620_v55 = vadd.f32 %v9809_v53, %v12399_v52  ;;  %v12461_v53 = vld [vmem:[#allocation12 + $0xb8] sm:$0xff] }
 0x71d   :  { %v1614_v57 = vpop.f32.mrf.mxu1 }
 0x71e   :  { %v1615_v58 = vadd.f32 %v12399_v52, %v1614_v57  ;;  %9820 = vmatprep.subr.mxu0 %v1620_v55  ;;  %v12469_v57 = vld [vmem:[#allocation12 + $0xa8] sm:$0xff] }
 0x71f   :  { %v9812_v60 = vpop.f32.mrf.mxu1  ;;  %9821 = vmatpush3.msra.mxu0 %v1620_v55  ;;  %v12465_v55 = vld [vmem:[#allocation12 + $0xb0] sm:$0xff] }
 0x720   :  { %v12405_v61 = vadd.f32 %v9812_v60, %v12399_v52  ;;  %9822 = vmatprep.subr.mxu0 %v1615_v58  ;;  %v12477_v60 = vld [vmem:[#allocation12 + $0x98] sm:$0xff] }
 0x721   :  { %9823 = vmatpush3.msra.mxu0 %v1615_v58  ;;  %v12413_v8 = vpop.f32.mrf.mxu1  ;;  %v12473_v58 = vld [vmem:[#allocation12 + $0xa0] sm:$0xff] }
 0x722   :  { %9827 = vmatprep.subr.mxu0 %v12429_v29 }
 0x797   :  { %v12415_v10 = vpop.f32.mrf.mxu1 }
 0x799   :  { %v12417_v11 = vpop.f32.mrf.mxu1 }
 0x7b7   :  { %v12419_v13 = vpop.f32.mrf.mxu1 }
 0x7b9   :  { %v12421_v14 = vpop.f32.mrf.mxu1 }
 0x7c1   :  { %v9819_v63 = vpop.f32.mrf.mxu0 }
 0x7c2   :  { %v1709_v0 = vmul.f32 0.35355338, %v9819_v63  ;;  %v12481_v63 = vld [vmem:[#allocation12 + $0x90] sm:$0xff] }
 0x7c3   :  { %v1699_v1 = vpop.f32.mrf.mxu0 }
 0x7c4   :  { %v1708_v3 = vmul.f32 0.35355338, %v1699_v1  ;;  %v1711_v4 = vadd.f32 %v1709_v0, %v12342_v9  ;;  %v12485_v0 = vld [vmem:[#allocation12 + $0x88] sm:$0xff]  ;;  %v12489_v1 = vld [vmem:[#allocation12 + $0x80] sm:$0xff] }
 0x7c6   :  { %v1715_v5 = vsel %vm1004_vm6, %v1711_v4, -inf  ;;  %v1710_v6 = vadd.f32 %v1708_v3, %v12347_v12 }
 0x7c7   :  { %1716 = vmax.xlane.f32.xlu1 %v1715_v5  ;;  %v1534_v5 = vadd.f32 %v12367_v28, %v12407_v62 }
 0x7c8   :  { %v1712_v7 = vsel %vm1004_vm6, %v1710_v6, -inf }
 0x7c9   :  { %1713 = vmax.xlane.f32.xlu0 %v1712_v7 }
 0x7d7   :  { %v10053_v9 = vpop.f32.mrf.mxu1 }
 0x7d8   :  { %v2533_v16 = vadd.f32 %v10053_v9, %v12423_v15 }
 0x7d9   :  { %v2527_v12 = vpop.f32.mrf.mxu1 }
 0x7da   :  { %v2528_v17 = vadd.f32 %v12423_v15, %v2527_v12  ;;  %10095 = vmatprep.subr.mxu1 %v2533_v16 }
 0x7db   :  { %10096 = vmatpush3.xpose.msra.mxu1 %v2533_v16 }
 0x7dc   :  { %10097 = vmatprep.subr.mxu1 %v2528_v17 }
 0x7df   :  { %10098 = vmatpush3.xpose.msra.mxu1 %v2528_v17 }
 0x850   :  { %v1717_v18 = vpop.xlane.xlu1 %1716 }
 0x851   :  { %v1719_v54 = vsub.f32 %v1711_v4, %v1717_v18 }
 0x852   :  { %v1714_v2 = vpop.xlane.xlu0 %1713 }
 0x853   :  { %v1722_v20 = vmul.f32 1.442695, %v1719_v54  ;;  %v1718_v21 = vsub.f32 %v1710_v6, %v1714_v2  ;;  %v1625_v6 = vadd.f32 %v12399_v52, %v12413_v8 }
 0x855   :  { %11494 = vpow2.f32 %v1722_v20  ;;  %v1720_v23 = vmul.f32 1.442695, %v1718_v21 }
 0x857   :  { %11496 = vpow2.f32 %v1720_v23 }
 0x862   :  { %v11495_v24 = vpop.eup %11494 }
 0x863   :  { %v1727_v25 = vsel %vm1004_vm6, %v11495_v24, 0.0 }
 0x864   :  { %v11497_v26 = vpop.eup %11496  ;;  %1728 = vadd.xlane.f32.xlu1 %v1727_v25 }
 0x865   :  { %v1724_v27 = vsel %vm1004_vm6, %v11497_v26, 0.0 }
 0x866   :  { %1725 = vadd.xlane.f32.xlu0 %v1724_v27 }
 0x8ed   :  { %v1729_v30 = vpop.xlane.xlu1 %1728 }
 0x8ee   :  { %11498 = vrcp.f32 %v1729_v30 }
 0x8ef   :  { %v1726_v31 = vpop.xlane.xlu0 %1725 }
 0x8f0   :  { %11500 = vrcp.f32 %v1726_v31 }
 0x8fb   :  { %v11499_v33 = vpop.eup %11498 }
 0x8fc   :  { %v1733_v41 = vmul.f32 %v11499_v33, %v11495_v24 }
 0x8fd   :  { %v11501_v35 = vpop.eup %11500 }
 0x8fe   :  { %v1732_v37 = vmul.f32 %v11501_v35, %v11497_v26  ;;  %v2311_v35 = vld [vmem:[#allocation9 + $0x550] sm:$0xff] }
 0x900   :  { %9824 = vmatprep.mubr.msk.f32.mxu0 %vm1004_vm6, %v1732_v37  ;;  %v2310_v37 = vld [vmem:[#allocation9 + $0x4f0] sm:$0xff] }
 0x901   :  { %9825 = vmatmul.mubr.msk.f32.vlgmr.msra.gmra.mxu0 %vm1004_vm6, %v1733_v41  ;;  %v2309_v41 = vld [vmem:[#allocation9 + $0x490] sm:$0xff] }
 0x902   :  { %9828 = vmatpush3.msra.mxu0 %v12429_v29 }
 0x903   :  { %9829 = vmatprep.subr.mxu0 %v12433_v42 }
 0x904   :  { %9830 = vmatpush3.msra.mxu0 %v12433_v42 }
 0x905   :  { %9831 = vmatprep.subr.mxu0 %v12437_v44 }
 0x906   :  { %9832 = vmatpush3.msra.mxu0 %v12437_v44 }
 0x907   :  { %9833 = vmatprep.subr.mxu0 %v12441_v46 }
 0x908   :  { %9834 = vmatpush3.msra.mxu0 %v12441_v46 }
 0x909   :  { %9835 = vmatprep.subr.mxu0 %v12445_v48 }
 0x90a   :  { %9836 = vmatpush3.msra.mxu0 %v12445_v48 }
 0x90b   :  { %9837 = vmatprep.subr.mxu0 %v12449_v49 }
 0x90c   :  { %9838 = vmatpush3.msra.mxu0 %v12449_v49 }
 0x90d   :  { %9839 = vmatprep.subr.mxu0 %v12453_v50 }
 0x90e   :  { %9840 = vmatpush3.msra.mxu0 %v12453_v50 }
 0x90f   :  { %9841 = vmatprep.subr.mxu0 %v12457_v51 }
 0x910   :  { %9842 = vmatpush3.msra.mxu0 %v12457_v51 }
 0x911   :  { %9843 = vmatprep.subr.mxu0 %v12461_v53 }
 0x912   :  { %9844 = vmatpush3.msra.mxu0 %v12461_v53 }
 0x913   :  { %9845 = vmatprep.subr.mxu0 %v12465_v55 }
 0x914   :  { %9846 = vmatpush3.msra.mxu0 %v12465_v55 }
 0x915   :  { %9847 = vmatprep.subr.mxu0 %v12469_v57 }
 0x916   :  { %9848 = vmatpush3.msra.mxu0 %v12469_v57 }
 0x917   :  { %9849 = vmatprep.subr.mxu0 %v12473_v58 }
 0x918   :  { %9850 = vmatpush3.msra.mxu0 %v12473_v58 }
 0x919   :  { %9851 = vmatprep.subr.mxu0 %v12477_v60 }
 0x91a   :  { %9852 = vmatpush3.msra.mxu0 %v12477_v60 }
 0x91b   :  { %9853 = vmatprep.subr.mxu0 %v12481_v63 }
 0x91c   :  { %9854 = vmatpush3.msra.mxu0 %v12481_v63 }
 0x91d   :  { %9855 = vmatprep.subr.mxu0 %v12485_v0 }
 0x91e   :  { %9856 = vmatpush3.msra.mxu0 %v12485_v0 }
 0x91f   :  { %9857 = vmatprep.subr.mxu0 %v12489_v1 }
 0x920   :  { %9858 = vmatpush3.msra.mxu0 %v12489_v1 }
 0x921   :  { %9897 = vmatprep.subr.mxu0 %v12372_v34 }
 0x9c1   :  { %v9826_v3 = vpop.f32.mrf.mxu0 }
 0x9c3   :  { %v1806_v4 = vpop.f32.mrf.mxu0 }
 0x9c4   :  { %9859 = vmatprep.mubr.f32.mxu0 %v1806_v4  ;;  %v2340_v4 = vld [vmem:[#allocation9 + $0x470] sm:$0xff] }
 0x9c5   :  { %9860 = vmatmul.mubr.f32.vlgmr.msra.gmra.mxu0 %v9826_v3  ;;  %v2341_v3 = vld [vmem:[#allocation9 + $0x4d0] sm:$0xff] }
 0x9c6   :  { %9898 = vmatpush3.xpose.msra.mxu0 %v12372_v34  ;;  %9901 = vmatprep.mubr.f32.mxu0 %v12395_v36 }
 0x9c7   :  { %9899 = vmatprep.subr.mxu0 %v1534_v5 }
 0x9ca   :  { %9900 = vmatpush3.xpose.msra.mxu0 %v1534_v5  ;;  %v2339_v5 = vld [vmem:[#allocation9 + $0x410] sm:$0xff] }
 0x9cb   :  { %9904 = vmatprep.subr.mxu0 %v12405_v61 }
 0x9cd   :  { %9902 = vmatmul.mubr.f32.vlgmr.msra.gmra.mxu0 %v12393_v32 }
 0x9ce   :  { %9905 = vmatpush3.msra.mxu0 %v12405_v61 }
 0x9cf   :  { %9906 = vmatprep.subr.mxu0 %v1625_v6 }
 0x9d0   :  { %9907 = vmatpush3.msra.mxu0 %v1625_v6  ;;  %v2338_v6 = vld [vmem:[#allocation9 + $0x3b0] sm:$0xff] }
 0x9d1   :  { %9911 = vmatprep.subr.mxu0 %v12429_v29 }
 0xa85   :  { %v12506_v28 = vpop.f32.mrf.mxu0 }
 0xa87   :  { %v12508_v34 = vpop.f32.mrf.mxu0 }
 0xa8d   :  { %v9903_v36 = vpop.f32.mrf.mxu0 }
 0xa8e   :  { %v2041_v62 = vmul.f32 0.35355338, %v9903_v36  ;;  %v2337_v36 = vld [vmem:[#allocation9 + $0x350] sm:$0xff] }
 0xa8f   :  { %v2031_v7 = vpop.f32.mrf.mxu0 }
 0xa90   :  { %v2040_v9 = vmul.f32 0.35355338, %v2031_v7  ;;  %v2043_v16 = vadd.f32 %v12356_v19, %v2041_v62  ;;  %v2336_v62 = vld [vmem:[#allocation9 + $0x2f0] sm:$0xff] }
 0xa91   :  { %v2335_v7 = vld [vmem:[#allocation9 + $0x290] sm:$0xff] }
 0xa92   :  { %v2047_v52 = vsel %vm1004_vm6, %v2043_v16, -inf  ;;  %v2042_v32 = vadd.f32 %v12361_v22, %v2040_v9  ;;  %v2334_v9 = vld [vmem:[#allocation9 + $0x230] sm:$0xff] }
 0xa93   :  { %2048 = vmax.xlane.f32.xlu1 %v2047_v52  ;;  %v2332_v52 = vld [vmem:[#allocation9 + $0x170] sm:$0xff] }
 0xa94   :  { %v2044_v61 = vsel %vm1004_vm6, %v2042_v32, -inf }
 0xa95   :  { %2045 = vmax.xlane.f32.xlu0 %v2044_v61  ;;  %v10056_v61 = vpop.f32.mrf.mxu1 }
 0xb1c   :  { %v2049_v8 = vpop.xlane.xlu1 %2048 }
 0xb1d   :  { %v2051_v12 = vsub.f32 %v2043_v16, %v2049_v8  ;;  %v2333_v16 = vld [vmem:[#allocation9 + $0x1d0] sm:$0xff] }
 0xb1e   :  { %v2046_v17 = vpop.xlane.xlu0 %2045  ;;  %v2330_v8 = vld [vmem:[#allocation9 + $0xb0] sm:$0xff] }
 0xb1f   :  { %v2054_v18 = vmul.f32 1.442695, %v2051_v12  ;;  %v2050_v54 = vsub.f32 %v2042_v32, %v2046_v17  ;;  %v2331_v32 = vld [vmem:[#allocation9 + $0x110] sm:$0xff]  ;;  %v2537_v17 = vpop.f32.mrf.mxu1 }
 0xb20   :  { %v2329_v12 = vld [vmem:[#allocation9 + $0x50] sm:$0xff] }
 0xb21   :  { %11502 = vpow2.f32 %v2054_v18  ;;  %v2052_v2 = vmul.f32 1.442695, %v2050_v54  ;;  %v2543_v18 = vadd.f32 %v10056_v61, %v12423_v15  ;;  %v2538_v54 = vadd.f32 %v12423_v15, %v2537_v17 }
 0xb23   :  { %11504 = vpow2.f32 %v2052_v2 }
 0xb2e   :  { %v11503_v20 = vpop.eup %11502 }
 0xb2f   :  { %v2059_v21 = vsel %vm1004_vm6, %v11503_v20, 0.0 }
 0xb30   :  { %v11505_v19 = vpop.eup %11504  ;;  %2060 = vadd.xlane.f32.xlu1 %v2059_v21 }
 0xb31   :  { %v2056_v23 = vsel %vm1004_vm6, %v11505_v19, 0.0 }
 0xb32   :  { %2057 = vadd.xlane.f32.xlu0 %v2056_v23 }
 0xbb9   :  { %v2061_v22 = vpop.xlane.xlu1 %2060 }
 0xbba   :  { %11506 = vrcp.f32 %v2061_v22 }
 0xbbb   :  { %v2058_v24 = vpop.xlane.xlu0 %2057 }
 0xbbc   :  { %11508 = vrcp.f32 %v2058_v24 }
 0xbc7   :  { %v11507_v25 = vpop.eup %11506 }
 0xbc8   :  { %v2065_v30 = vmul.f32 %v11507_v25, %v11503_v20 }
 0xbc9   :  { %v11509_v26 = vpop.eup %11508 }
 0xbca   :  { %v2064_v27 = vmul.f32 %v11509_v26, %v11505_v19  ;;  %v8440_v19 = vld [vmem:[#allocation10 + $0x2] ss:$0 sm:$0xff] }
 0xbcc   :  { %9908 = vmatprep.mubr.msk.f32.mxu0 %vm1004_vm6, %v2064_v27 }
 0xbcd   :  { %9909 = vmatmul.mubr.msk.f32.vlgmr.msra.gmra.mxu0 %vm1004_vm6, %v2065_v30  ;;  %v8442_v30 = vld [vmem:[#allocation10 + $0xa] ss:$0 sm:$0xff] }
 0xbce   :  { %9912 = vmatpush3.msra.mxu0 %v12429_v29  ;;  %v2312_v29 = vld [vmem:[#allocation9 + $0x5b0] sm:$0xff] }
 0xbcf   :  { %9913 = vmatprep.subr.mxu0 %v12433_v42 }
 0xbd0   :  { %9914 = vmatpush3.msra.mxu0 %v12433_v42  ;;  %v2308_v42 = vld [vmem:[#allocation9 + $0x430] sm:$0xff] }
 0xbd1   :  { %9915 = vmatprep.subr.mxu0 %v12437_v44 }
 0xbd2   :  { %9916 = vmatpush3.msra.mxu0 %v12437_v44  ;;  %v2307_v44 = vld [vmem:[#allocation9 + $0x3d0] sm:$0xff] }
 0xbd3   :  { %9917 = vmatprep.subr.mxu0 %v12441_v46 }
 0xbd4   :  { %9918 = vmatpush3.msra.mxu0 %v12441_v46  ;;  %v2306_v46 = vld [vmem:[#allocation9 + $0x370] sm:$0xff] }
 0xbd5   :  { %9919 = vmatprep.subr.mxu0 %v12445_v48 }
 0xbd6   :  { %9920 = vmatpush3.msra.mxu0 %v12445_v48  ;;  %v2305_v48 = vld [vmem:[#allocation9 + $0x310] sm:$0xff] }
 0xbd7   :  { %9921 = vmatprep.subr.mxu0 %v12449_v49 }
 0xbd8   :  { %9922 = vmatpush3.msra.mxu0 %v12449_v49  ;;  %v2304_v49 = vld [vmem:[#allocation9 + $0x2b0] sm:$0xff] }
 0xbd9   :  { %9923 = vmatprep.subr.mxu0 %v12453_v50 }
 0xbda   :  { %9924 = vmatpush3.msra.mxu0 %v12453_v50  ;;  %v2303_v50 = vld [vmem:[#allocation9 + $0x250] sm:$0xff] }
 0xbdb   :  { %9925 = vmatprep.subr.mxu0 %v12457_v51 }
 0xbdc   :  { %9926 = vmatpush3.msra.mxu0 %v12457_v51  ;;  %v2302_v51 = vld [vmem:[#allocation9 + $0x1f0] sm:$0xff] }
 0xbdd   :  { %9927 = vmatprep.subr.mxu0 %v12461_v53 }
 0xbde   :  { %9928 = vmatpush3.msra.mxu0 %v12461_v53  ;;  %v2301_v53 = vld [vmem:[#allocation9 + $0x190] sm:$0xff] }
 0xbdf   :  { %9929 = vmatprep.subr.mxu0 %v12465_v55 }
 0xbe0   :  { %9930 = vmatpush3.msra.mxu0 %v12465_v55  ;;  %v2300_v55 = vld [vmem:[#allocation9 + $0x130] sm:$0xff] }
 0xbe1   :  { %9931 = vmatprep.subr.mxu0 %v12469_v57 }
 0xbe2   :  { %9932 = vmatpush3.msra.mxu0 %v12469_v57  ;;  %v2299_v57 = vld [vmem:[#allocation9 + $0xd0] sm:$0xff] }
 0xbe3   :  { %9933 = vmatprep.subr.mxu0 %v12473_v58 }
 0xbe4   :  { %9934 = vmatpush3.msra.mxu0 %v12473_v58  ;;  %v2298_v58 = vld [vmem:[#allocation9 + $0x70] sm:$0xff] }
 0xbe5   :  { %9935 = vmatprep.subr.mxu0 %v12477_v60 }
 0xbe6   :  { %9936 = vmatpush3.msra.mxu0 %v12477_v60  ;;  %v2297_v60 = vld [vmem:[#allocation9 + $0x10] sm:$0xff] }
 0xbe7   :  { %9937 = vmatprep.subr.mxu0 %v12481_v63 }
 0xbe8   :  { %9938 = vmatpush3.msra.mxu0 %v12481_v63  ;;  %v2344_v63 = vld [vmem:[#allocation9 + $0x5f0] sm:$0xff] }
 0xbe9   :  { %9939 = vmatprep.subr.mxu0 %v12485_v0 }
 0xbea   :  { %9940 = vmatpush3.msra.mxu0 %v12485_v0  ;;  %v2343_v0 = vld [vmem:[#allocation9 + $0x590] sm:$0xff] }
 0xbeb   :  { %9941 = vmatprep.subr.mxu0 %v12489_v1 }
 0xbec   :  { %9942 = vmatpush3.msra.mxu0 %v12489_v1  ;;  %v2342_v1 = vld [vmem:[#allocation9 + $0x530] sm:$0xff] }
 0xbed   :  { %9981 = vmatprep.subr.mxu0 %v2312_v29 }
 0xc8d   :  { %v9910_v31 = vpop.f32.mrf.mxu0 }
 0xc8f   :  { %v2138_v33 = vpop.f32.mrf.mxu0 }
 0xc90   :  { %9943 = vmatprep.mubr.f32.mxu0 %v2138_v33 }
 0xc91   :  { %9944 = vmatmul.mubr.f32.vlgmr.msra.gmra.mxu0 %v9910_v31 }
 0xc92   :  { %9982 = vmatpush3.msra.mxu0 %v2312_v29  ;;  %10013 = vmatprep.mubr.f32.mxu0 %v12305_v39 }
 0xc93   :  { %9983 = vmatprep.subr.mxu0 %v2311_v35 }
 0xc94   :  { %9984 = vmatpush3.msra.mxu0 %v2311_v35 }
 0xc95   :  { %9985 = vmatprep.subr.mxu0 %v2310_v37 }
 0xc96   :  { %9986 = vmatpush3.msra.mxu0 %v2310_v37 }
 0xc97   :  { %9987 = vmatprep.subr.mxu0 %v2309_v41 }
 0xc98   :  { %9988 = vmatpush3.msra.mxu0 %v2309_v41 }
 0xc99   :  { %9989 = vmatprep.subr.mxu0 %v2308_v42 }
 0xc9a   :  { %9990 = vmatpush3.msra.mxu0 %v2308_v42 }
 0xc9b   :  { %9991 = vmatprep.subr.mxu0 %v2307_v44 }
 0xc9c   :  { %9992 = vmatpush3.msra.mxu0 %v2307_v44 }
 0xc9d   :  { %9993 = vmatprep.subr.mxu0 %v2306_v46 }
 0xc9e   :  { %9994 = vmatpush3.msra.mxu0 %v2306_v46 }
 0xc9f   :  { %9995 = vmatprep.subr.mxu0 %v2305_v48 }
 0xca0   :  { %9996 = vmatpush3.msra.mxu0 %v2305_v48 }
 0xca1   :  { %9997 = vmatprep.subr.mxu0 %v2304_v49 }
 0xca2   :  { %9998 = vmatpush3.msra.mxu0 %v2304_v49 }
 0xca3   :  { %9999 = vmatprep.subr.mxu0 %v2303_v50 }
 0xca4   :  { %10000 = vmatpush3.msra.mxu0 %v2303_v50 }
 0xca5   :  { %10001 = vmatprep.subr.mxu0 %v2302_v51 }
 0xca6   :  { %10002 = vmatpush3.msra.mxu0 %v2302_v51 }
 0xca7   :  { %10003 = vmatprep.subr.mxu0 %v2301_v53 }
 0xca8   :  { %10004 = vmatpush3.msra.mxu0 %v2301_v53 }
 0xca9   :  { %10005 = vmatprep.subr.mxu0 %v2300_v55 }
 0xcaa   :  { %10006 = vmatpush3.msra.mxu0 %v2300_v55 }
 0xcab   :  { %10007 = vmatprep.subr.mxu0 %v2299_v57 }
 0xcac   :  { %10008 = vmatpush3.msra.mxu0 %v2299_v57 }
 0xcad   :  { %10009 = vmatprep.subr.mxu0 %v2298_v58 }
 0xcae   :  { %10010 = vmatpush3.msra.mxu0 %v2298_v58  ;;  %v12566_v58 = vld [vmem:[%s13482_s29 + $0x18] sm:$0xff] }
 0xcaf   :  { %10011 = vmatprep.subr.mxu0 %v2297_v60 }
 0xcb0   :  { %10012 = vmatpush3.msra.mxu0 %v2297_v60 }
 0xcb1   :  { %10014 = vmatmul.mubr.f32.vlgmr.msra.gmra.mxu0 %v12308_v43  ;;  %10057 = vmatprep.subr.mxu0 %v2344_v63 }
 0xcb2   :  { %10016 = vmatprep.mubr.f32.mxu0 %v12313_v56  ;;  %10058 = vmatpush3.msra.mxu0 %v2344_v63 }
 0xcb3   :  { %10059 = vmatprep.subr.mxu0 %v2343_v0 }
 0xcb4   :  { %10060 = vmatpush3.msra.mxu0 %v2343_v0  ;;  %v12573_v0 = vld [vmem:[%s13482_s29 + $0x10] sm:$0xff] }
 0xcb5   :  { %10017 = vmatmul.mubr.f32.gmra.mxu0 %v12315_v59  ;;  %10061 = vmatprep.subr.mxu0 %v2342_v1 }
 0xcb6   :  { %10062 = vmatpush3.msra.mxu0 %v2342_v1  ;;  %10089 = vmatprep.mubr.f32.mxu0 %v12305_v39 }
 0xcb7   :  { %10063 = vmatprep.subr.mxu0 %v2341_v3 }
 0xcb8   :  { %10064 = vmatpush3.msra.mxu0 %v2341_v3  ;;  %v12579_v3 = vld [vmem:[%s13482_s29 + $0x8] sm:$0xff] }
 0xcb9   :  { %10065 = vmatprep.subr.mxu0 %v2340_v4 }
 0xcba   :  { %10066 = vmatpush3.msra.mxu0 %v2340_v4 }
 0xcbb   :  { %10067 = vmatprep.subr.mxu0 %v2339_v5 }
 0xcbc   :  { %10068 = vmatpush3.msra.mxu0 %v2339_v5 }
 0xcbd   :  { %10069 = vmatprep.subr.mxu0 %v2338_v6 }
 0xcbe   :  { %10070 = vmatpush3.msra.mxu0 %v2338_v6  ;;  %v12586_v6 = vld [vmem:[%s13482_s29] sm:$0xff] }
 0xcbf   :  { %10071 = vmatprep.subr.mxu0 %v2337_v36 }
 0xcc0   :  { %10072 = vmatpush3.msra.mxu0 %v2337_v36 }
 0xcc1   :  { %10073 = vmatprep.subr.mxu0 %v2336_v62 }
 0xcc2   :  { %10074 = vmatpush3.msra.mxu0 %v2336_v62 }
 0xcc3   :  { %10075 = vmatprep.subr.mxu0 %v2335_v7 }
 0xcc4   :  { %10076 = vmatpush3.msra.mxu0 %v2335_v7 }
 0xcc5   :  { %10077 = vmatprep.subr.mxu0 %v2334_v9 }
 0xcc6   :  { %10078 = vmatpush3.msra.mxu0 %v2334_v9 }
 0xcc7   :  { %10079 = vmatprep.subr.mxu0 %v2333_v16 }
 0xcc8   :  { %10080 = vmatpush3.msra.mxu0 %v2333_v16 }
 0xcc9   :  { %10081 = vmatprep.subr.mxu0 %v2332_v52 }
 0xcca   :  { %10082 = vmatpush3.msra.mxu0 %v2332_v52 }
 0xccb   :  { %10083 = vmatprep.subr.mxu0 %v2331_v32 }
 0xccc   :  { %10084 = vmatpush3.msra.mxu0 %v2331_v32 }
 0xccd   :  { %10085 = vmatprep.subr.mxu0 %v2330_v8 }
 0xcce   :  { %10086 = vmatpush3.msra.mxu0 %v2330_v8 }
 0xccf   :  { %10087 = vmatprep.subr.mxu0 %v2329_v12 }
 0xcd0   :  { %10088 = vmatpush3.msra.mxu0 %v2329_v12 }
 0xcd1   :  { %10090 = vmatmul.mubr.f32.vlgmr.msra.gmra.mxu0 %v12308_v43  ;;  %10144 = vmatprep.subr.mxu0 %v2543_v18 }
 0xcd2   :  { %10092 = vmatprep.mubr.f32.mxu0 %v12313_v56  ;;  %10145 = vmatpush3.xpose.msra.mxu0 %v2543_v18 }
 0xcd3   :  { %10146 = vmatprep.subr.mxu0 %v2538_v54 }
 0xcd5   :  { %10093 = vmatmul.mubr.f32.gmra.mxu0 %v12315_v59 }
 0xcd6   :  { %10147 = vmatpush3.xpose.msra.mxu0 %v2538_v54 }
 0xd51   :  { %v12559_v2 = vpop.f32.mrf.mxu0 }
 0xd53   :  { %v12561_v20 = vpop.f32.mrf.mxu0 }
 0xd71   :  { %v10015_v21 = vpop.f32.mrf.mxu0 }
 0xd72   :  { %v2442_v24 = vadd.f32 %v10015_v21, %v8440_v19 }
 0xd73   :  { %v2436_v23 = vpop.f32.mrf.mxu0 }
 0xd74   :  { %v2437_v22 = vadd.f32 %v8440_v19, %v2436_v23 }
 0xd75   :  { %v10018_v15 = vpop.f32.mrf.mxu0 }
 0xd76   :  { %10099 = vmatprep.mubr.f32.mxu1 %v2437_v22  ;;  %v2452_v27 = vadd.f32 %v10018_v15, %v8440_v19 }
 0xd77   :  { %v2446_v25 = vpop.f32.mrf.mxu0  ;;  %10100 = vmatmul.mubr.f32.vlgmr.msra.gmra.mxu1 %v2442_v24 }
 0xd78   :  { %v2447_v26 = vadd.f32 %v8440_v19, %v2446_v25 }
 0xd7a   :  { %10148 = vmatprep.mubr.f32.mxu0 %v2447_v26 }
 0xd7b   :  { %10149 = vmatmul.mubr.f32.vlgmr.msra.gmra.mxu0 %v2452_v27 }
 0xd91   :  { %v10091_v29 = vpop.f32.mrf.mxu0 }
 0xd92   :  { %v2624_v31 = vadd.f32 %v10091_v29, %v8442_v30  ;;  %v2363_v29 = vld [vmem:[#allocation12 + $0x178] sm:$0xff] }
 0xd93   :  { %v2618_v33 = vpop.f32.mrf.mxu0 }
 0xd94   :  { %v2619_v35 = vadd.f32 %v8442_v30, %v2618_v33  ;;  %10102 = vmatprep.subr.mxu1 %v2624_v31 }
 0xd95   :  { %v10094_v37 = vpop.f32.mrf.mxu0  ;;  %10103 = vmatpush3.msra.mxu1 %v2624_v31 }
 0xd96   :  { %v2634_v41 = vadd.f32 %v10094_v37, %v8442_v30  ;;  %10104 = vmatprep.subr.mxu1 %v2619_v35 }
 0xd97   :  { %v2628_v42 = vpop.f32.mrf.mxu0  ;;  %10105 = vmatpush3.msra.mxu1 %v2619_v35 }
 0xd98   :  { %v2629_v44 = vadd.f32 %v8442_v30, %v2628_v42  ;;  %10151 = vmatprep.subr.mxu0 %v2634_v41  ;;  %10109 = vmatprep.subr.mxu1 %v2363_v29 }
 0xd99   :  { %10152 = vmatpush3.msra.mxu0 %v2634_v41 }
 0xd9a   :  { %10153 = vmatprep.subr.mxu0 %v2629_v44 }
 0xd9b   :  { %10154 = vmatpush3.msra.mxu0 %v2629_v44 }
 0xd9c   :  { %10158 = vmatprep.subr.mxu0 %v2363_v29 }
 0xe37   :  { %v10101_v46 = vpop.f32.mrf.mxu1 }
 0xe38   :  { %v2713_v50 = vmul.f32 0.35355338, %v10101_v46 }
 0xe39   :  { %v2703_v48 = vpop.f32.mrf.mxu1 }
 0xe3a   :  { %v2712_v55 = vmul.f32 0.35355338, %v2703_v48  ;;  %v2715_v4 = vadd.f32 %v12579_v3, %v2713_v50 }
 0xe3b   :  { %v10150_v49 = vpop.f32.mrf.mxu0 }
 0xe3c   :  { %v2972_v51 = vmul.f32 0.35355338, %v10150_v49  ;;  %v2714_v36 = vadd.f32 %v12586_v6, %v2712_v55  ;;  %v2719_v62 = vsel %vm1004_vm6, %v2715_v4, -inf  ;;  %v2362_v49 = vld [vmem:[#allocation12 + $0x170] sm:$0xff] }
 0xe3d   :  { %v2962_v53 = vpop.f32.mrf.mxu0 }
 0xe3e   :  { %v2971_v57 = vmul.f32 0.35355338, %v2962_v53  ;;  %v2974_v60 = vadd.f32 %v12566_v58, %v2972_v51  ;;  %v2716_v7 = vsel %vm1004_vm6, %v2714_v36, -inf  ;;  %v2361_v53 = vld [vmem:[#allocation12 + $0x168] sm:$0xff] }
 0xe40   :  { %v2978_v63 = vsel %vm1004_vm6, %v2974_v60, -inf  ;;  %v2973_v1 = vadd.f32 %v12573_v0, %v2971_v57  ;;  %v2360_v57 = vld [vmem:[#allocation12 + $0x160] sm:$0xff] }
 0xe41   :  { %2979 = vmax.xlane.f32.xlu1 %v2978_v63  ;;  %v2358_v63 = vld [vmem:[#allocation12 + $0x150] sm:$0xff] }
 0xe42   :  { %v2975_v5 = vsel %vm1004_vm6, %v2973_v1, -inf }
 0xe43   :  { %2976 = vmax.xlane.f32.xlu0 %v2975_v5  ;;  %v2355_v5 = vld [vmem:[#allocation12 + $0x138] sm:$0xff] }
 0xe45   :  { %2720 = vmax.xlane.f32.xlu1 %v2719_v62  ;;  %v2353_v62 = vld [vmem:[#allocation12 + $0x128] sm:$0xff] }
 0xe47   :  { %2717 = vmax.xlane.f32.xlu0 %v2716_v7  ;;  %v2352_v7 = vld [vmem:[#allocation12 + $0x120] sm:$0xff] }
 0xeca   :  { %v2980_v9 = vpop.xlane.xlu1 %2979 }
 0xecb   :  { %v2982_v16 = vsub.f32 %v2974_v60, %v2980_v9  ;;  %v2359_v60 = vld [vmem:[#allocation12 + $0x158] sm:$0xff] }
 0xecc   :  { %v2977_v52 = vpop.xlane.xlu0 %2976  ;;  %v2351_v9 = vld [vmem:[#allocation12 + $0x118] sm:$0xff] }
 0xecd   :  { %v2985_v32 = vmul.f32 1.442695, %v2982_v16  ;;  %v2981_v61 = vsub.f32 %v2973_v1, %v2977_v52  ;;  %v2357_v1 = vld [vmem:[#allocation12 + $0x148] sm:$0xff]  ;;  %v2350_v16 = vld [vmem:[#allocation12 + $0x110] sm:$0xff] }
 0xece   :  { %v2721_v8 = vpop.xlane.xlu1 %2720  ;;  %v2349_v52 = vld [vmem:[#allocation12 + $0x108] sm:$0xff] }
 0xecf   :  { %11510 = vpow2.f32 %v2985_v32  ;;  %v2983_v12 = vmul.f32 1.442695, %v2981_v61  ;;  %v2723_v17 = vsub.f32 %v2715_v4, %v2721_v8  ;;  %v2356_v4 = vld [vmem:[#allocation12 + $0x140] sm:$0xff] }
 0xed0   :  { %v2718_v18 = vpop.xlane.xlu0 %2717  ;;  %v2348_v32 = vld [vmem:[#allocation12 + $0x100] sm:$0xff] }
 0xed1   :  { %11512 = vpow2.f32 %v2983_v12  ;;  %v2726_v54 = vmul.f32 1.442695, %v2723_v17  ;;  %v2722_v21 = vsub.f32 %v2714_v36, %v2718_v18  ;;  %v2354_v36 = vld [vmem:[#allocation12 + $0x130] sm:$0xff]  ;;  %v3186_v61 = vld [vmem:[#allocation9 + $0x5d8] sm:$0xff] }
 0xed2   :  { %v3170_v8 = vld [vmem:[#allocation9 + $0x5b8] sm:$0xff] }
 0xed3   :  { %11514 = vpow2.f32 %v2726_v54  ;;  %v2724_v19 = vmul.f32 1.442695, %v2722_v21  ;;  %v3185_v18 = vld [vmem:[#allocation9 + $0x578] sm:$0xff] }
 0xed4   :  { %v3184_v21 = vld [vmem:[#allocation9 + $0x518] sm:$0xff] }
 0xed5   :  { %11516 = vpow2.f32 %v2724_v19 }
 0xedc   :  { %v11511_v23 = vpop.eup %11510 }
 0xedd   :  { %v2990_v22 = vsel %vm1004_vm6, %v11511_v23, 0.0 }
 0xede   :  { %v11513_v24 = vpop.eup %11512  ;;  %2991 = vadd.xlane.f32.xlu1 %v2990_v22  ;;  %v3183_v22 = vld [vmem:[#allocation9 + $0x4b8] sm:$0xff] }
 0xedf   :  { %v2987_v15 = vsel %vm1004_vm6, %v11513_v24, 0.0 }
 0xee0   :  { %v11515_v25 = vpop.eup %11514  ;;  %2988 = vadd.xlane.f32.xlu0 %v2987_v15  ;;  %v3182_v15 = vld [vmem:[#allocation9 + $0x458] sm:$0xff] }
 0xee1   :  { %v2731_v26 = vsel %vm1004_vm6, %v11515_v25, 0.0 }
 0xee2   :  { %v11517_v27 = vpop.eup %11516  ;;  %2732 = vadd.xlane.f32.xlu1 %v2731_v26  ;;  %v3181_v26 = vld [vmem:[#allocation9 + $0x3f8] sm:$0xff] }
 0xee3   :  { %v2728_v30 = vsel %vm1004_vm6, %v11517_v27, 0.0 }
 0xee4   :  { %2729 = vadd.xlane.f32.xlu0 %v2728_v30  ;;  %v3180_v30 = vld [vmem:[#allocation9 + $0x398] sm:$0xff] }
 0xf67   :  { %v2992_v31 = vpop.xlane.xlu1 %2991 }
 0xf68   :  { %11518 = vrcp.f32 %v2992_v31  ;;  %v3179_v31 = vld [vmem:[#allocation9 + $0x338] sm:$0xff] }
 0xf69   :  { %v2989_v33 = vpop.xlane.xlu0 %2988 }
 0xf6a   :  { %11520 = vrcp.f32 %v2989_v33  ;;  %v3164_v33 = vld [vmem:[#allocation9 + $0x378] sm:$0xff] }
 0xf6b   :  { %v2733_v35 = vpop.xlane.xlu1 %2732 }
 0xf6c   :  { %11522 = vrcp.f32 %v2733_v35  ;;  %v3178_v35 = vld [vmem:[#allocation9 + $0x2d8] sm:$0xff] }
 0xf6d   :  { %v2730_v37 = vpop.xlane.xlu0 %2729 }
 0xf6e   :  { %11524 = vrcp.f32 %v2730_v37  ;;  %v3163_v37 = vld [vmem:[#allocation9 + $0x318] sm:$0xff] }
 0xf75   :  { %v11519_v41 = vpop.eup %11518 }
 0xf76   :  { %v2996_v46 = vmul.f32 %v11519_v41, %v11511_v23  ;;  %v3169_v23 = vld [vmem:[#allocation9 + $0x558] sm:$0xff] }
 0xf77   :  { %v11521_v42 = vpop.eup %11520  ;;  %v3177_v41 = vld [vmem:[#allocation9 + $0x278] sm:$0xff] }
 0xf78   :  { %v2995_v44 = vmul.f32 %v11521_v42, %v11513_v24  ;;  %v3168_v24 = vld [vmem:[#allocation9 + $0x4f8] sm:$0xff] }
 0xf79   :  { %v11523_v48 = vpop.eup %11522  ;;  %v3162_v42 = vld [vmem:[#allocation9 + $0x2b8] sm:$0xff] }
 0xf7a   :  { %10155 = vmatprep.mubr.msk.f32.mxu0 %vm1004_vm6, %v2995_v44  ;;  %v2737_v55 = vmul.f32 %v11523_v48, %v11515_v25  ;;  %v3167_v25 = vld [vmem:[#allocation9 + $0x498] sm:$0xff] }
 0xf7b   :  { %v11525_v50 = vpop.eup %11524  ;;  %10156 = vmatmul.mubr.msk.f32.vlgmr.msra.gmra.mxu0 %vm1004_vm6, %v2996_v46  ;;  %v3176_v44 = vld [vmem:[#allocation9 + $0x218] sm:$0xff] }
 0xf7c   :  { %v2736_v51 = vmul.f32 %v11525_v50, %v11517_v27  ;;  %10159 = vmatpush3.msra.mxu0 %v2363_v29  ;;  %v3166_v27 = vld [vmem:[#allocation9 + $0x438] sm:$0xff] }
 0xf7d   :  { %10160 = vmatprep.subr.mxu0 %v2362_v49  ;;  %v3161_v46 = vld [vmem:[#allocation9 + $0x258] sm:$0xff] }
 0xf7e   :  { %10106 = vmatprep.mubr.msk.f32.mxu1 %vm1004_vm6, %v2736_v51  ;;  %10161 = vmatpush3.msra.mxu0 %v2362_v49  ;;  %v3175_v48 = vld [vmem:[#allocation9 + $0x1b8] sm:$0xff] }
 0xf7f   :  { %10107 = vmatmul.mubr.msk.f32.vlgmr.msra.gmra.mxu1 %vm1004_vm6, %v2737_v55  ;;  %10162 = vmatprep.subr.mxu0 %v2361_v53  ;;  %v3174_v50 = vld [vmem:[#allocation9 + $0x158] sm:$0xff] }
 0xf80   :  { %10110 = vmatpush3.msra.mxu1 %v2363_v29  ;;  %10163 = vmatpush3.msra.mxu0 %v2361_v53  ;;  %v3165_v29 = vld [vmem:[#allocation9 + $0x3d8] sm:$0xff] }
 0xf81   :  { %10111 = vmatprep.subr.mxu1 %v2362_v49  ;;  %10164 = vmatprep.subr.mxu0 %v2360_v57  ;;  %v3159_v51 = vld [vmem:[#allocation9 + $0x198] sm:$0xff] }
 0xf82   :  { %10112 = vmatpush3.msra.mxu1 %v2362_v49  ;;  %10165 = vmatpush3.msra.mxu0 %v2360_v57  ;;  %v3160_v49 = vld [vmem:[#allocation9 + $0x1f8] sm:$0xff] }
 0xf83   :  { %10113 = vmatprep.subr.mxu1 %v2361_v53  ;;  %10166 = vmatprep.subr.mxu0 %v2359_v60  ;;  %v3158_v55 = vld [vmem:[#allocation9 + $0x138] sm:$0xff] }
 0xf84   :  { %10114 = vmatpush3.msra.mxu1 %v2361_v53  ;;  %10167 = vmatpush3.msra.mxu0 %v2359_v60  ;;  %v3173_v53 = vld [vmem:[#allocation9 + $0xf8] sm:$0xff] }
 0xf85   :  { %10115 = vmatprep.subr.mxu1 %v2360_v57  ;;  %10168 = vmatprep.subr.mxu0 %v2358_v63 }
 0xf86   :  { %10116 = vmatpush3.msra.mxu1 %v2360_v57  ;;  %10169 = vmatpush3.msra.mxu0 %v2358_v63  ;;  %v3172_v57 = vld [vmem:[#allocation9 + $0x98] sm:$0xff] }
 0xf87   :  { %10117 = vmatprep.subr.mxu1 %v2359_v60  ;;  %10170 = vmatprep.subr.mxu0 %v2357_v1 }
 0xf88   :  { %10118 = vmatpush3.msra.mxu1 %v2359_v60  ;;  %10171 = vmatpush3.msra.mxu0 %v2357_v1  ;;  %v3157_v60 = vld [vmem:[#allocation9 + $0xd8] sm:$0xff] }
 0xf89   :  { %10119 = vmatprep.subr.mxu1 %v2358_v63  ;;  %10172 = vmatprep.subr.mxu0 %v2356_v4 }
 0xf8a   :  { %10120 = vmatpush3.msra.mxu1 %v2358_v63  ;;  %10173 = vmatpush3.msra.mxu0 %v2356_v4  ;;  %v3171_v63 = vld [vmem:[#allocation9 + $0x38] sm:$0xff] }
 0xf8b   :  { %10121 = vmatprep.subr.mxu1 %v2357_v1  ;;  %10174 = vmatprep.subr.mxu0 %v2355_v5 }
 0xf8c   :  { %10122 = vmatpush3.msra.mxu1 %v2357_v1  ;;  %10175 = vmatpush3.msra.mxu0 %v2355_v5  ;;  %v3156_v1 = vld [vmem:[#allocation9 + $0x78] sm:$0xff] }
 0xf8d   :  { %10123 = vmatprep.subr.mxu1 %v2356_v4  ;;  %10176 = vmatprep.subr.mxu0 %v2354_v36 }
 0xf8e   :  { %10124 = vmatpush3.msra.mxu1 %v2356_v4  ;;  %10177 = vmatpush3.msra.mxu0 %v2354_v36  ;;  %v3155_v4 = vld [vmem:[#allocation9 + $0x18] sm:$0xff] }
 0xf8f   :  { %10125 = vmatprep.subr.mxu1 %v2355_v5  ;;  %10178 = vmatprep.subr.mxu0 %v2353_v62 }
 0xf90   :  { %10126 = vmatpush3.msra.mxu1 %v2355_v5  ;;  %10179 = vmatpush3.msra.mxu0 %v2353_v62  ;;  %v3202_v5 = vld [vmem:[#allocation9 + $0x5f8] sm:$0xff] }
 0xf91   :  { %10127 = vmatprep.subr.mxu1 %v2354_v36  ;;  %10180 = vmatprep.subr.mxu0 %v2352_v7 }
 0xf92   :  { %10128 = vmatpush3.msra.mxu1 %v2354_v36  ;;  %10181 = vmatpush3.msra.mxu0 %v2352_v7  ;;  %v3201_v36 = vld [vmem:[#allocation9 + $0x598] sm:$0xff] }
 0xf93   :  { %10129 = vmatprep.subr.mxu1 %v2353_v62  ;;  %10182 = vmatprep.subr.mxu0 %v2351_v9 }
 0xf94   :  { %10130 = vmatpush3.msra.mxu1 %v2353_v62  ;;  %10183 = vmatpush3.msra.mxu0 %v2351_v9  ;;  %v3200_v62 = vld [vmem:[#allocation9 + $0x538] sm:$0xff] }
 0xf95   :  { %10131 = vmatprep.subr.mxu1 %v2352_v7  ;;  %10184 = vmatprep.subr.mxu0 %v2350_v16 }
 0xf96   :  { %10132 = vmatpush3.msra.mxu1 %v2352_v7  ;;  %10185 = vmatpush3.msra.mxu0 %v2350_v16  ;;  %v3199_v7 = vld [vmem:[#allocation9 + $0x4d8] sm:$0xff] }
 0xf97   :  { %10133 = vmatprep.subr.mxu1 %v2351_v9  ;;  %10186 = vmatprep.subr.mxu0 %v2349_v52 }
 0xf98   :  { %10134 = vmatpush3.msra.mxu1 %v2351_v9  ;;  %10187 = vmatpush3.msra.mxu0 %v2349_v52  ;;  %v3198_v9 = vld [vmem:[#allocation9 + $0x478] sm:$0xff] }
 0xf99   :  { %10135 = vmatprep.subr.mxu1 %v2350_v16  ;;  %10188 = vmatprep.subr.mxu0 %v2348_v32 }
 0xf9a   :  { %10136 = vmatpush3.msra.mxu1 %v2350_v16  ;;  %10189 = vmatpush3.msra.mxu0 %v2348_v32  ;;  %v3197_v16 = vld [vmem:[#allocation9 + $0x418] sm:$0xff] }
 0xf9b   :  { %10137 = vmatprep.subr.mxu1 %v2349_v52  ;;  %10231 = vmatprep.subr.mxu0 %v3186_v61 }
 0xf9c   :  { %10138 = vmatpush3.msra.mxu1 %v2349_v52  ;;  %v3196_v52 = vld [vmem:[#allocation9 + $0x3b8] sm:$0xff] }
 0xf9d   :  { %10139 = vmatprep.subr.mxu1 %v2348_v32 }
 0xf9e   :  { %10140 = vmatpush3.msra.mxu1 %v2348_v32  ;;  %v3195_v32 = vld [vmem:[#allocation9 + $0x358] sm:$0xff] }
 0xf9f   :  { %10193 = vmatprep.subr.mxu1 %v3170_v8 }
0x103b   :  { %v10157_v12 = vpop.f32.mrf.mxu0 }
0x103d   :  { %v3069_v17 = vpop.f32.mrf.mxu0 }
0x103e   :  { %10190 = vmatprep.mubr.f32.mxu0 %v3069_v17  ;;  %v3190_v17 = vld [vmem:[#allocation9 + $0x178] sm:$0xff] }
0x103f   :  { %v10108_v54 = vpop.f32.mrf.mxu1  ;;  %10191 = vmatmul.mubr.f32.vlgmr.msra.gmra.mxu0 %v10157_v12  ;;  %v3192_v12 = vld [vmem:[#allocation9 + $0x238] sm:$0xff] }
0x1040   :  { %10232 = vmatpush3.msra.mxu0 %v3186_v61  ;;  %10263 = vmatprep.mubr.f32.mxu0 %v12305_v39  ;;  %v3194_v61 = vld [vmem:[#allocation9 + $0x2f8] sm:$0xff] }
0x1041   :  { %10233 = vmatprep.subr.mxu0 %v3185_v18  ;;  %v2810_v19 = vpop.f32.mrf.mxu1 }
0x1042   :  { %10234 = vmatpush3.msra.mxu0 %v3185_v18  ;;  %10141 = vmatprep.mubr.f32.mxu1 %v2810_v19  ;;  %v3189_v18 = vld [vmem:[#allocation9 + $0x118] sm:$0xff]  ;;  %v2294_v19 = vadd.f32 %v12419_v13, %v12559_v2  ;;  %v12627_v2 = vld [vmem:[#allocation10 + $0x7] ss:$0 sm:$0xff] }
0x1043   :  { %10235 = vmatprep.subr.mxu0 %v3184_v21  ;;  %10142 = vmatmul.mubr.f32.vlgmr.msra.gmra.mxu1 %v10108_v54  ;;  %v3188_v54 = vld [vmem:[#allocation9 + $0xb8] sm:$0xff] }
0x1044   :  { %10194 = vmatpush3.msra.mxu1 %v3170_v8  ;;  %10236 = vmatpush3.msra.mxu0 %v3184_v21  ;;  %v3193_v8 = vld [vmem:[#allocation9 + $0x298] sm:$0xff] }
0x1045   :  { %10195 = vmatprep.subr.mxu1 %v3169_v23  ;;  %10225 = vmatprep.mubr.f32.mxu1 %v12305_v39  ;;  %v3187_v21 = vld [vmem:[#allocation9 + $0x58] sm:$0xff] }
0x1046   :  { %10237 = vmatprep.subr.mxu0 %v3183_v22  ;;  %10196 = vmatpush3.msra.mxu1 %v3169_v23 }
0x1047   :  { %10238 = vmatpush3.msra.mxu0 %v3183_v22  ;;  %10197 = vmatprep.subr.mxu1 %v3168_v24  ;;  %v2289_v22 = vadd.f32 %v12421_v14, %v12561_v20 }
0x1048   :  { %10239 = vmatprep.subr.mxu0 %v3182_v15  ;;  %10198 = vmatpush3.msra.mxu1 %v3168_v24 }
0x1049   :  { %10240 = vmatpush3.msra.mxu0 %v3182_v15  ;;  %10199 = vmatprep.subr.mxu1 %v3167_v25 }
0x104a   :  { %10241 = vmatprep.subr.mxu0 %v3181_v26  ;;  %10200 = vmatpush3.msra.mxu1 %v3167_v25  ;;  %v1962_v25 = vadd.f32 %v12415_v10, %v12506_v28  ;;  %v8447_v28 = vld [vmem:[#allocation10 + $0x3] ss:$0 sm:$0xff] }
0x104b   :  { %10242 = vmatpush3.msra.mxu0 %v3181_v26  ;;  %10201 = vmatprep.subr.mxu1 %v3166_v27 }
0x104c   :  { %10243 = vmatprep.subr.mxu0 %v3180_v30  ;;  %10202 = vmatpush3.msra.mxu1 %v3166_v27 }
0x104d   :  { %10244 = vmatpush3.msra.mxu0 %v3180_v30  ;;  %10203 = vmatprep.subr.mxu1 %v3165_v29 }
0x104e   :  { %10245 = vmatprep.subr.mxu0 %v3179_v31  ;;  %10204 = vmatpush3.msra.mxu1 %v3165_v29 }
0x104f   :  { %10246 = vmatpush3.msra.mxu0 %v3179_v31  ;;  %10205 = vmatprep.subr.mxu1 %v3164_v33 }
0x1050   :  { %10247 = vmatprep.subr.mxu0 %v3178_v35  ;;  %10206 = vmatpush3.msra.mxu1 %v3164_v33 }
0x1051   :  { %10248 = vmatpush3.msra.mxu0 %v3178_v35  ;;  %10207 = vmatprep.subr.mxu1 %v3163_v37 }
0x1052   :  { %10249 = vmatprep.subr.mxu0 %v3177_v41  ;;  %10208 = vmatpush3.msra.mxu1 %v3163_v37 }
0x1053   :  { %10250 = vmatpush3.msra.mxu0 %v3177_v41  ;;  %10209 = vmatprep.subr.mxu1 %v3162_v42 }
0x1054   :  { %10251 = vmatprep.subr.mxu0 %v3176_v44  ;;  %10210 = vmatpush3.msra.mxu1 %v3162_v42  ;;  %v12635_v42 = vld [vmem:[#allocation10 + $0xb] ss:$0 sm:$0xff] }
0x1055   :  { %10252 = vmatpush3.msra.mxu0 %v3176_v44  ;;  %10211 = vmatprep.subr.mxu1 %v3161_v46 }
0x1056   :  { %10253 = vmatprep.subr.mxu0 %v3175_v48  ;;  %10212 = vmatpush3.msra.mxu1 %v3161_v46 }
0x1057   :  { %10254 = vmatpush3.msra.mxu0 %v3175_v48  ;;  %10213 = vmatprep.subr.mxu1 %v3160_v49 }
0x1058   :  { %10255 = vmatprep.subr.mxu0 %v3174_v50  ;;  %10214 = vmatpush3.msra.mxu1 %v3160_v49 }
0x1059   :  { %10256 = vmatpush3.msra.mxu0 %v3174_v50  ;;  %10215 = vmatprep.subr.mxu1 %v3159_v51 }
0x105a   :  { %10257 = vmatprep.subr.mxu0 %v3173_v53  ;;  %10216 = vmatpush3.msra.mxu1 %v3159_v51 }
0x105b   :  { %10258 = vmatpush3.msra.mxu0 %v3173_v53  ;;  %10217 = vmatprep.subr.mxu1 %v3158_v55 }
0x105c   :  { %10259 = vmatprep.subr.mxu0 %v3172_v57  ;;  %10218 = vmatpush3.msra.mxu1 %v3158_v55 }
0x105d   :  { %10260 = vmatpush3.msra.mxu0 %v3172_v57  ;;  %10219 = vmatprep.subr.mxu1 %v3157_v60 }
0x105e   :  { %10261 = vmatprep.subr.mxu0 %v3171_v63  ;;  %10220 = vmatpush3.msra.mxu1 %v3157_v60 }
0x105f   :  { %10262 = vmatpush3.msra.mxu0 %v3171_v63  ;;  %10221 = vmatprep.subr.mxu1 %v3156_v1 }
0x1060   :  { %10264 = vmatmul.mubr.f32.vlgmr.msra.gmra.mxu0 %v12308_v43  ;;  %10222 = vmatpush3.msra.mxu1 %v3156_v1 }
0x1061   :  { %10266 = vmatprep.mubr.f32.mxu0 %v12313_v56  ;;  %10223 = vmatprep.subr.mxu1 %v3155_v4 }
0x1062   :  { %10224 = vmatpush3.msra.mxu1 %v3155_v4 }
0x1063   :  { %10226 = vmatmul.mubr.f32.vlgmr.msra.gmra.mxu1 %v12308_v43  ;;  %10269 = vmatprep.subr.mxu1 %v3202_v5 }
0x1064   :  { %10267 = vmatmul.mubr.f32.gmra.mxu0 %v12315_v59  ;;  %10228 = vmatprep.mubr.f32.mxu1 %v12313_v56 }
0x1065   :  { %10270 = vmatpush3.msra.mxu1 %v3202_v5 }
0x1066   :  { %10271 = vmatprep.subr.mxu1 %v3201_v36 }
0x1067   :  { %10272 = vmatpush3.msra.mxu1 %v3201_v36 }
0x1068   :  { %10229 = vmatmul.mubr.f32.gmra.mxu1 %v12315_v59  ;;  %10273 = vmatprep.subr.mxu1 %v3200_v62 }
0x1069   :  { %10274 = vmatpush3.msra.mxu1 %v3200_v62  ;;  %10301 = vmatprep.mubr.f32.mxu1 %v12305_v39  ;;  %v3191_v39 = vld [vmem:[#allocation9 + $0x1d8] sm:$0xff] }
0x106a   :  { %10275 = vmatprep.subr.mxu1 %v3199_v7 }
0x106b   :  { %10276 = vmatpush3.msra.mxu1 %v3199_v7 }
0x106c   :  { %10277 = vmatprep.subr.mxu1 %v3198_v9 }
0x106d   :  { %10278 = vmatpush3.msra.mxu1 %v3198_v9 }
0x106e   :  { %10279 = vmatprep.subr.mxu1 %v3197_v16 }
0x106f   :  { %10280 = vmatpush3.msra.mxu1 %v3197_v16 }
0x1070   :  { %10281 = vmatprep.subr.mxu1 %v3196_v52 }
0x1071   :  { %10282 = vmatpush3.msra.mxu1 %v3196_v52 }
0x1072   :  { %10283 = vmatprep.subr.mxu1 %v3195_v32 }
0x1073   :  { %10284 = vmatpush3.msra.mxu1 %v3195_v32 }
0x1074   :  { %10285 = vmatprep.subr.mxu1 %v3194_v61 }
0x1075   :  { %10286 = vmatpush3.msra.mxu1 %v3194_v61 }
0x1076   :  { %10287 = vmatprep.subr.mxu1 %v3193_v8 }
0x1077   :  { %10288 = vmatpush3.msra.mxu1 %v3193_v8 }
0x1078   :  { %10289 = vmatprep.subr.mxu1 %v3192_v12 }
0x1079   :  { %10290 = vmatpush3.msra.mxu1 %v3192_v12 }
0x107a   :  { %10291 = vmatprep.subr.mxu1 %v3191_v39 }
0x107b   :  { %10292 = vmatpush3.msra.mxu1 %v3191_v39  ;;  %v12653_v39 = vld [vmem:[#allocation12 + $0x1f0] sm:$0xff] }
0x107c   :  { %10293 = vmatprep.subr.mxu1 %v3190_v17 }
0x107d   :  { %10294 = vmatpush3.msra.mxu1 %v3190_v17  ;;  %v12657_v17 = vld [vmem:[#allocation12 + $0x1e8] sm:$0xff] }
0x107e   :  { %10295 = vmatprep.subr.mxu1 %v3189_v18 }
0x107f   :  { %10296 = vmatpush3.msra.mxu1 %v3189_v18  ;;  %v12661_v18 = vld [vmem:[#allocation12 + $0x1e0] sm:$0xff] }
0x1080   :  { %10297 = vmatprep.subr.mxu1 %v3188_v54 }
0x1081   :  { %10298 = vmatpush3.msra.mxu1 %v3188_v54  ;;  %v12665_v54 = vld [vmem:[#allocation12 + $0x1d8] sm:$0xff] }
0x1082   :  { %10299 = vmatprep.subr.mxu1 %v3187_v21 }
0x1083   :  { %10300 = vmatpush3.msra.mxu1 %v3187_v21  ;;  %v12669_v21 = vld [vmem:[#allocation12 + $0x1d0] sm:$0xff] }
0x1084   :  { %10302 = vmatmul.mubr.f32.vlgmr.msra.gmra.mxu1 %v12308_v43 }
0x1085   :  { %10304 = vmatprep.mubr.f32.mxu1 %v12313_v56  ;;  %v1957_v56 = vadd.f32 %v12417_v11, %v12508_v34 }
0x1088   :  { %10305 = vmatmul.mubr.f32.gmra.mxu1 %v12315_v59 }
0x10ff   :  { %v10192_v23 = vpop.f32.mrf.mxu0 }
0x1100   :  { %v12615_v24 = vadd.f32 %v10192_v23, %v2294_v19  ;;  %v12673_v19 = vld [vmem:[#allocation12 + $0x1c8] sm:$0xff]  ;;  %v12677_v23 = vld [vmem:[#allocation12 + $0x1c0] sm:$0xff] }
0x1101   :  { %v3144_v15 = vpop.f32.mrf.mxu0 }
0x1102   :  { %v12619_v26 = vadd.f32 %v3144_v15, %v2289_v22  ;;  %v12681_v22 = vld [vmem:[#allocation12 + $0x1b8] sm:$0xff]  ;;  %v12685_v15 = vld [vmem:[#allocation12 + $0x1b0] sm:$0xff] }
0x1103   :  { %v10143_v43 = vpop.f32.mrf.mxu1 }
0x1104   :  { %v12623_v59 = vadd.f32 %v10143_v43, %v1962_v25  ;;  %v12689_v25 = vld [vmem:[#allocation12 + $0x1a8] sm:$0xff]  ;;  %v12693_v43 = vld [vmem:[#allocation12 + $0x1a0] sm:$0xff] }
0x1105   :  { %v2885_v27 = vpop.f32.mrf.mxu1 }
0x1106   :  { %v12625_v13 = vadd.f32 %v2885_v27, %v1957_v56  ;;  %v12697_v56 = vld [vmem:[#allocation12 + $0x198] sm:$0xff]  ;;  %v12701_v27 = vld [vmem:[#allocation12 + $0x190] sm:$0xff] }
0x1120   :  { %v10265_v14 = vpop.f32.mrf.mxu0 }
0x1121   :  { %v3391_v20 = vadd.f32 %v10265_v14, %v12627_v2 }
0x1122   :  { %v3385_v30 = vpop.f32.mrf.mxu0 }
0x1123   :  { %v3386_v29 = vadd.f32 %v12627_v2, %v3385_v30  ;;  %10307 = vmatprep.subr.mxu0 %v3391_v20  ;;  %v10227_v10 = vpop.f32.mrf.mxu1 }
0x1124   :  { %10308 = vmatpush3.xpose.msra.mxu0 %v3391_v20  ;;  %v3300_v33 = vadd.f32 %v10227_v10, %v8447_v28  ;;  %v10268_v48 = vpop.f32.mrf.mxu0 }
0x1125   :  { %10309 = vmatprep.subr.mxu0 %v3386_v29  ;;  %v3294_v31 = vpop.f32.mrf.mxu1  ;;  %v12640_v51 = vadd.f32 %v10268_v48, %v12627_v2 }
0x1126   :  { %v3295_v11 = vadd.f32 %v8447_v28, %v3294_v31  ;;  %v12643_v53 = vpop.f32.mrf.mxu0 }
0x1127   :  { %v3396_v31 = vadd.f32 %v12627_v2, %v12643_v53  ;;  %v12717_v2 = vld [vmem:[#allocation12 + $0x188] sm:$0xff] }
0x1128   :  { %v10230_v34 = vpop.f32.mrf.mxu1  ;;  %10310 = vmatpush3.xpose.msra.mxu0 %v3386_v29  ;;  %10311 = vmatprep.mubr.f32.mxu0 %v3295_v11 }
0x1129   :  { %v12631_v35 = vadd.f32 %v10230_v34, %v8447_v28 }
0x112a   :  { %v3304_v37 = vpop.f32.mrf.mxu1 }
0x112b   :  { %v12633_v41 = vadd.f32 %v8447_v28, %v3304_v37  ;;  %10312 = vmatmul.mubr.f32.vlgmr.msra.gmra.mxu0 %v3300_v33 }
0x1144   :  { %v10303_v44 = vpop.f32.mrf.mxu1 }
0x1145   :  { %v3482_v46 = vadd.f32 %v10303_v44, %v12635_v42 }
0x1146   :  { %v3476_v49 = vpop.f32.mrf.mxu1 }
0x1147   :  { %v3477_v50 = vadd.f32 %v12635_v42, %v3476_v49  ;;  %10314 = vmatprep.subr.mxu0 %v3482_v46 }
0x1148   :  { %10315 = vmatpush3.msra.mxu0 %v3482_v46  ;;  %v10306_v11 = vpop.f32.mrf.mxu1 }
0x1149   :  { %10316 = vmatprep.subr.mxu0 %v3477_v50  ;;  %v3492_v34 = vadd.f32 %v10306_v11, %v12635_v42  ;;  %v4108_v11 = vld [vmem:[#allocation18 + $0x30] sm:$0xff] }
0x114a   :  { %10317 = vmatpush3.msra.mxu0 %v3477_v50  ;;  %v3486_v33 = vpop.f32.mrf.mxu1 }
0x114b   :  { %10356 = vmatprep.subr.mxu0 %v12640_v51  ;;  %v3487_v37 = vadd.f32 %v12635_v42, %v3486_v33  ;;  %v4106_v33 = vld [vmem:[#allocation18 + $0x20] sm:$0xff] }
0x11eb   :  { %v10313_v55 = vpop.f32.mrf.mxu0 }
0x11ec   :  { %v3571_v57 = vmul.f32 0.35355338, %v10313_v55 }
0x11ed   :  { %v3561_v60 = vpop.f32.mrf.mxu0 }
0x11ee   :  { %v3570_v63 = vmul.f32 0.35355338, %v3561_v60  ;;  %v3573_v1 = vadd.f32 %v12579_v3, %v3571_v57 }
0x11f0   :  { %v3577_v4 = vsel %vm1004_vm6, %v3573_v1, -inf  ;;  %v3572_v5 = vadd.f32 %v12586_v6, %v3570_v63  ;;  %v12651_v6 = vld [vmem:[#allocation12 + $0x1f8] sm:$0xff] }
0x11f1   :  { %3578 = vmax.xlane.f32.xlu1 %v3577_v4  ;;  %10321 = vmatprep.subr.mxu1 %v12651_v6 }
0x11f2   :  { %v3574_v36 = vsel %vm1004_vm6, %v3572_v5, -inf  ;;  %10322 = vmatpush3.msra.mxu1 %v12651_v6 }
0x11f3   :  { %3575 = vmax.xlane.f32.xlu0 %v3574_v36  ;;  %10323 = vmatprep.subr.mxu1 %v12653_v39 }
0x11f4   :  { %10324 = vmatpush3.msra.mxu1 %v12653_v39 }
0x11f5   :  { %10325 = vmatprep.subr.mxu1 %v12657_v17 }
0x11f6   :  { %10326 = vmatpush3.msra.mxu1 %v12657_v17 }
0x11f7   :  { %10327 = vmatprep.subr.mxu1 %v12661_v18 }
0x11f8   :  { %10328 = vmatpush3.msra.mxu1 %v12661_v18 }
0x11f9   :  { %10329 = vmatprep.subr.mxu1 %v12665_v54 }
0x11fa   :  { %10330 = vmatpush3.msra.mxu1 %v12665_v54 }
0x11fb   :  { %10331 = vmatprep.subr.mxu1 %v12669_v21 }
0x11fc   :  { %10332 = vmatpush3.msra.mxu1 %v12669_v21 }
0x11fd   :  { %10333 = vmatprep.subr.mxu1 %v12673_v19 }
0x11fe   :  { %10334 = vmatpush3.msra.mxu1 %v12673_v19 }
0x11ff   :  { %10335 = vmatprep.subr.mxu1 %v12677_v23 }
0x1200   :  { %10336 = vmatpush3.msra.mxu1 %v12677_v23 }
0x1201   :  { %10337 = vmatprep.subr.mxu1 %v12681_v22 }
0x1202   :  { %10338 = vmatpush3.msra.mxu1 %v12681_v22 }
0x1203   :  { %10339 = vmatprep.subr.mxu1 %v12685_v15 }
0x1204   :  { %10340 = vmatpush3.msra.mxu1 %v12685_v15 }
0x1205   :  { %10341 = vmatprep.subr.mxu1 %v12689_v25 }
0x1206   :  { %10342 = vmatpush3.msra.mxu1 %v12689_v25 }
0x1207   :  { %10343 = vmatprep.subr.mxu1 %v12693_v43 }
0x1208   :  { %10344 = vmatpush3.msra.mxu1 %v12693_v43 }
0x1209   :  { %10345 = vmatprep.subr.mxu1 %v12697_v56 }
0x120a   :  { %10346 = vmatpush3.msra.mxu1 %v12697_v56 }
0x120b   :  { %10347 = vmatprep.subr.mxu1 %v12701_v27 }
0x120c   :  { %10348 = vmatpush3.msra.mxu1 %v12701_v27 }
0x120d   :  { %10349 = vmatprep.subr.mxu1 %v12717_v2 }
0x120e   :  { %10350 = vmatpush3.msra.mxu1 %v12717_v2 }
0x127a   :  { %v3579_v62 = vpop.xlane.xlu1 %3578 }
0x127b   :  { %v3581_v7 = vsub.f32 %v3573_v1, %v3579_v62 }
0x127c   :  { %v3576_v9 = vpop.xlane.xlu0 %3575 }
0x127d   :  { %v3584_v16 = vmul.f32 1.442695, %v3581_v7  ;;  %v3580_v52 = vsub.f32 %v3572_v5, %v3576_v9 }
0x127f   :  { %11526 = vpow2.f32 %v3584_v16  ;;  %v3582_v32 = vmul.f32 1.442695, %v3580_v52  ;;  %v12738_v16 = vld [vmem:[#allocation13] ss:$0 sm:$0xff] }
0x1281   :  { %11528 = vpow2.f32 %v3582_v32 }
0x128c   :  { %v11527_v61 = vpop.eup %11526 }
0x128d   :  { %v3589_v8 = vsel %vm1004_vm6, %v11527_v61, 0.0 }
0x128e   :  { %v11529_v3 = vpop.eup %11528  ;;  %3590 = vadd.xlane.f32.xlu1 %v3589_v8 }
0x128f   :  { %v3586_v12 = vsel %vm1004_vm6, %v11529_v3, 0.0 }
0x1290   :  { %3587 = vadd.xlane.f32.xlu0 %v3586_v12 }
0x1317   :  { %v3591_v14 = vpop.xlane.xlu1 %3590 }
0x1318   :  { %11530 = vrcp.f32 %v3591_v14  ;;  %v4116_v14 = vld [vmem:[#allocation18 + $0x70] sm:$0xff] }
0x1319   :  { %v3588_v20 = vpop.xlane.xlu0 %3587 }
0x131a   :  { %11532 = vrcp.f32 %v3588_v20  ;;  %v4114_v20 = vld [vmem:[#allocation18 + $0x60] sm:$0xff] }
0x1325   :  { %v11531_v30 = vpop.eup %11530 }
0x1326   :  { %v3595_v28 = vmul.f32 %v11531_v30, %v11527_v61  ;;  %v4113_v30 = vld [vmem:[#allocation18 + $0x58] sm:$0xff] }
0x1327   :  { %v11533_v29 = vpop.eup %11532 }
0x1328   :  { %v3594_v10 = vmul.f32 %v11533_v29, %v11529_v3  ;;  %v4112_v29 = vld [vmem:[#allocation18 + $0x50] sm:$0xff] }
0x132a   :  { %10318 = vmatprep.mubr.msk.f32.mxu0 %vm1004_vm6, %v3594_v10  ;;  %v4111_v10 = vld [vmem:[#allocation18 + $0x48] sm:$0xff] }
0x132b   :  { %10319 = vmatmul.mubr.msk.f32.vlgmr.msra.gmra.mxu0 %vm1004_vm6, %v3595_v28  ;;  %v4110_v28 = vld [vmem:[#allocation18 + $0x40] sm:$0xff] }
0x132c   :  { %10357 = vmatpush3.xpose.msra.mxu0 %v12640_v51  ;;  %10360 = vmatprep.mubr.f32.mxu0 %v12633_v41  ;;  %v12721_v41 = vld [vmem:[#allocation12 + $0x180] sm:$0xff] }
0x132d   :  { %10358 = vmatprep.subr.mxu0 %v3396_v31  ;;  %10351 = vmatprep.subr.mxu1 %v12721_v41 }
0x132e   :  { %10352 = vmatpush3.msra.mxu1 %v12721_v41 }
0x1330   :  { %10359 = vmatpush3.xpose.msra.mxu0 %v3396_v31  ;;  %v4109_v31 = vld [vmem:[#allocation18 + $0x38] sm:$0xff] }
0x1331   :  { %10363 = vmatprep.subr.mxu0 %v3492_v34 }
0x1333   :  { %10361 = vmatmul.mubr.f32.vlgmr.msra.gmra.mxu0 %v12631_v35 }
0x1334   :  { %10364 = vmatpush3.msra.mxu0 %v3492_v34  ;;  %v4107_v34 = vld [vmem:[#allocation18 + $0x28] sm:$0xff] }
0x1335   :  { %10365 = vmatprep.subr.mxu0 %v3487_v37 }
0x1336   :  { %10366 = vmatpush3.msra.mxu0 %v3487_v37  ;;  %v4105_v37 = vld [vmem:[#allocation18 + $0x18] sm:$0xff] }
0x1337   :  { %10370 = vmatprep.subr.mxu0 %v12651_v6 }
0x13eb   :  { %v10320_v42 = vpop.f32.mrf.mxu0 }
0x13ed   :  { %v3668_v44 = vpop.f32.mrf.mxu0 }
0x13ee   :  { %10353 = vmatprep.mubr.f32.mxu1 %v3668_v44  ;;  %v4103_v44 = vld [vmem:[#allocation18 + $0x8] sm:$0xff] }
0x13ef   :  { %10354 = vmatmul.mubr.f32.vlgmr.msra.gmra.mxu1 %v10320_v42  ;;  %v4104_v42 = vld [vmem:[#allocation18 + $0x10] sm:$0xff] }
0x13f3   :  { %v10362_v35 = vpop.f32.mrf.mxu0 }
0x13f4   :  { %v3830_v46 = vmul.f32 0.35355338, %v10362_v35  ;;  %v4102_v35 = vld [vmem:[#allocation18] sm:$0xff] }
0x13f5   :  { %v3820_v48 = vpop.f32.mrf.mxu0 }
0x13f6   :  { %v3829_v49 = vmul.f32 0.35355338, %v3820_v48  ;;  %v3832_v50 = vadd.f32 %v12566_v58, %v3830_v46 }
0x13f8   :  { %v3836_v51 = vsel %vm1004_vm6, %v3832_v50, -inf  ;;  %v3831_v53 = vadd.f32 %v12573_v0, %v3829_v49 }
0x13f9   :  { %3837 = vmax.xlane.f32.xlu1 %v3836_v51 }
0x13fa   :  { %v3833_v55 = vsel %vm1004_vm6, %v3831_v53, -inf }
0x13fb   :  { %3834 = vmax.xlane.f32.xlu0 %v3833_v55 }
0x1482   :  { %v3838_v57 = vpop.xlane.xlu1 %3837 }
0x1483   :  { %v3840_v60 = vsub.f32 %v3832_v50, %v3838_v57 }
0x1484   :  { %v3835_v63 = vpop.xlane.xlu0 %3834 }
0x1485   :  { %v3843_v1 = vmul.f32 1.442695, %v3840_v60  ;;  %v3839_v4 = vsub.f32 %v3831_v53, %v3835_v63 }
0x1487   :  { %11534 = vpow2.f32 %v3843_v1  ;;  %v3841_v5 = vmul.f32 1.442695, %v3839_v4 }
0x1489   :  { %11536 = vpow2.f32 %v3841_v5 }
0x1494   :  { %v12729_v36 = vpop.eup %11534 }
0x1495   :  { %v3848_v58 = vsel %vm1004_vm6, %v12729_v36, 0.0 }
0x1496   :  { %v12733_v62 = vpop.eup %11536  ;;  %3849 = vadd.xlane.f32.xlu1 %v3848_v58  ;;  %v12795_v58 = vld [vmem:[#allocation16] ss:$0 sm:$0xff] }
0x1497   :  { %v3845_v0 = vsel %vm1004_vm6, %v12733_v62, 0.0 }
0x1498   :  { %3846 = vadd.xlane.f32.xlu0 %v3845_v0  ;;  %v4261_v0 = vld [vmem:[#allocation21 + $0x78] sm:$0xff] }
0x14af   :  { %v10355_v7 = vpop.f32.mrf.mxu1 }
0x14b0   :  { %v3753_v9 = vadd.f32 %v10355_v7, %v12623_v59 }
0x14b1   :  { %v3743_v52 = vpop.f32.mrf.mxu1 }
0x14b2   :  { %v4014_v32 = vadd.f32 %v3753_v9, %v12279_v40  ;;  %v3752_v61 = vadd.f32 %v3743_v52, %v12625_v13  ;;  %v4117_v13 = vld [vmem:[#allocation18 + $0x78] sm:$0xff] }
0x14b3   :  { %10405 = vmatprep.subr.mxu1 %v4117_v13  ;;  %v4260_v52 = vld [vmem:[#allocation21 + $0x70] sm:$0xff] }
0x14b4   :  { %v12743_v8 = vadd.f32 %v12738_v16, %v4014_v32  ;;  %v4013_v3 = vadd.f32 %v3752_v61, %v12277_v38  ;;  %10406 = vmatpush3.msra.mxu1 %v4117_v13  ;;  %v4115_v38 = vld [vmem:[#allocation18 + $0x68] sm:$0xff] }
0x14b5   :  { %10407 = vmatprep.subr.mxu1 %v4116_v14  ;;  %v4259_v32 = vld [vmem:[#allocation21 + $0x68] sm:$0xff]  ;;  %v4258_v61 = vld [vmem:[#allocation21 + $0x60] sm:$0xff] }
0x14b6   :  { %v12747_v12 = vadd.f32 %v12738_v16, %v4013_v3  ;;  %4032 = vadd.xlane.f32.xlu1 %v12743_v8  ;;  %v4043_v59 = vmul.f32 %v12743_v8, %v12743_v8  ;;  %10408 = vmatpush3.msra.mxu1 %v4116_v14  ;;  %v4257_v3 = vld [vmem:[#allocation21 + $0x58] sm:$0xff]  ;;  %v4254_v13 = vld [vmem:[#allocation21 + $0x40] sm:$0xff] }
0x14b7   :  { %10409 = vmatprep.subr.mxu1 %v4115_v38  ;;  %v4253_v14 = vld [vmem:[#allocation21 + $0x38] sm:$0xff] }
0x14b8   :  { %4030 = vadd.xlane.f32.xlu0 %v12747_v12  ;;  %v4042_v40 = vmul.f32 %v12747_v12, %v12747_v12  ;;  %10410 = vmatpush3.msra.mxu1 %v4115_v38  ;;  %v4252_v38 = vld [vmem:[#allocation21 + $0x30] sm:$0xff] }
0x14b9   :  { %10411 = vmatprep.subr.mxu1 %v4114_v20 }
0x14ba   :  { %4048 = vadd.xlane.f32.xlu1 %v4043_v59  ;;  %10412 = vmatpush3.msra.mxu1 %v4114_v20  ;;  %v4256_v59 = vld [vmem:[#allocation21 + $0x50] sm:$0xff]  ;;  %v4251_v20 = vld [vmem:[#allocation21 + $0x28] sm:$0xff] }
0x14bb   :  { %10413 = vmatprep.subr.mxu1 %v4113_v30 }
0x14bc   :  { %4046 = vadd.xlane.f32.xlu0 %v4042_v40  ;;  %10414 = vmatpush3.msra.mxu1 %v4113_v30  ;;  %v4255_v40 = vld [vmem:[#allocation21 + $0x48] sm:$0xff]  ;;  %v4250_v30 = vld [vmem:[#allocation21 + $0x20] sm:$0xff] }
0x14bd   :  { %10415 = vmatprep.subr.mxu1 %v4112_v29 }
0x14be   :  { %10416 = vmatpush3.msra.mxu1 %v4112_v29  ;;  %v4249_v29 = vld [vmem:[#allocation21 + $0x18] sm:$0xff] }
0x14bf   :  { %10417 = vmatprep.subr.mxu1 %v4111_v10 }
0x14c0   :  { %10418 = vmatpush3.msra.mxu1 %v4111_v10  ;;  %v4248_v10 = vld [vmem:[#allocation21 + $0x10] sm:$0xff] }
0x14c1   :  { %10419 = vmatprep.subr.mxu1 %v4110_v28 }
0x14c2   :  { %10420 = vmatpush3.msra.mxu1 %v4110_v28  ;;  %v4247_v28 = vld [vmem:[#allocation21 + $0x8] sm:$0xff] }
0x14c3   :  { %10421 = vmatprep.subr.mxu1 %v4109_v31 }
0x14c4   :  { %10422 = vmatpush3.msra.mxu1 %v4109_v31  ;;  %v4246_v31 = vld [vmem:[#allocation21] sm:$0xff] }
0x14c5   :  { %10423 = vmatprep.subr.mxu1 %v4108_v11 }
0x14c6   :  { %10424 = vmatpush3.msra.mxu1 %v4108_v11  ;;  %v12800_v11 = vld [vmem:[#allocation19] ss:$0 sm:$0xff] }
0x14c7   :  { %10425 = vmatprep.subr.mxu1 %v4107_v34 }
0x14c8   :  { %10426 = vmatpush3.msra.mxu1 %v4107_v34 }
0x14c9   :  { %10427 = vmatprep.subr.mxu1 %v4106_v33 }
0x14ca   :  { %10428 = vmatpush3.msra.mxu1 %v4106_v33 }
0x14cb   :  { %10429 = vmatprep.subr.mxu1 %v4105_v37 }
0x14cc   :  { %10430 = vmatpush3.msra.mxu1 %v4105_v37 }
0x14cd   :  { %10431 = vmatprep.subr.mxu1 %v4104_v42 }
0x14ce   :  { %10432 = vmatpush3.msra.mxu1 %v4104_v42 }
0x14cf   :  { %10433 = vmatprep.subr.mxu1 %v4103_v44 }
0x14d0   :  { %10434 = vmatpush3.msra.mxu1 %v4103_v44 }
0x14d1   :  { %10435 = vmatprep.subr.mxu1 %v4102_v35 }
0x14d2   :  { %10436 = vmatpush3.msra.mxu1 %v4102_v35 }
0x151f   :  { %v3850_v46 = vpop.xlane.xlu1 %3849 }
0x1520   :  { %11538 = vrcp.f32 %v3850_v46 }
0x1521   :  { %v3847_v48 = vpop.xlane.xlu0 %3846 }
0x1522   :  { %11540 = vrcp.f32 %v3847_v48 }
0x152d   :  { %v11539_v49 = vpop.eup %11538 }
0x152e   :  { %v3854_v53 = vmul.f32 %v11539_v49, %v12729_v36 }
0x152f   :  { %v11541_v50 = vpop.eup %11540 }
0x1530   :  { %v3853_v51 = vmul.f32 %v11541_v50, %v12733_v62 }
0x1532   :  { %10367 = vmatprep.mubr.msk.f32.mxu0 %vm1004_vm6, %v3853_v51 }
0x1533   :  { %10368 = vmatmul.mubr.msk.f32.vlgmr.msra.gmra.mxu0 %vm1004_vm6, %v3854_v53 }
0x1534   :  { %10371 = vmatpush3.msra.mxu0 %v12651_v6 }
0x1535   :  { %10372 = vmatprep.subr.mxu0 %v12653_v39 }
0x1536   :  { %10373 = vmatpush3.msra.mxu0 %v12653_v39 }
0x1537   :  { %10374 = vmatprep.subr.mxu0 %v12657_v17 }
0x1538   :  { %10375 = vmatpush3.msra.mxu0 %v12657_v17 }
0x1539   :  { %10376 = vmatprep.subr.mxu0 %v12661_v18 }
0x153a   :  { %10377 = vmatpush3.msra.mxu0 %v12661_v18 }
0x153b   :  { %10378 = vmatprep.subr.mxu0 %v12665_v54 }
0x153c   :  { %10379 = vmatpush3.msra.mxu0 %v12665_v54 }
0x153d   :  { %10380 = vmatprep.subr.mxu0 %v12669_v21 }
0x153e   :  { %10381 = vmatpush3.msra.mxu0 %v12669_v21 }
0x153f   :  { %v4033_v6 = vpop.xlane.xlu1 %4032  ;;  %10382 = vmatprep.subr.mxu0 %v12673_v19 }
0x1540   :  { %v4039_v39 = vmul.f32 0.03125, %v4033_v6  ;;  %10383 = vmatpush3.msra.mxu0 %v12673_v19 }
0x1541   :  { %v4031_v55 = vpop.xlane.xlu0 %4030  ;;  %10384 = vmatprep.subr.mxu0 %v12677_v23 }
0x1542   :  { %v4038_v17 = vmul.f32 0.03125, %v4031_v55  ;;  %10385 = vmatpush3.msra.mxu0 %v12677_v23  ;;  %v4059_v54 = vmul.f32 %v4039_v39, %v4039_v39 }
0x1543   :  { %v4049_v18 = vpop.xlane.xlu1 %4048  ;;  %10386 = vmatprep.subr.mxu0 %v12681_v22 }
0x1544   :  { %v4055_v57 = vmul.f32 0.03125, %v4049_v18  ;;  %10387 = vmatpush3.msra.mxu0 %v12681_v22  ;;  %v4058_v60 = vmul.f32 %v4038_v17, %v4038_v17  ;;  %v4067_v22 = vsub.f32 %v12743_v8, %v4039_v39 }
0x1545   :  { %v4047_v21 = vpop.xlane.xlu0 %4046  ;;  %10388 = vmatprep.subr.mxu0 %v12685_v15 }
0x1546   :  { %v4063_v63 = vsub.f32 %v4055_v57, %v4059_v54  ;;  %v4054_v1 = vmul.f32 0.03125, %v4047_v21  ;;  %10389 = vmatpush3.msra.mxu0 %v12685_v15 }
0x1547   :  { %10390 = vmatprep.subr.mxu0 %v12689_v25 }
0x1548   :  { %v4071_v19 = vadd.f32 1e-05, %v4063_v63  ;;  %v4062_v4 = vsub.f32 %v4054_v1, %v4058_v60  ;;  %10391 = vmatpush3.msra.mxu0 %v12689_v25  ;;  %v4066_v25 = vsub.f32 %v12747_v12, %v4038_v17 }
0x1549   :  { %10392 = vmatprep.subr.mxu0 %v12693_v43 }
0x154a   :  { %11542 = vrsqrt.f32 %v4071_v19  ;;  %v4070_v23 = vadd.f32 1e-05, %v4062_v4  ;;  %10393 = vmatpush3.msra.mxu0 %v12693_v43  ;;  %v12792_v43 = vld [vmem:[#allocation15] ss:$0 sm:$0xff] }
0x154b   :  { %10394 = vmatprep.subr.mxu0 %v12697_v56 }
0x154c   :  { %11544 = vrsqrt.f32 %v4070_v23  ;;  %10395 = vmatpush3.msra.mxu0 %v12697_v56 }
0x154d   :  { %10396 = vmatprep.subr.mxu0 %v12701_v27 }
0x154e   :  { %10397 = vmatpush3.msra.mxu0 %v12701_v27 }
0x154f   :  { %10398 = vmatprep.subr.mxu0 %v12717_v2 }
0x1550   :  { %10399 = vmatpush3.msra.mxu0 %v12717_v2 }
0x1551   :  { %10400 = vmatprep.subr.mxu0 %v12721_v41 }
0x1552   :  { %10401 = vmatpush3.msra.mxu0 %v12721_v41 }
0x1553   :  { %10443 = vmatprep.subr.mxu0 %v4261_v0 }
0x1557   :  { %v11543_v15 = vpop.eup %11542 }
0x1558   :  { %v4079_v56 = vmul.f32 %v11543_v15, %v4067_v22 }
0x1559   :  { %v11545_v5 = vpop.eup %11544 }
0x155a   :  { %v4078_v36 = vmul.f32 %v11545_v5, %v4066_v25  ;;  %v4089_v27 = vmul.f32 %v12792_v43, %v4079_v56  ;;  %v12820_v5 = vld [vmem:[#allocation22] ss:$0 sm:$0xff] }
0x155c   :  { %v4088_v2 = vmul.f32 %v12792_v43, %v4078_v36  ;;  %v4099_v41 = vadd.f32 %v12795_v58, %v4089_v27 }
0x155e   :  { %v4098_v62 = vadd.f32 %v12795_v58, %v4088_v2 }
0x1560   :  { %10437 = vmatprep.mubr.f32.mxu1 %v4098_v62 }
0x1561   :  { %10438 = vmatmul.mubr.f32.vlgmr.msra.gmra.mxu1 %v4099_v41  ;;  %v4454_v41 = vld [vmem:[#allocation9 + $0xba0] sm:$0xff] }
0x1562   :  { %10481 = vmatprep.subr.mxu1 %v4454_v41 }
0x1563   :  { %10482 = vmatpush3.msra.mxu1 %v4454_v41 }
0x15f3   :  { %v10369_v7 = vpop.f32.mrf.mxu0 }
0x15f5   :  { %v3927_v9 = vpop.f32.mrf.mxu0 }
0x15f6   :  { %10402 = vmatprep.mubr.f32.mxu0 %v3927_v9  ;;  %v4450_v9 = vld [vmem:[#allocation9 + $0xa20] sm:$0xff] }
0x15f7   :  { %10403 = vmatmul.mubr.f32.vlgmr.msra.gmra.mxu0 %v10369_v7  ;;  %v4451_v7 = vld [vmem:[#allocation9 + $0xa80] sm:$0xff] }
0x15f8   :  { %10444 = vmatpush3.msra.mxu0 %v4261_v0  ;;  %v4453_v0 = vld [vmem:[#allocation9 + $0xb40] sm:$0xff] }
0x15f9   :  { %10445 = vmatprep.subr.mxu0 %v4260_v52  ;;  %10483 = vmatprep.subr.mxu1 %v4453_v0 }
0x15fa   :  { %10446 = vmatpush3.msra.mxu0 %v4260_v52  ;;  %10484 = vmatpush3.msra.mxu1 %v4453_v0  ;;  %v4449_v52 = vld [vmem:[#allocation9 + $0x9c0] sm:$0xff] }
0x15fb   :  { %10447 = vmatprep.subr.mxu0 %v4259_v32 }
0x15fc   :  { %10448 = vmatpush3.msra.mxu0 %v4259_v32  ;;  %v4448_v32 = vld [vmem:[#allocation9 + $0x960] sm:$0xff] }
0x15fd   :  { %10449 = vmatprep.subr.mxu0 %v4258_v61 }
0x15fe   :  { %10450 = vmatpush3.msra.mxu0 %v4258_v61  ;;  %v4447_v61 = vld [vmem:[#allocation9 + $0x900] sm:$0xff] }
0x15ff   :  { %10451 = vmatprep.subr.mxu0 %v4257_v3 }
0x1600   :  { %10452 = vmatpush3.msra.mxu0 %v4257_v3  ;;  %v4446_v3 = vld [vmem:[#allocation9 + $0x8a0] sm:$0xff] }
0x1601   :  { %10453 = vmatprep.subr.mxu0 %v4256_v59 }
0x1602   :  { %10454 = vmatpush3.msra.mxu0 %v4256_v59  ;;  %v4445_v59 = vld [vmem:[#allocation9 + $0x840] sm:$0xff] }
0x1603   :  { %10455 = vmatprep.subr.mxu0 %v4255_v40 }
0x1604   :  { %10456 = vmatpush3.msra.mxu0 %v4255_v40  ;;  %v4444_v40 = vld [vmem:[#allocation9 + $0x7e0] sm:$0xff] }
0x1605   :  { %10457 = vmatprep.subr.mxu0 %v4254_v13 }
0x1606   :  { %10458 = vmatpush3.msra.mxu0 %v4254_v13  ;;  %v4443_v13 = vld [vmem:[#allocation9 + $0x780] sm:$0xff] }
0x1607   :  { %10459 = vmatprep.subr.mxu0 %v4253_v14 }
0x1608   :  { %10460 = vmatpush3.msra.mxu0 %v4253_v14  ;;  %v4442_v14 = vld [vmem:[#allocation9 + $0x720] sm:$0xff] }
0x1609   :  { %10461 = vmatprep.subr.mxu0 %v4252_v38 }
0x160a   :  { %10462 = vmatpush3.msra.mxu0 %v4252_v38  ;;  %v4441_v38 = vld [vmem:[#allocation9 + $0x6c0] sm:$0xff] }
0x160b   :  { %10463 = vmatprep.subr.mxu0 %v4251_v20 }
0x160c   :  { %10464 = vmatpush3.msra.mxu0 %v4251_v20  ;;  %v4440_v20 = vld [vmem:[#allocation9 + $0x660] sm:$0xff] }
0x160d   :  { %10465 = vmatprep.subr.mxu0 %v4250_v30 }
0x160e   :  { %10466 = vmatpush3.msra.mxu0 %v4250_v30  ;;  %v4439_v30 = vld [vmem:[#allocation9 + $0x600] sm:$0xff] }
0x160f   :  { %10467 = vmatprep.subr.mxu0 %v4249_v29 }
0x1610   :  { %10468 = vmatpush3.msra.mxu0 %v4249_v29 }
0x1611   :  { %10469 = vmatprep.subr.mxu0 %v4248_v10 }
0x1612   :  { %10470 = vmatpush3.msra.mxu0 %v4248_v10 }
0x1613   :  { %10471 = vmatprep.subr.mxu0 %v4247_v28 }
0x1614   :  { %10472 = vmatpush3.msra.mxu0 %v4247_v28 }
0x1615   :  { %10473 = vmatprep.subr.mxu0 %v4246_v31 }
0x1616   :  { %10474 = vmatpush3.msra.mxu0 %v4246_v31 }
0x1621   :  { %v10439_v34 = vpop.f32.mrf.mxu1 }
0x1622   :  { %v4197_v33 = vadd.f32 %v10439_v34, %v12800_v11 }
0x1623   :  { %v4191_v37 = vpop.f32.mrf.mxu1 }
0x1624   :  { %v4215_v42 = vmul.f32 %v4197_v33, %v4197_v33  ;;  %v4192_v44 = vadd.f32 %v12800_v11, %v4191_v37  ;;  %v4211_v21 = vmul.f32 0.5, %v4197_v33 }
0x1626   :  { %v4219_v35 = vmul.f32 %v4215_v42, %v4197_v33  ;;  %v4214_v46 = vmul.f32 %v4192_v44, %v4192_v44  ;;  %v4210_v54 = vmul.f32 0.5, %v4192_v44 }
0x1628   :  { %v4223_v48 = vmul.f32 0.044715, %v4219_v35  ;;  %v4218_v49 = vmul.f32 %v4214_v46, %v4192_v44 }
0x162a   :  { %v4227_v50 = vadd.f32 %v4223_v48, %v4197_v33  ;;  %v4222_v51 = vmul.f32 0.044715, %v4218_v49 }
0x162c   :  { %v4231_v53 = vmul.f32 0.7978846, %v4227_v50  ;;  %v4226_v6 = vadd.f32 %v4222_v51, %v4192_v44 }
0x162e   :  { %11546 = vtanh.f32 %v4231_v53  ;;  %v4230_v39 = vmul.f32 0.7978846, %v4226_v6 }
0x1630   :  { %11548 = vtanh.f32 %v4230_v39 }
0x163b   :  { %v11547_v55 = vpop.eup %11546 }
0x163c   :  { %v4239_v18 = vadd.f32 1.0, %v11547_v55 }
0x163d   :  { %v11549_v17 = vpop.eup %11548 }
0x163e   :  { %v4238_v57 = vadd.f32 1.0, %v11549_v17  ;;  %v4243_v63 = vmul.f32 %v4239_v18, %v4211_v21 }
0x1640   :  { %v4242_v60 = vmul.f32 %v4238_v57, %v4210_v54 }
0x1642   :  { %10475 = vmatprep.mubr.f32.mxu0 %v4242_v60 }
0x1643   :  { %10476 = vmatmul.mubr.f32.vlgmr.msra.gmra.mxu0 %v4243_v63 }
0x16b7   :  { %v10404_v1 = vpop.f32.mrf.mxu0 }
0x16b8   :  { %v4012_v19 = vadd.f32 %v10404_v1, %v12615_v24 }
0x16b9   :  { %v4002_v4 = vpop.f32.mrf.mxu0 }
0x16ba   :  { %v4016_v23 = vadd.f32 %v4012_v19, %v12295_v47  ;;  %v4011_v22 = vadd.f32 %v4002_v4, %v12619_v26 }
0x16bc   :  { %v12808_v15 = vadd.f32 %v12738_v16, %v4016_v23  ;;  %v4015_v25 = vadd.f32 %v4011_v22, %v12291_v45 }
0x16be   :  { %v12812_v56 = vadd.f32 %v12738_v16, %v4015_v25  ;;  %4036 = vadd.xlane.f32.xlu1 %v12808_v15  ;;  %v4045_v24 = vmul.f32 %v12808_v15, %v12808_v15 }
0x16c0   :  { %4034 = vadd.xlane.f32.xlu0 %v12812_v56  ;;  %v4044_v47 = vmul.f32 %v12812_v56, %v12812_v56 }
0x16c2   :  { %4052 = vadd.xlane.f32.xlu1 %v4045_v24 }
0x16c4   :  { %4050 = vadd.xlane.f32.xlu0 %v4044_v47 }
0x1703   :  { %v10477_v26 = vpop.f32.mrf.mxu0 }
0x1704   :  { %v4348_v45 = vadd.f32 %v10477_v26, %v12743_v8 }
0x1705   :  { %v4328_v36 = vpop.f32.mrf.mxu0 }
0x1706   :  { %v12824_v16 = vadd.f32 %v12820_v5, %v4348_v45  ;;  %v4347_v27 = vadd.f32 %v4328_v36, %v12747_v12  ;;  %v4452_v12 = vld [vmem:[#allocation9 + $0xae0] sm:$0xff] }
0x1707   :  { %10485 = vmatprep.subr.mxu1 %v4452_v12 }
0x1708   :  { %v12828_v2 = vadd.f32 %v12820_v5, %v4347_v27  ;;  %4368 = vadd.xlane.f32.xlu1 %v12824_v16  ;;  %v4379_v62 = vmul.f32 %v12824_v16, %v12824_v16  ;;  %10486 = vmatpush3.msra.mxu1 %v4452_v12 }
0x1709   :  { %10487 = vmatprep.subr.mxu1 %v4451_v7 }
0x170a   :  { %4366 = vadd.xlane.f32.xlu0 %v12828_v2  ;;  %v4378_v8 = vmul.f32 %v12828_v2, %v12828_v2  ;;  %10488 = vmatpush3.msra.mxu1 %v4451_v7 }
0x170b   :  { %10489 = vmatprep.subr.mxu1 %v4450_v9 }
0x170c   :  { %4384 = vadd.xlane.f32.xlu1 %v4379_v62  ;;  %10490 = vmatpush3.msra.mxu1 %v4450_v9  ;;  %v12847_v9 = vld [vmem:[#allocation7 + $0x1] ss:$0 sm:$0xff] }
0x170d   :  { %10491 = vmatprep.subr.mxu1 %v4449_v52 }
0x170e   :  { %4382 = vadd.xlane.f32.xlu0 %v4378_v8  ;;  %10492 = vmatpush3.msra.mxu1 %v4449_v52  ;;  %v12844_v8 = vld [vmem:[#allocation6 + $0x1] ss:$0 sm:$0xff] }
0x170f   :  { %10493 = vmatprep.subr.mxu1 %v4448_v32 }
0x1710   :  { %10494 = vmatpush3.msra.mxu1 %v4448_v32  ;;  %v4470_v32 = vld [vmem:[#allocation9 + $0xbc0] sm:$0xff] }
0x1711   :  { %10495 = vmatprep.subr.mxu1 %v4447_v61  ;;  %10519 = vmatprep.subr.mxu0 %v4470_v32 }
0x1712   :  { %10496 = vmatpush3.msra.mxu1 %v4447_v61  ;;  %10520 = vmatpush3.msra.mxu0 %v4470_v32  ;;  %v4479_v32 = vld [vmem:[#allocation9 + $0x940] sm:$0xff] }
0x1713   :  { %10497 = vmatprep.subr.mxu1 %v4446_v3 }
0x1714   :  { %10498 = vmatpush3.msra.mxu1 %v4446_v3  ;;  %v4469_v3 = vld [vmem:[#allocation9 + $0xb60] sm:$0xff] }
0x1715   :  { %10499 = vmatprep.subr.mxu1 %v4445_v59  ;;  %10521 = vmatprep.subr.mxu0 %v4469_v3 }
0x1716   :  { %10500 = vmatpush3.msra.mxu1 %v4445_v59  ;;  %10522 = vmatpush3.msra.mxu0 %v4469_v3  ;;  %v4478_v3 = vld [vmem:[#allocation9 + $0x8e0] sm:$0xff] }
0x1717   :  { %10501 = vmatprep.subr.mxu1 %v4444_v40 }
0x1718   :  { %10502 = vmatpush3.msra.mxu1 %v4444_v40  ;;  %v4468_v40 = vld [vmem:[#allocation9 + $0xb00] sm:$0xff] }
0x1719   :  { %10503 = vmatprep.subr.mxu1 %v4443_v13  ;;  %10523 = vmatprep.subr.mxu0 %v4468_v40 }
0x171a   :  { %10504 = vmatpush3.msra.mxu1 %v4443_v13  ;;  %10524 = vmatpush3.msra.mxu0 %v4468_v40  ;;  %v4467_v13 = vld [vmem:[#allocation9 + $0xaa0] sm:$0xff] }
0x171b   :  { %10505 = vmatprep.subr.mxu1 %v4442_v14  ;;  %10525 = vmatprep.subr.mxu0 %v4467_v13  ;;  %v4477_v40 = vld [vmem:[#allocation9 + $0x880] sm:$0xff] }
0x171c   :  { %10506 = vmatpush3.msra.mxu1 %v4442_v14  ;;  %10526 = vmatpush3.msra.mxu0 %v4467_v13  ;;  %v4466_v14 = vld [vmem:[#allocation9 + $0xa40] sm:$0xff] }
0x171d   :  { %10507 = vmatprep.subr.mxu1 %v4441_v38  ;;  %10527 = vmatprep.subr.mxu0 %v4466_v14  ;;  %v4476_v13 = vld [vmem:[#allocation9 + $0x820] sm:$0xff] }
0x171e   :  { %10508 = vmatpush3.msra.mxu1 %v4441_v38  ;;  %v4465_v38 = vld [vmem:[#allocation9 + $0x9e0] sm:$0xff]  ;;  %10528 = vmatpush3.msra.mxu0 %v4466_v14 }
0x171f   :  { %10509 = vmatprep.subr.mxu1 %v4440_v20  ;;  %10529 = vmatprep.subr.mxu0 %v4465_v38  ;;  %v4475_v14 = vld [vmem:[#allocation9 + $0x7c0] sm:$0xff] }
0x1720   :  { %10510 = vmatpush3.msra.mxu1 %v4440_v20  ;;  %v4464_v20 = vld [vmem:[#allocation9 + $0x980] sm:$0xff]  ;;  %10530 = vmatpush3.msra.mxu0 %v4465_v38 }
0x1721   :  { %10511 = vmatprep.subr.mxu1 %v4439_v30  ;;  %10531 = vmatprep.subr.mxu0 %v4464_v20  ;;  %v4474_v38 = vld [vmem:[#allocation9 + $0x760] sm:$0xff] }
0x1722   :  { %10512 = vmatpush3.msra.mxu1 %v4439_v30  ;;  %v4463_v30 = vld [vmem:[#allocation9 + $0x920] sm:$0xff]  ;;  %10532 = vmatpush3.msra.mxu0 %v4464_v20 }
0x1723   :  { %10533 = vmatprep.subr.mxu0 %v4463_v30  ;;  %v4473_v20 = vld [vmem:[#allocation9 + $0x700] sm:$0xff] }
0x1724   :  { %10534 = vmatpush3.msra.mxu0 %v4463_v30  ;;  %v4472_v30 = vld [vmem:[#allocation9 + $0x6a0] sm:$0xff] }
0x1747   :  { %v4037_v29 = vpop.xlane.xlu1 %4036 }
0x1748   :  { %v4041_v10 = vmul.f32 0.03125, %v4037_v29  ;;  %v4462_v29 = vld [vmem:[#allocation9 + $0x8c0] sm:$0xff] }
0x1749   :  { %v4035_v28 = vpop.xlane.xlu0 %4034  ;;  %10535 = vmatprep.subr.mxu0 %v4462_v29 }
0x174a   :  { %v4040_v31 = vmul.f32 0.03125, %v4035_v28  ;;  %v4061_v33 = vmul.f32 %v4041_v10, %v4041_v10  ;;  %v4069_v51 = vsub.f32 %v12808_v15, %v4041_v10  ;;  %v4461_v10 = vld [vmem:[#allocation9 + $0x860] sm:$0xff]  ;;  %10536 = vmatpush3.msra.mxu0 %v4462_v29 }
0x174b   :  { %v4053_v34 = vpop.xlane.xlu1 %4052  ;;  %v4460_v28 = vld [vmem:[#allocation9 + $0x800] sm:$0xff]  ;;  %10537 = vmatprep.subr.mxu0 %v4461_v10 }
0x174c   :  { %v4057_v37 = vmul.f32 0.03125, %v4053_v34  ;;  %v4060_v44 = vmul.f32 %v4040_v31, %v4040_v31  ;;  %v4068_v6 = vsub.f32 %v12812_v56, %v4040_v31  ;;  %10538 = vmatpush3.msra.mxu0 %v4461_v10  ;;  %v4459_v31 = vld [vmem:[#allocation9 + $0x7a0] sm:$0xff]  ;;  %v5176_v10 = vld [vmem:[#allocation9 + $0xbc8] sm:$0xff] }
0x174d   :  { %v4051_v42 = vpop.xlane.xlu0 %4050  ;;  %10539 = vmatprep.subr.mxu0 %v4460_v28  ;;  %v4458_v34 = vld [vmem:[#allocation9 + $0x740] sm:$0xff] }
0x174e   :  { %v4065_v35 = vsub.f32 %v4057_v37, %v4061_v33  ;;  %v4056_v46 = vmul.f32 0.03125, %v4051_v42  ;;  %10540 = vmatpush3.msra.mxu0 %v4460_v28  ;;  %v4457_v33 = vld [vmem:[#allocation9 + $0x6e0] sm:$0xff] }
0x174f   :  { %10541 = vmatprep.subr.mxu0 %v4459_v31  ;;  %v4456_v37 = vld [vmem:[#allocation9 + $0x680] sm:$0xff] }
0x1750   :  { %v4073_v48 = vadd.f32 1e-05, %v4065_v35  ;;  %v4064_v49 = vsub.f32 %v4056_v46, %v4060_v44  ;;  %10542 = vmatpush3.msra.mxu0 %v4459_v31  ;;  %v4455_v42 = vld [vmem:[#allocation9 + $0x620] sm:$0xff] }
0x1751   :  { %10543 = vmatprep.subr.mxu0 %v4458_v34  ;;  %v4471_v29 = vld [vmem:[#allocation9 + $0x640] sm:$0xff] }
0x1752   :  { %11550 = vrsqrt.f32 %v4073_v48  ;;  %v4072_v50 = vadd.f32 1e-05, %v4064_v49  ;;  %10544 = vmatpush3.msra.mxu0 %v4458_v34 }
0x1753   :  { %10545 = vmatprep.subr.mxu0 %v4457_v33 }
0x1754   :  { %11552 = vrsqrt.f32 %v4072_v50  ;;  %10546 = vmatpush3.msra.mxu0 %v4457_v33 }
0x1755   :  { %10547 = vmatprep.subr.mxu0 %v4456_v37 }
0x1756   :  { %10548 = vmatpush3.msra.mxu0 %v4456_v37 }
0x1757   :  { %10549 = vmatprep.subr.mxu0 %v4455_v42 }
0x1758   :  { %10550 = vmatpush3.msra.mxu0 %v4455_v42 }
0x175f   :  { %v11551_v53 = vpop.eup %11550 }
0x1760   :  { %v4081_v39 = vmul.f32 %v11551_v53, %v4069_v51 }
0x1761   :  { %v11553_v55 = vpop.eup %11552 }
0x1762   :  { %v4080_v17 = vmul.f32 %v11553_v55, %v4068_v6  ;;  %v4091_v18 = vmul.f32 %v12792_v43, %v4081_v39 }
0x1764   :  { %v4090_v54 = vmul.f32 %v12792_v43, %v4080_v17  ;;  %v4101_v21 = vadd.f32 %v12795_v58, %v4091_v18 }
0x1766   :  { %v4100_v57 = vadd.f32 %v12795_v58, %v4090_v54 }
0x1768   :  { %10440 = vmatprep.mubr.f32.mxu1 %v4100_v57 }
0x1769   :  { %10441 = vmatmul.mubr.f32.gmra.mxu1 %v4101_v21 }
0x1791   :  { %v4369_v60 = vpop.xlane.xlu1 %4368 }
0x1792   :  { %v4375_v63 = vmul.f32 0.03125, %v4369_v60 }
0x1793   :  { %v4367_v1 = vpop.xlane.xlu0 %4366 }
0x1794   :  { %v4374_v19 = vmul.f32 0.03125, %v4367_v1  ;;  %v4395_v23 = vmul.f32 %v4375_v63, %v4375_v63  ;;  %v4403_v58 = vsub.f32 %v12824_v16, %v4375_v63 }
0x1795   :  { %v4385_v4 = vpop.xlane.xlu1 %4384 }
0x1796   :  { %v4391_v22 = vmul.f32 0.03125, %v4385_v4  ;;  %v4394_v24 = vmul.f32 %v4374_v19, %v4374_v19  ;;  %v4402_v62 = vsub.f32 %v12828_v2, %v4374_v19 }
0x1797   :  { %v4383_v25 = vpop.xlane.xlu0 %4382 }
0x1798   :  { %v4399_v47 = vsub.f32 %v4391_v22, %v4395_v23  ;;  %v4390_v26 = vmul.f32 0.03125, %v4383_v25 }
0x179a   :  { %v4407_v45 = vadd.f32 1e-05, %v4399_v47  ;;  %v4398_v36 = vsub.f32 %v4390_v26, %v4394_v24  ;;  %v12863_v24 = vld [vmem:[#allocation10 + $0x10] ss:$0 sm:$0xff] }
0x179c   :  { %11554 = vrsqrt.f32 %v4407_v45  ;;  %v4406_v43 = vadd.f32 1e-05, %v4398_v36 }
0x179e   :  { %11556 = vrsqrt.f32 %v4406_v43 }
0x17a9   :  { %v11555_v27 = vpop.eup %11554 }
0x17aa   :  { %v4415_v41 = vmul.f32 %v11555_v27, %v4403_v58 }
0x17ab   :  { %v11557_v0 = vpop.eup %11556 }
0x17ac   :  { %v4414_v12 = vmul.f32 %v11557_v0, %v4402_v62  ;;  %v4425_v7 = vmul.f32 %v12844_v8, %v4415_v41  ;;  %v4485_v62 = vld [vmem:[#allocation9 + $0xb80] sm:$0xff] }
0x17ad   :  { %v4484_v41 = vld [vmem:[#allocation9 + $0xb20] sm:$0xff] }
0x17ae   :  { %v4424_v52 = vmul.f32 %v12844_v8, %v4414_v12  ;;  %v12854_v59 = vadd.f32 %v12847_v9, %v4425_v7  ;;  %v4483_v0 = vld [vmem:[#allocation9 + $0xac0] sm:$0xff] }
0x17af   :  { %v4482_v12 = vld [vmem:[#allocation9 + $0xa60] sm:$0xff] }
0x17b0   :  { %v12851_v61 = vadd.f32 %v12847_v9, %v4424_v52  ;;  %v4481_v7 = vld [vmem:[#allocation9 + $0xa00] sm:$0xff] }
0x17b1   :  { %v4480_v52 = vld [vmem:[#allocation9 + $0x9a0] sm:$0xff] }
0x17b2   :  { %10513 = vmatprep.mubr.f32.mxu1 %v12851_v61 }
0x17b3   :  { %10514 = vmatmul.mubr.f32.vlgmr.msra.gmra.mxu1 %v12854_v59 }
0x1829   :  { %v10442_v44 = vpop.f32.mrf.mxu1 }
0x182a   :  { %v4207_v35 = vadd.f32 %v10442_v44, %v12800_v11 }
0x182b   :  { %v4201_v46 = vpop.f32.mrf.mxu1 }
0x182c   :  { %v4217_v48 = vmul.f32 %v4207_v35, %v4207_v35  ;;  %v4202_v49 = vadd.f32 %v12800_v11, %v4201_v46  ;;  %v4213_v19 = vmul.f32 0.5, %v4207_v35 }
0x182e   :  { %v4221_v50 = vmul.f32 %v4217_v48, %v4207_v35  ;;  %v4216_v51 = vmul.f32 %v4202_v49, %v4202_v49  ;;  %v4212_v63 = vmul.f32 0.5, %v4202_v49 }
0x1830   :  { %v4225_v53 = vmul.f32 0.044715, %v4221_v50  ;;  %v4220_v6 = vmul.f32 %v4216_v51, %v4202_v49 }
0x1832   :  { %v4229_v39 = vadd.f32 %v4225_v53, %v4207_v35  ;;  %v4224_v55 = vmul.f32 0.044715, %v4220_v6 }
0x1834   :  { %v4233_v17 = vmul.f32 0.7978846, %v4229_v39  ;;  %v4228_v18 = vadd.f32 %v4224_v55, %v4202_v49 }
0x1836   :  { %v4232_v54 = vmul.f32 0.7978846, %v4228_v18  ;;  %11558 = vtanh.f32 %v4233_v17 }
0x1838   :  { %11560 = vtanh.f32 %v4232_v54 }
0x1843   :  { %v11559_v57 = vpop.eup %11558 }
0x1844   :  { %v4241_v60 = vadd.f32 1.0, %v11559_v57 }
0x1845   :  { %v11561_v21 = vpop.eup %11560 }
0x1846   :  { %v4240_v1 = vadd.f32 1.0, %v11561_v21  ;;  %v4245_v23 = vmul.f32 %v4241_v60, %v4213_v19  ;;  %v12887_v19 = vld [vmem:[#allocation10 + $0xc] ss:$0 sm:$0xff] }
0x1848   :  { %v4244_v4 = vmul.f32 %v4240_v1, %v4212_v63 }
0x184a   :  { %10478 = vmatprep.mubr.f32.mxu0 %v4244_v4 }
0x184b   :  { %10479 = vmatmul.mubr.f32.gmra.mxu0 %v4245_v23 }
0x184c   :  { %10551 = vmatprep.mubr.f32.mxu0 %v12851_v61 }
0x184f   :  { %10552 = vmatmul.mubr.f32.vlgmr.msra.gmra.mxu0 %v12854_v59 }
0x1873   :  { %v10515_v54 = vpop.f32.mrf.mxu1 }
0x1875   :  { %v4580_v63 = vpop.f32.mrf.mxu1 }
0x1876   :  { %v4581_v23 = vadd.f32 %v12887_v19, %v4580_v63 }
0x190b   :  { %v10480_v11 = vpop.f32.mrf.mxu0 }
0x190c   :  { %v4350_v22 = vadd.f32 %v10480_v11, %v12808_v15  ;;  %v5175_v11 = vld [vmem:[#allocation9 + $0xb68] sm:$0xff] }
0x190d   :  { %v4338_v25 = vpop.f32.mrf.mxu0 }
0x190e   :  { %v12866_v47 = vadd.f32 %v12820_v5, %v4350_v22  ;;  %v4349_v26 = vadd.f32 %v4338_v25, %v12812_v56  ;;  %v5173_v22 = vld [vmem:[#allocation9 + $0xaa8] sm:$0xff] }
0x190f   :  { %v10553_v45 = vpop.f32.mrf.mxu0  ;;  %v5172_v25 = vld [vmem:[#allocation9 + $0xa48] sm:$0xff] }
0x1910   :  { %v12870_v36 = vadd.f32 %v12820_v5, %v4349_v26  ;;  %v4677_v43 = vadd.f32 %v10553_v45, %v12863_v24  ;;  %4372 = vadd.xlane.f32.xlu1 %v12866_v47  ;;  %v4381_v15 = vmul.f32 %v12866_v47, %v12866_v47  ;;  %v4486_v5 = vld [vmem:[#allocation9 + $0xbe0] sm:$0xff]  ;;  %v5171_v26 = vld [vmem:[#allocation9 + $0x9e8] sm:$0xff] }
0x1911   :  { %v4671_v58 = vpop.f32.mrf.mxu0  ;;  %10557 = vmatprep.subr.mxu1 %v4486_v5  ;;  %v5170_v45 = vld [vmem:[#allocation9 + $0x988] sm:$0xff] }
0x1912   :  { %v4672_v27 = vadd.f32 %v12863_v24, %v4671_v58  ;;  %4370 = vadd.xlane.f32.xlu0 %v12870_v36  ;;  %10595 = vmatprep.subr.mxu0 %v4677_v43  ;;  %v4380_v56 = vmul.f32 %v12870_v36, %v12870_v36  ;;  %v5168_v58 = vld [vmem:[#allocation9 + $0x8c8] sm:$0xff] }
0x1913   :  { %10596 = vmatpush3.xpose.msra.mxu0 %v4677_v43  ;;  %10558 = vmatpush3.msra.mxu1 %v4486_v5  ;;  %v5169_v43 = vld [vmem:[#allocation9 + $0x928] sm:$0xff] }
0x1914   :  { %4388 = vadd.xlane.f32.xlu1 %v4381_v15  ;;  %10597 = vmatprep.subr.mxu0 %v4672_v27  ;;  %v5166_v15 = vld [vmem:[#allocation9 + $0x808] sm:$0xff] }
0x1915   :  { %10559 = vmatprep.subr.mxu1 %v4485_v62  ;;  %v5164_v5 = vld [vmem:[#allocation9 + $0x748] sm:$0xff] }
0x1916   :  { %4386 = vadd.xlane.f32.xlu0 %v4380_v56  ;;  %10560 = vmatpush3.msra.mxu1 %v4485_v62  ;;  %v5165_v56 = vld [vmem:[#allocation9 + $0x7a8] sm:$0xff] }
0x1917   :  { %10598 = vmatpush3.xpose.msra.mxu0 %v4672_v27  ;;  %10561 = vmatprep.subr.mxu1 %v4484_v41  ;;  %v5167_v27 = vld [vmem:[#allocation9 + $0x868] sm:$0xff] }
0x1918   :  { %10562 = vmatpush3.msra.mxu1 %v4484_v41  ;;  %v5163_v62 = vld [vmem:[#allocation9 + $0x6e8] sm:$0xff] }
0x1919   :  { %10563 = vmatprep.subr.mxu1 %v4483_v0  ;;  %v5162_v41 = vld [vmem:[#allocation9 + $0x688] sm:$0xff] }
0x191a   :  { %10564 = vmatpush3.msra.mxu1 %v4483_v0  ;;  %v5161_v0 = vld [vmem:[#allocation9 + $0x628] sm:$0xff] }
0x191b   :  { %10565 = vmatprep.subr.mxu1 %v4482_v12 }
0x191c   :  { %10566 = vmatpush3.msra.mxu1 %v4482_v12 }
0x191d   :  { %10567 = vmatprep.subr.mxu1 %v4481_v7 }
0x191e   :  { %10568 = vmatpush3.msra.mxu1 %v4481_v7 }
0x191f   :  { %10569 = vmatprep.subr.mxu1 %v4480_v52 }
0x1920   :  { %10570 = vmatpush3.msra.mxu1 %v4480_v52 }
0x1921   :  { %10571 = vmatprep.subr.mxu1 %v4479_v32 }
0x1922   :  { %10572 = vmatpush3.msra.mxu1 %v4479_v32 }
0x1923   :  { %10573 = vmatprep.subr.mxu1 %v4478_v3 }
0x1924   :  { %10574 = vmatpush3.msra.mxu1 %v4478_v3  ;;  %v8463_v3 = vld [vmem:[#allocation10 + $0x14] ss:$0 sm:$0xff] }
0x1925   :  { %10575 = vmatprep.subr.mxu1 %v4477_v40 }
0x1926   :  { %10576 = vmatpush3.msra.mxu1 %v4477_v40 }
0x1927   :  { %10577 = vmatprep.subr.mxu1 %v4476_v13 }
0x1928   :  { %10578 = vmatpush3.msra.mxu1 %v4476_v13 }
0x1929   :  { %10579 = vmatprep.subr.mxu1 %v4475_v14 }
0x192a   :  { %10580 = vmatpush3.msra.mxu1 %v4475_v14 }
0x192b   :  { %10581 = vmatprep.subr.mxu1 %v4474_v38 }
0x192c   :  { %10582 = vmatpush3.msra.mxu1 %v4474_v38 }
0x192d   :  { %10583 = vmatprep.subr.mxu1 %v4473_v20 }
0x192e   :  { %10584 = vmatpush3.msra.mxu1 %v4473_v20 }
0x192f   :  { %10585 = vmatprep.subr.mxu1 %v4472_v30 }
0x1930   :  { %10586 = vmatpush3.msra.mxu1 %v4472_v30 }
0x1931   :  { %10587 = vmatprep.subr.mxu1 %v4471_v29 }
0x1932   :  { %10588 = vmatpush3.msra.mxu1 %v4471_v29 }
0x1933   :  { %10661 = vmatprep.subr.mxu1 %v5176_v10 }
0x1999   :  { %v4373_v28 = vpop.xlane.xlu1 %4372 }
0x199a   :  { %v4377_v31 = vmul.f32 0.03125, %v4373_v28  ;;  %v12913_v28 = vld [vmem:[%s13482_s29 + $0x8] sm:$0xff] }
0x199b   :  { %v4371_v34 = vpop.xlane.xlu0 %4370 }
0x199c   :  { %v4376_v33 = vmul.f32 0.03125, %v4371_v34  ;;  %v4397_v42 = vmul.f32 %v4377_v31, %v4377_v31  ;;  %v4405_v6 = vsub.f32 %v12866_v47, %v4377_v31 }
0x199d   :  { %v4389_v37 = vpop.xlane.xlu1 %4388 }
0x199e   :  { %v4393_v44 = vmul.f32 0.03125, %v4389_v37  ;;  %v4396_v46 = vmul.f32 %v4376_v33, %v4376_v33  ;;  %v4404_v55 = vsub.f32 %v12870_v36, %v4376_v33 }
0x199f   :  { %v4387_v35 = vpop.xlane.xlu0 %4386 }
0x19a0   :  { %v4401_v48 = vsub.f32 %v4393_v44, %v4397_v42  ;;  %v4392_v49 = vmul.f32 0.03125, %v4387_v35  ;;  %v12921_v44 = vld [vmem:[%s13482_s29] sm:$0xff] }
0x19a2   :  { %v4409_v50 = vadd.f32 1e-05, %v4401_v48  ;;  %v4400_v51 = vsub.f32 %v4392_v49, %v4396_v46 }
0x19a4   :  { %11562 = vrsqrt.f32 %v4409_v50  ;;  %v4408_v53 = vadd.f32 1e-05, %v4400_v51  ;;  %v12925_v50 = vld [vmem:[#allocation10 + $0x11] ss:$0 sm:$0xff] }
0x19a6   :  { %11564 = vrsqrt.f32 %v4408_v53 }
0x19b1   :  { %v11563_v39 = vpop.eup %11562 }
0x19b2   :  { %v4417_v17 = vmul.f32 %v11563_v39, %v4405_v6 }
0x19b3   :  { %v11565_v18 = vpop.eup %11564 }
0x19b4   :  { %v4416_v57 = vmul.f32 %v11565_v18, %v4404_v55  ;;  %v4427_v21 = vmul.f32 %v12844_v8, %v4417_v17 }
0x19b6   :  { %v4426_v60 = vmul.f32 %v12844_v8, %v4416_v57  ;;  %v12890_v4 = vadd.f32 %v12847_v9, %v4427_v21  ;;  %v4586_v8 = vadd.f32 %v10515_v54, %v12887_v19 }
0x19b8   :  { %v12885_v1 = vadd.f32 %v12847_v9, %v4426_v60  ;;  %v5174_v9 = vld [vmem:[#allocation9 + $0xb08] sm:$0xff] }
0x19ba   :  { %10516 = vmatprep.mubr.f32.mxu1 %v12885_v1  ;;  %10554 = vmatprep.mubr.f32.mxu0 %v12885_v1 }
0x19bb   :  { %10517 = vmatmul.mubr.f32.gmra.mxu1 %v12890_v4  ;;  %10555 = vmatmul.mubr.f32.gmra.mxu0 %v12890_v4 }
0x19bc   :  { %10589 = vmatprep.mubr.f32.mxu1 %v12851_v61  ;;  %10599 = vmatprep.mubr.f32.mxu0 %v4581_v23 }
0x19bf   :  { %10590 = vmatmul.mubr.f32.vlgmr.msra.gmra.mxu1 %v12854_v59  ;;  %10600 = vmatmul.mubr.f32.vlgmr.msra.gmra.mxu0 %v4586_v8 }
0x19c0   :  { %10662 = vmatpush3.msra.mxu1 %v5176_v10  ;;  %10592 = vmatprep.mubr.f32.mxu1 %v12885_v1 }
0x19c1   :  { %10663 = vmatprep.subr.mxu1 %v5175_v11 }
0x19c2   :  { %10664 = vmatpush3.msra.mxu1 %v5175_v11 }
0x19c3   :  { %10665 = vmatprep.subr.mxu1 %v5174_v9  ;;  %10593 = vmatmul.mubr.f32.gmra.mxu1 %v12890_v4 }
0x19c4   :  { %10666 = vmatpush3.msra.mxu1 %v5174_v9  ;;  %10693 = vmatprep.mubr.f32.mxu1 %v12851_v61 }
0x19c5   :  { %10667 = vmatprep.subr.mxu1 %v5173_v22 }
0x19c6   :  { %10668 = vmatpush3.msra.mxu1 %v5173_v22 }
0x19c7   :  { %10669 = vmatprep.subr.mxu1 %v5172_v25 }
0x19c8   :  { %10670 = vmatpush3.msra.mxu1 %v5172_v25 }
0x19c9   :  { %10671 = vmatprep.subr.mxu1 %v5171_v26 }
0x19ca   :  { %10672 = vmatpush3.msra.mxu1 %v5171_v26 }
0x19cb   :  { %10673 = vmatprep.subr.mxu1 %v5170_v45 }
0x19cc   :  { %10674 = vmatpush3.msra.mxu1 %v5170_v45 }
0x19cd   :  { %10675 = vmatprep.subr.mxu1 %v5169_v43 }
0x19ce   :  { %10676 = vmatpush3.msra.mxu1 %v5169_v43 }
0x19cf   :  { %10677 = vmatprep.subr.mxu1 %v5168_v58 }
0x19d0   :  { %10678 = vmatpush3.msra.mxu1 %v5168_v58 }
0x19d1   :  { %10679 = vmatprep.subr.mxu1 %v5167_v27 }
0x19d2   :  { %10680 = vmatpush3.msra.mxu1 %v5167_v27 }
0x19d3   :  { %10681 = vmatprep.subr.mxu1 %v5166_v15 }
0x19d4   :  { %10682 = vmatpush3.msra.mxu1 %v5166_v15 }
0x19d5   :  { %10683 = vmatprep.subr.mxu1 %v5165_v56 }
0x19d6   :  { %10684 = vmatpush3.msra.mxu1 %v5165_v56 }
0x19d7   :  { %10685 = vmatprep.subr.mxu1 %v5164_v5 }
0x19d8   :  { %10686 = vmatpush3.msra.mxu1 %v5164_v5 }
0x19d9   :  { %10687 = vmatprep.subr.mxu1 %v5163_v62 }
0x19da   :  { %10688 = vmatpush3.msra.mxu1 %v5163_v62 }
0x19db   :  { %10689 = vmatprep.subr.mxu1 %v5162_v41 }
0x19dc   :  { %10690 = vmatpush3.msra.mxu1 %v5162_v41 }
0x19dd   :  { %10691 = vmatprep.subr.mxu1 %v5161_v0 }
0x19de   :  { %10692 = vmatpush3.msra.mxu1 %v5161_v0 }
0x19df   :  { %10694 = vmatmul.mubr.f32.vlgmr.msra.gmra.mxu1 %v12854_v59 }
0x19e0   :  { %10696 = vmatprep.mubr.f32.mxu1 %v12885_v1 }
0x19e3   :  { %10697 = vmatmul.mubr.f32.gmra.mxu1 %v12890_v4 }
0x1a7b   :  { %v12906_v12 = vpop.f32.mrf.mxu1  ;;  %v10556_v7 = vpop.f32.mrf.mxu0 }
0x1a7c   :  { %v4687_v33 = vadd.f32 %v10556_v7, %v12863_v24  ;;  %v4596_v56 = vadd.f32 %v12906_v12, %v12887_v19 }
0x1a7d   :  { %v4590_v52 = vpop.f32.mrf.mxu1  ;;  %v12908_v32 = vpop.f32.mrf.mxu0 }
0x1a7e   :  { %v4591_v27 = vadd.f32 %v12887_v19, %v4590_v52  ;;  %v4682_v15 = vadd.f32 %v12863_v24, %v12908_v32  ;;  %v12948_v52 = vld [vmem:[%s13482_s29 + $0x18] sm:$0xff]  ;;  %v12955_v32 = vld [vmem:[%s13482_s29 + $0x10] sm:$0xff] }
0x1a7f   :  { %v10591_v40 = vpop.f32.mrf.mxu1  ;;  %v10601_v13 = vpop.f32.mrf.mxu0 }
0x1a80   :  { %v4768_v14 = vadd.f32 %v10591_v40, %v8463_v3  ;;  %v4857_v38 = vmul.f32 0.35355338, %v10601_v13 }
0x1a81   :  { %v4762_v20 = vpop.f32.mrf.mxu1  ;;  %v4847_v30 = vpop.f32.mrf.mxu0 }
0x1a82   :  { %v4763_v29 = vadd.f32 %v8463_v3, %v4762_v20  ;;  %v4856_v10 = vmul.f32 0.35355338, %v4847_v30  ;;  %10602 = vmatprep.subr.mxu0 %v4768_v14  ;;  %v4859_v31 = vadd.f32 %v12913_v28, %v4857_v38 }
0x1a83   :  { %v10594_v34 = vpop.f32.mrf.mxu1  ;;  %10603 = vmatpush3.msra.mxu0 %v4768_v14 }
0x1a84   :  { %v4778_v37 = vadd.f32 %v10594_v34, %v8463_v3  ;;  %10604 = vmatprep.subr.mxu0 %v4763_v29  ;;  %v4863_v42 = vsel %vm1004_vm6, %v4859_v31, -inf  ;;  %v4858_v35 = vadd.f32 %v12921_v44, %v4856_v10 }
0x1a85   :  { %4864 = vmax.xlane.f32.xlu1 %v4863_v42  ;;  %v4772_v46 = vpop.f32.mrf.mxu1  ;;  %10605 = vmatpush3.msra.mxu0 %v4763_v29 }
0x1a86   :  { %v4773_v48 = vadd.f32 %v8463_v3, %v4772_v46  ;;  %10609 = vmatprep.subr.mxu0 %v4687_v33  ;;  %v4860_v49 = vsel %vm1004_vm6, %v4858_v35, -inf }
0x1a87   :  { %4861 = vmax.xlane.f32.xlu0 %v4860_v49 }
0x1a9f   :  { %v10695_v51 = vpop.f32.mrf.mxu1 }
0x1aa0   :  { %v5381_v53 = vadd.f32 %v10695_v51, %v12925_v50 }
0x1aa1   :  { %v5375_v6 = vpop.f32.mrf.mxu1 }
0x1aa2   :  { %v5376_v39 = vadd.f32 %v12925_v50, %v5375_v6  ;;  %10737 = vmatprep.subr.mxu1 %v5381_v53  ;;  %v5158_v6 = vld [vmem:[#allocation9 + $0xae8] sm:$0xff] }
0x1aa3   :  { %v10698_v55 = vpop.f32.mrf.mxu1  ;;  %10738 = vmatpush3.xpose.msra.mxu1 %v5381_v53  ;;  %v5159_v53 = vld [vmem:[#allocation9 + $0xb48] sm:$0xff] }
0x1aa4   :  { %v12930_v17 = vadd.f32 %v10698_v55, %v12925_v50  ;;  %10739 = vmatprep.subr.mxu1 %v5376_v39  ;;  %v5156_v55 = vld [vmem:[#allocation9 + $0xa28] sm:$0xff] }
0x1aa7   :  { %10740 = vmatpush3.xpose.msra.mxu1 %v5376_v39  ;;  %v5157_v39 = vld [vmem:[#allocation9 + $0xa88] sm:$0xff] }
0x1b0e   :  { %v4865_v18 = vpop.xlane.xlu1 %4864 }
0x1b0f   :  { %v4867_v54 = vsub.f32 %v4859_v31, %v4865_v18  ;;  %v5155_v18 = vld [vmem:[#allocation9 + $0x9c8] sm:$0xff] }
0x1b10   :  { %v4862_v57 = vpop.xlane.xlu0 %4861 }
0x1b11   :  { %v4870_v21 = vmul.f32 1.442695, %v4867_v54  ;;  %v4866_v60 = vsub.f32 %v4858_v35, %v4862_v57  ;;  %v5154_v54 = vld [vmem:[#allocation9 + $0x968] sm:$0xff] }
0x1b12   :  { %v5153_v57 = vld [vmem:[#allocation9 + $0x908] sm:$0xff] }
0x1b13   :  { %11566 = vpow2.f32 %v4870_v21  ;;  %v4868_v63 = vmul.f32 1.442695, %v4866_v60  ;;  %v5152_v21 = vld [vmem:[#allocation9 + $0x8a8] sm:$0xff] }
0x1b14   :  { %v5151_v60 = vld [vmem:[#allocation9 + $0x848] sm:$0xff] }
0x1b15   :  { %11568 = vpow2.f32 %v4868_v63  ;;  %v5150_v63 = vld [vmem:[#allocation9 + $0x7e8] sm:$0xff] }
0x1b20   :  { %v11567_v23 = vpop.eup %11566 }
0x1b21   :  { %v4875_v8 = vsel %vm1004_vm6, %v11567_v23, 0.0 }
0x1b22   :  { %v11569_v11 = vpop.eup %11568  ;;  %4876 = vadd.xlane.f32.xlu1 %v4875_v8  ;;  %v5148_v8 = vld [vmem:[#allocation9 + $0x728] sm:$0xff] }
0x1b23   :  { %v4872_v9 = vsel %vm1004_vm6, %v11569_v11, 0.0 }
0x1b24   :  { %4873 = vadd.xlane.f32.xlu0 %v4872_v9  ;;  %v5146_v9 = vld [vmem:[#allocation9 + $0x668] sm:$0xff] }
0x1bab   :  { %v4877_v22 = vpop.xlane.xlu1 %4876 }
0x1bac   :  { %11570 = vrcp.f32 %v4877_v22  ;;  %v5145_v22 = vld [vmem:[#allocation9 + $0x608] sm:$0xff] }
0x1bad   :  { %v4874_v25 = vpop.xlane.xlu0 %4873 }
0x1bae   :  { %11572 = vrcp.f32 %v4874_v25  ;;  %v5192_v25 = vld [vmem:[#allocation9 + $0xbe8] sm:$0xff] }
0x1bb9   :  { %v11571_v26 = vpop.eup %11570 }
0x1bba   :  { %v4881_v58 = vmul.f32 %v11571_v26, %v11567_v23  ;;  %v5149_v23 = vld [vmem:[#allocation9 + $0x788] sm:$0xff] }
0x1bbb   :  { %v11573_v45 = vpop.eup %11572  ;;  %v5191_v26 = vld [vmem:[#allocation9 + $0xb88] sm:$0xff] }
0x1bbc   :  { %v4880_v43 = vmul.f32 %v11573_v45, %v11569_v11  ;;  %v5147_v11 = vld [vmem:[#allocation9 + $0x6c8] sm:$0xff] }
0x1bbd   :  { %v5190_v45 = vld [vmem:[#allocation9 + $0xb28] sm:$0xff] }
0x1bbe   :  { %10606 = vmatprep.mubr.msk.f32.mxu0 %vm1004_vm6, %v4880_v43  ;;  %v5189_v43 = vld [vmem:[#allocation9 + $0xac8] sm:$0xff] }
0x1bbf   :  { %10607 = vmatmul.mubr.msk.f32.vlgmr.msra.gmra.mxu0 %vm1004_vm6, %v4881_v58  ;;  %v5188_v58 = vld [vmem:[#allocation9 + $0xa68] sm:$0xff] }
0x1bc0   :  { %10610 = vmatpush3.xpose.msra.mxu0 %v4687_v33  ;;  %10613 = vmatprep.mubr.f32.mxu0 %v4591_v27  ;;  %v5187_v27 = vld [vmem:[#allocation9 + $0xa08] sm:$0xff] }
0x1bc1   :  { %10611 = vmatprep.subr.mxu0 %v4682_v15 }
0x1bc4   :  { %10612 = vmatpush3.xpose.msra.mxu0 %v4682_v15  ;;  %v5186_v15 = vld [vmem:[#allocation9 + $0x9a8] sm:$0xff] }
0x1bc5   :  { %10616 = vmatprep.subr.mxu0 %v4778_v37 }
0x1bc7   :  { %10614 = vmatmul.mubr.f32.vlgmr.msra.gmra.mxu0 %v4596_v56  ;;  %v5185_v56 = vld [vmem:[#allocation9 + $0x948] sm:$0xff] }
0x1bc8   :  { %10617 = vmatpush3.msra.mxu0 %v4778_v37  ;;  %v5160_v37 = vld [vmem:[#allocation9 + $0xba8] sm:$0xff] }
0x1bc9   :  { %10618 = vmatprep.subr.mxu0 %v4773_v48 }
0x1bca   :  { %10619 = vmatpush3.msra.mxu0 %v4773_v48 }
0x1bcb   :  { %10623 = vmatprep.subr.mxu0 %v5160_v37 }
0x1c7f   :  { %v12941_v5 = vpop.f32.mrf.mxu0 }
0x1c81   :  { %v12943_v62 = vpop.f32.mrf.mxu0 }
0x1c87   :  { %v10615_v41 = vpop.f32.mrf.mxu0 }
0x1c88   :  { %v5039_v24 = vmul.f32 0.35355338, %v10615_v41  ;;  %v5184_v41 = vld [vmem:[#allocation9 + $0x8e8] sm:$0xff] }
0x1c89   :  { %v5029_v0 = vpop.f32.mrf.mxu0 }
0x1c8a   :  { %v5038_v7 = vmul.f32 0.35355338, %v5029_v0  ;;  %v5041_v19 = vadd.f32 %v12948_v52, %v5039_v24  ;;  %v5183_v24 = vld [vmem:[#allocation9 + $0x888] sm:$0xff] }
0x1c8b   :  { %v5182_v0 = vld [vmem:[#allocation9 + $0x828] sm:$0xff] }
0x1c8c   :  { %v5045_v12 = vsel %vm1004_vm6, %v5041_v19, -inf  ;;  %v5040_v3 = vadd.f32 %v12955_v32, %v5038_v7  ;;  %v5181_v7 = vld [vmem:[#allocation9 + $0x7c8] sm:$0xff] }
0x1c8d   :  { %5046 = vmax.xlane.f32.xlu1 %v5045_v12  ;;  %v5179_v12 = vld [vmem:[#allocation9 + $0x708] sm:$0xff] }
0x1c8e   :  { %v5042_v40 = vsel %vm1004_vm6, %v5040_v3, -inf }
0x1c8f   :  { %5043 = vmax.xlane.f32.xlu0 %v5042_v40  ;;  %v5177_v40 = vld [vmem:[#allocation9 + $0x648] sm:$0xff] }
0x1d16   :  { %v5047_v13 = vpop.xlane.xlu1 %5046 }
0x1d17   :  { %v5049_v14 = vsub.f32 %v5041_v19, %v5047_v13  ;;  %v5180_v19 = vld [vmem:[#allocation9 + $0x768] sm:$0xff]  ;;  %v4507_v13 = vld [vmem:[#allocation12 + $0x278] sm:$0xff] }
0x1d18   :  { %v5044_v38 = vpop.xlane.xlu0 %5043 }
0x1d19   :  { %v5052_v20 = vmul.f32 1.442695, %v5049_v14  ;;  %v5048_v30 = vsub.f32 %v5040_v3, %v5044_v38  ;;  %v5178_v3 = vld [vmem:[#allocation9 + $0x6a8] sm:$0xff]  ;;  %v4505_v38 = vld [vmem:[#allocation12 + $0x268] sm:$0xff] }
0x1d1a   :  { %v4506_v14 = vld [vmem:[#allocation12 + $0x270] sm:$0xff] }
0x1d1b   :  { %11574 = vpow2.f32 %v5052_v20  ;;  %v5050_v29 = vmul.f32 1.442695, %v5048_v30  ;;  %v4504_v20 = vld [vmem:[#allocation12 + $0x260] sm:$0xff]  ;;  %v4503_v30 = vld [vmem:[#allocation12 + $0x258] sm:$0xff] }
0x1d1d   :  { %11576 = vpow2.f32 %v5050_v29  ;;  %v4502_v29 = vld [vmem:[#allocation12 + $0x250] sm:$0xff] }
0x1d28   :  { %v11575_v10 = vpop.eup %11574 }
0x1d29   :  { %v5057_v31 = vsel %vm1004_vm6, %v11575_v10, 0.0 }
0x1d2a   :  { %v11577_v34 = vpop.eup %11576  ;;  %5058 = vadd.xlane.f32.xlu1 %v5057_v31  ;;  %v4500_v31 = vld [vmem:[#allocation12 + $0x240] sm:$0xff] }
0x1d2b   :  { %v5054_v33 = vsel %vm1004_vm6, %v11577_v34, 0.0 }
0x1d2c   :  { %5055 = vadd.xlane.f32.xlu0 %v5054_v33  ;;  %v4498_v33 = vld [vmem:[#allocation12 + $0x230] sm:$0xff] }
0x1db3   :  { %v5059_v42 = vpop.xlane.xlu1 %5058 }
0x1db4   :  { %11578 = vrcp.f32 %v5059_v42  ;;  %v4495_v42 = vld [vmem:[#allocation12 + $0x218] sm:$0xff] }
0x1db5   :  { %v5056_v35 = vpop.xlane.xlu0 %5055 }
0x1db6   :  { %11580 = vrcp.f32 %v5056_v35  ;;  %v4494_v35 = vld [vmem:[#allocation12 + $0x210] sm:$0xff] }
0x1dc1   :  { %v11579_v46 = vpop.eup %11578 }
0x1dc2   :  { %v5063_v51 = vmul.f32 %v11579_v46, %v11575_v10  ;;  %v4501_v10 = vld [vmem:[#allocation12 + $0x248] sm:$0xff] }
0x1dc3   :  { %v11581_v48 = vpop.eup %11580  ;;  %v4493_v46 = vld [vmem:[#allocation12 + $0x208] sm:$0xff] }
0x1dc4   :  { %v5062_v49 = vmul.f32 %v11581_v48, %v11577_v34  ;;  %v4499_v34 = vld [vmem:[#allocation12 + $0x238] sm:$0xff]  ;;  %v4492_v48 = vld [vmem:[#allocation12 + $0x200] sm:$0xff] }
0x1dc6   :  { %10620 = vmatprep.mubr.msk.f32.mxu0 %vm1004_vm6, %v5062_v49 }
0x1dc7   :  { %10621 = vmatmul.mubr.msk.f32.vlgmr.msra.gmra.mxu0 %vm1004_vm6, %v5063_v51 }
0x1dc8   :  { %10624 = vmatpush3.msra.mxu0 %v5160_v37  ;;  %10655 = vmatprep.mubr.f32.mxu0 %v12851_v61  ;;  %v4497_v37 = vld [vmem:[#allocation12 + $0x228] sm:$0xff] }
0x1dc9   :  { %10625 = vmatprep.subr.mxu0 %v5159_v53 }
0x1dca   :  { %10626 = vmatpush3.msra.mxu0 %v5159_v53  ;;  %v6179_v53 = vld [vmem:[#allocation9 + $0xb70] sm:$0xff] }
0x1dcb   :  { %10627 = vmatprep.subr.mxu0 %v5158_v6 }
0x1dcc   :  { %10628 = vmatpush3.msra.mxu0 %v5158_v6  ;;  %v6178_v6 = vld [vmem:[#allocation9 + $0xb10] sm:$0xff] }
0x1dcd   :  { %10629 = vmatprep.subr.mxu0 %v5157_v39 }
0x1dce   :  { %10630 = vmatpush3.msra.mxu0 %v5157_v39  ;;  %v6177_v39 = vld [vmem:[#allocation9 + $0xab0] sm:$0xff] }
0x1dcf   :  { %10631 = vmatprep.subr.mxu0 %v5156_v55 }
0x1dd0   :  { %10632 = vmatpush3.msra.mxu0 %v5156_v55  ;;  %v6176_v55 = vld [vmem:[#allocation9 + $0xa50] sm:$0xff] }
0x1dd1   :  { %10633 = vmatprep.subr.mxu0 %v5155_v18 }
0x1dd2   :  { %10634 = vmatpush3.msra.mxu0 %v5155_v18  ;;  %v6175_v18 = vld [vmem:[#allocation9 + $0x9f0] sm:$0xff] }
0x1dd3   :  { %10635 = vmatprep.subr.mxu0 %v5154_v54 }
0x1dd4   :  { %10636 = vmatpush3.msra.mxu0 %v5154_v54  ;;  %v6174_v54 = vld [vmem:[#allocation9 + $0x990] sm:$0xff] }
0x1dd5   :  { %10637 = vmatprep.subr.mxu0 %v5153_v57 }
0x1dd6   :  { %10638 = vmatpush3.msra.mxu0 %v5153_v57  ;;  %v6173_v57 = vld [vmem:[#allocation9 + $0x930] sm:$0xff] }
0x1dd7   :  { %10639 = vmatprep.subr.mxu0 %v5152_v21 }
0x1dd8   :  { %10640 = vmatpush3.msra.mxu0 %v5152_v21  ;;  %v6172_v21 = vld [vmem:[#allocation9 + $0x8d0] sm:$0xff] }
0x1dd9   :  { %10641 = vmatprep.subr.mxu0 %v5151_v60 }
0x1dda   :  { %10642 = vmatpush3.msra.mxu0 %v5151_v60  ;;  %v6171_v60 = vld [vmem:[#allocation9 + $0x870] sm:$0xff] }
0x1ddb   :  { %10643 = vmatprep.subr.mxu0 %v5150_v63 }
0x1ddc   :  { %10644 = vmatpush3.msra.mxu0 %v5150_v63  ;;  %v6170_v63 = vld [vmem:[#allocation9 + $0x810] sm:$0xff] }
0x1ddd   :  { %10645 = vmatprep.subr.mxu0 %v5149_v23 }
0x1dde   :  { %10646 = vmatpush3.msra.mxu0 %v5149_v23  ;;  %v6169_v23 = vld [vmem:[#allocation9 + $0x7b0] sm:$0xff] }
0x1ddf   :  { %10647 = vmatprep.subr.mxu0 %v5148_v8 }
0x1de0   :  { %10648 = vmatpush3.msra.mxu0 %v5148_v8  ;;  %v6168_v8 = vld [vmem:[#allocation9 + $0x750] sm:$0xff] }
0x1de1   :  { %10649 = vmatprep.subr.mxu0 %v5147_v11 }
0x1de2   :  { %10650 = vmatpush3.msra.mxu0 %v5147_v11  ;;  %v6167_v11 = vld [vmem:[#allocation9 + $0x6f0] sm:$0xff] }
0x1de3   :  { %10651 = vmatprep.subr.mxu0 %v5146_v9 }
0x1de4   :  { %10652 = vmatpush3.msra.mxu0 %v5146_v9  ;;  %v6166_v9 = vld [vmem:[#allocation9 + $0x690] sm:$0xff] }
0x1de5   :  { %10653 = vmatprep.subr.mxu0 %v5145_v22 }
0x1de6   :  { %10654 = vmatpush3.msra.mxu0 %v5145_v22  ;;  %v6165_v22 = vld [vmem:[#allocation9 + $0x630] sm:$0xff] }
0x1de7   :  { %10656 = vmatmul.mubr.f32.vlgmr.msra.gmra.mxu0 %v12854_v59  ;;  %10699 = vmatprep.subr.mxu0 %v5192_v25 }
0x1de8   :  { %10658 = vmatprep.mubr.f32.mxu0 %v12885_v1  ;;  %10700 = vmatpush3.msra.mxu0 %v5192_v25 }
0x1de9   :  { %10701 = vmatprep.subr.mxu0 %v5191_v26 }
0x1dea   :  { %10702 = vmatpush3.msra.mxu0 %v5191_v26  ;;  %v8468_v26 = vld [vmem:[#allocation10 + $0xd] ss:$0 sm:$0xff] }
0x1deb   :  { %10659 = vmatmul.mubr.f32.gmra.mxu0 %v12890_v4  ;;  %10703 = vmatprep.subr.mxu0 %v5190_v45 }
0x1dec   :  { %10704 = vmatpush3.msra.mxu0 %v5190_v45  ;;  %10731 = vmatprep.mubr.f32.mxu0 %v12851_v61 }
0x1ded   :  { %10705 = vmatprep.subr.mxu0 %v5189_v43 }
0x1dee   :  { %10706 = vmatpush3.msra.mxu0 %v5189_v43 }
0x1def   :  { %10707 = vmatprep.subr.mxu0 %v5188_v58 }
0x1df0   :  { %10708 = vmatpush3.msra.mxu0 %v5188_v58 }
0x1df1   :  { %10709 = vmatprep.subr.mxu0 %v5187_v27 }
0x1df2   :  { %10710 = vmatpush3.msra.mxu0 %v5187_v27 }
0x1df3   :  { %10711 = vmatprep.subr.mxu0 %v5186_v15 }
0x1df4   :  { %10712 = vmatpush3.msra.mxu0 %v5186_v15 }
0x1df5   :  { %10713 = vmatprep.subr.mxu0 %v5185_v56 }
0x1df6   :  { %10714 = vmatpush3.msra.mxu0 %v5185_v56 }
0x1df7   :  { %10715 = vmatprep.subr.mxu0 %v5184_v41 }
0x1df8   :  { %10716 = vmatpush3.msra.mxu0 %v5184_v41 }
0x1df9   :  { %10717 = vmatprep.subr.mxu0 %v5183_v24 }
0x1dfa   :  { %10718 = vmatpush3.msra.mxu0 %v5183_v24  ;;  %v8470_v24 = vld [vmem:[#allocation10 + $0x15] ss:$0 sm:$0xff] }
0x1dfb   :  { %10719 = vmatprep.subr.mxu0 %v5182_v0 }
0x1dfc   :  { %10720 = vmatpush3.msra.mxu0 %v5182_v0 }
0x1dfd   :  { %10721 = vmatprep.subr.mxu0 %v5181_v7 }
0x1dfe   :  { %10722 = vmatpush3.msra.mxu0 %v5181_v7 }
0x1dff   :  { %10723 = vmatprep.subr.mxu0 %v5180_v19 }
0x1e00   :  { %10724 = vmatpush3.msra.mxu0 %v5180_v19 }
0x1e01   :  { %10725 = vmatprep.subr.mxu0 %v5179_v12 }
0x1e02   :  { %10726 = vmatpush3.msra.mxu0 %v5179_v12 }
0x1e03   :  { %10727 = vmatprep.subr.mxu0 %v5178_v3 }
0x1e04   :  { %10728 = vmatpush3.msra.mxu0 %v5178_v3 }
0x1e05   :  { %10729 = vmatprep.subr.mxu0 %v5177_v40 }
0x1e06   :  { %10730 = vmatpush3.msra.mxu0 %v5177_v40 }
0x1e07   :  { %10732 = vmatmul.mubr.f32.vlgmr.msra.gmra.mxu0 %v12854_v59  ;;  %10786 = vmatprep.subr.mxu0 %v4507_v13 }
0x1e08   :  { %10734 = vmatprep.mubr.f32.mxu0 %v12885_v1  ;;  %10787 = vmatpush3.msra.mxu0 %v4507_v13 }
0x1e09   :  { %10788 = vmatprep.subr.mxu0 %v4506_v14 }
0x1e0a   :  { %10789 = vmatpush3.msra.mxu0 %v4506_v14 }
0x1e0b   :  { %10735 = vmatmul.mubr.f32.gmra.mxu0 %v12890_v4  ;;  %10790 = vmatprep.subr.mxu0 %v4505_v38 }
0x1e0c   :  { %10791 = vmatpush3.msra.mxu0 %v4505_v38  ;;  %10818 = vmatprep.mubr.f32.mxu0 %v12943_v62  ;;  %v4496_v62 = vld [vmem:[#allocation12 + $0x220] sm:$0xff] }
0x1e0d   :  { %10792 = vmatprep.subr.mxu0 %v4504_v20 }
0x1e0e   :  { %10793 = vmatpush3.msra.mxu0 %v4504_v20 }
0x1e0f   :  { %10794 = vmatprep.subr.mxu0 %v4503_v30 }
0x1e10   :  { %10795 = vmatpush3.msra.mxu0 %v4503_v30 }
0x1e11   :  { %10796 = vmatprep.subr.mxu0 %v4502_v29 }
0x1e12   :  { %10797 = vmatpush3.msra.mxu0 %v4502_v29 }
0x1e13   :  { %10798 = vmatprep.subr.mxu0 %v4501_v10 }
0x1e14   :  { %10799 = vmatpush3.msra.mxu0 %v4501_v10 }
0x1e15   :  { %10800 = vmatprep.subr.mxu0 %v4500_v31 }
0x1e16   :  { %10801 = vmatpush3.msra.mxu0 %v4500_v31 }
0x1e17   :  { %10802 = vmatprep.subr.mxu0 %v4499_v34 }
0x1e18   :  { %10803 = vmatpush3.msra.mxu0 %v4499_v34 }
0x1e19   :  { %10804 = vmatprep.subr.mxu0 %v4498_v33 }
0x1e1a   :  { %10805 = vmatpush3.msra.mxu0 %v4498_v33 }
0x1e1b   :  { %10806 = vmatprep.subr.mxu0 %v4497_v37 }
0x1e1c   :  { %10807 = vmatpush3.msra.mxu0 %v4497_v37 }
0x1e1d   :  { %10808 = vmatprep.subr.mxu0 %v4496_v62 }
0x1e1e   :  { %10809 = vmatpush3.msra.mxu0 %v4496_v62 }
0x1e1f   :  { %10810 = vmatprep.subr.mxu0 %v4495_v42 }
0x1e20   :  { %10811 = vmatpush3.msra.mxu0 %v4495_v42 }
0x1e21   :  { %10812 = vmatprep.subr.mxu0 %v4494_v35 }
0x1e22   :  { %10813 = vmatpush3.msra.mxu0 %v4494_v35 }
0x1e23   :  { %10814 = vmatprep.subr.mxu0 %v4493_v46 }
0x1e24   :  { %10815 = vmatpush3.msra.mxu0 %v4493_v46 }
0x1e25   :  { %10816 = vmatprep.subr.mxu0 %v4492_v48 }
0x1e26   :  { %10817 = vmatpush3.msra.mxu0 %v4492_v48 }
0x1e27   :  { %10819 = vmatmul.mubr.f32.vlgmr.msra.gmra.mxu0 %v12941_v5  ;;  %10870 = vmatprep.subr.mxu0 %v4507_v13  ;;  %v6180_v5 = vld [vmem:[#allocation9 + $0xbd0] sm:$0xff] }
0x1e28   :  { %10871 = vmatpush3.msra.mxu0 %v4507_v13 }
0x1e29   :  { %10872 = vmatprep.subr.mxu0 %v4506_v14 }
0x1e2a   :  { %10873 = vmatpush3.msra.mxu0 %v4506_v14 }
0x1e2b   :  { %10874 = vmatprep.subr.mxu0 %v4505_v38 }
0x1e2c   :  { %10875 = vmatpush3.msra.mxu0 %v4505_v38 }
0x1e2d   :  { %10876 = vmatprep.subr.mxu0 %v4504_v20 }
0x1e2e   :  { %10877 = vmatpush3.msra.mxu0 %v4504_v20 }
0x1e2f   :  { %10878 = vmatprep.subr.mxu0 %v4503_v30 }
0x1e30   :  { %10879 = vmatpush3.msra.mxu0 %v4503_v30 }
0x1e31   :  { %10880 = vmatprep.subr.mxu0 %v4502_v29 }
0x1e32   :  { %10881 = vmatpush3.msra.mxu0 %v4502_v29 }
0x1e33   :  { %10882 = vmatprep.subr.mxu0 %v4501_v10 }
0x1e34   :  { %10883 = vmatpush3.msra.mxu0 %v4501_v10  ;;  %v12993_v10 = vld [vmem:[#allocation10 + $0x12] ss:$0 sm:$0xff] }
0x1e35   :  { %10884 = vmatprep.subr.mxu0 %v4500_v31 }
0x1e36   :  { %10885 = vmatpush3.msra.mxu0 %v4500_v31  ;;  %v12995_v31 = vpop.f32.mrf.mxu1 }
0x1e37   :  { %10886 = vmatprep.subr.mxu0 %v4499_v34 }
0x1e38   :  { %10887 = vmatpush3.msra.mxu0 %v4499_v34 }
0x1e39   :  { %10888 = vmatprep.subr.mxu0 %v4498_v33 }
0x1e3a   :  { %10889 = vmatpush3.msra.mxu0 %v4498_v33 }
0x1e3b   :  { %10890 = vmatprep.subr.mxu0 %v4497_v37 }
0x1e3c   :  { %10891 = vmatpush3.msra.mxu0 %v4497_v37 }
0x1e3d   :  { %10892 = vmatprep.subr.mxu0 %v4496_v62 }
0x1e3e   :  { %10893 = vmatpush3.msra.mxu0 %v4496_v62 }
0x1e3f   :  { %10894 = vmatprep.subr.mxu0 %v4495_v42 }
0x1e40   :  { %10895 = vmatpush3.msra.mxu0 %v4495_v42 }
0x1e41   :  { %10896 = vmatprep.subr.mxu0 %v4494_v35 }
0x1e42   :  { %10897 = vmatpush3.msra.mxu0 %v4494_v35 }
0x1e43   :  { %10898 = vmatprep.subr.mxu0 %v4493_v46 }
0x1e44   :  { %10899 = vmatpush3.msra.mxu0 %v4493_v46 }
0x1e45   :  { %10900 = vmatprep.subr.mxu0 %v4492_v48 }
0x1e46   :  { %10901 = vmatpush3.msra.mxu0 %v4492_v48 }
0x1e47   :  { %10943 = vmatprep.subr.mxu0 %v6180_v5 }
0x1e87   :  { %v10622_v49 = vpop.f32.mrf.mxu0 }
0x1e89   :  { %v5136_v51 = vpop.f32.mrf.mxu0 }
0x1e8a   :  { %10902 = vmatprep.mubr.f32.mxu0 %v5136_v51 }
0x1e8b   :  { %10903 = vmatmul.mubr.f32.vlgmr.msra.gmra.mxu0 %v10622_v49 }
0x1e8c   :  { %10944 = vmatpush3.msra.mxu0 %v6180_v5  ;;  %10975 = vmatprep.mubr.f32.mxu0 %v12851_v61 }
0x1e8d   :  { %10945 = vmatprep.subr.mxu0 %v6179_v53 }
0x1e8e   :  { %10946 = vmatpush3.msra.mxu0 %v6179_v53 }
0x1e8f   :  { %10947 = vmatprep.subr.mxu0 %v6178_v6 }
0x1e90   :  { %10948 = vmatpush3.msra.mxu0 %v6178_v6 }
0x1e91   :  { %10949 = vmatprep.subr.mxu0 %v6177_v39 }
0x1e92   :  { %10950 = vmatpush3.msra.mxu0 %v6177_v39 }
0x1e93   :  { %10951 = vmatprep.subr.mxu0 %v6176_v55 }
0x1e94   :  { %10952 = vmatpush3.msra.mxu0 %v6176_v55 }
0x1e95   :  { %10953 = vmatprep.subr.mxu0 %v6175_v18 }
0x1e96   :  { %10954 = vmatpush3.msra.mxu0 %v6175_v18 }
0x1e97   :  { %10955 = vmatprep.subr.mxu0 %v6174_v54 }
0x1e98   :  { %10956 = vmatpush3.msra.mxu0 %v6174_v54 }
0x1e99   :  { %10957 = vmatprep.subr.mxu0 %v6173_v57 }
0x1e9a   :  { %10958 = vmatpush3.msra.mxu0 %v6173_v57 }
0x1e9b   :  { %10959 = vmatprep.subr.mxu0 %v6172_v21 }
0x1e9c   :  { %10960 = vmatpush3.msra.mxu0 %v6172_v21 }
0x1e9d   :  { %10961 = vmatprep.subr.mxu0 %v6171_v60 }
0x1e9e   :  { %10962 = vmatpush3.msra.mxu0 %v6171_v60 }
0x1e9f   :  { %10963 = vmatprep.subr.mxu0 %v6170_v63 }
0x1ea0   :  { %10964 = vmatpush3.msra.mxu0 %v6170_v63  ;;  %v13005_v63 = vld [vmem:[#allocation12 + $0x2f8] sm:$0xff] }
0x1ea1   :  { %10965 = vmatprep.subr.mxu0 %v6169_v23 }
0x1ea2   :  { %10966 = vmatpush3.msra.mxu0 %v6169_v23 }
0x1ea3   :  { %10967 = vmatprep.subr.mxu0 %v6168_v8 }
0x1ea4   :  { %10968 = vmatpush3.msra.mxu0 %v6168_v8 }
0x1ea5   :  { %10969 = vmatprep.subr.mxu0 %v6167_v11 }
0x1ea6   :  { %10970 = vmatpush3.msra.mxu0 %v6167_v11 }
0x1ea7   :  { %v10657_v25 = vpop.f32.mrf.mxu0  ;;  %10971 = vmatprep.subr.mxu0 %v6166_v9 }
0x1ea8   :  { %10972 = vmatpush3.msra.mxu0 %v6166_v9  ;;  %v5290_v58 = vadd.f32 %v10657_v25, %v8468_v26 }
0x1ea9   :  { %v5284_v45 = vpop.f32.mrf.mxu0  ;;  %10973 = vmatprep.subr.mxu0 %v6165_v22 }
0x1eaa   :  { %v5285_v43 = vadd.f32 %v8468_v26, %v5284_v45  ;;  %10974 = vmatpush3.msra.mxu0 %v6165_v22  ;;  %v13013_v45 = vld [vmem:[#allocation12 + $0x2e8] sm:$0xff] }
0x1eab   :  { %v10660_v27 = vpop.f32.mrf.mxu0  ;;  %10976 = vmatmul.mubr.f32.vlgmr.msra.gmra.mxu0 %v12854_v59 }
0x1eac   :  { %v12975_v15 = vadd.f32 %v10660_v27, %v8468_v26  ;;  %10741 = vmatprep.mubr.f32.mxu1 %v5285_v43  ;;  %10978 = vmatprep.mubr.f32.mxu0 %v12885_v1  ;;  %v13017_v43 = vld [vmem:[#allocation12 + $0x2e0] sm:$0xff]  ;;  %v13025_v27 = vld [vmem:[#allocation12 + $0x2d0] sm:$0xff] }
0x1ead   :  { %v5294_v56 = vpop.f32.mrf.mxu0  ;;  %10742 = vmatmul.mubr.f32.vlgmr.msra.gmra.mxu1 %v5290_v58  ;;  %v13021_v58 = vld [vmem:[#allocation12 + $0x2d8] sm:$0xff] }
0x1eae   :  { %v12978_v41 = vadd.f32 %v8468_v26, %v5294_v56  ;;  %v13009_v26 = vld [vmem:[#allocation12 + $0x2f0] sm:$0xff]  ;;  %v13029_v56 = vld [vmem:[#allocation12 + $0x2c8] sm:$0xff] }
0x1eaf   :  { %10979 = vmatmul.mubr.f32.gmra.mxu0 %v12890_v4 }
0x1ec7   :  { %v10733_v0 = vpop.f32.mrf.mxu0 }
0x1ec8   :  { %v5472_v7 = vadd.f32 %v10733_v0, %v8470_v24  ;;  %v13037_v0 = vld [vmem:[#allocation12 + $0x2b8] sm:$0xff] }
0x1ec9   :  { %v5466_v19 = vpop.f32.mrf.mxu0 }
0x1eca   :  { %v5467_v12 = vadd.f32 %v8470_v24, %v5466_v19  ;;  %10744 = vmatprep.subr.mxu1 %v5472_v7  ;;  %v13045_v19 = vld [vmem:[#allocation12 + $0x2a8] sm:$0xff] }
0x1ecb   :  { %v10736_v3 = vpop.f32.mrf.mxu0  ;;  %10745 = vmatpush3.msra.mxu1 %v5472_v7  ;;  %v13041_v7 = vld [vmem:[#allocation12 + $0x2b0] sm:$0xff] }
0x1ecc   :  { %v12981_v40 = vadd.f32 %v10736_v3, %v8470_v24  ;;  %10746 = vmatprep.subr.mxu1 %v5467_v12  ;;  %v13053_v3 = vld [vmem:[#allocation12 + $0x298] sm:$0xff] }
0x1ecd   :  { %v5476_v13 = vpop.f32.mrf.mxu0  ;;  %10747 = vmatpush3.msra.mxu1 %v5467_v12  ;;  %v13049_v12 = vld [vmem:[#allocation12 + $0x2a0] sm:$0xff] }
0x1ece   :  { %v12983_v14 = vadd.f32 %v8470_v24, %v5476_v13  ;;  %10751 = vmatprep.subr.mxu1 %v13005_v63  ;;  %v13033_v24 = vld [vmem:[#allocation12 + $0x2c0] sm:$0xff]  ;;  %v13057_v13 = vld [vmem:[#allocation12 + $0x290] sm:$0xff] }
0x1ee7   :  { %v12985_v38 = vpop.f32.mrf.mxu0 }
0x1ee9   :  { %v12987_v20 = vpop.f32.mrf.mxu0 }
0x1f4b   :  { %v12989_v30 = vpop.f32.mrf.mxu0 }
0x1f4d   :  { %v12991_v29 = vpop.f32.mrf.mxu0 }
0x1f6b   :  { %v10977_v34 = vpop.f32.mrf.mxu0 }
0x1f6c   :  { %v6385_v33 = vadd.f32 %v10977_v34, %v12993_v10  ;;  %v13061_v34 = vld [vmem:[#allocation12 + $0x288] sm:$0xff] }
0x1f6d   :  { %v10743_v37 = vpop.f32.mrf.mxu1  ;;  %v6379_v62 = vpop.f32.mrf.mxu0 }
0x1f6e   :  { %v5561_v42 = vmul.f32 0.35355338, %v10743_v37  ;;  %v6380_v35 = vadd.f32 %v12993_v10, %v6379_v62  ;;  %11019 = vmatprep.subr.mxu0 %v6385_v33 }
0x1f6f   :  { %v5551_v46 = vpop.f32.mrf.mxu1  ;;  %11020 = vmatpush3.xpose.msra.mxu0 %v6385_v33  ;;  %v13065_v33 = vld [vmem:[#allocation12 + $0x280] sm:$0xff] }
0x1f70   :  { %v5560_v48 = vmul.f32 0.35355338, %v5551_v46  ;;  %11021 = vmatprep.subr.mxu0 %v6380_v35  ;;  %v5563_v5 = vadd.f32 %v12913_v28, %v5561_v42  ;;  %v5386_v42 = vadd.f32 %v12925_v50, %v12995_v31 }
0x1f72   :  { %v5567_v49 = vsel %vm1004_vm6, %v5563_v5, -inf  ;;  %v5562_v51 = vadd.f32 %v12921_v44, %v5560_v48 }
0x1f73   :  { %11022 = vmatpush3.xpose.msra.mxu0 %v6380_v35  ;;  %5568 = vmax.xlane.f32.xlu1 %v5567_v49 }
0x1f74   :  { %v5564_v53 = vsel %vm1004_vm6, %v5562_v51, -inf }
0x1f75   :  { %5565 = vmax.xlane.f32.xlu0 %v5564_v53 }
0x1ffc   :  { %v5569_v6 = vpop.xlane.xlu1 %5568 }
0x1ffd   :  { %v5571_v39 = vsub.f32 %v5563_v5, %v5569_v6 }
0x1ffe   :  { %v5566_v55 = vpop.xlane.xlu0 %5565 }
0x1fff   :  { %v5574_v18 = vmul.f32 1.442695, %v5571_v39  ;;  %v5570_v54 = vsub.f32 %v5562_v51, %v5566_v55 }
0x2001   :  { %11582 = vpow2.f32 %v5574_v18  ;;  %v5572_v57 = vmul.f32 1.442695, %v5570_v54 }
0x2003   :  { %11584 = vpow2.f32 %v5572_v57 }
0x200e   :  { %v11583_v21 = vpop.eup %11582 }
0x200f   :  { %v5579_v28 = vsel %vm1004_vm6, %v11583_v21, 0.0 }
0x2010   :  { %v11585_v60 = vpop.eup %11584  ;;  %5580 = vadd.xlane.f32.xlu1 %v5579_v28 }
0x2011   :  { %v5576_v44 = vsel %vm1004_vm6, %v11585_v60, 0.0 }
0x2012   :  { %5577 = vadd.xlane.f32.xlu0 %v5576_v44 }
0x2099   :  { %v5581_v23 = vpop.xlane.xlu1 %5580 }
0x209a   :  { %11586 = vrcp.f32 %v5581_v23 }
0x209b   :  { %v5578_v8 = vpop.xlane.xlu0 %5577 }
0x209c   :  { %11588 = vrcp.f32 %v5578_v8 }
0x20a7   :  { %v11587_v11 = vpop.eup %11586 }
0x20a8   :  { %v5585_v25 = vmul.f32 %v11587_v11, %v11583_v21  ;;  %v6163_v11 = vld [vmem:[#allocation9 + $0xb50] sm:$0xff] }
0x20a9   :  { %v11589_v9 = vpop.eup %11588 }
0x20aa   :  { %v5584_v22 = vmul.f32 %v11589_v9, %v11585_v60  ;;  %v6162_v9 = vld [vmem:[#allocation9 + $0xaf0] sm:$0xff] }
0x20ac   :  { %10748 = vmatprep.mubr.msk.f32.mxu1 %vm1004_vm6, %v5584_v22  ;;  %v6161_v22 = vld [vmem:[#allocation9 + $0xa90] sm:$0xff] }
0x20ad   :  { %10749 = vmatmul.mubr.msk.f32.vlgmr.msra.gmra.mxu1 %vm1004_vm6, %v5585_v25  ;;  %v6160_v25 = vld [vmem:[#allocation9 + $0xa30] sm:$0xff] }
0x20ae   :  { %10752 = vmatpush3.msra.mxu1 %v13005_v63 }
0x20af   :  { %10753 = vmatprep.subr.mxu1 %v13009_v26 }
0x20b0   :  { %10754 = vmatpush3.msra.mxu1 %v13009_v26 }
0x20b1   :  { %10755 = vmatprep.subr.mxu1 %v13013_v45 }
0x20b2   :  { %10756 = vmatpush3.msra.mxu1 %v13013_v45 }
0x20b3   :  { %10757 = vmatprep.subr.mxu1 %v13017_v43 }
0x20b4   :  { %10758 = vmatpush3.msra.mxu1 %v13017_v43 }
0x20b5   :  { %10759 = vmatprep.subr.mxu1 %v13021_v58 }
0x20b6   :  { %10760 = vmatpush3.msra.mxu1 %v13021_v58 }
0x20b7   :  { %10761 = vmatprep.subr.mxu1 %v13025_v27 }
0x20b8   :  { %10762 = vmatpush3.msra.mxu1 %v13025_v27 }
0x20b9   :  { %10763 = vmatprep.subr.mxu1 %v13029_v56 }
0x20ba   :  { %10764 = vmatpush3.msra.mxu1 %v13029_v56 }
0x20bb   :  { %10765 = vmatprep.subr.mxu1 %v13033_v24 }
0x20bc   :  { %10766 = vmatpush3.msra.mxu1 %v13033_v24 }
0x20bd   :  { %10767 = vmatprep.subr.mxu1 %v13037_v0 }
0x20be   :  { %10768 = vmatpush3.msra.mxu1 %v13037_v0 }
0x20bf   :  { %10769 = vmatprep.subr.mxu1 %v13041_v7 }
0x20c0   :  { %10770 = vmatpush3.msra.mxu1 %v13041_v7 }
0x20c1   :  { %10771 = vmatprep.subr.mxu1 %v13045_v19 }
0x20c2   :  { %10772 = vmatpush3.msra.mxu1 %v13045_v19 }
0x20c3   :  { %10773 = vmatprep.subr.mxu1 %v13049_v12 }
0x20c4   :  { %10774 = vmatpush3.msra.mxu1 %v13049_v12 }
0x20c5   :  { %10775 = vmatprep.subr.mxu1 %v13053_v3 }
0x20c6   :  { %10776 = vmatpush3.msra.mxu1 %v13053_v3 }
0x20c7   :  { %10777 = vmatprep.subr.mxu1 %v13057_v13 }
0x20c8   :  { %10778 = vmatpush3.msra.mxu1 %v13057_v13 }
0x20c9   :  { %10779 = vmatprep.subr.mxu1 %v13061_v34 }
0x20ca   :  { %10780 = vmatpush3.msra.mxu1 %v13061_v34 }
0x20cb   :  { %10781 = vmatprep.subr.mxu1 %v13065_v33 }
0x20cc   :  { %10782 = vmatpush3.msra.mxu1 %v13065_v33 }
0x20cd   :  { %10821 = vmatprep.subr.mxu1 %v12930_v17 }
0x216d   :  { %v10750_v37 = vpop.f32.mrf.mxu1 }
0x216f   :  { %v5658_v62 = vpop.f32.mrf.mxu1 }
0x2170   :  { %10783 = vmatprep.mubr.f32.mxu1 %v5658_v62  ;;  %v6191_v62 = vld [vmem:[#allocation9 + $0xa10] sm:$0xff] }
0x2171   :  { %10784 = vmatmul.mubr.f32.vlgmr.msra.gmra.mxu1 %v10750_v37  ;;  %v6192_v37 = vld [vmem:[#allocation9 + $0xa70] sm:$0xff] }
0x2172   :  { %10822 = vmatpush3.xpose.msra.mxu1 %v12930_v17  ;;  %10825 = vmatprep.mubr.f32.mxu1 %v12978_v41 }
0x2173   :  { %10823 = vmatprep.subr.mxu1 %v5386_v42 }
0x2176   :  { %10824 = vmatpush3.xpose.msra.mxu1 %v5386_v42  ;;  %v6190_v42 = vld [vmem:[#allocation9 + $0x9b0] sm:$0xff] }
0x2177   :  { %10828 = vmatprep.subr.mxu1 %v12981_v40 }
0x2179   :  { %10826 = vmatmul.mubr.f32.vlgmr.msra.gmra.mxu1 %v12975_v15 }
0x217a   :  { %10829 = vmatpush3.msra.mxu1 %v12981_v40 }
0x217b   :  { %10830 = vmatprep.subr.mxu1 %v12983_v14 }
0x217c   :  { %10831 = vmatpush3.msra.mxu1 %v12983_v14 }
0x217d   :  { %10835 = vmatprep.subr.mxu1 %v13005_v63 }
0x2231   :  { %v13082_v50 = vpop.f32.mrf.mxu1 }
0x2233   :  { %v13084_v31 = vpop.f32.mrf.mxu1 }
0x2239   :  { %v10827_v17 = vpop.f32.mrf.mxu1 }
0x223a   :  { %v5893_v41 = vmul.f32 0.35355338, %v10827_v17  ;;  %v6189_v17 = vld [vmem:[#allocation9 + $0x950] sm:$0xff] }
0x223b   :  { %v5883_v35 = vpop.f32.mrf.mxu1 }
0x223c   :  { %v5892_v46 = vmul.f32 0.35355338, %v5883_v35  ;;  %v5895_v48 = vadd.f32 %v12948_v52, %v5893_v41  ;;  %v6188_v41 = vld [vmem:[#allocation9 + $0x8f0] sm:$0xff] }
0x223d   :  { %v6187_v35 = vld [vmem:[#allocation9 + $0x890] sm:$0xff] }
0x223e   :  { %v5899_v15 = vsel %vm1004_vm6, %v5895_v48, -inf  ;;  %v5894_v40 = vadd.f32 %v12955_v32, %v5892_v46  ;;  %v6186_v46 = vld [vmem:[#allocation9 + $0x830] sm:$0xff] }
0x223f   :  { %5900 = vmax.xlane.f32.xlu1 %v5899_v15  ;;  %v6184_v15 = vld [vmem:[#allocation9 + $0x770] sm:$0xff] }
0x2240   :  { %v5896_v5 = vsel %vm1004_vm6, %v5894_v40, -inf }
0x2241   :  { %5897 = vmax.xlane.f32.xlu0 %v5896_v5  ;;  %v10980_v5 = vpop.f32.mrf.mxu0 }
0x22c8   :  { %v5901_v14 = vpop.xlane.xlu1 %5900 }
0x22c9   :  { %v5903_v49 = vsub.f32 %v5895_v48, %v5901_v14  ;;  %v6185_v48 = vld [vmem:[#allocation9 + $0x7d0] sm:$0xff] }
0x22ca   :  { %v5898_v51 = vpop.xlane.xlu0 %5897  ;;  %v6182_v14 = vld [vmem:[#allocation9 + $0x6b0] sm:$0xff] }
0x22cb   :  { %v5906_v53 = vmul.f32 1.442695, %v5903_v49  ;;  %v5902_v6 = vsub.f32 %v5894_v40, %v5898_v51  ;;  %v6183_v40 = vld [vmem:[#allocation9 + $0x710] sm:$0xff]  ;;  %v6389_v51 = vpop.f32.mrf.mxu0 }
0x22cc   :  { %v6181_v49 = vld [vmem:[#allocation9 + $0x650] sm:$0xff] }
0x22cd   :  { %11590 = vpow2.f32 %v5906_v53  ;;  %v5904_v39 = vmul.f32 1.442695, %v5902_v6  ;;  %v6395_v53 = vadd.f32 %v10980_v5, %v12993_v10  ;;  %v6390_v6 = vadd.f32 %v12993_v10, %v6389_v51 }
0x22cf   :  { %11592 = vpow2.f32 %v5904_v39 }
0x22da   :  { %v11591_v55 = vpop.eup %11590 }
0x22db   :  { %v5911_v18 = vsel %vm1004_vm6, %v11591_v55, 0.0 }
0x22dc   :  { %v11593_v52 = vpop.eup %11592  ;;  %5912 = vadd.xlane.f32.xlu1 %v5911_v18 }
0x22dd   :  { %v5908_v54 = vsel %vm1004_vm6, %v11593_v52, 0.0 }
0x22de   :  { %5909 = vadd.xlane.f32.xlu0 %v5908_v54 }
0x2365   :  { %v5913_v32 = vpop.xlane.xlu1 %5912 }
0x2366   :  { %11594 = vrcp.f32 %v5913_v32 }
0x2367   :  { %v5910_v57 = vpop.xlane.xlu0 %5909 }
0x2368   :  { %11596 = vrcp.f32 %v5910_v57 }
0x2373   :  { %v11595_v21 = vpop.eup %11594 }
0x2374   :  { %v5917_v44 = vmul.f32 %v11595_v21, %v11591_v55 }
0x2375   :  { %v11597_v28 = vpop.eup %11596 }
0x2376   :  { %v5916_v60 = vmul.f32 %v11597_v28, %v11593_v52  ;;  %v8475_v52 = vld [vmem:[#allocation10 + $0xe] ss:$0 sm:$0xff] }
0x2378   :  { %10832 = vmatprep.mubr.msk.f32.mxu1 %vm1004_vm6, %v5916_v60 }
0x2379   :  { %10833 = vmatmul.mubr.msk.f32.vlgmr.msra.gmra.mxu1 %vm1004_vm6, %v5917_v44  ;;  %v8477_v44 = vld [vmem:[#allocation10 + $0x16] ss:$0 sm:$0xff] }
0x237a   :  { %10836 = vmatpush3.msra.mxu1 %v13005_v63  ;;  %v6164_v63 = vld [vmem:[#allocation9 + $0xbb0] sm:$0xff] }
0x237b   :  { %10837 = vmatprep.subr.mxu1 %v13009_v26 }
0x237c   :  { %10838 = vmatpush3.msra.mxu1 %v13009_v26  ;;  %v6159_v26 = vld [vmem:[#allocation9 + $0x9d0] sm:$0xff] }
0x237d   :  { %10839 = vmatprep.subr.mxu1 %v13013_v45 }
0x237e   :  { %10840 = vmatpush3.msra.mxu1 %v13013_v45  ;;  %v6158_v45 = vld [vmem:[#allocation9 + $0x970] sm:$0xff] }
0x237f   :  { %10841 = vmatprep.subr.mxu1 %v13017_v43 }
0x2380   :  { %10842 = vmatpush3.msra.mxu1 %v13017_v43  ;;  %v6157_v43 = vld [vmem:[#allocation9 + $0x910] sm:$0xff] }
0x2381   :  { %10843 = vmatprep.subr.mxu1 %v13021_v58 }
0x2382   :  { %10844 = vmatpush3.msra.mxu1 %v13021_v58  ;;  %v6156_v58 = vld [vmem:[#allocation9 + $0x8b0] sm:$0xff] }
0x2383   :  { %10845 = vmatprep.subr.mxu1 %v13025_v27 }
0x2384   :  { %10846 = vmatpush3.msra.mxu1 %v13025_v27  ;;  %v6155_v27 = vld [vmem:[#allocation9 + $0x850] sm:$0xff] }
0x2385   :  { %10847 = vmatprep.subr.mxu1 %v13029_v56 }
0x2386   :  { %10848 = vmatpush3.msra.mxu1 %v13029_v56  ;;  %v6154_v56 = vld [vmem:[#allocation9 + $0x7f0] sm:$0xff] }
0x2387   :  { %10849 = vmatprep.subr.mxu1 %v13033_v24 }
0x2388   :  { %10850 = vmatpush3.msra.mxu1 %v13033_v24  ;;  %v6153_v24 = vld [vmem:[#allocation9 + $0x790] sm:$0xff] }
0x2389   :  { %10851 = vmatprep.subr.mxu1 %v13037_v0 }
0x238a   :  { %10852 = vmatpush3.msra.mxu1 %v13037_v0  ;;  %v6152_v0 = vld [vmem:[#allocation9 + $0x730] sm:$0xff] }
0x238b   :  { %10853 = vmatprep.subr.mxu1 %v13041_v7 }
0x238c   :  { %10854 = vmatpush3.msra.mxu1 %v13041_v7  ;;  %v6151_v7 = vld [vmem:[#allocation9 + $0x6d0] sm:$0xff] }
0x238d   :  { %10855 = vmatprep.subr.mxu1 %v13045_v19 }
0x238e   :  { %10856 = vmatpush3.msra.mxu1 %v13045_v19  ;;  %v6150_v19 = vld [vmem:[#allocation9 + $0x670] sm:$0xff] }
0x238f   :  { %10857 = vmatprep.subr.mxu1 %v13049_v12 }
0x2390   :  { %10858 = vmatpush3.msra.mxu1 %v13049_v12  ;;  %v6149_v12 = vld [vmem:[#allocation9 + $0x610] sm:$0xff] }
0x2391   :  { %10859 = vmatprep.subr.mxu1 %v13053_v3 }
0x2392   :  { %10860 = vmatpush3.msra.mxu1 %v13053_v3  ;;  %v6196_v3 = vld [vmem:[#allocation9 + $0xbf0] sm:$0xff] }
0x2393   :  { %10861 = vmatprep.subr.mxu1 %v13057_v13 }
0x2394   :  { %10862 = vmatpush3.msra.mxu1 %v13057_v13  ;;  %v6195_v13 = vld [vmem:[#allocation9 + $0xb90] sm:$0xff] }
0x2395   :  { %10863 = vmatprep.subr.mxu1 %v13061_v34 }
0x2396   :  { %10864 = vmatpush3.msra.mxu1 %v13061_v34  ;;  %v6194_v34 = vld [vmem:[#allocation9 + $0xb30] sm:$0xff] }
0x2397   :  { %10865 = vmatprep.subr.mxu1 %v13065_v33 }
0x2398   :  { %10866 = vmatpush3.msra.mxu1 %v13065_v33  ;;  %v6193_v33 = vld [vmem:[#allocation9 + $0xad0] sm:$0xff] }
0x2399   :  { %10905 = vmatprep.subr.mxu1 %v6164_v63 }
0x2439   :  { %v10834_v23 = vpop.f32.mrf.mxu1 }
0x243b   :  { %v5990_v8 = vpop.f32.mrf.mxu1 }
0x243c   :  { %10867 = vmatprep.mubr.f32.mxu1 %v5990_v8 }
0x243d   :  { %10868 = vmatmul.mubr.f32.vlgmr.msra.gmra.mxu1 %v10834_v23 }
0x243e   :  { %10906 = vmatpush3.msra.mxu1 %v6164_v63  ;;  %10937 = vmatprep.mubr.f32.mxu1 %v12851_v61 }
0x243f   :  { %10907 = vmatprep.subr.mxu1 %v6163_v11 }
0x2440   :  { %10908 = vmatpush3.msra.mxu1 %v6163_v11 }
0x2441   :  { %10909 = vmatprep.subr.mxu1 %v6162_v9 }
0x2442   :  { %10910 = vmatpush3.msra.mxu1 %v6162_v9 }
0x2443   :  { %10911 = vmatprep.subr.mxu1 %v6161_v22 }
0x2444   :  { %10912 = vmatpush3.msra.mxu1 %v6161_v22 }
0x2445   :  { %10913 = vmatprep.subr.mxu1 %v6160_v25 }
0x2446   :  { %10914 = vmatpush3.msra.mxu1 %v6160_v25 }
0x2447   :  { %10915 = vmatprep.subr.mxu1 %v6159_v26 }
0x2448   :  { %10916 = vmatpush3.msra.mxu1 %v6159_v26 }
0x2449   :  { %10917 = vmatprep.subr.mxu1 %v6158_v45 }
0x244a   :  { %10918 = vmatpush3.msra.mxu1 %v6158_v45 }
0x244b   :  { %10919 = vmatprep.subr.mxu1 %v6157_v43 }
0x244c   :  { %10920 = vmatpush3.msra.mxu1 %v6157_v43 }
0x244d   :  { %10921 = vmatprep.subr.mxu1 %v6156_v58 }
0x244e   :  { %10922 = vmatpush3.msra.mxu1 %v6156_v58 }
0x244f   :  { %10923 = vmatprep.subr.mxu1 %v6155_v27 }
0x2450   :  { %10924 = vmatpush3.msra.mxu1 %v6155_v27 }
0x2451   :  { %10925 = vmatprep.subr.mxu1 %v6154_v56 }
0x2452   :  { %10926 = vmatpush3.msra.mxu1 %v6154_v56 }
0x2453   :  { %10927 = vmatprep.subr.mxu1 %v6153_v24 }
0x2454   :  { %10928 = vmatpush3.msra.mxu1 %v6153_v24 }
0x2455   :  { %10929 = vmatprep.subr.mxu1 %v6152_v0 }
0x2456   :  { %10930 = vmatpush3.msra.mxu1 %v6152_v0 }
0x2457   :  { %10931 = vmatprep.subr.mxu1 %v6151_v7 }
0x2458   :  { %10932 = vmatpush3.msra.mxu1 %v6151_v7 }
0x2459   :  { %10933 = vmatprep.subr.mxu1 %v6150_v19 }
0x245a   :  { %10934 = vmatpush3.msra.mxu1 %v6150_v19  ;;  %v13142_v19 = vld [vmem:[%s13482_s29 + $0x18] sm:$0xff] }
0x245b   :  { %10935 = vmatprep.subr.mxu1 %v6149_v12 }
0x245c   :  { %10936 = vmatpush3.msra.mxu1 %v6149_v12 }
0x245d   :  { %10938 = vmatmul.mubr.f32.vlgmr.msra.gmra.mxu1 %v12854_v59  ;;  %10981 = vmatprep.subr.mxu1 %v6196_v3 }
0x245e   :  { %10940 = vmatprep.mubr.f32.mxu1 %v12885_v1  ;;  %10982 = vmatpush3.msra.mxu1 %v6196_v3 }
0x245f   :  { %10983 = vmatprep.subr.mxu1 %v6195_v13 }
0x2460   :  { %10984 = vmatpush3.msra.mxu1 %v6195_v13  ;;  %v13149_v13 = vld [vmem:[%s13482_s29 + $0x10] sm:$0xff] }
0x2461   :  { %10941 = vmatmul.mubr.f32.gmra.mxu1 %v12890_v4  ;;  %10985 = vmatprep.subr.mxu1 %v6194_v34 }
0x2462   :  { %10986 = vmatpush3.msra.mxu1 %v6194_v34  ;;  %11013 = vmatprep.mubr.f32.mxu1 %v12851_v61 }
0x2463   :  { %10987 = vmatprep.subr.mxu1 %v6193_v33 }
0x2464   :  { %10988 = vmatpush3.msra.mxu1 %v6193_v33  ;;  %v13155_v33 = vld [vmem:[%s13482_s29 + $0x8] sm:$0xff] }
0x2465   :  { %10989 = vmatprep.subr.mxu1 %v6192_v37 }
0x2466   :  { %10990 = vmatpush3.msra.mxu1 %v6192_v37 }
0x2467   :  { %10991 = vmatprep.subr.mxu1 %v6191_v62 }
0x2468   :  { %10992 = vmatpush3.msra.mxu1 %v6191_v62 }
0x2469   :  { %10993 = vmatprep.subr.mxu1 %v6190_v42 }
0x246a   :  { %10994 = vmatpush3.msra.mxu1 %v6190_v42  ;;  %v13162_v42 = vld [vmem:[%s13482_s29] sm:$0xff] }
0x246b   :  { %10995 = vmatprep.subr.mxu1 %v6189_v17 }
0x246c   :  { %10996 = vmatpush3.msra.mxu1 %v6189_v17 }
0x246d   :  { %10997 = vmatprep.subr.mxu1 %v6188_v41 }
0x246e   :  { %10998 = vmatpush3.msra.mxu1 %v6188_v41 }
0x246f   :  { %10999 = vmatprep.subr.mxu1 %v6187_v35 }
0x2470   :  { %11000 = vmatpush3.msra.mxu1 %v6187_v35 }
0x2471   :  { %11001 = vmatprep.subr.mxu1 %v6186_v46 }
0x2472   :  { %11002 = vmatpush3.msra.mxu1 %v6186_v46 }
0x2473   :  { %11003 = vmatprep.subr.mxu1 %v6185_v48 }
0x2474   :  { %11004 = vmatpush3.msra.mxu1 %v6185_v48 }
0x2475   :  { %11005 = vmatprep.subr.mxu1 %v6184_v15 }
0x2476   :  { %11006 = vmatpush3.msra.mxu1 %v6184_v15 }
0x2477   :  { %11007 = vmatprep.subr.mxu1 %v6183_v40 }
0x2478   :  { %11008 = vmatpush3.msra.mxu1 %v6183_v40 }
0x2479   :  { %11009 = vmatprep.subr.mxu1 %v6182_v14 }
0x247a   :  { %11010 = vmatpush3.msra.mxu1 %v6182_v14 }
0x247b   :  { %11011 = vmatprep.subr.mxu1 %v6181_v49 }
0x247c   :  { %11012 = vmatpush3.msra.mxu1 %v6181_v49 }
0x247d   :  { %11014 = vmatmul.mubr.f32.vlgmr.msra.gmra.mxu1 %v12854_v59  ;;  %11068 = vmatprep.subr.mxu1 %v6395_v53 }
0x247e   :  { %11016 = vmatprep.mubr.f32.mxu1 %v12885_v1  ;;  %11069 = vmatpush3.xpose.msra.mxu1 %v6395_v53 }
0x247f   :  { %11070 = vmatprep.subr.mxu1 %v6390_v6 }
0x2481   :  { %11017 = vmatmul.mubr.f32.gmra.mxu1 %v12890_v4 }
0x2482   :  { %11071 = vmatpush3.xpose.msra.mxu1 %v6390_v6 }
0x24fd   :  { %v13135_v39 = vpop.f32.mrf.mxu1 }
0x24ff   :  { %v13137_v55 = vpop.f32.mrf.mxu1 }
0x251d   :  { %v10939_v18 = vpop.f32.mrf.mxu1 }
0x251e   :  { %v6294_v57 = vadd.f32 %v10939_v18, %v8475_v52 }
0x251f   :  { %v6288_v54 = vpop.f32.mrf.mxu1 }
0x2520   :  { %v6289_v32 = vadd.f32 %v8475_v52, %v6288_v54 }
0x2521   :  { %v10942_v10 = vpop.f32.mrf.mxu1 }
0x2522   :  { %11023 = vmatprep.mubr.f32.mxu0 %v6289_v32  ;;  %v6304_v60 = vadd.f32 %v10942_v10, %v8475_v52 }
0x2523   :  { %v6298_v21 = vpop.f32.mrf.mxu1  ;;  %11024 = vmatmul.mubr.f32.vlgmr.msra.gmra.mxu0 %v6294_v57 }
0x2524   :  { %v6299_v28 = vadd.f32 %v8475_v52, %v6298_v21 }
0x2526   :  { %11072 = vmatprep.mubr.f32.mxu1 %v6299_v28 }
0x2527   :  { %11073 = vmatmul.mubr.f32.vlgmr.msra.gmra.mxu1 %v6304_v60 }
0x253d   :  { %v11015_v63 = vpop.f32.mrf.mxu1 }
0x253e   :  { %v6476_v23 = vadd.f32 %v11015_v63, %v8477_v44  ;;  %v6215_v63 = vld [vmem:[#allocation12 + $0x378] sm:$0xff] }
0x253f   :  { %v6470_v8 = vpop.f32.mrf.mxu1 }
0x2540   :  { %v6471_v11 = vadd.f32 %v8477_v44, %v6470_v8  ;;  %11026 = vmatprep.subr.mxu0 %v6476_v23 }
0x2541   :  { %v11018_v9 = vpop.f32.mrf.mxu1  ;;  %11027 = vmatpush3.msra.mxu0 %v6476_v23 }
0x2542   :  { %v6486_v22 = vadd.f32 %v11018_v9, %v8477_v44  ;;  %11028 = vmatprep.subr.mxu0 %v6471_v11 }
0x2543   :  { %v6480_v25 = vpop.f32.mrf.mxu1  ;;  %11029 = vmatpush3.msra.mxu0 %v6471_v11 }
0x2544   :  { %v6481_v26 = vadd.f32 %v8477_v44, %v6480_v25  ;;  %11075 = vmatprep.subr.mxu1 %v6486_v22  ;;  %11033 = vmatprep.subr.mxu0 %v6215_v63 }
0x2545   :  { %11076 = vmatpush3.msra.mxu1 %v6486_v22 }
0x2546   :  { %11077 = vmatprep.subr.mxu1 %v6481_v26 }
0x2547   :  { %11078 = vmatpush3.msra.mxu1 %v6481_v26 }
0x2548   :  { %11082 = vmatprep.subr.mxu1 %v6215_v63 }
0x25e3   :  { %v11025_v45 = vpop.f32.mrf.mxu0 }
0x25e4   :  { %v6565_v27 = vmul.f32 0.35355338, %v11025_v45 }
0x25e5   :  { %v6555_v43 = vpop.f32.mrf.mxu0 }
0x25e6   :  { %v6564_v0 = vmul.f32 0.35355338, %v6555_v43  ;;  %v6567_v37 = vadd.f32 %v13155_v33, %v6565_v27 }
0x25e7   :  { %v11074_v58 = vpop.f32.mrf.mxu1 }
0x25e8   :  { %v6824_v56 = vmul.f32 0.35355338, %v11074_v58  ;;  %v6566_v17 = vadd.f32 %v13162_v42, %v6564_v0  ;;  %v6571_v41 = vsel %vm1004_vm6, %v6567_v37, -inf  ;;  %v6214_v58 = vld [vmem:[#allocation12 + $0x370] sm:$0xff] }
0x25e9   :  { %v6814_v24 = vpop.f32.mrf.mxu1 }
0x25ea   :  { %v6823_v7 = vmul.f32 0.35355338, %v6814_v24  ;;  %v6826_v12 = vadd.f32 %v13142_v19, %v6824_v56  ;;  %v6568_v35 = vsel %vm1004_vm6, %v6566_v17, -inf  ;;  %v6213_v24 = vld [vmem:[#allocation12 + $0x368] sm:$0xff] }
0x25ec   :  { %v6830_v3 = vsel %vm1004_vm6, %v6826_v12, -inf  ;;  %v6825_v34 = vadd.f32 %v13149_v13, %v6823_v7  ;;  %v6212_v7 = vld [vmem:[#allocation12 + $0x360] sm:$0xff] }
0x25ed   :  { %6831 = vmax.xlane.f32.xlu1 %v6830_v3  ;;  %v6210_v3 = vld [vmem:[#allocation12 + $0x350] sm:$0xff] }
0x25ee   :  { %v6827_v62 = vsel %vm1004_vm6, %v6825_v34, -inf }
0x25ef   :  { %6828 = vmax.xlane.f32.xlu0 %v6827_v62  ;;  %v6207_v62 = vld [vmem:[#allocation12 + $0x338] sm:$0xff] }
0x25f1   :  { %6572 = vmax.xlane.f32.xlu1 %v6571_v41  ;;  %v6205_v41 = vld [vmem:[#allocation12 + $0x328] sm:$0xff] }
0x25f3   :  { %6569 = vmax.xlane.f32.xlu0 %v6568_v35  ;;  %v6204_v35 = vld [vmem:[#allocation12 + $0x320] sm:$0xff] }
0x2676   :  { %v6832_v46 = vpop.xlane.xlu1 %6831 }
0x2677   :  { %v6834_v48 = vsub.f32 %v6826_v12, %v6832_v46  ;;  %v6211_v12 = vld [vmem:[#allocation12 + $0x358] sm:$0xff] }
0x2678   :  { %v6829_v15 = vpop.xlane.xlu0 %6828  ;;  %v6203_v46 = vld [vmem:[#allocation12 + $0x318] sm:$0xff] }
0x2679   :  { %v6837_v40 = vmul.f32 1.442695, %v6834_v48  ;;  %v6833_v5 = vsub.f32 %v6825_v34, %v6829_v15  ;;  %v6209_v34 = vld [vmem:[#allocation12 + $0x348] sm:$0xff]  ;;  %v6202_v48 = vld [vmem:[#allocation12 + $0x310] sm:$0xff] }
0x267a   :  { %v6573_v14 = vpop.xlane.xlu1 %6572  ;;  %v6201_v15 = vld [vmem:[#allocation12 + $0x308] sm:$0xff] }
0x267b   :  { %11598 = vpow2.f32 %v6837_v40  ;;  %v6835_v49 = vmul.f32 1.442695, %v6833_v5  ;;  %v6575_v51 = vsub.f32 %v6567_v37, %v6573_v14  ;;  %v6208_v37 = vld [vmem:[#allocation12 + $0x340] sm:$0xff] }
0x267c   :  { %v6570_v53 = vpop.xlane.xlu0 %6569  ;;  %v6200_v40 = vld [vmem:[#allocation12 + $0x300] sm:$0xff] }
0x267d   :  { %11600 = vpow2.f32 %v6835_v49  ;;  %v6578_v6 = vmul.f32 1.442695, %v6575_v51  ;;  %v6574_v18 = vsub.f32 %v6566_v17, %v6570_v53  ;;  %v6206_v17 = vld [vmem:[#allocation12 + $0x330] sm:$0xff]  ;;  %v7038_v5 = vld [vmem:[#allocation9 + $0xbd8] sm:$0xff] }
0x267e   :  { %v7022_v14 = vld [vmem:[#allocation9 + $0xbb8] sm:$0xff] }
0x267f   :  { %11602 = vpow2.f32 %v6578_v6  ;;  %v6576_v52 = vmul.f32 1.442695, %v6574_v18  ;;  %v7037_v53 = vld [vmem:[#allocation9 + $0xb78] sm:$0xff] }
0x2680   :  { %v7036_v18 = vld [vmem:[#allocation9 + $0xb18] sm:$0xff] }
0x2681   :  { %11604 = vpow2.f32 %v6576_v52 }
0x2688   :  { %v11599_v54 = vpop.eup %11598 }
0x2689   :  { %v6842_v32 = vsel %vm1004_vm6, %v11599_v54, 0.0 }
0x268a   :  { %v11601_v57 = vpop.eup %11600  ;;  %6843 = vadd.xlane.f32.xlu1 %v6842_v32  ;;  %v7035_v32 = vld [vmem:[#allocation9 + $0xab8] sm:$0xff] }
0x268b   :  { %v6839_v10 = vsel %vm1004_vm6, %v11601_v57, 0.0 }
0x268c   :  { %v11603_v21 = vpop.eup %11602  ;;  %6840 = vadd.xlane.f32.xlu0 %v6839_v10  ;;  %v7034_v10 = vld [vmem:[#allocation9 + $0xa58] sm:$0xff] }
0x268d   :  { %v6583_v28 = vsel %vm1004_vm6, %v11603_v21, 0.0 }
0x268e   :  { %v11605_v60 = vpop.eup %11604  ;;  %6584 = vadd.xlane.f32.xlu1 %v6583_v28  ;;  %v7033_v28 = vld [vmem:[#allocation9 + $0x9f8] sm:$0xff] }
0x268f   :  { %v6580_v44 = vsel %vm1004_vm6, %v11605_v60, 0.0 }
0x2690   :  { %6581 = vadd.xlane.f32.xlu0 %v6580_v44  ;;  %v7032_v44 = vld [vmem:[#allocation9 + $0x998] sm:$0xff] }
0x2713   :  { %v6844_v23 = vpop.xlane.xlu1 %6843 }
0x2714   :  { %11606 = vrcp.f32 %v6844_v23  ;;  %v7031_v23 = vld [vmem:[#allocation9 + $0x938] sm:$0xff] }
0x2715   :  { %v6841_v8 = vpop.xlane.xlu0 %6840 }
0x2716   :  { %11608 = vrcp.f32 %v6841_v8  ;;  %v7016_v8 = vld [vmem:[#allocation9 + $0x978] sm:$0xff] }
0x2717   :  { %v6585_v11 = vpop.xlane.xlu1 %6584 }
0x2718   :  { %11610 = vrcp.f32 %v6585_v11  ;;  %v7030_v11 = vld [vmem:[#allocation9 + $0x8d8] sm:$0xff] }
0x2719   :  { %v6582_v9 = vpop.xlane.xlu0 %6581 }
0x271a   :  { %11612 = vrcp.f32 %v6582_v9  ;;  %v7015_v9 = vld [vmem:[#allocation9 + $0x918] sm:$0xff] }
0x2721   :  { %v11607_v22 = vpop.eup %11606 }
0x2722   :  { %v6848_v45 = vmul.f32 %v11607_v22, %v11599_v54  ;;  %v7021_v54 = vld [vmem:[#allocation9 + $0xb58] sm:$0xff] }
0x2723   :  { %v11609_v25 = vpop.eup %11608  ;;  %v7029_v22 = vld [vmem:[#allocation9 + $0x878] sm:$0xff] }
0x2724   :  { %v6847_v26 = vmul.f32 %v11609_v25, %v11601_v57  ;;  %v7020_v57 = vld [vmem:[#allocation9 + $0xaf8] sm:$0xff] }
0x2725   :  { %v11611_v43 = vpop.eup %11610  ;;  %v7014_v25 = vld [vmem:[#allocation9 + $0x8b8] sm:$0xff] }
0x2726   :  { %11079 = vmatprep.mubr.msk.f32.mxu1 %vm1004_vm6, %v6847_v26  ;;  %v6589_v0 = vmul.f32 %v11611_v43, %v11603_v21  ;;  %v7019_v21 = vld [vmem:[#allocation9 + $0xa98] sm:$0xff] }
0x2727   :  { %v11613_v27 = vpop.eup %11612  ;;  %11080 = vmatmul.mubr.msk.f32.vlgmr.msra.gmra.mxu1 %vm1004_vm6, %v6848_v45  ;;  %v7028_v26 = vld [vmem:[#allocation9 + $0x818] sm:$0xff] }
0x2728   :  { %v6588_v56 = vmul.f32 %v11613_v27, %v11605_v60  ;;  %11083 = vmatpush3.msra.mxu1 %v6215_v63  ;;  %v7018_v60 = vld [vmem:[#allocation9 + $0xa38] sm:$0xff] }
0x2729   :  { %11084 = vmatprep.subr.mxu1 %v6214_v58  ;;  %v7013_v45 = vld [vmem:[#allocation9 + $0x858] sm:$0xff] }
0x272a   :  { %11030 = vmatprep.mubr.msk.f32.mxu0 %vm1004_vm6, %v6588_v56  ;;  %11085 = vmatpush3.msra.mxu1 %v6214_v58  ;;  %v7027_v43 = vld [vmem:[#allocation9 + $0x7b8] sm:$0xff] }
0x272b   :  { %11031 = vmatmul.mubr.msk.f32.vlgmr.msra.gmra.mxu0 %vm1004_vm6, %v6589_v0  ;;  %11086 = vmatprep.subr.mxu1 %v6213_v24  ;;  %v7026_v27 = vld [vmem:[#allocation9 + $0x758] sm:$0xff] }
0x272c   :  { %11034 = vmatpush3.msra.mxu0 %v6215_v63  ;;  %11087 = vmatpush3.msra.mxu1 %v6213_v24  ;;  %v7017_v63 = vld [vmem:[#allocation9 + $0x9d8] sm:$0xff] }
0x272d   :  { %11035 = vmatprep.subr.mxu0 %v6214_v58  ;;  %11088 = vmatprep.subr.mxu1 %v6212_v7  ;;  %v7011_v56 = vld [vmem:[#allocation9 + $0x798] sm:$0xff] }
0x272e   :  { %11036 = vmatpush3.msra.mxu0 %v6214_v58  ;;  %11089 = vmatpush3.msra.mxu1 %v6212_v7  ;;  %v7012_v58 = vld [vmem:[#allocation9 + $0x7f8] sm:$0xff] }
0x272f   :  { %11037 = vmatprep.subr.mxu0 %v6213_v24  ;;  %11090 = vmatprep.subr.mxu1 %v6211_v12  ;;  %v7010_v0 = vld [vmem:[#allocation9 + $0x738] sm:$0xff] }
0x2730   :  { %11038 = vmatpush3.msra.mxu0 %v6213_v24  ;;  %11091 = vmatpush3.msra.mxu1 %v6211_v12  ;;  %v7025_v24 = vld [vmem:[#allocation9 + $0x6f8] sm:$0xff] }
0x2731   :  { %11039 = vmatprep.subr.mxu0 %v6212_v7  ;;  %11092 = vmatprep.subr.mxu1 %v6210_v3 }
0x2732   :  { %11040 = vmatpush3.msra.mxu0 %v6212_v7  ;;  %11093 = vmatpush3.msra.mxu1 %v6210_v3  ;;  %v7024_v7 = vld [vmem:[#allocation9 + $0x698] sm:$0xff] }
0x2733   :  { %11041 = vmatprep.subr.mxu0 %v6211_v12  ;;  %11094 = vmatprep.subr.mxu1 %v6209_v34 }
0x2734   :  { %11042 = vmatpush3.msra.mxu0 %v6211_v12  ;;  %11095 = vmatpush3.msra.mxu1 %v6209_v34  ;;  %v7009_v12 = vld [vmem:[#allocation9 + $0x6d8] sm:$0xff] }
0x2735   :  { %11043 = vmatprep.subr.mxu0 %v6210_v3  ;;  %11096 = vmatprep.subr.mxu1 %v6208_v37 }
0x2736   :  { %11044 = vmatpush3.msra.mxu0 %v6210_v3  ;;  %11097 = vmatpush3.msra.mxu1 %v6208_v37  ;;  %v7023_v3 = vld [vmem:[#allocation9 + $0x638] sm:$0xff] }
0x2737   :  { %11045 = vmatprep.subr.mxu0 %v6209_v34  ;;  %11098 = vmatprep.subr.mxu1 %v6207_v62 }
0x2738   :  { %11046 = vmatpush3.msra.mxu0 %v6209_v34  ;;  %11099 = vmatpush3.msra.mxu1 %v6207_v62  ;;  %v7008_v34 = vld [vmem:[#allocation9 + $0x678] sm:$0xff] }
0x2739   :  { %11047 = vmatprep.subr.mxu0 %v6208_v37  ;;  %11100 = vmatprep.subr.mxu1 %v6206_v17 }
0x273a   :  { %11048 = vmatpush3.msra.mxu0 %v6208_v37  ;;  %11101 = vmatpush3.msra.mxu1 %v6206_v17  ;;  %v7007_v37 = vld [vmem:[#allocation9 + $0x618] sm:$0xff] }
0x273b   :  { %11049 = vmatprep.subr.mxu0 %v6207_v62  ;;  %11102 = vmatprep.subr.mxu1 %v6205_v41 }
0x273c   :  { %11050 = vmatpush3.msra.mxu0 %v6207_v62  ;;  %11103 = vmatpush3.msra.mxu1 %v6205_v41  ;;  %v7054_v62 = vld [vmem:[#allocation9 + $0xbf8] sm:$0xff] }
0x273d   :  { %11051 = vmatprep.subr.mxu0 %v6206_v17  ;;  %11104 = vmatprep.subr.mxu1 %v6204_v35 }
0x273e   :  { %11052 = vmatpush3.msra.mxu0 %v6206_v17  ;;  %11105 = vmatpush3.msra.mxu1 %v6204_v35  ;;  %v7053_v17 = vld [vmem:[#allocation9 + $0xb98] sm:$0xff] }
0x273f   :  { %11053 = vmatprep.subr.mxu0 %v6205_v41  ;;  %11106 = vmatprep.subr.mxu1 %v6203_v46 }
0x2740   :  { %11054 = vmatpush3.msra.mxu0 %v6205_v41  ;;  %11107 = vmatpush3.msra.mxu1 %v6203_v46  ;;  %v7052_v41 = vld [vmem:[#allocation9 + $0xb38] sm:$0xff] }
0x2741   :  { %11055 = vmatprep.subr.mxu0 %v6204_v35  ;;  %11108 = vmatprep.subr.mxu1 %v6202_v48 }
0x2742   :  { %11056 = vmatpush3.msra.mxu0 %v6204_v35  ;;  %11109 = vmatpush3.msra.mxu1 %v6202_v48  ;;  %v7051_v35 = vld [vmem:[#allocation9 + $0xad8] sm:$0xff] }
0x2743   :  { %11057 = vmatprep.subr.mxu0 %v6203_v46  ;;  %11110 = vmatprep.subr.mxu1 %v6201_v15 }
0x2744   :  { %11058 = vmatpush3.msra.mxu0 %v6203_v46  ;;  %11111 = vmatpush3.msra.mxu1 %v6201_v15  ;;  %v7050_v46 = vld [vmem:[#allocation9 + $0xa78] sm:$0xff] }
0x2745   :  { %11059 = vmatprep.subr.mxu0 %v6202_v48  ;;  %11112 = vmatprep.subr.mxu1 %v6200_v40 }
0x2746   :  { %11060 = vmatpush3.msra.mxu0 %v6202_v48  ;;  %11113 = vmatpush3.msra.mxu1 %v6200_v40  ;;  %v7049_v48 = vld [vmem:[#allocation9 + $0xa18] sm:$0xff] }
0x2747   :  { %11061 = vmatprep.subr.mxu0 %v6201_v15  ;;  %11155 = vmatprep.subr.mxu1 %v7038_v5 }
0x2748   :  { %11062 = vmatpush3.msra.mxu0 %v6201_v15  ;;  %v7048_v15 = vld [vmem:[#allocation9 + $0x9b8] sm:$0xff] }
0x2749   :  { %11063 = vmatprep.subr.mxu0 %v6200_v40 }
0x274a   :  { %11064 = vmatpush3.msra.mxu0 %v6200_v40  ;;  %v7047_v40 = vld [vmem:[#allocation9 + $0x958] sm:$0xff] }
0x274b   :  { %11117 = vmatprep.subr.mxu0 %v7022_v14 }
0x27e7   :  { %v11081_v49 = vpop.f32.mrf.mxu1 }
0x27e9   :  { %v6921_v51 = vpop.f32.mrf.mxu1 }
0x27ea   :  { %11114 = vmatprep.mubr.f32.mxu1 %v6921_v51  ;;  %v7042_v51 = vld [vmem:[#allocation9 + $0x778] sm:$0xff] }
0x27eb   :  { %v11032_v6 = vpop.f32.mrf.mxu0  ;;  %11115 = vmatmul.mubr.f32.vlgmr.msra.gmra.mxu1 %v11081_v49  ;;  %v7044_v49 = vld [vmem:[#allocation9 + $0x838] sm:$0xff] }
0x27ec   :  { %11156 = vmatpush3.msra.mxu1 %v7038_v5  ;;  %11187 = vmatprep.mubr.f32.mxu1 %v12851_v61  ;;  %v7046_v5 = vld [vmem:[#allocation9 + $0x8f8] sm:$0xff] }
0x27ed   :  { %11157 = vmatprep.subr.mxu1 %v7037_v53  ;;  %v6662_v52 = vpop.f32.mrf.mxu0 }
0x27ee   :  { %11158 = vmatpush3.msra.mxu1 %v7037_v53  ;;  %11065 = vmatprep.mubr.f32.mxu0 %v6662_v52  ;;  %v7041_v53 = vld [vmem:[#allocation9 + $0x718] sm:$0xff]  ;;  %v6146_v52 = vadd.f32 %v12989_v30, %v13135_v39  ;;  %v13203_v39 = vld [vmem:[#allocation10 + $0x13] ss:$0 sm:$0xff] }
0x27ef   :  { %11159 = vmatprep.subr.mxu1 %v7036_v18  ;;  %11066 = vmatmul.mubr.f32.vlgmr.msra.gmra.mxu0 %v11032_v6  ;;  %v7040_v6 = vld [vmem:[#allocation9 + $0x6b8] sm:$0xff] }
0x27f0   :  { %11118 = vmatpush3.msra.mxu0 %v7022_v14  ;;  %11160 = vmatpush3.msra.mxu1 %v7036_v18  ;;  %v7045_v14 = vld [vmem:[#allocation9 + $0x898] sm:$0xff] }
0x27f1   :  { %11119 = vmatprep.subr.mxu0 %v7021_v54  ;;  %11149 = vmatprep.mubr.f32.mxu0 %v12851_v61  ;;  %v7039_v18 = vld [vmem:[#allocation9 + $0x658] sm:$0xff] }
0x27f2   :  { %11161 = vmatprep.subr.mxu1 %v7035_v32  ;;  %11120 = vmatpush3.msra.mxu0 %v7021_v54 }
0x27f3   :  { %11162 = vmatpush3.msra.mxu1 %v7035_v32  ;;  %11121 = vmatprep.subr.mxu0 %v7020_v57  ;;  %v6141_v32 = vadd.f32 %v12991_v29, %v13137_v55 }
0x27f4   :  { %11163 = vmatprep.subr.mxu1 %v7034_v10  ;;  %11122 = vmatpush3.msra.mxu0 %v7020_v57 }
0x27f5   :  { %11164 = vmatpush3.msra.mxu1 %v7034_v10  ;;  %11123 = vmatprep.subr.mxu0 %v7019_v21 }
0x27f6   :  { %11165 = vmatprep.subr.mxu1 %v7033_v28  ;;  %11124 = vmatpush3.msra.mxu0 %v7019_v21  ;;  %v5814_v21 = vadd.f32 %v12985_v38, %v13082_v50  ;;  %v8482_v50 = vld [vmem:[#allocation10 + $0xf] ss:$0 sm:$0xff] }
0x27f7   :  { %11166 = vmatpush3.msra.mxu1 %v7033_v28  ;;  %11125 = vmatprep.subr.mxu0 %v7018_v60 }
0x27f8   :  { %11167 = vmatprep.subr.mxu1 %v7032_v44  ;;  %11126 = vmatpush3.msra.mxu0 %v7018_v60 }
0x27f9   :  { %11168 = vmatpush3.msra.mxu1 %v7032_v44  ;;  %11127 = vmatprep.subr.mxu0 %v7017_v63 }
0x27fa   :  { %11169 = vmatprep.subr.mxu1 %v7031_v23  ;;  %11128 = vmatpush3.msra.mxu0 %v7017_v63 }
0x27fb   :  { %11170 = vmatpush3.msra.mxu1 %v7031_v23  ;;  %11129 = vmatprep.subr.mxu0 %v7016_v8 }
0x27fc   :  { %11171 = vmatprep.subr.mxu1 %v7030_v11  ;;  %11130 = vmatpush3.msra.mxu0 %v7016_v8 }
0x27fd   :  { %11172 = vmatpush3.msra.mxu1 %v7030_v11  ;;  %11131 = vmatprep.subr.mxu0 %v7015_v9 }
0x27fe   :  { %11173 = vmatprep.subr.mxu1 %v7029_v22  ;;  %11132 = vmatpush3.msra.mxu0 %v7015_v9 }
0x27ff   :  { %11174 = vmatpush3.msra.mxu1 %v7029_v22  ;;  %11133 = vmatprep.subr.mxu0 %v7014_v25 }
0x2800   :  { %11175 = vmatprep.subr.mxu1 %v7028_v26  ;;  %11134 = vmatpush3.msra.mxu0 %v7014_v25  ;;  %v13211_v25 = vld [vmem:[#allocation10 + $0x17] ss:$0 sm:$0xff] }
0x2801   :  { %11176 = vmatpush3.msra.mxu1 %v7028_v26  ;;  %11135 = vmatprep.subr.mxu0 %v7013_v45 }
0x2802   :  { %11177 = vmatprep.subr.mxu1 %v7027_v43  ;;  %11136 = vmatpush3.msra.mxu0 %v7013_v45 }
0x2803   :  { %11178 = vmatpush3.msra.mxu1 %v7027_v43  ;;  %11137 = vmatprep.subr.mxu0 %v7012_v58 }
0x2804   :  { %11179 = vmatprep.subr.mxu1 %v7026_v27  ;;  %11138 = vmatpush3.msra.mxu0 %v7012_v58 }
0x2805   :  { %11180 = vmatpush3.msra.mxu1 %v7026_v27  ;;  %11139 = vmatprep.subr.mxu0 %v7011_v56 }
0x2806   :  { %11181 = vmatprep.subr.mxu1 %v7025_v24  ;;  %11140 = vmatpush3.msra.mxu0 %v7011_v56 }
0x2807   :  { %11182 = vmatpush3.msra.mxu1 %v7025_v24  ;;  %11141 = vmatprep.subr.mxu0 %v7010_v0 }
0x2808   :  { %11183 = vmatprep.subr.mxu1 %v7024_v7  ;;  %11142 = vmatpush3.msra.mxu0 %v7010_v0 }
0x2809   :  { %11184 = vmatpush3.msra.mxu1 %v7024_v7  ;;  %11143 = vmatprep.subr.mxu0 %v7009_v12 }
0x280a   :  { %11185 = vmatprep.subr.mxu1 %v7023_v3  ;;  %11144 = vmatpush3.msra.mxu0 %v7009_v12 }
0x280b   :  { %11186 = vmatpush3.msra.mxu1 %v7023_v3  ;;  %11145 = vmatprep.subr.mxu0 %v7008_v34 }
0x280c   :  { %11188 = vmatmul.mubr.f32.vlgmr.msra.gmra.mxu1 %v12854_v59  ;;  %11146 = vmatpush3.msra.mxu0 %v7008_v34 }
0x280d   :  { %11190 = vmatprep.mubr.f32.mxu1 %v12885_v1  ;;  %11147 = vmatprep.subr.mxu0 %v7007_v37 }
0x280e   :  { %11148 = vmatpush3.msra.mxu0 %v7007_v37 }
0x280f   :  { %11150 = vmatmul.mubr.f32.vlgmr.msra.gmra.mxu0 %v12854_v59  ;;  %11193 = vmatprep.subr.mxu0 %v7054_v62 }
0x2810   :  { %11191 = vmatmul.mubr.f32.gmra.mxu1 %v12890_v4  ;;  %11152 = vmatprep.mubr.f32.mxu0 %v12885_v1 }
0x2811   :  { %11194 = vmatpush3.msra.mxu0 %v7054_v62 }
0x2812   :  { %11195 = vmatprep.subr.mxu0 %v7053_v17 }
0x2813   :  { %11196 = vmatpush3.msra.mxu0 %v7053_v17 }
0x2814   :  { %11153 = vmatmul.mubr.f32.gmra.mxu0 %v12890_v4  ;;  %11197 = vmatprep.subr.mxu0 %v7052_v41 }
0x2815   :  { %11198 = vmatpush3.msra.mxu0 %v7052_v41  ;;  %11225 = vmatprep.mubr.f32.mxu0 %v12851_v61  ;;  %v7043_v61 = vld [vmem:[#allocation9 + $0x7d8] sm:$0xff] }
0x2816   :  { %11199 = vmatprep.subr.mxu0 %v7051_v35 }
0x2817   :  { %11200 = vmatpush3.msra.mxu0 %v7051_v35 }
0x2818   :  { %11201 = vmatprep.subr.mxu0 %v7050_v46 }
0x2819   :  { %11202 = vmatpush3.msra.mxu0 %v7050_v46 }
0x281a   :  { %11203 = vmatprep.subr.mxu0 %v7049_v48 }
0x281b   :  { %11204 = vmatpush3.msra.mxu0 %v7049_v48 }
0x281c   :  { %11205 = vmatprep.subr.mxu0 %v7048_v15 }
0x281d   :  { %11206 = vmatpush3.msra.mxu0 %v7048_v15 }
0x281e   :  { %11207 = vmatprep.subr.mxu0 %v7047_v40 }
0x281f   :  { %11208 = vmatpush3.msra.mxu0 %v7047_v40 }
0x2820   :  { %11209 = vmatprep.subr.mxu0 %v7046_v5 }
0x2821   :  { %11210 = vmatpush3.msra.mxu0 %v7046_v5 }
0x2822   :  { %11211 = vmatprep.subr.mxu0 %v7045_v14 }
0x2823   :  { %11212 = vmatpush3.msra.mxu0 %v7045_v14 }
0x2824   :  { %11213 = vmatprep.subr.mxu0 %v7044_v49 }
0x2825   :  { %11214 = vmatpush3.msra.mxu0 %v7044_v49 }
0x2826   :  { %11215 = vmatprep.subr.mxu0 %v7043_v61 }
0x2827   :  { %11216 = vmatpush3.msra.mxu0 %v7043_v61  ;;  %v13229_v61 = vld [vmem:[#allocation12 + $0x3f0] sm:$0xff] }
0x2828   :  { %11217 = vmatprep.subr.mxu0 %v7042_v51 }
0x2829   :  { %11218 = vmatpush3.msra.mxu0 %v7042_v51  ;;  %v13233_v51 = vld [vmem:[#allocation12 + $0x3e8] sm:$0xff] }
0x282a   :  { %11219 = vmatprep.subr.mxu0 %v7041_v53 }
0x282b   :  { %11220 = vmatpush3.msra.mxu0 %v7041_v53  ;;  %v13237_v53 = vld [vmem:[#allocation12 + $0x3e0] sm:$0xff] }
0x282c   :  { %11221 = vmatprep.subr.mxu0 %v7040_v6 }
0x282d   :  { %11222 = vmatpush3.msra.mxu0 %v7040_v6  ;;  %v13241_v6 = vld [vmem:[#allocation12 + $0x3d8] sm:$0xff] }
0x282e   :  { %11223 = vmatprep.subr.mxu0 %v7039_v18 }
0x282f   :  { %11224 = vmatpush3.msra.mxu0 %v7039_v18  ;;  %v13245_v18 = vld [vmem:[#allocation12 + $0x3d0] sm:$0xff] }
0x2830   :  { %11226 = vmatmul.mubr.f32.vlgmr.msra.gmra.mxu0 %v12854_v59 }
0x2831   :  { %11228 = vmatprep.mubr.f32.mxu0 %v12885_v1  ;;  %v5809_v1 = vadd.f32 %v12987_v20, %v13084_v31 }
0x2834   :  { %11229 = vmatmul.mubr.f32.gmra.mxu0 %v12890_v4 }
0x28ab   :  { %v11116_v54 = vpop.f32.mrf.mxu1 }
0x28ac   :  { %v13191_v57 = vadd.f32 %v11116_v54, %v6146_v52  ;;  %v13249_v52 = vld [vmem:[#allocation12 + $0x3c8] sm:$0xff]  ;;  %v13253_v54 = vld [vmem:[#allocation12 + $0x3c0] sm:$0xff] }
0x28ad   :  { %v6996_v10 = vpop.f32.mrf.mxu1 }
0x28ae   :  { %v13195_v28 = vadd.f32 %v6996_v10, %v6141_v32  ;;  %v13257_v32 = vld [vmem:[#allocation12 + $0x3b8] sm:$0xff]  ;;  %v13261_v10 = vld [vmem:[#allocation12 + $0x3b0] sm:$0xff] }
0x28af   :  { %v11067_v59 = vpop.f32.mrf.mxu0 }
0x28b0   :  { %v13199_v4 = vadd.f32 %v11067_v59, %v5814_v21  ;;  %v13265_v21 = vld [vmem:[#allocation12 + $0x3a8] sm:$0xff]  ;;  %v13269_v59 = vld [vmem:[#allocation12 + $0x3a0] sm:$0xff] }
0x28b1   :  { %v6737_v60 = vpop.f32.mrf.mxu0 }
0x28b2   :  { %v13201_v30 = vadd.f32 %v6737_v60, %v5809_v1  ;;  %v13273_v1 = vld [vmem:[#allocation12 + $0x398] sm:$0xff]  ;;  %v13277_v60 = vld [vmem:[#allocation12 + $0x390] sm:$0xff] }
0x28cc   :  { %v11189_v29 = vpop.f32.mrf.mxu1 }
0x28cd   :  { %v7243_v55 = vadd.f32 %v11189_v29, %v13203_v39 }
0x28ce   :  { %v7237_v44 = vpop.f32.mrf.mxu1 }
0x28cf   :  { %v7238_v63 = vadd.f32 %v13203_v39, %v7237_v44  ;;  %11231 = vmatprep.subr.mxu1 %v7243_v55  ;;  %v11151_v38 = vpop.f32.mrf.mxu0 }
0x28d0   :  { %11232 = vmatpush3.xpose.msra.mxu1 %v7243_v55  ;;  %v7152_v8 = vadd.f32 %v11151_v38, %v8482_v50  ;;  %v11192_v43 = vpop.f32.mrf.mxu1 }
0x28d1   :  { %11233 = vmatprep.subr.mxu1 %v7238_v63  ;;  %v7146_v23 = vpop.f32.mrf.mxu0  ;;  %v13216_v56 = vadd.f32 %v11192_v43, %v13203_v39 }
0x28d2   :  { %v7147_v20 = vadd.f32 %v8482_v50, %v7146_v23  ;;  %v13219_v24 = vpop.f32.mrf.mxu1 }
0x28d3   :  { %v7248_v23 = vadd.f32 %v13203_v39, %v13219_v24  ;;  %v13293_v39 = vld [vmem:[#allocation12 + $0x388] sm:$0xff] }
0x28d4   :  { %v11154_v31 = vpop.f32.mrf.mxu0  ;;  %11234 = vmatpush3.xpose.msra.mxu1 %v7238_v63  ;;  %11235 = vmatprep.mubr.f32.mxu1 %v7147_v20 }
0x28d5   :  { %v13207_v11 = vadd.f32 %v11154_v31, %v8482_v50 }
0x28d6   :  { %v7156_v9 = vpop.f32.mrf.mxu0 }
0x28d7   :  { %v13209_v22 = vadd.f32 %v8482_v50, %v7156_v9  ;;  %11236 = vmatmul.mubr.f32.vlgmr.msra.gmra.mxu1 %v7152_v8 }
0x28f0   :  { %v11227_v26 = vpop.f32.mrf.mxu0 }
0x28f1   :  { %v7334_v45 = vadd.f32 %v11227_v26, %v13211_v25 }
0x28f2   :  { %v7328_v58 = vpop.f32.mrf.mxu0 }
0x28f3   :  { %v7329_v27 = vadd.f32 %v13211_v25, %v7328_v58  ;;  %11238 = vmatprep.subr.mxu1 %v7334_v45 }
0x28f4   :  { %11239 = vmatpush3.msra.mxu1 %v7334_v45  ;;  %v11230_v20 = vpop.f32.mrf.mxu0 }
0x28f5   :  { %11240 = vmatprep.subr.mxu1 %v7329_v27  ;;  %v7344_v31 = vadd.f32 %v11230_v20, %v13211_v25  ;;  %v7964_v20 = vld [vmem:[#allocation18 + $0xb0] sm:$0xff] }
0x28f6   :  { %11241 = vmatpush3.msra.mxu1 %v7329_v27  ;;  %v7338_v8 = vpop.f32.mrf.mxu0 }
0x28f7   :  { %11280 = vmatprep.subr.mxu1 %v13216_v56  ;;  %v7339_v9 = vadd.f32 %v13211_v25, %v7338_v8  ;;  %v7962_v8 = vld [vmem:[#allocation18 + $0xa0] sm:$0xff] }
0x2997   :  { %v11237_v0 = vpop.f32.mrf.mxu1 }
0x2998   :  { %v7423_v7 = vmul.f32 0.35355338, %v11237_v0 }
0x2999   :  { %v7413_v12 = vpop.f32.mrf.mxu1 }
0x299a   :  { %v7422_v3 = vmul.f32 0.35355338, %v7413_v12  ;;  %v7425_v34 = vadd.f32 %v13155_v33, %v7423_v7 }
0x299c   :  { %v7429_v37 = vsel %vm1004_vm6, %v7425_v34, -inf  ;;  %v7424_v62 = vadd.f32 %v13162_v42, %v7422_v3  ;;  %v13227_v42 = vld [vmem:[#allocation12 + $0x3f8] sm:$0xff] }
0x299d   :  { %7430 = vmax.xlane.f32.xlu1 %v7429_v37  ;;  %11245 = vmatprep.subr.mxu0 %v13227_v42 }
0x299e   :  { %v7426_v17 = vsel %vm1004_vm6, %v7424_v62, -inf  ;;  %11246 = vmatpush3.msra.mxu0 %v13227_v42 }
0x299f   :  { %7427 = vmax.xlane.f32.xlu0 %v7426_v17  ;;  %11247 = vmatprep.subr.mxu0 %v13229_v61 }
0x29a0   :  { %11248 = vmatpush3.msra.mxu0 %v13229_v61 }
0x29a1   :  { %11249 = vmatprep.subr.mxu0 %v13233_v51 }
0x29a2   :  { %11250 = vmatpush3.msra.mxu0 %v13233_v51 }
0x29a3   :  { %11251 = vmatprep.subr.mxu0 %v13237_v53 }
0x29a4   :  { %11252 = vmatpush3.msra.mxu0 %v13237_v53 }
0x29a5   :  { %11253 = vmatprep.subr.mxu0 %v13241_v6 }
0x29a6   :  { %11254 = vmatpush3.msra.mxu0 %v13241_v6 }
0x29a7   :  { %11255 = vmatprep.subr.mxu0 %v13245_v18 }
0x29a8   :  { %11256 = vmatpush3.msra.mxu0 %v13245_v18 }
0x29a9   :  { %11257 = vmatprep.subr.mxu0 %v13249_v52 }
0x29aa   :  { %11258 = vmatpush3.msra.mxu0 %v13249_v52 }
0x29ab   :  { %11259 = vmatprep.subr.mxu0 %v13253_v54 }
0x29ac   :  { %11260 = vmatpush3.msra.mxu0 %v13253_v54 }
0x29ad   :  { %11261 = vmatprep.subr.mxu0 %v13257_v32 }
0x29ae   :  { %11262 = vmatpush3.msra.mxu0 %v13257_v32 }
0x29af   :  { %11263 = vmatprep.subr.mxu0 %v13261_v10 }
0x29b0   :  { %11264 = vmatpush3.msra.mxu0 %v13261_v10 }
0x29b1   :  { %11265 = vmatprep.subr.mxu0 %v13265_v21 }
0x29b2   :  { %11266 = vmatpush3.msra.mxu0 %v13265_v21 }
0x29b3   :  { %11267 = vmatprep.subr.mxu0 %v13269_v59 }
0x29b4   :  { %11268 = vmatpush3.msra.mxu0 %v13269_v59 }
0x29b5   :  { %11269 = vmatprep.subr.mxu0 %v13273_v1 }
0x29b6   :  { %11270 = vmatpush3.msra.mxu0 %v13273_v1 }
0x29b7   :  { %11271 = vmatprep.subr.mxu0 %v13277_v60 }
0x29b8   :  { %11272 = vmatpush3.msra.mxu0 %v13277_v60 }
0x29b9   :  { %11273 = vmatprep.subr.mxu0 %v13293_v39 }
0x29ba   :  { %11274 = vmatpush3.msra.mxu0 %v13293_v39 }
0x2a26   :  { %v7431_v41 = vpop.xlane.xlu1 %7430 }
0x2a27   :  { %v7433_v35 = vsub.f32 %v7425_v34, %v7431_v41 }
0x2a28   :  { %v7428_v46 = vpop.xlane.xlu0 %7427 }
0x2a29   :  { %v7436_v48 = vmul.f32 1.442695, %v7433_v35  ;;  %v7432_v15 = vsub.f32 %v7424_v62, %v7428_v46 }
0x2a2b   :  { %11614 = vpow2.f32 %v7436_v48  ;;  %v7434_v40 = vmul.f32 1.442695, %v7432_v15  ;;  %v13314_v48 = vld [vmem:[#allocation13 + $0x1] ss:$0 sm:$0xff] }
0x2a2d   :  { %11616 = vpow2.f32 %v7434_v40 }
0x2a38   :  { %v11615_v5 = vpop.eup %11614 }
0x2a39   :  { %v7441_v14 = vsel %vm1004_vm6, %v11615_v5, 0.0 }
0x2a3a   :  { %v11617_v33 = vpop.eup %11616  ;;  %7442 = vadd.xlane.f32.xlu1 %v7441_v14 }
0x2a3b   :  { %v7438_v49 = vsel %vm1004_vm6, %v11617_v33, 0.0 }
0x2a3c   :  { %7439 = vadd.xlane.f32.xlu0 %v7438_v49 }
0x2ac3   :  { %v7443_v29 = vpop.xlane.xlu1 %7442 }
0x2ac4   :  { %11618 = vrcp.f32 %v7443_v29  ;;  %v7972_v29 = vld [vmem:[#allocation18 + $0xf0] sm:$0xff] }
0x2ac5   :  { %v7440_v55 = vpop.xlane.xlu0 %7439 }
0x2ac6   :  { %11620 = vrcp.f32 %v7440_v55  ;;  %v7970_v55 = vld [vmem:[#allocation18 + $0xe0] sm:$0xff] }
0x2ad1   :  { %v11619_v44 = vpop.eup %11618 }
0x2ad2   :  { %v7447_v50 = vmul.f32 %v11619_v44, %v11615_v5  ;;  %v7969_v44 = vld [vmem:[#allocation18 + $0xd8] sm:$0xff] }
0x2ad3   :  { %v11621_v63 = vpop.eup %11620 }
0x2ad4   :  { %v7446_v38 = vmul.f32 %v11621_v63, %v11617_v33  ;;  %v7968_v63 = vld [vmem:[#allocation18 + $0xd0] sm:$0xff] }
0x2ad6   :  { %11242 = vmatprep.mubr.msk.f32.mxu1 %vm1004_vm6, %v7446_v38  ;;  %v7967_v38 = vld [vmem:[#allocation18 + $0xc8] sm:$0xff] }
0x2ad7   :  { %11243 = vmatmul.mubr.msk.f32.vlgmr.msra.gmra.mxu1 %vm1004_vm6, %v7447_v50  ;;  %v7966_v50 = vld [vmem:[#allocation18 + $0xc0] sm:$0xff] }
0x2ad8   :  { %11281 = vmatpush3.xpose.msra.mxu1 %v13216_v56  ;;  %11284 = vmatprep.mubr.f32.mxu1 %v13209_v22  ;;  %v13297_v22 = vld [vmem:[#allocation12 + $0x380] sm:$0xff] }
0x2ad9   :  { %11282 = vmatprep.subr.mxu1 %v7248_v23  ;;  %11275 = vmatprep.subr.mxu0 %v13297_v22 }
0x2ada   :  { %11276 = vmatpush3.msra.mxu0 %v13297_v22 }
0x2adc   :  { %11283 = vmatpush3.xpose.msra.mxu1 %v7248_v23  ;;  %v7965_v23 = vld [vmem:[#allocation18 + $0xb8] sm:$0xff] }
0x2add   :  { %11287 = vmatprep.subr.mxu1 %v7344_v31 }
0x2adf   :  { %11285 = vmatmul.mubr.f32.vlgmr.msra.gmra.mxu1 %v13207_v11 }
0x2ae0   :  { %11288 = vmatpush3.msra.mxu1 %v7344_v31  ;;  %v7963_v31 = vld [vmem:[#allocation18 + $0xa8] sm:$0xff] }
0x2ae1   :  { %11289 = vmatprep.subr.mxu1 %v7339_v9 }
0x2ae2   :  { %11290 = vmatpush3.msra.mxu1 %v7339_v9  ;;  %v7961_v9 = vld [vmem:[#allocation18 + $0x98] sm:$0xff] }
0x2ae3   :  { %11294 = vmatprep.subr.mxu1 %v13227_v42 }
0x2b97   :  { %v11244_v25 = vpop.f32.mrf.mxu1 }
0x2b99   :  { %v7520_v26 = vpop.f32.mrf.mxu1 }
0x2b9a   :  { %11277 = vmatprep.mubr.f32.mxu0 %v7520_v26  ;;  %v7959_v26 = vld [vmem:[#allocation18 + $0x88] sm:$0xff] }
0x2b9b   :  { %11278 = vmatmul.mubr.f32.vlgmr.msra.gmra.mxu0 %v11244_v25  ;;  %v7960_v25 = vld [vmem:[#allocation18 + $0x90] sm:$0xff] }
0x2b9f   :  { %v11286_v11 = vpop.f32.mrf.mxu1 }
0x2ba0   :  { %v7682_v45 = vmul.f32 0.35355338, %v11286_v11  ;;  %v7958_v11 = vld [vmem:[#allocation18 + $0x80] sm:$0xff] }
0x2ba1   :  { %v7672_v43 = vpop.f32.mrf.mxu1 }
0x2ba2   :  { %v7681_v58 = vmul.f32 0.35355338, %v7672_v43  ;;  %v7684_v27 = vadd.f32 %v13142_v19, %v7682_v45 }
0x2ba4   :  { %v7688_v56 = vsel %vm1004_vm6, %v7684_v27, -inf  ;;  %v7683_v24 = vadd.f32 %v13149_v13, %v7681_v58 }
0x2ba5   :  { %7689 = vmax.xlane.f32.xlu1 %v7688_v56 }
0x2ba6   :  { %v7685_v0 = vsel %vm1004_vm6, %v7683_v24, -inf }
0x2ba7   :  { %7686 = vmax.xlane.f32.xlu0 %v7685_v0 }
0x2c2e   :  { %v7690_v7 = vpop.xlane.xlu1 %7689 }
0x2c2f   :  { %v7692_v12 = vsub.f32 %v7684_v27, %v7690_v7 }
0x2c30   :  { %v7687_v3 = vpop.xlane.xlu0 %7686 }
0x2c31   :  { %v7695_v34 = vmul.f32 1.442695, %v7692_v12  ;;  %v7691_v37 = vsub.f32 %v7683_v24, %v7687_v3 }
0x2c33   :  { %11622 = vpow2.f32 %v7695_v34  ;;  %v7693_v62 = vmul.f32 1.442695, %v7691_v37 }
0x2c35   :  { %11624 = vpow2.f32 %v7693_v62 }
0x2c40   :  { %v13305_v17 = vpop.eup %11622 }
0x2c41   :  { %v7700_v19 = vsel %vm1004_vm6, %v13305_v17, 0.0 }
0x2c42   :  { %v13309_v41 = vpop.eup %11624  ;;  %7701 = vadd.xlane.f32.xlu1 %v7700_v19  ;;  %v13371_v19 = vld [vmem:[#allocation16 + $0x1] ss:$0 sm:$0xff] }
0x2c43   :  { %v7697_v13 = vsel %vm1004_vm6, %v13309_v41, 0.0 }
0x2c44   :  { %7698 = vadd.xlane.f32.xlu0 %v7697_v13  ;;  %v8119_v13 = vld [vmem:[#allocation21 + $0xf8] sm:$0xff] }
0x2c5b   :  { %v11279_v35 = vpop.f32.mrf.mxu0 }
0x2c5c   :  { %v7605_v46 = vadd.f32 %v11279_v35, %v13199_v4 }
0x2c5d   :  { %v7595_v15 = vpop.f32.mrf.mxu0 }
0x2c5e   :  { %v7866_v40 = vadd.f32 %v7605_v46, %v12824_v16  ;;  %v7604_v5 = vadd.f32 %v7595_v15, %v13201_v30  ;;  %v7973_v30 = vld [vmem:[#allocation18 + $0xf8] sm:$0xff] }
0x2c5f   :  { %11329 = vmatprep.subr.mxu0 %v7973_v30  ;;  %v8118_v15 = vld [vmem:[#allocation21 + $0xf0] sm:$0xff] }
0x2c60   :  { %v13319_v14 = vadd.f32 %v13314_v48, %v7866_v40  ;;  %v7865_v33 = vadd.f32 %v7604_v5, %v12828_v2  ;;  %11330 = vmatpush3.msra.mxu0 %v7973_v30  ;;  %v7971_v2 = vld [vmem:[#allocation18 + $0xe8] sm:$0xff] }
0x2c61   :  { %11331 = vmatprep.subr.mxu0 %v7972_v29  ;;  %v8117_v40 = vld [vmem:[#allocation21 + $0xe8] sm:$0xff]  ;;  %v8116_v5 = vld [vmem:[#allocation21 + $0xe0] sm:$0xff] }
0x2c62   :  { %v13323_v49 = vadd.f32 %v13314_v48, %v7865_v33  ;;  %7887 = vadd.xlane.f32.xlu1 %v13319_v14  ;;  %v7898_v4 = vmul.f32 %v13319_v14, %v13319_v14  ;;  %11332 = vmatpush3.msra.mxu0 %v7972_v29  ;;  %v8115_v33 = vld [vmem:[#allocation21 + $0xd8] sm:$0xff]  ;;  %v8112_v30 = vld [vmem:[#allocation21 + $0xc0] sm:$0xff] }
0x2c63   :  { %11333 = vmatprep.subr.mxu0 %v7971_v2  ;;  %v8111_v29 = vld [vmem:[#allocation21 + $0xb8] sm:$0xff] }
0x2c64   :  { %7885 = vadd.xlane.f32.xlu0 %v13323_v49  ;;  %v7897_v16 = vmul.f32 %v13323_v49, %v13323_v49  ;;  %11334 = vmatpush3.msra.mxu0 %v7971_v2  ;;  %v8110_v2 = vld [vmem:[#allocation21 + $0xb0] sm:$0xff] }
0x2c65   :  { %11335 = vmatprep.subr.mxu0 %v7970_v55 }
0x2c66   :  { %7903 = vadd.xlane.f32.xlu1 %v7898_v4  ;;  %11336 = vmatpush3.msra.mxu0 %v7970_v55  ;;  %v8114_v4 = vld [vmem:[#allocation21 + $0xd0] sm:$0xff]  ;;  %v8109_v55 = vld [vmem:[#allocation21 + $0xa8] sm:$0xff] }
0x2c67   :  { %11337 = vmatprep.subr.mxu0 %v7969_v44 }
0x2c68   :  { %7901 = vadd.xlane.f32.xlu0 %v7897_v16  ;;  %11338 = vmatpush3.msra.mxu0 %v7969_v44  ;;  %v8113_v16 = vld [vmem:[#allocation21 + $0xc8] sm:$0xff]  ;;  %v8108_v44 = vld [vmem:[#allocation21 + $0xa0] sm:$0xff] }
0x2c69   :  { %11339 = vmatprep.subr.mxu0 %v7968_v63 }
0x2c6a   :  { %11340 = vmatpush3.msra.mxu0 %v7968_v63  ;;  %v8107_v63 = vld [vmem:[#allocation21 + $0x98] sm:$0xff] }
0x2c6b   :  { %11341 = vmatprep.subr.mxu0 %v7967_v38 }
0x2c6c   :  { %11342 = vmatpush3.msra.mxu0 %v7967_v38  ;;  %v8106_v38 = vld [vmem:[#allocation21 + $0x90] sm:$0xff] }
0x2c6d   :  { %11343 = vmatprep.subr.mxu0 %v7966_v50 }
0x2c6e   :  { %11344 = vmatpush3.msra.mxu0 %v7966_v50  ;;  %v8105_v50 = vld [vmem:[#allocation21 + $0x88] sm:$0xff] }
0x2c6f   :  { %11345 = vmatprep.subr.mxu0 %v7965_v23 }
0x2c70   :  { %11346 = vmatpush3.msra.mxu0 %v7965_v23  ;;  %v8104_v23 = vld [vmem:[#allocation21 + $0x80] sm:$0xff] }
0x2c71   :  { %11347 = vmatprep.subr.mxu0 %v7964_v20 }
0x2c72   :  { %11348 = vmatpush3.msra.mxu0 %v7964_v20  ;;  %v13376_v20 = vld [vmem:[#allocation19 + $0x1] ss:$0 sm:$0xff] }
0x2c73   :  { %11349 = vmatprep.subr.mxu0 %v7963_v31 }
0x2c74   :  { %11350 = vmatpush3.msra.mxu0 %v7963_v31 }
0x2c75   :  { %11351 = vmatprep.subr.mxu0 %v7962_v8 }
0x2c76   :  { %11352 = vmatpush3.msra.mxu0 %v7962_v8 }
0x2c77   :  { %11353 = vmatprep.subr.mxu0 %v7961_v9 }
0x2c78   :  { %11354 = vmatpush3.msra.mxu0 %v7961_v9 }
0x2c79   :  { %11355 = vmatprep.subr.mxu0 %v7960_v25 }
0x2c7a   :  { %11356 = vmatpush3.msra.mxu0 %v7960_v25 }
0x2c7b   :  { %11357 = vmatprep.subr.mxu0 %v7959_v26 }
0x2c7c   :  { %11358 = vmatpush3.msra.mxu0 %v7959_v26 }
0x2c7d   :  { %11359 = vmatprep.subr.mxu0 %v7958_v11 }
0x2c7e   :  { %11360 = vmatpush3.msra.mxu0 %v7958_v11 }
0x2ccb   :  { %v7702_v45 = vpop.xlane.xlu1 %7701 }
0x2ccc   :  { %11626 = vrcp.f32 %v7702_v45 }
0x2ccd   :  { %v7699_v43 = vpop.xlane.xlu0 %7698 }
0x2cce   :  { %11628 = vrcp.f32 %v7699_v43 }
0x2cd9   :  { %v11627_v58 = vpop.eup %11626 }
0x2cda   :  { %v7706_v24 = vmul.f32 %v11627_v58, %v13305_v17 }
0x2cdb   :  { %v11629_v27 = vpop.eup %11628 }
0x2cdc   :  { %v7705_v56 = vmul.f32 %v11629_v27, %v13309_v41 }
0x2cde   :  { %11291 = vmatprep.mubr.msk.f32.mxu1 %vm1004_vm6, %v7705_v56 }
0x2cdf   :  { %11292 = vmatmul.mubr.msk.f32.vlgmr.msra.gmra.mxu1 %vm1004_vm6, %v7706_v24 }
0x2ce0   :  { %11295 = vmatpush3.msra.mxu1 %v13227_v42 }
0x2ce1   :  { %11296 = vmatprep.subr.mxu1 %v13229_v61 }
0x2ce2   :  { %11297 = vmatpush3.msra.mxu1 %v13229_v61 }
0x2ce3   :  { %11298 = vmatprep.subr.mxu1 %v13233_v51 }
0x2ce4   :  { %11299 = vmatpush3.msra.mxu1 %v13233_v51 }
0x2ce5   :  { %11300 = vmatprep.subr.mxu1 %v13237_v53 }
0x2ce6   :  { %11301 = vmatpush3.msra.mxu1 %v13237_v53 }
0x2ce7   :  { %11302 = vmatprep.subr.mxu1 %v13241_v6 }
0x2ce8   :  { %11303 = vmatpush3.msra.mxu1 %v13241_v6 }
0x2ce9   :  { %11304 = vmatprep.subr.mxu1 %v13245_v18 }
0x2cea   :  { %11305 = vmatpush3.msra.mxu1 %v13245_v18 }
0x2ceb   :  { %v7888_v42 = vpop.xlane.xlu1 %7887  ;;  %11306 = vmatprep.subr.mxu1 %v13249_v52 }
0x2cec   :  { %v7894_v61 = vmul.f32 0.03125, %v7888_v42  ;;  %11307 = vmatpush3.msra.mxu1 %v13249_v52 }
0x2ced   :  { %v7886_v0 = vpop.xlane.xlu0 %7885  ;;  %11308 = vmatprep.subr.mxu1 %v13253_v54 }
0x2cee   :  { %v7893_v51 = vmul.f32 0.03125, %v7886_v0  ;;  %11309 = vmatpush3.msra.mxu1 %v13253_v54  ;;  %v7914_v6 = vmul.f32 %v7894_v61, %v7894_v61 }
0x2cef   :  { %v7904_v53 = vpop.xlane.xlu1 %7903  ;;  %11310 = vmatprep.subr.mxu1 %v13257_v32 }
0x2cf0   :  { %v7910_v7 = vmul.f32 0.03125, %v7904_v53  ;;  %11311 = vmatpush3.msra.mxu1 %v13257_v32  ;;  %v7913_v12 = vmul.f32 %v7893_v51, %v7893_v51  ;;  %v7922_v32 = vsub.f32 %v13319_v14, %v7894_v61 }
0x2cf1   :  { %v7902_v18 = vpop.xlane.xlu0 %7901  ;;  %11312 = vmatprep.subr.mxu1 %v13261_v10 }
0x2cf2   :  { %v7918_v3 = vsub.f32 %v7910_v7, %v7914_v6  ;;  %v7909_v34 = vmul.f32 0.03125, %v7902_v18  ;;  %11313 = vmatpush3.msra.mxu1 %v13261_v10 }
0x2cf3   :  { %11314 = vmatprep.subr.mxu1 %v13265_v21 }
0x2cf4   :  { %v7926_v52 = vadd.f32 1e-05, %v7918_v3  ;;  %v7917_v37 = vsub.f32 %v7909_v34, %v7913_v12  ;;  %11315 = vmatpush3.msra.mxu1 %v13265_v21  ;;  %v7921_v21 = vsub.f32 %v13323_v49, %v7893_v51 }
0x2cf5   :  { %11316 = vmatprep.subr.mxu1 %v13269_v59 }
0x2cf6   :  { %11630 = vrsqrt.f32 %v7926_v52  ;;  %v7925_v54 = vadd.f32 1e-05, %v7917_v37  ;;  %11317 = vmatpush3.msra.mxu1 %v13269_v59  ;;  %v13368_v59 = vld [vmem:[#allocation15 + $0x1] ss:$0 sm:$0xff] }
0x2cf7   :  { %11318 = vmatprep.subr.mxu1 %v13273_v1 }
0x2cf8   :  { %11632 = vrsqrt.f32 %v7925_v54  ;;  %11319 = vmatpush3.msra.mxu1 %v13273_v1 }
0x2cf9   :  { %11320 = vmatprep.subr.mxu1 %v13277_v60 }
0x2cfa   :  { %11321 = vmatpush3.msra.mxu1 %v13277_v60 }
0x2cfb   :  { %11322 = vmatprep.subr.mxu1 %v13293_v39 }
0x2cfc   :  { %11323 = vmatpush3.msra.mxu1 %v13293_v39 }
0x2cfd   :  { %11324 = vmatprep.subr.mxu1 %v13297_v22 }
0x2cfe   :  { %11325 = vmatpush3.msra.mxu1 %v13297_v22 }
0x2cff   :  { %11367 = vmatprep.subr.mxu1 %v8119_v13 }
0x2d03   :  { %v11631_v10 = vpop.eup %11630 }
0x2d04   :  { %v7934_v1 = vmul.f32 %v11631_v10, %v7922_v32 }
0x2d05   :  { %v11633_v62 = vpop.eup %11632 }
0x2d06   :  { %v7933_v17 = vmul.f32 %v11633_v62, %v7921_v21  ;;  %v7944_v60 = vmul.f32 %v13368_v59, %v7934_v1  ;;  %v8309_v62 = vld [vmem:[#allocation27 + $0x70] sm:$0xff] }
0x2d08   :  { %v7943_v39 = vmul.f32 %v13368_v59, %v7933_v17  ;;  %v7954_v22 = vadd.f32 %v13371_v19, %v7944_v60  ;;  %v8306_v17 = vld [vmem:[#allocation27 + $0x58] sm:$0xff]  ;;  %v8305_v60 = vld [vmem:[#allocation27 + $0x50] sm:$0xff] }
0x2d0a   :  { %v7953_v41 = vadd.f32 %v13371_v19, %v7943_v39  ;;  %v8304_v39 = vld [vmem:[#allocation27 + $0x48] sm:$0xff] }
0x2d0c   :  { %11361 = vmatprep.mubr.f32.mxu0 %v7953_v41  ;;  %v8303_v41 = vld [vmem:[#allocation27 + $0x40] sm:$0xff] }
0x2d0d   :  { %11362 = vmatmul.mubr.f32.vlgmr.msra.gmra.mxu0 %v7954_v22 }
0x2d9f   :  { %v11293_v35 = vpop.f32.mrf.mxu1 }
0x2da1   :  { %v7779_v46 = vpop.f32.mrf.mxu1 }
0x2da2   :  { %11326 = vmatprep.mubr.f32.mxu1 %v7779_v46 }
0x2da3   :  { %11327 = vmatmul.mubr.f32.vlgmr.msra.gmra.mxu1 %v11293_v35 }
0x2da4   :  { %11368 = vmatpush3.msra.mxu1 %v8119_v13  ;;  %v13396_v13 = vld [vmem:[#allocation22 + $0x1] ss:$0 sm:$0xff] }
0x2da5   :  { %11369 = vmatprep.subr.mxu1 %v8118_v15 }
0x2da6   :  { %11370 = vmatpush3.msra.mxu1 %v8118_v15 }
0x2da7   :  { %11371 = vmatprep.subr.mxu1 %v8117_v40 }
0x2da8   :  { %11372 = vmatpush3.msra.mxu1 %v8117_v40 }
0x2da9   :  { %11373 = vmatprep.subr.mxu1 %v8116_v5 }
0x2daa   :  { %11374 = vmatpush3.msra.mxu1 %v8116_v5 }
0x2dab   :  { %11375 = vmatprep.subr.mxu1 %v8115_v33 }
0x2dac   :  { %11376 = vmatpush3.msra.mxu1 %v8115_v33 }
0x2dad   :  { %11377 = vmatprep.subr.mxu1 %v8114_v4 }
0x2dae   :  { %11378 = vmatpush3.msra.mxu1 %v8114_v4  ;;  %v8302_v4 = vld [vmem:[#allocation27 + $0x38] sm:$0xff] }
0x2daf   :  { %11379 = vmatprep.subr.mxu1 %v8113_v16 }
0x2db0   :  { %11380 = vmatpush3.msra.mxu1 %v8113_v16  ;;  %v8300_v16 = vld [vmem:[#allocation27 + $0x28] sm:$0xff] }
0x2db1   :  { %11381 = vmatprep.subr.mxu1 %v8112_v30 }
0x2db2   :  { %11382 = vmatpush3.msra.mxu1 %v8112_v30  ;;  %v8299_v30 = vld [vmem:[#allocation27 + $0x20] sm:$0xff] }
0x2db3   :  { %11383 = vmatprep.subr.mxu1 %v8111_v29 }
0x2db4   :  { %11384 = vmatpush3.msra.mxu1 %v8111_v29  ;;  %v8298_v29 = vld [vmem:[#allocation27 + $0x18] sm:$0xff] }
0x2db5   :  { %11385 = vmatprep.subr.mxu1 %v8110_v2 }
0x2db6   :  { %11386 = vmatpush3.msra.mxu1 %v8110_v2  ;;  %v8297_v2 = vld [vmem:[#allocation27 + $0x10] sm:$0xff] }
0x2db7   :  { %11387 = vmatprep.subr.mxu1 %v8109_v55 }
0x2db8   :  { %11388 = vmatpush3.msra.mxu1 %v8109_v55  ;;  %v8296_v55 = vld [vmem:[#allocation27 + $0x8] sm:$0xff] }
0x2db9   :  { %11389 = vmatprep.subr.mxu1 %v8108_v44 }
0x2dba   :  { %11390 = vmatpush3.msra.mxu1 %v8108_v44  ;;  %v8295_v44 = vld [vmem:[#allocation27] sm:$0xff] }
0x2dbb   :  { %11391 = vmatprep.subr.mxu1 %v8107_v63 }
0x2dbc   :  { %11392 = vmatpush3.msra.mxu1 %v8107_v63 }
0x2dbd   :  { %11393 = vmatprep.subr.mxu1 %v8106_v38 }
0x2dbe   :  { %11394 = vmatpush3.msra.mxu1 %v8106_v38 }
0x2dbf   :  { %11395 = vmatprep.subr.mxu1 %v8105_v50 }
0x2dc0   :  { %11396 = vmatpush3.msra.mxu1 %v8105_v50 }
0x2dc1   :  { %11397 = vmatprep.subr.mxu1 %v8104_v23 }
0x2dc2   :  { %11398 = vmatpush3.msra.mxu1 %v8104_v23 }
0x2dcd   :  { %v11363_v31 = vpop.f32.mrf.mxu0 }
0x2dce   :  { %v8054_v8 = vadd.f32 %v11363_v31, %v13376_v20 }
0x2dcf   :  { %v8048_v9 = vpop.f32.mrf.mxu0 }
0x2dd0   :  { %v8072_v25 = vmul.f32 %v8054_v8, %v8054_v8  ;;  %v8049_v26 = vadd.f32 %v13376_v20, %v8048_v9  ;;  %v8068_v18 = vmul.f32 0.5, %v8054_v8 }
0x2dd2   :  { %v8076_v11 = vmul.f32 %v8072_v25, %v8054_v8  ;;  %v8071_v45 = vmul.f32 %v8049_v26, %v8049_v26  ;;  %v8067_v6 = vmul.f32 0.5, %v8049_v26 }
0x2dd4   :  { %v8080_v43 = vmul.f32 0.044715, %v8076_v11  ;;  %v8075_v58 = vmul.f32 %v8071_v45, %v8049_v26 }
0x2dd6   :  { %v8084_v27 = vadd.f32 %v8080_v43, %v8054_v8  ;;  %v8079_v56 = vmul.f32 0.044715, %v8075_v58 }
0x2dd8   :  { %v8088_v24 = vmul.f32 0.7978846, %v8084_v27  ;;  %v8083_v42 = vadd.f32 %v8079_v56, %v8049_v26 }
0x2dda   :  { %11634 = vtanh.f32 %v8088_v24  ;;  %v8087_v61 = vmul.f32 0.7978846, %v8083_v42 }
0x2ddc   :  { %11636 = vtanh.f32 %v8087_v61 }
0x2de7   :  { %v11635_v0 = vpop.eup %11634 }
0x2de8   :  { %v8096_v53 = vadd.f32 1.0, %v11635_v0 }
0x2de9   :  { %v11637_v51 = vpop.eup %11636 }
0x2dea   :  { %v8095_v7 = vadd.f32 1.0, %v11637_v51  ;;  %v8100_v3 = vmul.f32 %v8096_v53, %v8068_v18 }
0x2dec   :  { %v8099_v12 = vmul.f32 %v8095_v7, %v8067_v6 }
0x2dee   :  { %11399 = vmatprep.mubr.f32.mxu1 %v8099_v12 }
0x2def   :  { %11400 = vmatmul.mubr.f32.vlgmr.msra.gmra.mxu1 %v8100_v3 }
0x2e63   :  { %v11328_v34 = vpop.f32.mrf.mxu1 }
0x2e64   :  { %v7864_v52 = vadd.f32 %v11328_v34, %v13191_v57 }
0x2e65   :  { %v7854_v37 = vpop.f32.mrf.mxu1 }
0x2e66   :  { %v7868_v54 = vadd.f32 %v7864_v52, %v12866_v47  ;;  %v7863_v32 = vadd.f32 %v7854_v37, %v13195_v28  ;;  %v8310_v28 = vld [vmem:[#allocation27 + $0x78] sm:$0xff] }
0x2e67   :  { %11405 = vmatprep.subr.mxu0 %v8310_v28 }
0x2e68   :  { %v13384_v10 = vadd.f32 %v13314_v48, %v7868_v54  ;;  %v7867_v21 = vadd.f32 %v7863_v32, %v12870_v36  ;;  %11406 = vmatpush3.xpose.msra.mxu0 %v8310_v28  ;;  %v8308_v36 = vld [vmem:[#allocation27 + $0x68] sm:$0xff] }
0x2e69   :  { %11407 = vmatprep.subr.mxu0 %v8309_v62 }
0x2e6a   :  { %v13388_v1 = vadd.f32 %v13314_v48, %v7867_v21  ;;  %7891 = vadd.xlane.f32.xlu1 %v13384_v10  ;;  %v7900_v57 = vmul.f32 %v13384_v10, %v13384_v10  ;;  %v8307_v48 = vld [vmem:[#allocation27 + $0x60] sm:$0xff] }
0x2e6c   :  { %7889 = vadd.xlane.f32.xlu0 %v13388_v1  ;;  %v7899_v47 = vmul.f32 %v13388_v1, %v13388_v1  ;;  %11408 = vmatpush3.xpose.msra.mxu0 %v8309_v62 }
0x2e6d   :  { %11409 = vmatprep.subr.mxu0 %v8308_v36 }
0x2e6e   :  { %7907 = vadd.xlane.f32.xlu1 %v7900_v57 }
0x2e70   :  { %7905 = vadd.xlane.f32.xlu0 %v7899_v47  ;;  %11410 = vmatpush3.xpose.msra.mxu0 %v8308_v36 }
0x2e71   :  { %11411 = vmatprep.subr.mxu0 %v8307_v48 }
0x2e74   :  { %11412 = vmatpush3.xpose.msra.mxu0 %v8307_v48 }
0x2e75   :  { %11413 = vmatprep.subr.mxu0 %v8306_v17 }
0x2e78   :  { %11414 = vmatpush3.xpose.msra.mxu0 %v8306_v17 }
0x2e79   :  { %11415 = vmatprep.subr.mxu0 %v8305_v60 }
0x2e7c   :  { %11416 = vmatpush3.xpose.msra.mxu0 %v8305_v60  ;;  %v13420_v60 = vld [vmem:[#allocation24] ss:$0 sm:$0xff] }
0x2e7d   :  { %11417 = vmatprep.subr.mxu0 %v8304_v39 }
0x2e80   :  { %11418 = vmatpush3.xpose.msra.mxu0 %v8304_v39 }
0x2e81   :  { %11419 = vmatprep.subr.mxu0 %v8303_v41 }
0x2e84   :  { %11420 = vmatpush3.xpose.msra.mxu0 %v8303_v41 }
0x2e85   :  { %11421 = vmatprep.subr.mxu0 %v8302_v4 }
0x2e88   :  { %11422 = vmatpush3.xpose.msra.mxu0 %v8302_v4 }
0x2eaf   :  { %v11401_v22 = vpop.f32.mrf.mxu1 }
0x2eb0   :  { %v8206_v35 = vadd.f32 %v11401_v22, %v13319_v14 }
0x2eb1   :  { %v8186_v46 = vpop.f32.mrf.mxu1 }
0x2eb2   :  { %v13400_v15 = vadd.f32 %v13396_v13, %v8206_v35  ;;  %v8205_v40 = vadd.f32 %v8186_v46, %v13323_v49  ;;  %v8301_v49 = vld [vmem:[#allocation27 + $0x30] sm:$0xff]  ;;  %v13423_v46 = vld [vmem:[#allocation25] ss:$0 sm:$0xff] }
0x2eb3   :  { %11423 = vmatprep.subr.mxu0 %v8301_v49 }
0x2eb4   :  { %v13404_v5 = vadd.f32 %v13396_v13, %v8205_v40  ;;  %8225 = vadd.xlane.f32.xlu1 %v13400_v15  ;;  %v8236_v33 = vmul.f32 %v13400_v15, %v13400_v15  ;;  %11424 = vmatpush3.xpose.msra.mxu0 %v8301_v49 }
0x2eb5   :  { %11425 = vmatprep.subr.mxu0 %v8300_v16 }
0x2eb6   :  { %8223 = vadd.xlane.f32.xlu0 %v13404_v5  ;;  %v8235_v14 = vmul.f32 %v13404_v5, %v13404_v5 }
0x2eb8   :  { %8241 = vadd.xlane.f32.xlu1 %v8236_v33  ;;  %11426 = vmatpush3.xpose.msra.mxu0 %v8300_v16 }
0x2eb9   :  { %11427 = vmatprep.subr.mxu0 %v8299_v30 }
0x2eba   :  { %8239 = vadd.xlane.f32.xlu0 %v8235_v14 }
0x2ebc   :  { %11428 = vmatpush3.xpose.msra.mxu0 %v8299_v30 }
0x2ebd   :  { %11429 = vmatprep.subr.mxu0 %v8298_v29 }
0x2ec0   :  { %11430 = vmatpush3.xpose.msra.mxu0 %v8298_v29 }
0x2ec1   :  { %11431 = vmatprep.subr.mxu0 %v8297_v2 }
0x2ec4   :  { %11432 = vmatpush3.xpose.msra.mxu0 %v8297_v2 }
0x2ec5   :  { %11433 = vmatprep.subr.mxu0 %v8296_v55 }
0x2ec8   :  { %11434 = vmatpush3.xpose.msra.mxu0 %v8296_v55 }
0x2ec9   :  { %11435 = vmatprep.subr.mxu0 %v8295_v44 }
0x2ecc   :  { %11436 = vmatpush3.xpose.msra.mxu0 %v8295_v44 }
0x2ef3   :  { %v7892_v63 = vpop.xlane.xlu1 %7891 }
0x2ef4   :  { %v7896_v38 = vmul.f32 0.03125, %v7892_v63 }
0x2ef5   :  { %v7890_v50 = vpop.xlane.xlu0 %7889 }
0x2ef6   :  { %v7895_v23 = vmul.f32 0.03125, %v7890_v50  ;;  %v7916_v8 = vmul.f32 %v7896_v38, %v7896_v38  ;;  %v7924_v56 = vsub.f32 %v13384_v10, %v7896_v38 }
0x2ef7   :  { %v7908_v31 = vpop.xlane.xlu1 %7907 }
0x2ef8   :  { %v7912_v9 = vmul.f32 0.03125, %v7908_v31  ;;  %v7915_v26 = vmul.f32 %v7895_v23, %v7895_v23  ;;  %v7923_v42 = vsub.f32 %v13388_v1, %v7895_v23 }
0x2ef9   :  { %v7906_v25 = vpop.xlane.xlu0 %7905 }
0x2efa   :  { %v7920_v11 = vsub.f32 %v7912_v9, %v7916_v8  ;;  %v7911_v45 = vmul.f32 0.03125, %v7906_v25 }
0x2efc   :  { %v7928_v43 = vadd.f32 1e-05, %v7920_v11  ;;  %v7919_v58 = vsub.f32 %v7911_v45, %v7915_v26 }
0x2efe   :  { %11638 = vrsqrt.f32 %v7928_v43  ;;  %v7927_v27 = vadd.f32 1e-05, %v7919_v58 }
0x2f00   :  { %11640 = vrsqrt.f32 %v7927_v27 }
0x2f0b   :  { %v11639_v24 = vpop.eup %11638 }
0x2f0c   :  { %v7936_v61 = vmul.f32 %v11639_v24, %v7924_v56 }
0x2f0d   :  { %v11641_v0 = vpop.eup %11640 }
0x2f0e   :  { %v7935_v51 = vmul.f32 %v11641_v0, %v7923_v42  ;;  %v7946_v53 = vmul.f32 %v13368_v59, %v7936_v61 }
0x2f10   :  { %v7945_v6 = vmul.f32 %v13368_v59, %v7935_v51  ;;  %v7956_v18 = vadd.f32 %v13371_v19, %v7946_v53 }
0x2f12   :  { %v7955_v7 = vadd.f32 %v13371_v19, %v7945_v6 }
0x2f14   :  { %11364 = vmatprep.mubr.f32.mxu0 %v7955_v7 }
0x2f15   :  { %11365 = vmatmul.mubr.f32.gmra.mxu0 %v7956_v18 }
0x2f3d   :  { %v8226_v12 = vpop.xlane.xlu1 %8225 }
0x2f3e   :  { %v8232_v3 = vmul.f32 0.03125, %v8226_v12 }
0x2f3f   :  { %v8224_v34 = vpop.xlane.xlu0 %8223 }
0x2f40   :  { %v8231_v52 = vmul.f32 0.03125, %v8224_v34  ;;  %v8252_v54 = vmul.f32 %v8232_v3, %v8232_v3  ;;  %v8260_v19 = vsub.f32 %v13400_v15, %v8232_v3 }
0x2f41   :  { %v8242_v37 = vpop.xlane.xlu1 %8241 }
0x2f42   :  { %v8248_v32 = vmul.f32 0.03125, %v8242_v37  ;;  %v8251_v57 = vmul.f32 %v8231_v52, %v8231_v52  ;;  %v8259_v17 = vsub.f32 %v13404_v5, %v8231_v52 }
0x2f43   :  { %v8240_v21 = vpop.xlane.xlu0 %8239 }
0x2f44   :  { %v8256_v47 = vsub.f32 %v8248_v32, %v8252_v54  ;;  %v8247_v28 = vmul.f32 0.03125, %v8240_v21 }
0x2f46   :  { %v8264_v62 = vadd.f32 1e-05, %v8256_v47  ;;  %v8255_v36 = vsub.f32 %v8247_v28, %v8251_v57 }
0x2f48   :  { %11642 = vrsqrt.f32 %v8264_v62  ;;  %v8263_v59 = vadd.f32 1e-05, %v8255_v36 }
0x2f4a   :  { %11644 = vrsqrt.f32 %v8263_v59 }
0x2f55   :  { %v11643_v48 = vpop.eup %11642 }
0x2f56   :  { %v8272_v39 = vmul.f32 %v11643_v48, %v8260_v19 }
0x2f57   :  { %v11645_v41 = vpop.eup %11644 }
0x2f58   :  { %v8271_v22 = vmul.f32 %v11645_v41, %v8259_v17  ;;  %v8282_v35 = vmul.f32 %v13420_v60, %v8272_v39 }
0x2f5a   :  { %v8281_v40 = vmul.f32 %v13420_v60, %v8271_v22  ;;  %v8292_v14 = vadd.f32 %v13423_v46, %v8282_v35 }
0x2f5c   :  { %v8291_v33 = vadd.f32 %v13423_v46, %v8281_v40 }
0x2f5e   :  { %11437 = vmatprep.mubr.f32.mxu0 %v8291_v33 }
0x2f5f   :  { %11438 = vmatmul.mubr.f32.vlgmr.msra.gmra.mxu0 %v8292_v14 }
0x2fd5   :  { %v11366_v15 = vpop.f32.mrf.mxu0 }
0x2fd6   :  { %v8064_v5 = vadd.f32 %v11366_v15, %v13376_v20 }
0x2fd7   :  { %v8058_v4 = vpop.f32.mrf.mxu0 }
0x2fd8   :  { %v8074_v49 = vmul.f32 %v8064_v5, %v8064_v5  ;;  %v8059_v16 = vadd.f32 %v13376_v20, %v8058_v4  ;;  %v8070_v11 = vmul.f32 0.5, %v8064_v5 }
0x2fda   :  { %v8078_v30 = vmul.f32 %v8074_v49, %v8064_v5  ;;  %v8073_v29 = vmul.f32 %v8059_v16, %v8059_v16  ;;  %v8069_v25 = vmul.f32 0.5, %v8059_v16 }
0x2fdc   :  { %v8082_v2 = vmul.f32 0.044715, %v8078_v30  ;;  %v8077_v55 = vmul.f32 %v8073_v29, %v8059_v16 }
0x2fde   :  { %v8086_v44 = vadd.f32 %v8082_v2, %v8064_v5  ;;  %v8081_v63 = vmul.f32 0.044715, %v8077_v55 }
0x2fe0   :  { %v8090_v38 = vmul.f32 0.7978846, %v8086_v44  ;;  %v8085_v50 = vadd.f32 %v8081_v63, %v8059_v16 }
0x2fe2   :  { %v8089_v23 = vmul.f32 0.7978846, %v8085_v50  ;;  %11646 = vtanh.f32 %v8090_v38 }
0x2fe4   :  { %11648 = vtanh.f32 %v8089_v23 }
0x2fef   :  { %v11647_v31 = vpop.eup %11646 }
0x2ff0   :  { %v8098_v9 = vadd.f32 1.0, %v11647_v31 }
0x2ff1   :  { %v11649_v8 = vpop.eup %11648 }
0x2ff2   :  { %v8097_v26 = vadd.f32 1.0, %v11649_v8  ;;  %v8102_v43 = vmul.f32 %v8098_v9, %v8070_v11 }
0x2ff4   :  { %v8101_v45 = vmul.f32 %v8097_v26, %v8069_v25 }
0x2ff6   :  { %11402 = vmatprep.mubr.f32.mxu1 %v8101_v45 }
0x2ff7   :  { %11403 = vmatmul.mubr.f32.gmra.mxu1 %v8102_v43 }
0x301f   :  { %v11439_v20 = vpop.f32.mrf.mxu0 }
0x3020   :  { %8397 = vst [vmem:[%s13470_s20 + $0x8] sm:$0xff] %v11439_v20 }
0x3021   :  { %v8377_v58 = vpop.f32.mrf.mxu0 }
0x3022   :  { %8396 = vst [vmem:[%s13470_s20] sm:$0xff] %v8377_v58 }
0x30b7   :  { %v11404_v27 = vpop.f32.mrf.mxu1 }
0x30b8   :  { %v8208_v56 = vadd.f32 %v11404_v27, %v13384_v10 }
0x30b9   :  { %v8196_v24 = vpop.f32.mrf.mxu1 }
0x30ba   :  { %v8220_v42 = vadd.f32 %v13396_v13, %v8208_v56  ;;  %v8207_v61 = vadd.f32 %v8196_v24, %v13388_v1 }
0x30bc   :  { %v8219_v0 = vadd.f32 %v13396_v13, %v8207_v61  ;;  %8229 = vadd.xlane.f32.xlu1 %v8220_v42  ;;  %v8238_v51 = vmul.f32 %v8220_v42, %v8220_v42 }
0x30be   :  { %8227 = vadd.xlane.f32.xlu0 %v8219_v0  ;;  %v8237_v53 = vmul.f32 %v8219_v0, %v8219_v0 }
0x30c0   :  { %8245 = vadd.xlane.f32.xlu1 %v8238_v51 }
0x30c2   :  { %8243 = vadd.xlane.f32.xlu0 %v8237_v53 }
0x3145   :  { %v8230_v6 = vpop.xlane.xlu1 %8229 }
0x3146   :  { %v8234_v7 = vmul.f32 0.03125, %v8230_v6 }
0x3147   :  { %v8228_v18 = vpop.xlane.xlu0 %8227 }
0x3148   :  { %v8233_v12 = vmul.f32 0.03125, %v8228_v18  ;;  %v8254_v34 = vmul.f32 %v8234_v7, %v8234_v7  ;;  %v8262_v57 = vsub.f32 %v8220_v42, %v8234_v7 }
0x3149   :  { %v8246_v3 = vpop.xlane.xlu1 %8245 }
0x314a   :  { %v8250_v10 = vmul.f32 0.03125, %v8246_v3  ;;  %v8253_v37 = vmul.f32 %v8233_v12, %v8233_v12  ;;  %v8261_v28 = vsub.f32 %v8219_v0, %v8233_v12 }
0x314b   :  { %v8244_v52 = vpop.xlane.xlu0 %8243 }
0x314c   :  { %v8258_v54 = vsub.f32 %v8250_v10, %v8254_v34  ;;  %v8249_v32 = vmul.f32 0.03125, %v8244_v52 }
0x314e   :  { %v8266_v1 = vadd.f32 1e-05, %v8258_v54  ;;  %v8257_v21 = vsub.f32 %v8249_v32, %v8253_v37 }
0x3150   :  { %11650 = vrsqrt.f32 %v8266_v1  ;;  %v8265_v13 = vadd.f32 1e-05, %v8257_v21 }
0x3152   :  { %11652 = vrsqrt.f32 %v8265_v13 }
0x315d   :  { %v11651_v47 = vpop.eup %11650 }
0x315e   :  { %v8274_v62 = vmul.f32 %v11651_v47, %v8262_v57 }
0x315f   :  { %v11653_v36 = vpop.eup %11652 }
0x3160   :  { %v8273_v59 = vmul.f32 %v11653_v36, %v8261_v28  ;;  %v8284_v19 = vmul.f32 %v13420_v60, %v8274_v62 }
0x3162   :  { %v8283_v48 = vmul.f32 %v13420_v60, %v8273_v59  ;;  %v8294_v39 = vadd.f32 %v13423_v46, %v8284_v19 }
0x3164   :  { %v8293_v17 = vadd.f32 %v13423_v46, %v8283_v48 }
0x3166   :  { %11440 = vmatprep.mubr.f32.mxu0 %v8293_v17 }
0x3167   :  { %11441 = vmatmul.mubr.f32.gmra.mxu0 %v8294_v39 }
0x3227   :  { %v11442_v41 = vpop.f32.mrf.mxu0 }
0x3228   :  { %8399 = vst [vmem:[%s13470_s20 + $0x18] sm:$0xff] %v11442_v41 }
0x3229   :  { %v8387_v22 = vpop.f32.mrf.mxu0 }
0x322a   :  { %8398 = vst [vmem:[%s13470_s20 + $0x10] sm:$0xff] %v8387_v22 }
0x322b   :  { %8404 = vsyncpa [#allocation3], 1 }
0x322c   :  { %8405 = vsyncpa [#allocation5], 1 }
0x322d   :  { %8406 = vsyncpa [#allocation8], 1 }
0x322e   :  { %8407 = vsyncpa [#allocation11], 1 }
0x322f   :  { %8408 = vsyncpa [#allocation14], 1 }
0x3230   :  { %8409 = vsyncpa [#allocation17], 1 }
0x3231   :  { %8410 = vsyncpa [#allocation20], 1 }
0x3232   :  { %8411 = vsyncpa [#allocation23], 1 }
0x3233   :  { %8412 = vsyncpa [#allocation26], 1 }

</bundles_post_ra>
